<compile_context>
chip_gen: v7x
topology: tpu7x:2x2x1
jax: 0.10.0
libtpu: 0.0.40
codegen_flags: <defaults>
</compile_context>

<pallas_src>
import jax
import jax.numpy as jnp
from jax.experimental import pallas as pl
from jax.experimental.pallas import tpu as pltpu


def _ceil_to(x, m):
    return ((x + m - 1) // m) * m


_VMEM_LIMIT_BYTES = 48 * 1024 * 1024          # safe on v7x (64 MiB) and v5e/v6e (128 MiB)
_RESIDENT_BUDGET = 24 * 1024 * 1024           # VMEM budget for the full-K/full-N path


def _compiler_params(sem):
    return pltpu.CompilerParams(dimension_semantics=sem,
                                vmem_limit_bytes=_VMEM_LIMIT_BYTES)


# ------------------------------------------------------------------ Pallas kernels


def _mm_kernel(a_ref, b_ref, o_ref):
    # full-K / full-N: one MXU pass per M tile, weight block is VMEM-resident.
    o_ref[...] = jnp.dot(a_ref[...], b_ref[...], preferred_element_type=jnp.float32)


def _mm_stats_kernel(a_ref, b_ref, o_ref, s_ref, q_ref):
    # matmul + fused per-column sum / sum-of-squares (BatchNorm statistics epilogue).
    y = jnp.dot(a_ref[...], b_ref[...], preferred_element_type=jnp.float32)
    o_ref[...] = y

    @pl.when(pl.program_id(0) == 0)
    def _():
        s_ref[...] = jnp.zeros_like(s_ref)
        q_ref[...] = jnp.zeros_like(q_ref)

    s_ref[...] += jnp.sum(y, axis=0, keepdims=True)
    q_ref[...] += jnp.sum(y * y, axis=0, keepdims=True)


def _mm_tiled_kernel(a_ref, b_ref, o_ref):
    # fallback for weights too large to hold in VMEM: accumulate directly into o_ref.
    @pl.when(pl.program_id(2) == 0)
    def _():
        o_ref[...] = jnp.zeros_like(o_ref)

    o_ref[...] += jnp.dot(a_ref[...], b_ref[...], preferred_element_type=jnp.float32)


def _colstats_kernel(x_ref, s_ref, q_ref):
    @pl.when(pl.program_id(0) == 0)
    def _():
        s_ref[...] = jnp.zeros_like(s_ref)
        q_ref[...] = jnp.zeros_like(q_ref)

    x = x_ref[...]
    s_ref[...] += jnp.sum(x, axis=0, keepdims=True)
    q_ref[...] += jnp.sum(x * x, axis=0, keepdims=True)


def _bn_relu_kernel(x_ref, mean_ref, invstd_ref, o_ref):
    o_ref[...] = jnp.maximum((x_ref[...] - mean_ref[...]) * invstd_ref[...], 0.0)


def _sigmoid_mul_kernel(y_ref, x_ref, o_ref):
    # o = x * sigmoid(y)   (fused fc7 Sigmoid and the final `x * mask`)
    o_ref[...] = x_ref[...] * (1.0 / (1.0 + jnp.exp(-y_ref[...])))


# ------------------------------------------------------------------ Pallas wrappers


def _pad_rows(a, tm):
    M = a.shape[0]
    Mp = _ceil_to(M, tm)
    if Mp != M:
        a = jnp.pad(a, ((0, Mp - M), (0, 0)))
    return a, Mp


def _pick_tm(M):
    return min(256, _ceil_to(M, 8))


def _fits_resident(tm, K, N):
    need = (K * N * 2                 # bf16 weight (resident)
            + 2 * tm * K * 2          # double-buffered bf16 A tile
            + 2 * tm * N * 4          # double-buffered f32 output tile
            + 4 * N * 4)              # stats
    return need <= _RESIDENT_BUDGET


def _mm_resident(a, b):
    """(M,K)bf16 @ (K,N)bf16, f32 out. Full-K / full-N blocks, grid only over M."""
    M, K = a.shape
    _, N = b.shape
    tm = _pick_tm(M)
    a, Mp = _pad_rows(a, tm)
    y = pl.pallas_call(
        _mm_kernel,
        out_shape=jax.ShapeDtypeStruct((Mp, N), jnp.float32),
        grid_spec=pltpu.PrefetchScalarGridSpec(
            num_scalar_prefetch=0,
            grid=(Mp // tm,),
            in_specs=[pl.BlockSpec((tm, K), lambda i: (i, 0)),
                      pl.BlockSpec((K, N), lambda i: (0, 0))],
            out_specs=pl.BlockSpec((tm, N), lambda i: (i, 0))),
        compiler_params=_compiler_params(("parallel",)),
    )(a, b)
    return y[:M]


def _mm_stats_resident(a, b):
    """Matmul with fused column sum / sum-of-squares. Returns (y_padded, sum, sq)."""
    M, K = a.shape
    _, N = b.shape
    tm = _pick_tm(M)
    a, Mp = _pad_rows(a, tm)                 # padded rows are zero -> stats unaffected
    y, s, q = pl.pallas_call(
        _mm_stats_kernel,
        out_shape=(jax.ShapeDtypeStruct((Mp, N), jnp.float32),
                   jax.ShapeDtypeStruct((1, N), jnp.float32),
                   jax.ShapeDtypeStruct((1, N), jnp.float32)),
        grid_spec=pltpu.PrefetchScalarGridSpec(
            num_scalar_prefetch=0,
            grid=(Mp // tm,),
            in_specs=[pl.BlockSpec((tm, K), lambda i: (i, 0)),
                      pl.BlockSpec((K, N), lambda i: (0, 0))],
            out_specs=[pl.BlockSpec((tm, N), lambda i: (i, 0)),
                       pl.BlockSpec((1, N), lambda i: (0, 0)),
                       pl.BlockSpec((1, N), lambda i: (0, 0))]),
        compiler_params=_compiler_params(("arbitrary",)),   # stats block revisited over M
    )(a, b)
    return y, s, q


def _mm_tiled(a, b):
    """Fallback for weights that do not fit VMEM (not used at the test sizes)."""
    M, K = a.shape
    _, N = b.shape
    tm = _pick_tm(M)
    tn = min(512, _ceil_to(N, 128))
    tk = K if K <= 2048 else 512
    Mp, Np, Kp = _ceil_to(M, tm), _ceil_to(N, tn), _ceil_to(K, tk)
    a = jnp.pad(a, ((0, Mp - M), (0, Kp - K)))
    b = jnp.pad(b, ((0, Kp - K), (0, Np - N)))
    out = pl.pallas_call(
        _mm_tiled_kernel,
        out_shape=jax.ShapeDtypeStruct((Mp, Np), jnp.float32),
        grid_spec=pltpu.PrefetchScalarGridSpec(
            num_scalar_prefetch=0,
            grid=(Mp // tm, Np // tn, Kp // tk),
            in_specs=[pl.BlockSpec((tm, tk), lambda i, j, k: (i, k)),
                      pl.BlockSpec((tk, tn), lambda i, j, k: (k, j))],
            out_specs=pl.BlockSpec((tm, tn), lambda i, j, k: (i, j))),
        compiler_params=_compiler_params(("parallel", "parallel", "arbitrary")),
    )(a, b)
    return out[:M, :N]


def _colstats(y):
    R, N = y.shape
    tr = min(512, _ceil_to(R, 8))
    Rp = _ceil_to(R, tr)
    if Rp != R:
        y = jnp.pad(y, ((0, Rp - R), (0, 0)))
    s, q = pl.pallas_call(
        _colstats_kernel,
        out_shape=(jax.ShapeDtypeStruct((1, N), jnp.float32),
                   jax.ShapeDtypeStruct((1, N), jnp.float32)),
        grid_spec=pltpu.PrefetchScalarGridSpec(
            num_scalar_prefetch=0,
            grid=(Rp // tr,),
            in_specs=[pl.BlockSpec((tr, N), lambda i: (i, 0))],
            out_specs=[pl.BlockSpec((1, N), lambda i: (0, 0)),
                       pl.BlockSpec((1, N), lambda i: (0, 0))]),
        compiler_params=_compiler_params(("arbitrary",)),
    )(y)
    return s, q


def _bn_relu(y, mean, invstd):
    R, N = y.shape
    tr = min(512, _ceil_to(R, 8))
    Rp = _ceil_to(R, tr)
    if Rp != R:
        y = jnp.pad(y, ((0, Rp - R), (0, 0)))
    out = pl.pallas_call(
        _bn_relu_kernel,
        out_shape=jax.ShapeDtypeStruct((Rp, N), jnp.float32),
        grid_spec=pltpu.PrefetchScalarGridSpec(
            num_scalar_prefetch=0,
            grid=(Rp // tr,),
            in_specs=[pl.BlockSpec((tr, N), lambda i: (i, 0)),
                      pl.BlockSpec((1, N), lambda i: (0, 0)),
                      pl.BlockSpec((1, N), lambda i: (0, 0))],
            out_specs=pl.BlockSpec((tr, N), lambda i: (i, 0))),
        compiler_params=_compiler_params(("parallel",)),
    )(y, mean, invstd)
    return out


def pallas_matmul(a, b):
    """(M,K) @ (K,N) -> (M,N) f32, bf16 operands, f32 MXU accumulation."""
    a = a.astype(jnp.bfloat16)
    b = b.astype(jnp.bfloat16)
    M, K = a.shape
    _, N = b.shape
    if _fits_resident(_pick_tm(M), K, N):
        return _mm_resident(a, b)
    return _mm_tiled(a, b)


def pallas_matmul_bn_relu(a, b, eps=1e-5):
    """(a @ b) -> training-mode BatchNorm (batch stats, gamma=1, beta=0) -> ReLU."""
    M = a.shape[0]
    a = a.astype(jnp.bfloat16)
    b = b.astype(jnp.bfloat16)
    K, N = b.shape
    if _fits_resident(_pick_tm(M), K, N):
        y, s, q = _mm_stats_resident(a, b)          # stats fused into matmul epilogue
    else:
        y = _mm_tiled(a, b)
        s, q = _colstats(y)
    mean = s / M
    var = jnp.maximum(q / M - mean * mean, 0.0)     # biased variance (PyTorch train mode)
    invstd = 1.0 / jnp.sqrt(var + eps)
    out = _bn_relu(y, mean, invstd)
    return out[:M]


def pallas_sigmoid_mul(logits, x):
    R, N = logits.shape
    tr = min(512, _ceil_to(R, 8))
    Rp = _ceil_to(R, tr)
    pad = ((0, Rp - R), (0, 0))
    out = pl.pallas_call(
        _sigmoid_mul_kernel,
        out_shape=jax.ShapeDtypeStruct((Rp, N), jnp.float32),
        grid_spec=pltpu.PrefetchScalarGridSpec(
            num_scalar_prefetch=0,
            grid=(Rp // tr,),
            in_specs=[pl.BlockSpec((tr, N), lambda i: (i, 0)),
                      pl.BlockSpec((tr, N), lambda i: (i, 0))],
            out_specs=pl.BlockSpec((tr, N), lambda i: (i, 0))),
        compiler_params=_compiler_params(("parallel",)),
    )(jnp.pad(logits, pad), jnp.pad(x, pad))
    return out[:R]


# ------------------------------------------------ conv glue (slicing only; MACs in Pallas)


def _im2col(x, kh, kw, stride, pt, pb, pleft, pright):
    x = jnp.pad(x, ((0, 0), (pt, pb), (pleft, pright), (0, 0)))
    N, H, W, C = x.shape
    Ho = (H - kh) // stride + 1
    Wo = (W - kw) // stride + 1
    cols = []
    for dy in range(kh):
        for dx in range(kw):
            cols.append(x[:, dy:dy + Ho * stride:stride,
                          dx:dx + Wo * stride:stride, :])
    col = jnp.concatenate(cols, axis=-1)           # (N,Ho,Wo,kh*kw*C), (dy,dx,c) order
    return col.reshape(N * Ho * Wo, kh * kw * C), (N, Ho, Wo)


def _dilate(x, s):
    N, H, W, C = x.shape
    out = jnp.zeros((N, (H - 1) * s + 1, (W - 1) * s + 1, C), x.dtype)
    return out.at[:, ::s, ::s, :].set(x)


def conv_bn_relu(x_nhwc, wmat, cout, stride):
    # Conv2d(k=3, pad=1, bias=False) + BatchNorm2d + ReLU ; weight pre-packed (9*Cin,Cout)
    # TODO(synk): fuse im2col into the matmul (implicit GEMM) to avoid materializing col.
    col, (N, Ho, Wo) = _im2col(x_nhwc.astype(jnp.bfloat16), 3, 3, stride, 1, 1, 1, 1)
    y = pallas_matmul_bn_relu(col, wmat)
    return y.reshape(N, Ho, Wo, cout)


def deconv_bn_relu(x_nhwc, wmat, cout):
    # ConvTranspose2d(k=3, s=2, p=1, output_padding=1, bias=False) + BN + ReLU via
    # zero-dilation + asymmetric pad + ordinary conv with pre-flipped/pre-packed weight.
    # TODO(synk): split into 4 stride-2 phase sub-convolutions to skip the zero taps.
    xd = _dilate(x_nhwc.astype(jnp.bfloat16), 2)
    col, (N, Ho, Wo) = _im2col(xd, 3, 3, 1, 1, 2, 1, 2)
    y = pallas_matmul_bn_relu(col, wmat)
    return y.reshape(N, Ho, Wo, cout)


# ------------------------------------------------------------------ config / parameters


def make_config(nz=8, base=4, H0=33, W0=6, fc_hidden=64):
    # Original module corresponds to nz=nz, base=32, H0=513, W0=22, fc_hidden=1024.
    def down(h):                       # Conv2d k=3, stride=2, pad=1
        return (h + 2 - 3) // 2 + 1
    enc_ch = [1, base, 2 * base, 4 * base, 8 * base, 16 * base]
    H, W = [H0], [W0]
    for _ in range(4):
        H.append(down(H[-1]))
        W.append(down(W[-1]))
    dec_H, dec_W = H[-1] * 16, W[-1] * 16          # four 2x upsamples in the decoder
    return dict(nz=nz, fc_hidden=fc_hidden, enc_ch=enc_ch, H=H, W=W, H0=H0, W0=W0,
                feat=enc_ch[-1] * H[-1] * W[-1],
                dec_flat=dec_H * dec_W,
                out_dim=H0 * W0)


def _conv_wmat(key, cout, cin, fan_in):
    # PyTorch Conv2d weight (Cout,Cin,3,3) -> (9*Cin, Cout) matrix, bf16, at init.
    w = jax.random.normal(key, (cout, cin, 3, 3), jnp.float32) / jnp.sqrt(fan_in)
    return jnp.transpose(w, (2, 3, 1, 0)).reshape(9 * cin, cout).astype(jnp.bfloat16)


def _deconv_wmat(key, cin, cout, fan_in):
    # PyTorch ConvTranspose2d weight (Cin,Cout,3,3): flip spatially, swap channel axes,
    # then pack as (9*Cin, Cout) matrix for the equivalent forward convolution.
    w = jax.random.normal(key, (cin, cout, 3, 3), jnp.float32) / jnp.sqrt(fan_in)
    w_conv = jnp.transpose(jnp.flip(w, axis=(2, 3)), (1, 0, 2, 3))   # (Cout,Cin,3,3)
    return jnp.transpose(w_conv, (2, 3, 1, 0)).reshape(9 * cin, cout).astype(jnp.bfloat16)


def _fc_wmat(key, din, dout):
    w = jax.random.normal(key, (din, dout), jnp.float32) / jnp.sqrt(din)
    return w.astype(jnp.bfloat16)


def init_params(key, cfg):
    ks = jax.random.split(key, 16)
    ch = cfg["enc_ch"]
    p = {}
    # Encoder
    for i in range(5):
        p[f"enc_conv{i + 1}"] = _conv_wmat(ks[i], ch[i + 1], ch[i], ch[i] * 9.0)
    p["fc6"] = _fc_wmat(ks[5], cfg["feat"], cfg["fc_hidden"])
    p["mu"] = _fc_wmat(ks[6], cfg["fc_hidden"], cfg["nz"])
    p["logvar"] = _fc_wmat(ks[7], cfg["fc_hidden"], cfg["nz"])
    # Decoder
    p["fc1"] = _fc_wmat(ks[8], cfg["nz"], cfg["feat"])
    dc = ch[::-1]                                   # [16b, 8b, 4b, 2b, b, 1]
    for i in range(4):
        p[f"deconv{i + 2}"] = _deconv_wmat(ks[9 + i], dc[i], dc[i + 1], dc[i] * 9.0)
    p["conv6"] = _conv_wmat(ks[13], 1, ch[1], ch[1] * 9.0)
    p["fc7"] = _fc_wmat(ks[14], cfg["dec_flat"], cfg["out_dim"])
    return p


# ------------------------------------------------------------------ forward


def generator_forward(params, cfg, x, eps_key):
    B = x.shape[0]
    ch = cfg["enc_ch"]
    x_in = jnp.log1p(x)

    # ---------------- Encoder ----------------
    h = x_in.reshape(B, cfg["H0"], cfg["W0"], 1)                  # NHWC view of (B,1,H,W)
    h = conv_bn_relu(h, params["enc_conv1"], ch[1], stride=1)
    h = conv_bn_relu(h, params["enc_conv2"], ch[2], stride=2)
    h = conv_bn_relu(h, params["enc_conv3"], ch[3], stride=2)
    h = conv_bn_relu(h, params["enc_conv4"], ch[4], stride=2)
    h = conv_bn_relu(h, params["enc_conv5"], ch[5], stride=2)
    flat = jnp.transpose(h, (0, 3, 1, 2)).reshape(B, -1)          # NCHW flatten order

    h6 = pallas_matmul_bn_relu(flat, params["fc6"])               # (B, fc_hidden)
    mu = pallas_matmul(h6, params["mu"])                          # (B, nz)
    logvar = pallas_matmul(h6, params["logvar"])                  # (B, nz)

    # reparameterize (training mode): z = mu + eps * exp(0.5*logvar)
    std = jnp.exp(0.5 * logvar)
    eps = jax.random.normal(eps_key, std.shape, std.dtype)
    z = mu + eps * std

    # ---------------- Decoder ----------------
    d = pallas_matmul_bn_relu(z, params["fc1"])                   # (B, feat)
    Hb, Wb, Cb = cfg["H"][-1], cfg["W"][-1], ch[5]
    d = d.reshape(B, Cb, Hb, Wb).transpose(0, 2, 3, 1)            # NCHW -> NHWC
    d = deconv_bn_relu(d, params["deconv2"], ch[4])
    d = deconv_bn_relu(d, params["deconv3"], ch[3])
    d = deconv_bn_relu(d, params["deconv4"], ch[2])
    d = deconv_bn_relu(d, params["deconv5"], ch[1])
    d = conv_bn_relu(d, params["conv6"], 1, stride=1)
    flat7 = d.reshape(B, -1)                                      # C==1 -> same as NCHW order

    logits = pallas_matmul(flat7, params["fc7"])                  # (B, out_dim)
    out = pallas_sigmoid_mul(logits, x)                           # x * sigmoid(logits)
    return out, mu, logvar


# ------------------------------------------------------------------ main


if __name__ == "__main__":
    # Small configuration (same architecture / op graph as the original
    # nz, base=32, 513x22 model, scaled down so it runs quickly everywhere).
    cfg = make_config(nz=8, base=4, H0=33, W0=6, fc_hidden=64)
    B = 2

    key = jax.random.PRNGKey(0)
    k_param, k_x, k_eps = jax.random.split(key, 3)

    params = init_params(k_param, cfg)
    # input spectrogram-like magnitudes, shape (B, H0*W0)
    x = jnp.abs(jax.random.normal(k_x, (B, cfg["out_dim"]), jnp.float32)) * 0.5

    fwd = jax.jit(lambda p, xx, kk: generator_forward(p, cfg, xx, kk))
    out, mu, logvar = fwd(params, x, k_eps)
    jax.block_until_ready((out, mu, logvar))

    assert out.shape == (B, cfg["out_dim"])
    assert mu.shape == (B, cfg["nz"]) and logvar.shape == (B, cfg["nz"])
    assert bool(jnp.all(jnp.isfinite(out)))
    print("KERNEL_OK")
</pallas_src>

<mosaic_0001>
module attributes {stable_mosaic.version = 11 : i64} {
  func.func @_mm_stats_kernel(%arg0: i32, %arg1: memref<256x9xbf16, #tpu.memory_space<vmem>>, %arg2: memref<9x4xbf16, #tpu.memory_space<vmem>>, %arg3: memref<256x4xf32, #tpu.memory_space<vmem>>, %arg4: memref<1x4xf32, #tpu.memory_space<vmem>>, %arg5: memref<1x4xf32, #tpu.memory_space<vmem>>) attributes {dimension_semantics = [#tpu.dimension_semantics<arbitrary>], iteration_bounds = array<i64: 2>, scalar_prefetch = 0 : i64, scratch_operands = 0 : i64, tpu.core_type = #tpu.core_type<tc>, window_params = [{transform_indices = @transform_0, window_bounds = array<i64: 256, 9>}, {pipeline_mode = #tpu.pipeline_mode<synchronous>, transform_indices = @transform_1, window_bounds = array<i64: 9, 4>}, {transform_indices = @transform_2, window_bounds = array<i64: 256, 4>}, {pipeline_mode = #tpu.pipeline_mode<synchronous>, transform_indices = @transform_3, window_bounds = array<i64: 1, 4>}, {pipeline_mode = #tpu.pipeline_mode<synchronous>, transform_indices = @transform_4, window_bounds = array<i64: 1, 4>}]} {
    %c0 = arith.constant 0 : index
    %c0_0 = arith.constant 0 : index
    %0 = vector.load %arg1[%c0, %c0_0] : memref<256x9xbf16, #tpu.memory_space<vmem>>, vector<256x9xbf16>
    %c0_1 = arith.constant 0 : index
    %c0_2 = arith.constant 0 : index
    %1 = vector.load %arg2[%c0_1, %c0_2] : memref<9x4xbf16, #tpu.memory_space<vmem>>, vector<9x4xbf16>
    %cst = arith.constant dense<0.000000e+00> : vector<256x4xf32>
    %2 = tpu.matmul %0, %1, %cst {dimension_numbers = #tpu.dot_dimension_numbers<[1], [0], [0], [1], [0, 0, 1, 1], [], []>} : vector<256x9xbf16>, vector<9x4xbf16>, vector<256x4xf32> -> vector<256x4xf32>
    %c0_3 = arith.constant 0 : index
    %c0_4 = arith.constant 0 : index
    %3 = vector.load %arg3[%c0_3, %c0_4] : memref<256x4xf32, #tpu.memory_space<vmem>>, vector<256x4xf32>
    tpu.vector_store %arg3[%c0_3, %c0_4], %2 {strides = array<i32>} : memref<256x4xf32, #tpu.memory_space<vmem>>, vector<256x4xf32>,
    %c0_i32 = arith.constant 0 : i32
    %4 = arith.cmpi eq, %arg0, %c0_i32 : i32
    %5 = arith.extui %4 : i1 to i32
    %c0_i32_5 = arith.constant 0 : i32
    %6 = arith.cmpi ne, %5, %c0_i32_5 : i32
    scf.if %6 {
      %cst_16 = arith.constant 0.000000e+00 : f32
      %18 = vector.broadcast %cst_16 : f32 to vector<1x4xf32>
      %c0_17 = arith.constant 0 : index
      %c0_18 = arith.constant 0 : index
      %19 = vector.load %arg4[%c0_17, %c0_18] : memref<1x4xf32, #tpu.memory_space<vmem>>, vector<1x4xf32>
      tpu.vector_store %arg4[%c0_17, %c0_18], %18 {strides = array<i32>} : memref<1x4xf32, #tpu.memory_space<vmem>>, vector<1x4xf32>,
      %cst_19 = arith.constant 0.000000e+00 : f32
      %20 = vector.broadcast %cst_19 : f32 to vector<1x4xf32>
      %c0_20 = arith.constant 0 : index
      %c0_21 = arith.constant 0 : index
      %21 = vector.load %arg5[%c0_20, %c0_21] : memref<1x4xf32, #tpu.memory_space<vmem>>, vector<1x4xf32>
      tpu.vector_store %arg5[%c0_20, %c0_21], %20 {strides = array<i32>} : memref<1x4xf32, #tpu.memory_space<vmem>>, vector<1x4xf32>,
    } else {
    }
    %c0_6 = arith.constant 0 : index
    %c0_7 = arith.constant 0 : index
    %7 = vector.load %arg4[%c0_6, %c0_7] : memref<1x4xf32, #tpu.memory_space<vmem>>, vector<1x4xf32>
    %cst_8 = arith.constant dense<0.000000e+00> : vector<4xf32>
    %8 = vector.multi_reduction <add>, %2, %cst_8 [0] : vector<256x4xf32> to vector<4xf32>
    %9 = vector.shape_cast %8 : vector<4xf32> to vector<1x4xf32>
    %10 = arith.addf %7, %9 : vector<1x4xf32>
    %c0_9 = arith.constant 0 : index
    %c0_10 = arith.constant 0 : index
    %11 = vector.load %arg4[%c0_9, %c0_10] : memref<1x4xf32, #tpu.memory_space<vmem>>, vector<1x4xf32>
    tpu.vector_store %arg4[%c0_9, %c0_10], %10 {strides = array<i32>} : memref<1x4xf32, #tpu.memory_space<vmem>>, vector<1x4xf32>,
    %c0_11 = arith.constant 0 : index
    %c0_12 = arith.constant 0 : index
    %12 = vector.load %arg5[%c0_11, %c0_12] : memref<1x4xf32, #tpu.memory_space<vmem>>, vector<1x4xf32>
    %13 = arith.mulf %2, %2 : vector<256x4xf32>
    %cst_13 = arith.constant dense<0.000000e+00> : vector<4xf32>
    %14 = vector.multi_reduction <add>, %13, %cst_13 [0] : vector<256x4xf32> to vector<4xf32>
    %15 = vector.shape_cast %14 : vector<4xf32> to vector<1x4xf32>
    %16 = arith.addf %12, %15 : vector<1x4xf32>
    %c0_14 = arith.constant 0 : index
    %c0_15 = arith.constant 0 : index
    %17 = vector.load %arg5[%c0_14, %c0_15] : memref<1x4xf32, #tpu.memory_space<vmem>>, vector<1x4xf32>
    tpu.vector_store %arg5[%c0_14, %c0_15], %16 {strides = array<i32>} : memref<1x4xf32, #tpu.memory_space<vmem>>, vector<1x4xf32>,
    return
  }
  func.func @transform_0(%arg0: i32) -> (i32, i32) {
    %c0_i32 = arith.constant 0 : i32
    %c0_i32_0 = arith.constant 0 : i32
    return %arg0, %c0_i32 : i32, i32
  }
  func.func @transform_1(%arg0: i32) -> (i32, i32) {
    %c0_i32 = arith.constant 0 : i32
    %c0_i32_0 = arith.constant 0 : i32
    %c0_i32_1 = arith.constant 0 : i32
    return %c0_i32, %c0_i32_0 : i32, i32
  }
  func.func @transform_2(%arg0: i32) -> (i32, i32) {
    %c0_i32 = arith.constant 0 : i32
    %c0_i32_0 = arith.constant 0 : i32
    return %arg0, %c0_i32 : i32, i32
  }
  func.func @transform_3(%arg0: i32) -> (i32, i32) {
    %c0_i32 = arith.constant 0 : i32
    %c0_i32_0 = arith.constant 0 : i32
    %c0_i32_1 = arith.constant 0 : i32
    return %c0_i32, %c0_i32_0 : i32, i32
  }
  func.func @transform_4(%arg0: i32) -> (i32, i32) {
    %c0_i32 = arith.constant 0 : i32
    %c0_i32_0 = arith.constant 0 : i32
    %c0_i32_1 = arith.constant 0 : i32
    return %c0_i32, %c0_i32_0 : i32, i32
  }
}

module attributes {stable_mosaic.version = 11 : i64} {
  func.func @_bn_relu_kernel(%arg0: i32, %arg1: memref<512x4xf32, #tpu.memory_space<vmem>>, %arg2: memref<1x4xf32, #tpu.memory_space<vmem>>, %arg3: memref<1x4xf32, #tpu.memory_space<vmem>>, %arg4: memref<512x4xf32, #tpu.memory_space<vmem>>) attributes {dimension_semantics = [#tpu.dimension_semantics<parallel>], iteration_bounds = array<i64: 1>, scalar_prefetch = 0 : i64, scratch_operands = 0 : i64, tpu.core_type = #tpu.core_type<tc>, window_params = [{transform_indices = @transform_0, window_bounds = array<i64: 512, 4>}, {pipeline_mode = #tpu.pipeline_mode<synchronous>, transform_indices = @transform_1, window_bounds = array<i64: 1, 4>}, {pipeline_mode = #tpu.pipeline_mode<synchronous>, transform_indices = @transform_2, window_bounds = array<i64: 1, 4>}, {transform_indices = @transform_3, window_bounds = array<i64: 512, 4>}]} {
    %c0 = arith.constant 0 : index
    %c0_0 = arith.constant 0 : index
    %0 = vector.load %arg1[%c0, %c0_0] : memref<512x4xf32, #tpu.memory_space<vmem>>, vector<512x4xf32>
    %c0_1 = arith.constant 0 : index
    %c0_2 = arith.constant 0 : index
    %1 = vector.load %arg2[%c0_1, %c0_2] : memref<1x4xf32, #tpu.memory_space<vmem>>, vector<1x4xf32>
    %2 = vector.broadcast %1 : vector<1x4xf32> to vector<512x4xf32>
    %3 = arith.subf %0, %2 : vector<512x4xf32>
    %c0_3 = arith.constant 0 : index
    %c0_4 = arith.constant 0 : index
    %4 = vector.load %arg3[%c0_3, %c0_4] : memref<1x4xf32, #tpu.memory_space<vmem>>, vector<1x4xf32>
    %5 = vector.broadcast %4 : vector<1x4xf32> to vector<512x4xf32>
    %6 = arith.mulf %3, %5 : vector<512x4xf32>
    %cst = arith.constant 0.000000e+00 : f32
    %7 = vector.broadcast %cst : f32 to vector<512x4xf32>
    %8 = arith.maximumf %6, %7 : vector<512x4xf32>
    %c0_5 = arith.constant 0 : index
    %c0_6 = arith.constant 0 : index
    %9 = vector.load %arg4[%c0_5, %c0_6] : memref<512x4xf32, #tpu.memory_space<vmem>>, vector<512x4xf32>
    tpu.vector_store %arg4[%c0_5, %c0_6], %8 {strides = array<i32>} : memref<512x4xf32, #tpu.memory_space<vmem>>, vector<512x4xf32>,
    return
  }
  func.func @transform_0(%arg0: i32) -> (i32, i32) {
    %c0_i32 = arith.constant 0 : i32
    %c0_i32_0 = arith.constant 0 : i32
    return %arg0, %c0_i32 : i32, i32
  }
  func.func @transform_1(%arg0: i32) -> (i32, i32) {
    %c0_i32 = arith.constant 0 : i32
    %c0_i32_0 = arith.constant 0 : i32
    %c0_i32_1 = arith.constant 0 : i32
    return %c0_i32, %c0_i32_0 : i32, i32
  }
  func.func @transform_2(%arg0: i32) -> (i32, i32) {
    %c0_i32 = arith.constant 0 : i32
    %c0_i32_0 = arith.constant 0 : i32
    %c0_i32_1 = arith.constant 0 : i32
    return %c0_i32, %c0_i32_0 : i32, i32
  }
  func.func @transform_3(%arg0: i32) -> (i32, i32) {
    %c0_i32 = arith.constant 0 : i32
    %c0_i32_0 = arith.constant 0 : i32
    return %arg0, %c0_i32 : i32, i32
  }
}

module attributes {stable_mosaic.version = 11 : i64} {
  func.func @_mm_stats_kernel(%arg0: i32, %arg1: memref<104x36xbf16, #tpu.memory_space<vmem>>, %arg2: memref<36x8xbf16, #tpu.memory_space<vmem>>, %arg3: memref<104x8xf32, #tpu.memory_space<vmem>>, %arg4: memref<1x8xf32, #tpu.memory_space<vmem>>, %arg5: memref<1x8xf32, #tpu.memory_space<vmem>>) attributes {dimension_semantics = [#tpu.dimension_semantics<arbitrary>], iteration_bounds = array<i64: 1>, scalar_prefetch = 0 : i64, scratch_operands = 0 : i64, tpu.core_type = #tpu.core_type<tc>, window_params = [{transform_indices = @transform_0, window_bounds = array<i64: 104, 36>}, {pipeline_mode = #tpu.pipeline_mode<synchronous>, transform_indices = @transform_1, window_bounds = array<i64: 36, 8>}, {transform_indices = @transform_2, window_bounds = array<i64: 104, 8>}, {pipeline_mode = #tpu.pipeline_mode<synchronous>, transform_indices = @transform_3, window_bounds = array<i64: 1, 8>}, {pipeline_mode = #tpu.pipeline_mode<synchronous>, transform_indices = @transform_4, window_bounds = array<i64: 1, 8>}]} {
    %c0 = arith.constant 0 : index
    %c0_0 = arith.constant 0 : index
    %0 = vector.load %arg1[%c0, %c0_0] : memref<104x36xbf16, #tpu.memory_space<vmem>>, vector<104x36xbf16>
    %c0_1 = arith.constant 0 : index
    %c0_2 = arith.constant 0 : index
    %1 = vector.load %arg2[%c0_1, %c0_2] : memref<36x8xbf16, #tpu.memory_space<vmem>>, vector<36x8xbf16>
    %cst = arith.constant dense<0.000000e+00> : vector<104x8xf32>
    %2 = tpu.matmul %0, %1, %cst {dimension_numbers = #tpu.dot_dimension_numbers<[1], [0], [0], [1], [0, 0, 1, 1], [], []>} : vector<104x36xbf16>, vector<36x8xbf16>, vector<104x8xf32> -> vector<104x8xf32>
    %c0_3 = arith.constant 0 : index
    %c0_4 = arith.constant 0 : index
    %3 = vector.load %arg3[%c0_3, %c0_4] : memref<104x8xf32, #tpu.memory_space<vmem>>, vector<104x8xf32>
    tpu.vector_store %arg3[%c0_3, %c0_4], %2 {strides = array<i32>} : memref<104x8xf32, #tpu.memory_space<vmem>>, vector<104x8xf32>,
    %c0_i32 = arith.constant 0 : i32
    %4 = arith.cmpi eq, %arg0, %c0_i32 : i32
    %5 = arith.extui %4 : i1 to i32
    %c0_i32_5 = arith.constant 0 : i32
    %6 = arith.cmpi ne, %5, %c0_i32_5 : i32
    scf.if %6 {
      %cst_16 = arith.constant 0.000000e+00 : f32
      %18 = vector.broadcast %cst_16 : f32 to vector<1x8xf32>
      %c0_17 = arith.constant 0 : index
      %c0_18 = arith.constant 0 : index
      %19 = vector.load %arg4[%c0_17, %c0_18] : memref<1x8xf32, #tpu.memory_space<vmem>>, vector<1x8xf32>
      tpu.vector_store %arg4[%c0_17, %c0_18], %18 {strides = array<i32>} : memref<1x8xf32, #tpu.memory_space<vmem>>, vector<1x8xf32>,
      %cst_19 = arith.constant 0.000000e+00 : f32
      %20 = vector.broadcast %cst_19 : f32 to vector<1x8xf32>
      %c0_20 = arith.constant 0 : index
      %c0_21 = arith.constant 0 : index
      %21 = vector.load %arg5[%c0_20, %c0_21] : memref<1x8xf32, #tpu.memory_space<vmem>>, vector<1x8xf32>
      tpu.vector_store %arg5[%c0_20, %c0_21], %20 {strides = array<i32>} : memref<1x8xf32, #tpu.memory_space<vmem>>, vector<1x8xf32>,
    } else {
    }
    %c0_6 = arith.constant 0 : index
    %c0_7 = arith.constant 0 : index
    %7 = vector.load %arg4[%c0_6, %c0_7] : memref<1x8xf32, #tpu.memory_space<vmem>>, vector<1x8xf32>
    %cst_8 = arith.constant dense<0.000000e+00> : vector<8xf32>
    %8 = vector.multi_reduction <add>, %2, %cst_8 [0] : vector<104x8xf32> to vector<8xf32>
    %9 = vector.shape_cast %8 : vector<8xf32> to vector<1x8xf32>
    %10 = arith.addf %7, %9 : vector<1x8xf32>
    %c0_9 = arith.constant 0 : index
    %c0_10 = arith.constant 0 : index
    %11 = vector.load %arg4[%c0_9, %c0_10] : memref<1x8xf32, #tpu.memory_space<vmem>>, vector<1x8xf32>
    tpu.vector_store %arg4[%c0_9, %c0_10], %10 {strides = array<i32>} : memref<1x8xf32, #tpu.memory_space<vmem>>, vector<1x8xf32>,
    %c0_11 = arith.constant 0 : index
    %c0_12 = arith.constant 0 : index
    %12 = vector.load %arg5[%c0_11, %c0_12] : memref<1x8xf32, #tpu.memory_space<vmem>>, vector<1x8xf32>
    %13 = arith.mulf %2, %2 : vector<104x8xf32>
    %cst_13 = arith.constant dense<0.000000e+00> : vector<8xf32>
    %14 = vector.multi_reduction <add>, %13, %cst_13 [0] : vector<104x8xf32> to vector<8xf32>
    %15 = vector.shape_cast %14 : vector<8xf32> to vector<1x8xf32>
    %16 = arith.addf %12, %15 : vector<1x8xf32>
    %c0_14 = arith.constant 0 : index
    %c0_15 = arith.constant 0 : index
    %17 = vector.load %arg5[%c0_14, %c0_15] : memref<1x8xf32, #tpu.memory_space<vmem>>, vector<1x8xf32>
    tpu.vector_store %arg5[%c0_14, %c0_15], %16 {strides = array<i32>} : memref<1x8xf32, #tpu.memory_space<vmem>>, vector<1x8xf32>,
    return
  }
  func.func @transform_0(%arg0: i32) -> (i32, i32) {
    %c0_i32 = arith.constant 0 : i32
    %c0_i32_0 = arith.constant 0 : i32
    return %arg0, %c0_i32 : i32, i32
  }
  func.func @transform_1(%arg0: i32) -> (i32, i32) {
    %c0_i32 = arith.constant 0 : i32
    %c0_i32_0 = arith.constant 0 : i32
    %c0_i32_1 = arith.constant 0 : i32
    return %c0_i32, %c0_i32_0 : i32, i32
  }
  func.func @transform_2(%arg0: i32) -> (i32, i32) {
    %c0_i32 = arith.constant 0 : i32
    %c0_i32_0 = arith.constant 0 : i32
    return %arg0, %c0_i32 : i32, i32
  }
  func.func @transform_3(%arg0: i32) -> (i32, i32) {
    %c0_i32 = arith.constant 0 : i32
    %c0_i32_0 = arith.constant 0 : i32
    %c0_i32_1 = arith.constant 0 : i32
    return %c0_i32, %c0_i32_0 : i32, i32
  }
  func.func @transform_4(%arg0: i32) -> (i32, i32) {
    %c0_i32 = arith.constant 0 : i32
    %c0_i32_0 = arith.constant 0 : i32
    %c0_i32_1 = arith.constant 0 : i32
    return %c0_i32, %c0_i32_0 : i32, i32
  }
}

module attributes {stable_mosaic.version = 11 : i64} {
  func.func @_bn_relu_kernel(%arg0: i32, %arg1: memref<104x8xf32, #tpu.memory_space<vmem>>, %arg2: memref<1x8xf32, #tpu.memory_space<vmem>>, %arg3: memref<1x8xf32, #tpu.memory_space<vmem>>, %arg4: memref<104x8xf32, #tpu.memory_space<vmem>>) attributes {dimension_semantics = [#tpu.dimension_semantics<parallel>], iteration_bounds = array<i64: 1>, scalar_prefetch = 0 : i64, scratch_operands = 0 : i64, tpu.core_type = #tpu.core_type<tc>, window_params = [{transform_indices = @transform_0, window_bounds = array<i64: 104, 8>}, {pipeline_mode = #tpu.pipeline_mode<synchronous>, transform_indices = @transform_1, window_bounds = array<i64: 1, 8>}, {pipeline_mode = #tpu.pipeline_mode<synchronous>, transform_indices = @transform_2, window_bounds = array<i64: 1, 8>}, {transform_indices = @transform_3, window_bounds = array<i64: 104, 8>}]} {
    %c0 = arith.constant 0 : index
    %c0_0 = arith.constant 0 : index
    %0 = vector.load %arg1[%c0, %c0_0] : memref<104x8xf32, #tpu.memory_space<vmem>>, vector<104x8xf32>
    %c0_1 = arith.constant 0 : index
    %c0_2 = arith.constant 0 : index
    %1 = vector.load %arg2[%c0_1, %c0_2] : memref<1x8xf32, #tpu.memory_space<vmem>>, vector<1x8xf32>
    %2 = vector.broadcast %1 : vector<1x8xf32> to vector<104x8xf32>
    %3 = arith.subf %0, %2 : vector<104x8xf32>
    %c0_3 = arith.constant 0 : index
    %c0_4 = arith.constant 0 : index
    %4 = vector.load %arg3[%c0_3, %c0_4] : memref<1x8xf32, #tpu.memory_space<vmem>>, vector<1x8xf32>
    %5 = vector.broadcast %4 : vector<1x8xf32> to vector<104x8xf32>
    %6 = arith.mulf %3, %5 : vector<104x8xf32>
    %cst = arith.constant 0.000000e+00 : f32
    %7 = vector.broadcast %cst : f32 to vector<104x8xf32>
    %8 = arith.maximumf %6, %7 : vector<104x8xf32>
    %c0_5 = arith.constant 0 : index
    %c0_6 = arith.constant 0 : index
    %9 = vector.load %arg4[%c0_5, %c0_6] : memref<104x8xf32, #tpu.memory_space<vmem>>, vector<104x8xf32>
    tpu.vector_store %arg4[%c0_5, %c0_6], %8 {strides = array<i32>} : memref<104x8xf32, #tpu.memory_space<vmem>>, vector<104x8xf32>,
    return
  }
  func.func @transform_0(%arg0: i32) -> (i32, i32) {
    %c0_i32 = arith.constant 0 : i32
    %c0_i32_0 = arith.constant 0 : i32
    return %arg0, %c0_i32 : i32, i32
  }
  func.func @transform_1(%arg0: i32) -> (i32, i32) {
    %c0_i32 = arith.constant 0 : i32
    %c0_i32_0 = arith.constant 0 : i32
    %c0_i32_1 = arith.constant 0 : i32
    return %c0_i32, %c0_i32_0 : i32, i32
  }
  func.func @transform_2(%arg0: i32) -> (i32, i32) {
    %c0_i32 = arith.constant 0 : i32
    %c0_i32_0 = arith.constant 0 : i32
    %c0_i32_1 = arith.constant 0 : i32
    return %c0_i32, %c0_i32_0 : i32, i32
  }
  func.func @transform_3(%arg0: i32) -> (i32, i32) {
    %c0_i32 = arith.constant 0 : i32
    %c0_i32_0 = arith.constant 0 : i32
    return %arg0, %c0_i32 : i32, i32
  }
}

module attributes {stable_mosaic.version = 11 : i64} {
  func.func @_bn_relu_kernel(%arg0: i32, %arg1: memref<40x16xf32, #tpu.memory_space<vmem>>, %arg2: memref<1x16xf32, #tpu.memory_space<vmem>>, %arg3: memref<1x16xf32, #tpu.memory_space<vmem>>, %arg4: memref<40x16xf32, #tpu.memory_space<vmem>>) attributes {dimension_semantics = [#tpu.dimension_semantics<parallel>], iteration_bounds = array<i64: 1>, scalar_prefetch = 0 : i64, scratch_operands = 0 : i64, tpu.core_type = #tpu.core_type<tc>, window_params = [{transform_indices = @transform_0, window_bounds = array<i64: 40, 16>}, {pipeline_mode = #tpu.pipeline_mode<synchronous>, transform_indices = @transform_1, window_bounds = array<i64: 1, 16>}, {pipeline_mode = #tpu.pipeline_mode<synchronous>, transform_indices = @transform_2, window_bounds = array<i64: 1, 16>}, {transform_indices = @transform_3, window_bounds = array<i64: 40, 16>}]} {
    %c0 = arith.constant 0 : index
    %c0_0 = arith.constant 0 : index
    %0 = vector.load %arg1[%c0, %c0_0] : memref<40x16xf32, #tpu.memory_space<vmem>>, vector<40x16xf32>
    %c0_1 = arith.constant 0 : index
    %c0_2 = arith.constant 0 : index
    %1 = vector.load %arg2[%c0_1, %c0_2] : memref<1x16xf32, #tpu.memory_space<vmem>>, vector<1x16xf32>
    %2 = vector.broadcast %1 : vector<1x16xf32> to vector<40x16xf32>
    %3 = arith.subf %0, %2 : vector<40x16xf32>
    %c0_3 = arith.constant 0 : index
    %c0_4 = arith.constant 0 : index
    %4 = vector.load %arg3[%c0_3, %c0_4] : memref<1x16xf32, #tpu.memory_space<vmem>>, vector<1x16xf32>
    %5 = vector.broadcast %4 : vector<1x16xf32> to vector<40x16xf32>
    %6 = arith.mulf %3, %5 : vector<40x16xf32>
    %cst = arith.constant 0.000000e+00 : f32
    %7 = vector.broadcast %cst : f32 to vector<40x16xf32>
    %8 = arith.maximumf %6, %7 : vector<40x16xf32>
    %c0_5 = arith.constant 0 : index
    %c0_6 = arith.constant 0 : index
    %9 = vector.load %arg4[%c0_5, %c0_6] : memref<40x16xf32, #tpu.memory_space<vmem>>, vector<40x16xf32>
    tpu.vector_store %arg4[%c0_5, %c0_6], %8 {strides = array<i32>} : memref<40x16xf32, #tpu.memory_space<vmem>>, vector<40x16xf32>,
    return
  }
  func.func @transform_0(%arg0: i32) -> (i32, i32) {
    %c0_i32 = arith.constant 0 : i32
    %c0_i32_0 = arith.constant 0 : i32
    return %arg0, %c0_i32 : i32, i32
  }
  func.func @transform_1(%arg0: i32) -> (i32, i32) {
    %c0_i32 = arith.constant 0 : i32
    %c0_i32_0 = arith.constant 0 : i32
    %c0_i32_1 = arith.constant 0 : i32
    return %c0_i32, %c0_i32_0 : i32, i32
  }
  func.func @transform_2(%arg0: i32) -> (i32, i32) {
    %c0_i32 = arith.constant 0 : i32
    %c0_i32_0 = arith.constant 0 : i32
    %c0_i32_1 = arith.constant 0 : i32
    return %c0_i32, %c0_i32_0 : i32, i32
  }
  func.func @transform_3(%arg0: i32) -> (i32, i32) {
    %c0_i32 = arith.constant 0 : i32
    %c0_i32_0 = arith.constant 0 : i32
    return %arg0, %c0_i32 : i32, i32
  }
}

module attributes {stable_mosaic.version = 11 : i64} {
  func.func @_mm_stats_kernel(%arg0: i32, %arg1: memref<40x72xbf16, #tpu.memory_space<vmem>>, %arg2: memref<72x16xbf16, #tpu.memory_space<vmem>>, %arg3: memref<40x16xf32, #tpu.memory_space<vmem>>, %arg4: memref<1x16xf32, #tpu.memory_space<vmem>>, %arg5: memref<1x16xf32, #tpu.memory_space<vmem>>) attributes {dimension_semantics = [#tpu.dimension_semantics<arbitrary>], iteration_bounds = array<i64: 1>, scalar_prefetch = 0 : i64, scratch_operands = 0 : i64, tpu.core_type = #tpu.core_type<tc>, window_params = [{transform_indices = @transform_0, window_bounds = array<i64: 40, 72>}, {pipeline_mode = #tpu.pipeline_mode<synchronous>, transform_indices = @transform_1, window_bounds = array<i64: 72, 16>}, {transform_indices = @transform_2, window_bounds = array<i64: 40, 16>}, {pipeline_mode = #tpu.pipeline_mode<synchronous>, transform_indices = @transform_3, window_bounds = array<i64: 1, 16>}, {pipeline_mode = #tpu.pipeline_mode<synchronous>, transform_indices = @transform_4, window_bounds = array<i64: 1, 16>}]} {
    %c0 = arith.constant 0 : index
    %c0_0 = arith.constant 0 : index
    %0 = vector.load %arg1[%c0, %c0_0] : memref<40x72xbf16, #tpu.memory_space<vmem>>, vector<40x72xbf16>
    %c0_1 = arith.constant 0 : index
    %c0_2 = arith.constant 0 : index
    %1 = vector.load %arg2[%c0_1, %c0_2] : memref<72x16xbf16, #tpu.memory_space<vmem>>, vector<72x16xbf16>
    %cst = arith.constant dense<0.000000e+00> : vector<40x16xf32>
    %2 = tpu.matmul %0, %1, %cst {dimension_numbers = #tpu.dot_dimension_numbers<[1], [0], [0], [1], [0, 0, 1, 1], [], []>} : vector<40x72xbf16>, vector<72x16xbf16>, vector<40x16xf32> -> vector<40x16xf32>
    %c0_3 = arith.constant 0 : index
    %c0_4 = arith.constant 0 : index
    %3 = vector.load %arg3[%c0_3, %c0_4] : memref<40x16xf32, #tpu.memory_space<vmem>>, vector<40x16xf32>
    tpu.vector_store %arg3[%c0_3, %c0_4], %2 {strides = array<i32>} : memref<40x16xf32, #tpu.memory_space<vmem>>, vector<40x16xf32>,
    %c0_i32 = arith.constant 0 : i32
    %4 = arith.cmpi eq, %arg0, %c0_i32 : i32
    %5 = arith.extui %4 : i1 to i32
    %c0_i32_5 = arith.constant 0 : i32
    %6 = arith.cmpi ne, %5, %c0_i32_5 : i32
    scf.if %6 {
      %cst_16 = arith.constant 0.000000e+00 : f32
      %18 = vector.broadcast %cst_16 : f32 to vector<1x16xf32>
      %c0_17 = arith.constant 0 : index
      %c0_18 = arith.constant 0 : index
      %19 = vector.load %arg4[%c0_17, %c0_18] : memref<1x16xf32, #tpu.memory_space<vmem>>, vector<1x16xf32>
      tpu.vector_store %arg4[%c0_17, %c0_18], %18 {strides = array<i32>} : memref<1x16xf32, #tpu.memory_space<vmem>>, vector<1x16xf32>,
      %cst_19 = arith.constant 0.000000e+00 : f32
      %20 = vector.broadcast %cst_19 : f32 to vector<1x16xf32>
      %c0_20 = arith.constant 0 : index
      %c0_21 = arith.constant 0 : index
      %21 = vector.load %arg5[%c0_20, %c0_21] : memref<1x16xf32, #tpu.memory_space<vmem>>, vector<1x16xf32>
      tpu.vector_store %arg5[%c0_20, %c0_21], %20 {strides = array<i32>} : memref<1x16xf32, #tpu.memory_space<vmem>>, vector<1x16xf32>,
    } else {
    }
    %c0_6 = arith.constant 0 : index
    %c0_7 = arith.constant 0 : index
    %7 = vector.load %arg4[%c0_6, %c0_7] : memref<1x16xf32, #tpu.memory_space<vmem>>, vector<1x16xf32>
    %cst_8 = arith.constant dense<0.000000e+00> : vector<16xf32>
    %8 = vector.multi_reduction <add>, %2, %cst_8 [0] : vector<40x16xf32> to vector<16xf32>
    %9 = vector.shape_cast %8 : vector<16xf32> to vector<1x16xf32>
    %10 = arith.addf %7, %9 : vector<1x16xf32>
    %c0_9 = arith.constant 0 : index
    %c0_10 = arith.constant 0 : index
    %11 = vector.load %arg4[%c0_9, %c0_10] : memref<1x16xf32, #tpu.memory_space<vmem>>, vector<1x16xf32>
    tpu.vector_store %arg4[%c0_9, %c0_10], %10 {strides = array<i32>} : memref<1x16xf32, #tpu.memory_space<vmem>>, vector<1x16xf32>,
    %c0_11 = arith.constant 0 : index
    %c0_12 = arith.constant 0 : index
    %12 = vector.load %arg5[%c0_11, %c0_12] : memref<1x16xf32, #tpu.memory_space<vmem>>, vector<1x16xf32>
    %13 = arith.mulf %2, %2 : vector<40x16xf32>
    %cst_13 = arith.constant dense<0.000000e+00> : vector<16xf32>
    %14 = vector.multi_reduction <add>, %13, %cst_13 [0] : vector<40x16xf32> to vector<16xf32>
    %15 = vector.shape_cast %14 : vector<16xf32> to vector<1x16xf32>
    %16 = arith.addf %12, %15 : vector<1x16xf32>
    %c0_14 = arith.constant 0 : index
    %c0_15 = arith.constant 0 : index
    %17 = vector.load %arg5[%c0_14, %c0_15] : memref<1x16xf32, #tpu.memory_space<vmem>>, vector<1x16xf32>
    tpu.vector_store %arg5[%c0_14, %c0_15], %16 {strides = array<i32>} : memref<1x16xf32, #tpu.memory_space<vmem>>, vector<1x16xf32>,
    return
  }
  func.func @transform_0(%arg0: i32) -> (i32, i32) {
    %c0_i32 = arith.constant 0 : i32
    %c0_i32_0 = arith.constant 0 : i32
    return %arg0, %c0_i32 : i32, i32
  }
  func.func @transform_1(%arg0: i32) -> (i32, i32) {
    %c0_i32 = arith.constant 0 : i32
    %c0_i32_0 = arith.constant 0 : i32
    %c0_i32_1 = arith.constant 0 : i32
    return %c0_i32, %c0_i32_0 : i32, i32
  }
  func.func @transform_2(%arg0: i32) -> (i32, i32) {
    %c0_i32 = arith.constant 0 : i32
    %c0_i32_0 = arith.constant 0 : i32
    return %arg0, %c0_i32 : i32, i32
  }
  func.func @transform_3(%arg0: i32) -> (i32, i32) {
    %c0_i32 = arith.constant 0 : i32
    %c0_i32_0 = arith.constant 0 : i32
    %c0_i32_1 = arith.constant 0 : i32
    return %c0_i32, %c0_i32_0 : i32, i32
  }
  func.func @transform_4(%arg0: i32) -> (i32, i32) {
    %c0_i32 = arith.constant 0 : i32
    %c0_i32_0 = arith.constant 0 : i32
    %c0_i32_1 = arith.constant 0 : i32
    return %c0_i32, %c0_i32_0 : i32, i32
  }
}

module attributes {stable_mosaic.version = 11 : i64} {
  func.func @_bn_relu_kernel(%arg0: i32, %arg1: memref<16x32xf32, #tpu.memory_space<vmem>>, %arg2: memref<1x32xf32, #tpu.memory_space<vmem>>, %arg3: memref<1x32xf32, #tpu.memory_space<vmem>>, %arg4: memref<16x32xf32, #tpu.memory_space<vmem>>) attributes {dimension_semantics = [#tpu.dimension_semantics<parallel>], iteration_bounds = array<i64: 1>, scalar_prefetch = 0 : i64, scratch_operands = 0 : i64, tpu.core_type = #tpu.core_type<tc>, window_params = [{transform_indices = @transform_0, window_bounds = array<i64: 16, 32>}, {pipeline_mode = #tpu.pipeline_mode<synchronous>, transform_indices = @transform_1, window_bounds = array<i64: 1, 32>}, {pipeline_mode = #tpu.pipeline_mode<synchronous>, transform_indices = @transform_2, window_bounds = array<i64: 1, 32>}, {transform_indices = @transform_3, window_bounds = array<i64: 16, 32>}]} {
    %c0 = arith.constant 0 : index
    %c0_0 = arith.constant 0 : index
    %0 = vector.load %arg1[%c0, %c0_0] : memref<16x32xf32, #tpu.memory_space<vmem>>, vector<16x32xf32>
    %c0_1 = arith.constant 0 : index
    %c0_2 = arith.constant 0 : index
    %1 = vector.load %arg2[%c0_1, %c0_2] : memref<1x32xf32, #tpu.memory_space<vmem>>, vector<1x32xf32>
    %2 = vector.broadcast %1 : vector<1x32xf32> to vector<16x32xf32>
    %3 = arith.subf %0, %2 : vector<16x32xf32>
    %c0_3 = arith.constant 0 : index
    %c0_4 = arith.constant 0 : index
    %4 = vector.load %arg3[%c0_3, %c0_4] : memref<1x32xf32, #tpu.memory_space<vmem>>, vector<1x32xf32>
    %5 = vector.broadcast %4 : vector<1x32xf32> to vector<16x32xf32>
    %6 = arith.mulf %3, %5 : vector<16x32xf32>
    %cst = arith.constant 0.000000e+00 : f32
    %7 = vector.broadcast %cst : f32 to vector<16x32xf32>
    %8 = arith.maximumf %6, %7 : vector<16x32xf32>
    %c0_5 = arith.constant 0 : index
    %c0_6 = arith.constant 0 : index
    %9 = vector.load %arg4[%c0_5, %c0_6] : memref<16x32xf32, #tpu.memory_space<vmem>>, vector<16x32xf32>
    tpu.vector_store %arg4[%c0_5, %c0_6], %8 {strides = array<i32>} : memref<16x32xf32, #tpu.memory_space<vmem>>, vector<16x32xf32>,
    return
  }
  func.func @transform_0(%arg0: i32) -> (i32, i32) {
    %c0_i32 = arith.constant 0 : i32
    %c0_i32_0 = arith.constant 0 : i32
    return %arg0, %c0_i32 : i32, i32
  }
  func.func @transform_1(%arg0: i32) -> (i32, i32) {
    %c0_i32 = arith.constant 0 : i32
    %c0_i32_0 = arith.constant 0 : i32
    %c0_i32_1 = arith.constant 0 : i32
    return %c0_i32, %c0_i32_0 : i32, i32
  }
  func.func @transform_2(%arg0: i32) -> (i32, i32) {
    %c0_i32 = arith.constant 0 : i32
    %c0_i32_0 = arith.constant 0 : i32
    %c0_i32_1 = arith.constant 0 : i32
    return %c0_i32, %c0_i32_0 : i32, i32
  }
  func.func @transform_3(%arg0: i32) -> (i32, i32) {
    %c0_i32 = arith.constant 0 : i32
    %c0_i32_0 = arith.constant 0 : i32
    return %arg0, %c0_i32 : i32, i32
  }
}

module attributes {stable_mosaic.version = 11 : i64} {
  func.func @_mm_stats_kernel(%arg0: i32, %arg1: memref<16x144xbf16, #tpu.memory_space<vmem>>, %arg2: memref<144x32xbf16, #tpu.memory_space<vmem>>, %arg3: memref<16x32xf32, #tpu.memory_space<vmem>>, %arg4: memref<1x32xf32, #tpu.memory_space<vmem>>, %arg5: memref<1x32xf32, #tpu.memory_space<vmem>>) attributes {dimension_semantics = [#tpu.dimension_semantics<arbitrary>], iteration_bounds = array<i64: 1>, scalar_prefetch = 0 : i64, scratch_operands = 0 : i64, tpu.core_type = #tpu.core_type<tc>, window_params = [{transform_indices = @transform_0, window_bounds = array<i64: 16, 144>}, {pipeline_mode = #tpu.pipeline_mode<synchronous>, transform_indices = @transform_1, window_bounds = array<i64: 144, 32>}, {transform_indices = @transform_2, window_bounds = array<i64: 16, 32>}, {pipeline_mode = #tpu.pipeline_mode<synchronous>, transform_indices = @transform_3, window_bounds = array<i64: 1, 32>}, {pipeline_mode = #tpu.pipeline_mode<synchronous>, transform_indices = @transform_4, window_bounds = array<i64: 1, 32>}]} {
    %c0 = arith.constant 0 : index
    %c0_0 = arith.constant 0 : index
    %0 = vector.load %arg1[%c0, %c0_0] : memref<16x144xbf16, #tpu.memory_space<vmem>>, vector<16x144xbf16>
    %c0_1 = arith.constant 0 : index
    %c0_2 = arith.constant 0 : index
    %1 = vector.load %arg2[%c0_1, %c0_2] : memref<144x32xbf16, #tpu.memory_space<vmem>>, vector<144x32xbf16>
    %cst = arith.constant dense<0.000000e+00> : vector<16x32xf32>
    %2 = tpu.matmul %0, %1, %cst {dimension_numbers = #tpu.dot_dimension_numbers<[1], [0], [0], [1], [0, 0, 1, 1], [], []>} : vector<16x144xbf16>, vector<144x32xbf16>, vector<16x32xf32> -> vector<16x32xf32>
    %c0_3 = arith.constant 0 : index
    %c0_4 = arith.constant 0 : index
    %3 = vector.load %arg3[%c0_3, %c0_4] : memref<16x32xf32, #tpu.memory_space<vmem>>, vector<16x32xf32>
    tpu.vector_store %arg3[%c0_3, %c0_4], %2 {strides = array<i32>} : memref<16x32xf32, #tpu.memory_space<vmem>>, vector<16x32xf32>,
    %c0_i32 = arith.constant 0 : i32
    %4 = arith.cmpi eq, %arg0, %c0_i32 : i32
    %5 = arith.extui %4 : i1 to i32
    %c0_i32_5 = arith.constant 0 : i32
    %6 = arith.cmpi ne, %5, %c0_i32_5 : i32
    scf.if %6 {
      %cst_16 = arith.constant 0.000000e+00 : f32
      %18 = vector.broadcast %cst_16 : f32 to vector<1x32xf32>
      %c0_17 = arith.constant 0 : index
      %c0_18 = arith.constant 0 : index
      %19 = vector.load %arg4[%c0_17, %c0_18] : memref<1x32xf32, #tpu.memory_space<vmem>>, vector<1x32xf32>
      tpu.vector_store %arg4[%c0_17, %c0_18], %18 {strides = array<i32>} : memref<1x32xf32, #tpu.memory_space<vmem>>, vector<1x32xf32>,
      %cst_19 = arith.constant 0.000000e+00 : f32
      %20 = vector.broadcast %cst_19 : f32 to vector<1x32xf32>
      %c0_20 = arith.constant 0 : index
      %c0_21 = arith.constant 0 : index
      %21 = vector.load %arg5[%c0_20, %c0_21] : memref<1x32xf32, #tpu.memory_space<vmem>>, vector<1x32xf32>
      tpu.vector_store %arg5[%c0_20, %c0_21], %20 {strides = array<i32>} : memref<1x32xf32, #tpu.memory_space<vmem>>, vector<1x32xf32>,
    } else {
    }
    %c0_6 = arith.constant 0 : index
    %c0_7 = arith.constant 0 : index
    %7 = vector.load %arg4[%c0_6, %c0_7] : memref<1x32xf32, #tpu.memory_space<vmem>>, vector<1x32xf32>
    %cst_8 = arith.constant dense<0.000000e+00> : vector<32xf32>
    %8 = vector.multi_reduction <add>, %2, %cst_8 [0] : vector<16x32xf32> to vector<32xf32>
    %9 = vector.shape_cast %8 : vector<32xf32> to vector<1x32xf32>
    %10 = arith.addf %7, %9 : vector<1x32xf32>
    %c0_9 = arith.constant 0 : index
    %c0_10 = arith.constant 0 : index
    %11 = vector.load %arg4[%c0_9, %c0_10] : memref<1x32xf32, #tpu.memory_space<vmem>>, vector<1x32xf32>
    tpu.vector_store %arg4[%c0_9, %c0_10], %10 {strides = array<i32>} : memref<1x32xf32, #tpu.memory_space<vmem>>, vector<1x32xf32>,
    %c0_11 = arith.constant 0 : index
    %c0_12 = arith.constant 0 : index
    %12 = vector.load %arg5[%c0_11, %c0_12] : memref<1x32xf32, #tpu.memory_space<vmem>>, vector<1x32xf32>
    %13 = arith.mulf %2, %2 : vector<16x32xf32>
    %cst_13 = arith.constant dense<0.000000e+00> : vector<32xf32>
    %14 = vector.multi_reduction <add>, %13, %cst_13 [0] : vector<16x32xf32> to vector<32xf32>
    %15 = vector.shape_cast %14 : vector<32xf32> to vector<1x32xf32>
    %16 = arith.addf %12, %15 : vector<1x32xf32>
    %c0_14 = arith.constant 0 : index
    %c0_15 = arith.constant 0 : index
    %17 = vector.load %arg5[%c0_14, %c0_15] : memref<1x32xf32, #tpu.memory_space<vmem>>, vector<1x32xf32>
    tpu.vector_store %arg5[%c0_14, %c0_15], %16 {strides = array<i32>} : memref<1x32xf32, #tpu.memory_space<vmem>>, vector<1x32xf32>,
    return
  }
  func.func @transform_0(%arg0: i32) -> (i32, i32) {
    %c0_i32 = arith.constant 0 : i32
    %c0_i32_0 = arith.constant 0 : i32
    return %arg0, %c0_i32 : i32, i32
  }
  func.func @transform_1(%arg0: i32) -> (i32, i32) {
    %c0_i32 = arith.constant 0 : i32
    %c0_i32_0 = arith.constant 0 : i32
    %c0_i32_1 = arith.constant 0 : i32
    return %c0_i32, %c0_i32_0 : i32, i32
  }
  func.func @transform_2(%arg0: i32) -> (i32, i32) {
    %c0_i32 = arith.constant 0 : i32
    %c0_i32_0 = arith.constant 0 : i32
    return %arg0, %c0_i32 : i32, i32
  }
  func.func @transform_3(%arg0: i32) -> (i32, i32) {
    %c0_i32 = arith.constant 0 : i32
    %c0_i32_0 = arith.constant 0 : i32
    %c0_i32_1 = arith.constant 0 : i32
    return %c0_i32, %c0_i32_0 : i32, i32
  }
  func.func @transform_4(%arg0: i32) -> (i32, i32) {
    %c0_i32 = arith.constant 0 : i32
    %c0_i32_0 = arith.constant 0 : i32
    %c0_i32_1 = arith.constant 0 : i32
    return %c0_i32, %c0_i32_0 : i32, i32
  }
}

module attributes {stable_mosaic.version = 11 : i64} {
  func.func @_bn_relu_kernel(%arg0: i32, %arg1: memref<8x64xf32, #tpu.memory_space<vmem>>, %arg2: memref<1x64xf32, #tpu.memory_space<vmem>>, %arg3: memref<1x64xf32, #tpu.memory_space<vmem>>, %arg4: memref<8x64xf32, #tpu.memory_space<vmem>>) attributes {dimension_semantics = [#tpu.dimension_semantics<parallel>], iteration_bounds = array<i64: 1>, scalar_prefetch = 0 : i64, scratch_operands = 0 : i64, tpu.core_type = #tpu.core_type<tc>, window_params = [{transform_indices = @transform_0, window_bounds = array<i64: 8, 64>}, {pipeline_mode = #tpu.pipeline_mode<synchronous>, transform_indices = @transform_1, window_bounds = array<i64: 1, 64>}, {pipeline_mode = #tpu.pipeline_mode<synchronous>, transform_indices = @transform_2, window_bounds = array<i64: 1, 64>}, {transform_indices = @transform_3, window_bounds = array<i64: 8, 64>}]} {
    %c0 = arith.constant 0 : index
    %c0_0 = arith.constant 0 : index
    %0 = vector.load %arg1[%c0, %c0_0] : memref<8x64xf32, #tpu.memory_space<vmem>>, vector<8x64xf32>
    %c0_1 = arith.constant 0 : index
    %c0_2 = arith.constant 0 : index
    %1 = vector.load %arg2[%c0_1, %c0_2] : memref<1x64xf32, #tpu.memory_space<vmem>>, vector<1x64xf32>
    %2 = vector.broadcast %1 : vector<1x64xf32> to vector<8x64xf32>
    %3 = arith.subf %0, %2 : vector<8x64xf32>
    %c0_3 = arith.constant 0 : index
    %c0_4 = arith.constant 0 : index
    %4 = vector.load %arg3[%c0_3, %c0_4] : memref<1x64xf32, #tpu.memory_space<vmem>>, vector<1x64xf32>
    %5 = vector.broadcast %4 : vector<1x64xf32> to vector<8x64xf32>
    %6 = arith.mulf %3, %5 : vector<8x64xf32>
    %cst = arith.constant 0.000000e+00 : f32
    %7 = vector.broadcast %cst : f32 to vector<8x64xf32>
    %8 = arith.maximumf %6, %7 : vector<8x64xf32>
    %c0_5 = arith.constant 0 : index
    %c0_6 = arith.constant 0 : index
    %9 = vector.load %arg4[%c0_5, %c0_6] : memref<8x64xf32, #tpu.memory_space<vmem>>, vector<8x64xf32>
    tpu.vector_store %arg4[%c0_5, %c0_6], %8 {strides = array<i32>} : memref<8x64xf32, #tpu.memory_space<vmem>>, vector<8x64xf32>,
    return
  }
  func.func @transform_0(%arg0: i32) -> (i32, i32) {
    %c0_i32 = arith.constant 0 : i32
    %c0_i32_0 = arith.constant 0 : i32
    return %arg0, %c0_i32 : i32, i32
  }
  func.func @transform_1(%arg0: i32) -> (i32, i32) {
    %c0_i32 = arith.constant 0 : i32
    %c0_i32_0 = arith.constant 0 : i32
    %c0_i32_1 = arith.constant 0 : i32
    return %c0_i32, %c0_i32_0 : i32, i32
  }
  func.func @transform_2(%arg0: i32) -> (i32, i32) {
    %c0_i32 = arith.constant 0 : i32
    %c0_i32_0 = arith.constant 0 : i32
    %c0_i32_1 = arith.constant 0 : i32
    return %c0_i32, %c0_i32_0 : i32, i32
  }
  func.func @transform_3(%arg0: i32) -> (i32, i32) {
    %c0_i32 = arith.constant 0 : i32
    %c0_i32_0 = arith.constant 0 : i32
    return %arg0, %c0_i32 : i32, i32
  }
}

module attributes {stable_mosaic.version = 11 : i64} {
  func.func @_mm_stats_kernel(%arg0: i32, %arg1: memref<8x288xbf16, #tpu.memory_space<vmem>>, %arg2: memref<288x64xbf16, #tpu.memory_space<vmem>>, %arg3: memref<8x64xf32, #tpu.memory_space<vmem>>, %arg4: memref<1x64xf32, #tpu.memory_space<vmem>>, %arg5: memref<1x64xf32, #tpu.memory_space<vmem>>) attributes {dimension_semantics = [#tpu.dimension_semantics<arbitrary>], iteration_bounds = array<i64: 1>, scalar_prefetch = 0 : i64, scratch_operands = 0 : i64, tpu.core_type = #tpu.core_type<tc>, window_params = [{transform_indices = @transform_0, window_bounds = array<i64: 8, 288>}, {pipeline_mode = #tpu.pipeline_mode<synchronous>, transform_indices = @transform_1, window_bounds = array<i64: 288, 64>}, {transform_indices = @transform_2, window_bounds = array<i64: 8, 64>}, {pipeline_mode = #tpu.pipeline_mode<synchronous>, transform_indices = @transform_3, window_bounds = array<i64: 1, 64>}, {pipeline_mode = #tpu.pipeline_mode<synchronous>, transform_indices = @transform_4, window_bounds = array<i64: 1, 64>}]} {
    %c0 = arith.constant 0 : index
    %c0_0 = arith.constant 0 : index
    %0 = vector.load %arg1[%c0, %c0_0] : memref<8x288xbf16, #tpu.memory_space<vmem>>, vector<8x288xbf16>
    %c0_1 = arith.constant 0 : index
    %c0_2 = arith.constant 0 : index
    %1 = vector.load %arg2[%c0_1, %c0_2] : memref<288x64xbf16, #tpu.memory_space<vmem>>, vector<288x64xbf16>
    %cst = arith.constant dense<0.000000e+00> : vector<8x64xf32>
    %2 = tpu.matmul %0, %1, %cst {dimension_numbers = #tpu.dot_dimension_numbers<[1], [0], [0], [1], [0, 0, 1, 1], [], []>} : vector<8x288xbf16>, vector<288x64xbf16>, vector<8x64xf32> -> vector<8x64xf32>
    %c0_3 = arith.constant 0 : index
    %c0_4 = arith.constant 0 : index
    %3 = vector.load %arg3[%c0_3, %c0_4] : memref<8x64xf32, #tpu.memory_space<vmem>>, vector<8x64xf32>
    tpu.vector_store %arg3[%c0_3, %c0_4], %2 {strides = array<i32>} : memref<8x64xf32, #tpu.memory_space<vmem>>, vector<8x64xf32>,
    %c0_i32 = arith.constant 0 : i32
    %4 = arith.cmpi eq, %arg0, %c0_i32 : i32
    %5 = arith.extui %4 : i1 to i32
    %c0_i32_5 = arith.constant 0 : i32
    %6 = arith.cmpi ne, %5, %c0_i32_5 : i32
    scf.if %6 {
      %cst_16 = arith.constant 0.000000e+00 : f32
      %18 = vector.broadcast %cst_16 : f32 to vector<1x64xf32>
      %c0_17 = arith.constant 0 : index
      %c0_18 = arith.constant 0 : index
      %19 = vector.load %arg4[%c0_17, %c0_18] : memref<1x64xf32, #tpu.memory_space<vmem>>, vector<1x64xf32>
      tpu.vector_store %arg4[%c0_17, %c0_18], %18 {strides = array<i32>} : memref<1x64xf32, #tpu.memory_space<vmem>>, vector<1x64xf32>,
      %cst_19 = arith.constant 0.000000e+00 : f32
      %20 = vector.broadcast %cst_19 : f32 to vector<1x64xf32>
      %c0_20 = arith.constant 0 : index
      %c0_21 = arith.constant 0 : index
      %21 = vector.load %arg5[%c0_20, %c0_21] : memref<1x64xf32, #tpu.memory_space<vmem>>, vector<1x64xf32>
      tpu.vector_store %arg5[%c0_20, %c0_21], %20 {strides = array<i32>} : memref<1x64xf32, #tpu.memory_space<vmem>>, vector<1x64xf32>,
    } else {
    }
    %c0_6 = arith.constant 0 : index
    %c0_7 = arith.constant 0 : index
    %7 = vector.load %arg4[%c0_6, %c0_7] : memref<1x64xf32, #tpu.memory_space<vmem>>, vector<1x64xf32>
    %cst_8 = arith.constant dense<0.000000e+00> : vector<64xf32>
    %8 = vector.multi_reduction <add>, %2, %cst_8 [0] : vector<8x64xf32> to vector<64xf32>
    %9 = vector.shape_cast %8 : vector<64xf32> to vector<1x64xf32>
    %10 = arith.addf %7, %9 : vector<1x64xf32>
    %c0_9 = arith.constant 0 : index
    %c0_10 = arith.constant 0 : index
    %11 = vector.load %arg4[%c0_9, %c0_10] : memref<1x64xf32, #tpu.memory_space<vmem>>, vector<1x64xf32>
    tpu.vector_store %arg4[%c0_9, %c0_10], %10 {strides = array<i32>} : memref<1x64xf32, #tpu.memory_space<vmem>>, vector<1x64xf32>,
    %c0_11 = arith.constant 0 : index
    %c0_12 = arith.constant 0 : index
    %12 = vector.load %arg5[%c0_11, %c0_12] : memref<1x64xf32, #tpu.memory_space<vmem>>, vector<1x64xf32>
    %13 = arith.mulf %2, %2 : vector<8x64xf32>
    %cst_13 = arith.constant dense<0.000000e+00> : vector<64xf32>
    %14 = vector.multi_reduction <add>, %13, %cst_13 [0] : vector<8x64xf32> to vector<64xf32>
    %15 = vector.shape_cast %14 : vector<64xf32> to vector<1x64xf32>
    %16 = arith.addf %12, %15 : vector<1x64xf32>
    %c0_14 = arith.constant 0 : index
    %c0_15 = arith.constant 0 : index
    %17 = vector.load %arg5[%c0_14, %c0_15] : memref<1x64xf32, #tpu.memory_space<vmem>>, vector<1x64xf32>
    tpu.vector_store %arg5[%c0_14, %c0_15], %16 {strides = array<i32>} : memref<1x64xf32, #tpu.memory_space<vmem>>, vector<1x64xf32>,
    return
  }
  func.func @transform_0(%arg0: i32) -> (i32, i32) {
    %c0_i32 = arith.constant 0 : i32
    %c0_i32_0 = arith.constant 0 : i32
    return %arg0, %c0_i32 : i32, i32
  }
  func.func @transform_1(%arg0: i32) -> (i32, i32) {
    %c0_i32 = arith.constant 0 : i32
    %c0_i32_0 = arith.constant 0 : i32
    %c0_i32_1 = arith.constant 0 : i32
    return %c0_i32, %c0_i32_0 : i32, i32
  }
  func.func @transform_2(%arg0: i32) -> (i32, i32) {
    %c0_i32 = arith.constant 0 : i32
    %c0_i32_0 = arith.constant 0 : i32
    return %arg0, %c0_i32 : i32, i32
  }
  func.func @transform_3(%arg0: i32) -> (i32, i32) {
    %c0_i32 = arith.constant 0 : i32
    %c0_i32_0 = arith.constant 0 : i32
    %c0_i32_1 = arith.constant 0 : i32
    return %c0_i32, %c0_i32_0 : i32, i32
  }
  func.func @transform_4(%arg0: i32) -> (i32, i32) {
    %c0_i32 = arith.constant 0 : i32
    %c0_i32_0 = arith.constant 0 : i32
    %c0_i32_1 = arith.constant 0 : i32
    return %c0_i32, %c0_i32_0 : i32, i32
  }
}

module attributes {stable_mosaic.version = 11 : i64} {
  func.func @_mm_stats_kernel(%arg0: i32, %arg1: memref<8x192xbf16, #tpu.memory_space<vmem>>, %arg2: memref<192x64xbf16, #tpu.memory_space<vmem>>, %arg3: memref<8x64xf32, #tpu.memory_space<vmem>>, %arg4: memref<1x64xf32, #tpu.memory_space<vmem>>, %arg5: memref<1x64xf32, #tpu.memory_space<vmem>>) attributes {dimension_semantics = [#tpu.dimension_semantics<arbitrary>], iteration_bounds = array<i64: 1>, scalar_prefetch = 0 : i64, scratch_operands = 0 : i64, tpu.core_type = #tpu.core_type<tc>, window_params = [{transform_indices = @transform_0, window_bounds = array<i64: 8, 192>}, {pipeline_mode = #tpu.pipeline_mode<synchronous>, transform_indices = @transform_1, window_bounds = array<i64: 192, 64>}, {transform_indices = @transform_2, window_bounds = array<i64: 8, 64>}, {pipeline_mode = #tpu.pipeline_mode<synchronous>, transform_indices = @transform_3, window_bounds = array<i64: 1, 64>}, {pipeline_mode = #tpu.pipeline_mode<synchronous>, transform_indices = @transform_4, window_bounds = array<i64: 1, 64>}]} {
    %c0 = arith.constant 0 : index
    %c0_0 = arith.constant 0 : index
    %0 = vector.load %arg1[%c0, %c0_0] : memref<8x192xbf16, #tpu.memory_space<vmem>>, vector<8x192xbf16>
    %c0_1 = arith.constant 0 : index
    %c0_2 = arith.constant 0 : index
    %1 = vector.load %arg2[%c0_1, %c0_2] : memref<192x64xbf16, #tpu.memory_space<vmem>>, vector<192x64xbf16>
    %cst = arith.constant dense<0.000000e+00> : vector<8x64xf32>
    %2 = tpu.matmul %0, %1, %cst {dimension_numbers = #tpu.dot_dimension_numbers<[1], [0], [0], [1], [0, 0, 1, 1], [], []>} : vector<8x192xbf16>, vector<192x64xbf16>, vector<8x64xf32> -> vector<8x64xf32>
    %c0_3 = arith.constant 0 : index
    %c0_4 = arith.constant 0 : index
    %3 = vector.load %arg3[%c0_3, %c0_4] : memref<8x64xf32, #tpu.memory_space<vmem>>, vector<8x64xf32>
    tpu.vector_store %arg3[%c0_3, %c0_4], %2 {strides = array<i32>} : memref<8x64xf32, #tpu.memory_space<vmem>>, vector<8x64xf32>,
    %c0_i32 = arith.constant 0 : i32
    %4 = arith.cmpi eq, %arg0, %c0_i32 : i32
    %5 = arith.extui %4 : i1 to i32
    %c0_i32_5 = arith.constant 0 : i32
    %6 = arith.cmpi ne, %5, %c0_i32_5 : i32
    scf.if %6 {
      %cst_16 = arith.constant 0.000000e+00 : f32
      %18 = vector.broadcast %cst_16 : f32 to vector<1x64xf32>
      %c0_17 = arith.constant 0 : index
      %c0_18 = arith.constant 0 : index
      %19 = vector.load %arg4[%c0_17, %c0_18] : memref<1x64xf32, #tpu.memory_space<vmem>>, vector<1x64xf32>
      tpu.vector_store %arg4[%c0_17, %c0_18], %18 {strides = array<i32>} : memref<1x64xf32, #tpu.memory_space<vmem>>, vector<1x64xf32>,
      %cst_19 = arith.constant 0.000000e+00 : f32
      %20 = vector.broadcast %cst_19 : f32 to vector<1x64xf32>
      %c0_20 = arith.constant 0 : index
      %c0_21 = arith.constant 0 : index
      %21 = vector.load %arg5[%c0_20, %c0_21] : memref<1x64xf32, #tpu.memory_space<vmem>>, vector<1x64xf32>
      tpu.vector_store %arg5[%c0_20, %c0_21], %20 {strides = array<i32>} : memref<1x64xf32, #tpu.memory_space<vmem>>, vector<1x64xf32>,
    } else {
    }
    %c0_6 = arith.constant 0 : index
    %c0_7 = arith.constant 0 : index
    %7 = vector.load %arg4[%c0_6, %c0_7] : memref<1x64xf32, #tpu.memory_space<vmem>>, vector<1x64xf32>
    %cst_8 = arith.constant dense<0.000000e+00> : vector<64xf32>
    %8 = vector.multi_reduction <add>, %2, %cst_8 [0] : vector<8x64xf32> to vector<64xf32>
    %9 = vector.shape_cast %8 : vector<64xf32> to vector<1x64xf32>
    %10 = arith.addf %7, %9 : vector<1x64xf32>
    %c0_9 = arith.constant 0 : index
    %c0_10 = arith.constant 0 : index
    %11 = vector.load %arg4[%c0_9, %c0_10] : memref<1x64xf32, #tpu.memory_space<vmem>>, vector<1x64xf32>
    tpu.vector_store %arg4[%c0_9, %c0_10], %10 {strides = array<i32>} : memref<1x64xf32, #tpu.memory_space<vmem>>, vector<1x64xf32>,
    %c0_11 = arith.constant 0 : index
    %c0_12 = arith.constant 0 : index
    %12 = vector.load %arg5[%c0_11, %c0_12] : memref<1x64xf32, #tpu.memory_space<vmem>>, vector<1x64xf32>
    %13 = arith.mulf %2, %2 : vector<8x64xf32>
    %cst_13 = arith.constant dense<0.000000e+00> : vector<64xf32>
    %14 = vector.multi_reduction <add>, %13, %cst_13 [0] : vector<8x64xf32> to vector<64xf32>
    %15 = vector.shape_cast %14 : vector<64xf32> to vector<1x64xf32>
    %16 = arith.addf %12, %15 : vector<1x64xf32>
    %c0_14 = arith.constant 0 : index
    %c0_15 = arith.constant 0 : index
    %17 = vector.load %arg5[%c0_14, %c0_15] : memref<1x64xf32, #tpu.memory_space<vmem>>, vector<1x64xf32>
    tpu.vector_store %arg5[%c0_14, %c0_15], %16 {strides = array<i32>} : memref<1x64xf32, #tpu.memory_space<vmem>>, vector<1x64xf32>,
    return
  }
  func.func @transform_0(%arg0: i32) -> (i32, i32) {
    %c0_i32 = arith.constant 0 : i32
    %c0_i32_0 = arith.constant 0 : i32
    return %arg0, %c0_i32 : i32, i32
  }
  func.func @transform_1(%arg0: i32) -> (i32, i32) {
    %c0_i32 = arith.constant 0 : i32
    %c0_i32_0 = arith.constant 0 : i32
    %c0_i32_1 = arith.constant 0 : i32
    return %c0_i32, %c0_i32_0 : i32, i32
  }
  func.func @transform_2(%arg0: i32) -> (i32, i32) {
    %c0_i32 = arith.constant 0 : i32
    %c0_i32_0 = arith.constant 0 : i32
    return %arg0, %c0_i32 : i32, i32
  }
  func.func @transform_3(%arg0: i32) -> (i32, i32) {
    %c0_i32 = arith.constant 0 : i32
    %c0_i32_0 = arith.constant 0 : i32
    %c0_i32_1 = arith.constant 0 : i32
    return %c0_i32, %c0_i32_0 : i32, i32
  }
  func.func @transform_4(%arg0: i32) -> (i32, i32) {
    %c0_i32 = arith.constant 0 : i32
    %c0_i32_0 = arith.constant 0 : i32
    %c0_i32_1 = arith.constant 0 : i32
    return %c0_i32, %c0_i32_0 : i32, i32
  }
}

module attributes {stable_mosaic.version = 11 : i64} {
  func.func @_mm_kernel(%arg0: i32, %arg1: memref<8x64xbf16, #tpu.memory_space<vmem>>, %arg2: memref<64x8xbf16, #tpu.memory_space<vmem>>, %arg3: memref<8x8xf32, #tpu.memory_space<vmem>>) attributes {dimension_semantics = [#tpu.dimension_semantics<parallel>], iteration_bounds = array<i64: 1>, scalar_prefetch = 0 : i64, scratch_operands = 0 : i64, tpu.core_type = #tpu.core_type<tc>, window_params = [{transform_indices = @transform_0, window_bounds = array<i64: 8, 64>}, {pipeline_mode = #tpu.pipeline_mode<synchronous>, transform_indices = @transform_1, window_bounds = array<i64: 64, 8>}, {transform_indices = @transform_2, window_bounds = array<i64: 8, 8>}]} {
    %c0 = arith.constant 0 : index
    %c0_0 = arith.constant 0 : index
    %0 = vector.load %arg1[%c0, %c0_0] : memref<8x64xbf16, #tpu.memory_space<vmem>>, vector<8x64xbf16>
    %c0_1 = arith.constant 0 : index
    %c0_2 = arith.constant 0 : index
    %1 = vector.load %arg2[%c0_1, %c0_2] : memref<64x8xbf16, #tpu.memory_space<vmem>>, vector<64x8xbf16>
    %cst = arith.constant dense<0.000000e+00> : vector<8x8xf32>
    %2 = tpu.matmul %0, %1, %cst {dimension_numbers = #tpu.dot_dimension_numbers<[1], [0], [0], [1], [0, 0, 1, 1], [], []>} : vector<8x64xbf16>, vector<64x8xbf16>, vector<8x8xf32> -> vector<8x8xf32>
    %c0_3 = arith.constant 0 : index
    %c0_4 = arith.constant 0 : index
    %3 = vector.load %arg3[%c0_3, %c0_4] : memref<8x8xf32, #tpu.memory_space<vmem>>, vector<8x8xf32>
    tpu.vector_store %arg3[%c0_3, %c0_4], %2 {strides = array<i32>} : memref<8x8xf32, #tpu.memory_space<vmem>>, vector<8x8xf32>,
    return
  }
  func.func @transform_0(%arg0: i32) -> (i32, i32) {
    %c0_i32 = arith.constant 0 : i32
    %c0_i32_0 = arith.constant 0 : i32
    return %arg0, %c0_i32 : i32, i32
  }
  func.func @transform_1(%arg0: i32) -> (i32, i32) {
    %c0_i32 = arith.constant 0 : i32
    %c0_i32_0 = arith.constant 0 : i32
    %c0_i32_1 = arith.constant 0 : i32
    return %c0_i32, %c0_i32_0 : i32, i32
  }
  func.func @transform_2(%arg0: i32) -> (i32, i32) {
    %c0_i32 = arith.constant 0 : i32
    %c0_i32_0 = arith.constant 0 : i32
    return %arg0, %c0_i32 : i32, i32
  }
}

module attributes {stable_mosaic.version = 11 : i64} {
  func.func @_mm_stats_kernel(%arg0: i32, %arg1: memref<8x8xbf16, #tpu.memory_space<vmem>>, %arg2: memref<8x192xbf16, #tpu.memory_space<vmem>>, %arg3: memref<8x192xf32, #tpu.memory_space<vmem>>, %arg4: memref<1x192xf32, #tpu.memory_space<vmem>>, %arg5: memref<1x192xf32, #tpu.memory_space<vmem>>) attributes {dimension_semantics = [#tpu.dimension_semantics<arbitrary>], iteration_bounds = array<i64: 1>, scalar_prefetch = 0 : i64, scratch_operands = 0 : i64, tpu.core_type = #tpu.core_type<tc>, window_params = [{transform_indices = @transform_0, window_bounds = array<i64: 8, 8>}, {pipeline_mode = #tpu.pipeline_mode<synchronous>, transform_indices = @transform_1, window_bounds = array<i64: 8, 192>}, {transform_indices = @transform_2, window_bounds = array<i64: 8, 192>}, {pipeline_mode = #tpu.pipeline_mode<synchronous>, transform_indices = @transform_3, window_bounds = array<i64: 1, 192>}, {pipeline_mode = #tpu.pipeline_mode<synchronous>, transform_indices = @transform_4, window_bounds = array<i64: 1, 192>}]} {
    %c0 = arith.constant 0 : index
    %c0_0 = arith.constant 0 : index
    %0 = vector.load %arg1[%c0, %c0_0] : memref<8x8xbf16, #tpu.memory_space<vmem>>, vector<8x8xbf16>
    %c0_1 = arith.constant 0 : index
    %c0_2 = arith.constant 0 : index
    %1 = vector.load %arg2[%c0_1, %c0_2] : memref<8x192xbf16, #tpu.memory_space<vmem>>, vector<8x192xbf16>
    %cst = arith.constant dense<0.000000e+00> : vector<8x192xf32>
    %2 = tpu.matmul %0, %1, %cst {dimension_numbers = #tpu.dot_dimension_numbers<[1], [0], [0], [1], [0, 0, 1, 1], [], []>} : vector<8x8xbf16>, vector<8x192xbf16>, vector<8x192xf32> -> vector<8x192xf32>
    %c0_3 = arith.constant 0 : index
    %c0_4 = arith.constant 0 : index
    %3 = vector.load %arg3[%c0_3, %c0_4] : memref<8x192xf32, #tpu.memory_space<vmem>>, vector<8x192xf32>
    tpu.vector_store %arg3[%c0_3, %c0_4], %2 {strides = array<i32>} : memref<8x192xf32, #tpu.memory_space<vmem>>, vector<8x192xf32>,
    %c0_i32 = arith.constant 0 : i32
    %4 = arith.cmpi eq, %arg0, %c0_i32 : i32
    %5 = arith.extui %4 : i1 to i32
    %c0_i32_5 = arith.constant 0 : i32
    %6 = arith.cmpi ne, %5, %c0_i32_5 : i32
    scf.if %6 {
      %cst_16 = arith.constant 0.000000e+00 : f32
      %18 = vector.broadcast %cst_16 : f32 to vector<1x192xf32>
      %c0_17 = arith.constant 0 : index
      %c0_18 = arith.constant 0 : index
      %19 = vector.load %arg4[%c0_17, %c0_18] : memref<1x192xf32, #tpu.memory_space<vmem>>, vector<1x192xf32>
      tpu.vector_store %arg4[%c0_17, %c0_18], %18 {strides = array<i32>} : memref<1x192xf32, #tpu.memory_space<vmem>>, vector<1x192xf32>,
      %cst_19 = arith.constant 0.000000e+00 : f32
      %20 = vector.broadcast %cst_19 : f32 to vector<1x192xf32>
      %c0_20 = arith.constant 0 : index
      %c0_21 = arith.constant 0 : index
      %21 = vector.load %arg5[%c0_20, %c0_21] : memref<1x192xf32, #tpu.memory_space<vmem>>, vector<1x192xf32>
      tpu.vector_store %arg5[%c0_20, %c0_21], %20 {strides = array<i32>} : memref<1x192xf32, #tpu.memory_space<vmem>>, vector<1x192xf32>,
    } else {
    }
    %c0_6 = arith.constant 0 : index
    %c0_7 = arith.constant 0 : index
    %7 = vector.load %arg4[%c0_6, %c0_7] : memref<1x192xf32, #tpu.memory_space<vmem>>, vector<1x192xf32>
    %cst_8 = arith.constant dense<0.000000e+00> : vector<192xf32>
    %8 = vector.multi_reduction <add>, %2, %cst_8 [0] : vector<8x192xf32> to vector<192xf32>
    %9 = vector.shape_cast %8 : vector<192xf32> to vector<1x192xf32>
    %10 = arith.addf %7, %9 : vector<1x192xf32>
    %c0_9 = arith.constant 0 : index
    %c0_10 = arith.constant 0 : index
    %11 = vector.load %arg4[%c0_9, %c0_10] : memref<1x192xf32, #tpu.memory_space<vmem>>, vector<1x192xf32>
    tpu.vector_store %arg4[%c0_9, %c0_10], %10 {strides = array<i32>} : memref<1x192xf32, #tpu.memory_space<vmem>>, vector<1x192xf32>,
    %c0_11 = arith.constant 0 : index
    %c0_12 = arith.constant 0 : index
    %12 = vector.load %arg5[%c0_11, %c0_12] : memref<1x192xf32, #tpu.memory_space<vmem>>, vector<1x192xf32>
    %13 = arith.mulf %2, %2 : vector<8x192xf32>
    %cst_13 = arith.constant dense<0.000000e+00> : vector<192xf32>
    %14 = vector.multi_reduction <add>, %13, %cst_13 [0] : vector<8x192xf32> to vector<192xf32>
    %15 = vector.shape_cast %14 : vector<192xf32> to vector<1x192xf32>
    %16 = arith.addf %12, %15 : vector<1x192xf32>
    %c0_14 = arith.constant 0 : index
    %c0_15 = arith.constant 0 : index
    %17 = vector.load %arg5[%c0_14, %c0_15] : memref<1x192xf32, #tpu.memory_space<vmem>>, vector<1x192xf32>
    tpu.vector_store %arg5[%c0_14, %c0_15], %16 {strides = array<i32>} : memref<1x192xf32, #tpu.memory_space<vmem>>, vector<1x192xf32>,
    return
  }
  func.func @transform_0(%arg0: i32) -> (i32, i32) {
    %c0_i32 = arith.constant 0 : i32
    %c0_i32_0 = arith.constant 0 : i32
    return %arg0, %c0_i32 : i32, i32
  }
  func.func @transform_1(%arg0: i32) -> (i32, i32) {
    %c0_i32 = arith.constant 0 : i32
    %c0_i32_0 = arith.constant 0 : i32
    %c0_i32_1 = arith.constant 0 : i32
    return %c0_i32, %c0_i32_0 : i32, i32
  }
  func.func @transform_2(%arg0: i32) -> (i32, i32) {
    %c0_i32 = arith.constant 0 : i32
    %c0_i32_0 = arith.constant 0 : i32
    return %arg0, %c0_i32 : i32, i32
  }
  func.func @transform_3(%arg0: i32) -> (i32, i32) {
    %c0_i32 = arith.constant 0 : i32
    %c0_i32_0 = arith.constant 0 : i32
    %c0_i32_1 = arith.constant 0 : i32
    return %c0_i32, %c0_i32_0 : i32, i32
  }
  func.func @transform_4(%arg0: i32) -> (i32, i32) {
    %c0_i32 = arith.constant 0 : i32
    %c0_i32_0 = arith.constant 0 : i32
    %c0_i32_1 = arith.constant 0 : i32
    return %c0_i32, %c0_i32_0 : i32, i32
  }
}

module attributes {stable_mosaic.version = 11 : i64} {
  func.func @_bn_relu_kernel(%arg0: i32, %arg1: memref<8x192xf32, #tpu.memory_space<vmem>>, %arg2: memref<1x192xf32, #tpu.memory_space<vmem>>, %arg3: memref<1x192xf32, #tpu.memory_space<vmem>>, %arg4: memref<8x192xf32, #tpu.memory_space<vmem>>) attributes {dimension_semantics = [#tpu.dimension_semantics<parallel>], iteration_bounds = array<i64: 1>, scalar_prefetch = 0 : i64, scratch_operands = 0 : i64, tpu.core_type = #tpu.core_type<tc>, window_params = [{transform_indices = @transform_0, window_bounds = array<i64: 8, 192>}, {pipeline_mode = #tpu.pipeline_mode<synchronous>, transform_indices = @transform_1, window_bounds = array<i64: 1, 192>}, {pipeline_mode = #tpu.pipeline_mode<synchronous>, transform_indices = @transform_2, window_bounds = array<i64: 1, 192>}, {transform_indices = @transform_3, window_bounds = array<i64: 8, 192>}]} {
    %c0 = arith.constant 0 : index
    %c0_0 = arith.constant 0 : index
    %0 = vector.load %arg1[%c0, %c0_0] : memref<8x192xf32, #tpu.memory_space<vmem>>, vector<8x192xf32>
    %c0_1 = arith.constant 0 : index
    %c0_2 = arith.constant 0 : index
    %1 = vector.load %arg2[%c0_1, %c0_2] : memref<1x192xf32, #tpu.memory_space<vmem>>, vector<1x192xf32>
    %2 = vector.broadcast %1 : vector<1x192xf32> to vector<8x192xf32>
    %3 = arith.subf %0, %2 : vector<8x192xf32>
    %c0_3 = arith.constant 0 : index
    %c0_4 = arith.constant 0 : index
    %4 = vector.load %arg3[%c0_3, %c0_4] : memref<1x192xf32, #tpu.memory_space<vmem>>, vector<1x192xf32>
    %5 = vector.broadcast %4 : vector<1x192xf32> to vector<8x192xf32>
    %6 = arith.mulf %3, %5 : vector<8x192xf32>
    %cst = arith.constant 0.000000e+00 : f32
    %7 = vector.broadcast %cst : f32 to vector<8x192xf32>
    %8 = arith.maximumf %6, %7 : vector<8x192xf32>
    %c0_5 = arith.constant 0 : index
    %c0_6 = arith.constant 0 : index
    %9 = vector.load %arg4[%c0_5, %c0_6] : memref<8x192xf32, #tpu.memory_space<vmem>>, vector<8x192xf32>
    tpu.vector_store %arg4[%c0_5, %c0_6], %8 {strides = array<i32>} : memref<8x192xf32, #tpu.memory_space<vmem>>, vector<8x192xf32>,
    return
  }
  func.func @transform_0(%arg0: i32) -> (i32, i32) {
    %c0_i32 = arith.constant 0 : i32
    %c0_i32_0 = arith.constant 0 : i32
    return %arg0, %c0_i32 : i32, i32
  }
  func.func @transform_1(%arg0: i32) -> (i32, i32) {
    %c0_i32 = arith.constant 0 : i32
    %c0_i32_0 = arith.constant 0 : i32
    %c0_i32_1 = arith.constant 0 : i32
    return %c0_i32, %c0_i32_0 : i32, i32
  }
  func.func @transform_2(%arg0: i32) -> (i32, i32) {
    %c0_i32 = arith.constant 0 : i32
    %c0_i32_0 = arith.constant 0 : i32
    %c0_i32_1 = arith.constant 0 : i32
    return %c0_i32, %c0_i32_0 : i32, i32
  }
  func.func @transform_3(%arg0: i32) -> (i32, i32) {
    %c0_i32 = arith.constant 0 : i32
    %c0_i32_0 = arith.constant 0 : i32
    return %arg0, %c0_i32 : i32, i32
  }
}

module attributes {stable_mosaic.version = 11 : i64} {
  func.func @_mm_stats_kernel(%arg0: i32, %arg1: memref<24x576xbf16, #tpu.memory_space<vmem>>, %arg2: memref<576x32xbf16, #tpu.memory_space<vmem>>, %arg3: memref<24x32xf32, #tpu.memory_space<vmem>>, %arg4: memref<1x32xf32, #tpu.memory_space<vmem>>, %arg5: memref<1x32xf32, #tpu.memory_space<vmem>>) attributes {dimension_semantics = [#tpu.dimension_semantics<arbitrary>], iteration_bounds = array<i64: 1>, scalar_prefetch = 0 : i64, scratch_operands = 0 : i64, tpu.core_type = #tpu.core_type<tc>, window_params = [{transform_indices = @transform_0, window_bounds = array<i64: 24, 576>}, {pipeline_mode = #tpu.pipeline_mode<synchronous>, transform_indices = @transform_1, window_bounds = array<i64: 576, 32>}, {transform_indices = @transform_2, window_bounds = array<i64: 24, 32>}, {pipeline_mode = #tpu.pipeline_mode<synchronous>, transform_indices = @transform_3, window_bounds = array<i64: 1, 32>}, {pipeline_mode = #tpu.pipeline_mode<synchronous>, transform_indices = @transform_4, window_bounds = array<i64: 1, 32>}]} {
    %c0 = arith.constant 0 : index
    %c0_0 = arith.constant 0 : index
    %0 = vector.load %arg1[%c0, %c0_0] : memref<24x576xbf16, #tpu.memory_space<vmem>>, vector<24x576xbf16>
    %c0_1 = arith.constant 0 : index
    %c0_2 = arith.constant 0 : index
    %1 = vector.load %arg2[%c0_1, %c0_2] : memref<576x32xbf16, #tpu.memory_space<vmem>>, vector<576x32xbf16>
    %cst = arith.constant dense<0.000000e+00> : vector<24x32xf32>
    %2 = tpu.matmul %0, %1, %cst {dimension_numbers = #tpu.dot_dimension_numbers<[1], [0], [0], [1], [0, 0, 1, 1], [], []>} : vector<24x576xbf16>, vector<576x32xbf16>, vector<24x32xf32> -> vector<24x32xf32>
    %c0_3 = arith.constant 0 : index
    %c0_4 = arith.constant 0 : index
    %3 = vector.load %arg3[%c0_3, %c0_4] : memref<24x32xf32, #tpu.memory_space<vmem>>, vector<24x32xf32>
    tpu.vector_store %arg3[%c0_3, %c0_4], %2 {strides = array<i32>} : memref<24x32xf32, #tpu.memory_space<vmem>>, vector<24x32xf32>,
    %c0_i32 = arith.constant 0 : i32
    %4 = arith.cmpi eq, %arg0, %c0_i32 : i32
    %5 = arith.extui %4 : i1 to i32
    %c0_i32_5 = arith.constant 0 : i32
    %6 = arith.cmpi ne, %5, %c0_i32_5 : i32
    scf.if %6 {
      %cst_16 = arith.constant 0.000000e+00 : f32
      %18 = vector.broadcast %cst_16 : f32 to vector<1x32xf32>
      %c0_17 = arith.constant 0 : index
      %c0_18 = arith.constant 0 : index
      %19 = vector.load %arg4[%c0_17, %c0_18] : memref<1x32xf32, #tpu.memory_space<vmem>>, vector<1x32xf32>
      tpu.vector_store %arg4[%c0_17, %c0_18], %18 {strides = array<i32>} : memref<1x32xf32, #tpu.memory_space<vmem>>, vector<1x32xf32>,
      %cst_19 = arith.constant 0.000000e+00 : f32
      %20 = vector.broadcast %cst_19 : f32 to vector<1x32xf32>
      %c0_20 = arith.constant 0 : index
      %c0_21 = arith.constant 0 : index
      %21 = vector.load %arg5[%c0_20, %c0_21] : memref<1x32xf32, #tpu.memory_space<vmem>>, vector<1x32xf32>
      tpu.vector_store %arg5[%c0_20, %c0_21], %20 {strides = array<i32>} : memref<1x32xf32, #tpu.memory_space<vmem>>, vector<1x32xf32>,
    } else {
    }
    %c0_6 = arith.constant 0 : index
    %c0_7 = arith.constant 0 : index
    %7 = vector.load %arg4[%c0_6, %c0_7] : memref<1x32xf32, #tpu.memory_space<vmem>>, vector<1x32xf32>
    %cst_8 = arith.constant dense<0.000000e+00> : vector<32xf32>
    %8 = vector.multi_reduction <add>, %2, %cst_8 [0] : vector<24x32xf32> to vector<32xf32>
    %9 = vector.shape_cast %8 : vector<32xf32> to vector<1x32xf32>
    %10 = arith.addf %7, %9 : vector<1x32xf32>
    %c0_9 = arith.constant 0 : index
    %c0_10 = arith.constant 0 : index
    %11 = vector.load %arg4[%c0_9, %c0_10] : memref<1x32xf32, #tpu.memory_space<vmem>>, vector<1x32xf32>
    tpu.vector_store %arg4[%c0_9, %c0_10], %10 {strides = array<i32>} : memref<1x32xf32, #tpu.memory_space<vmem>>, vector<1x32xf32>,
    %c0_11 = arith.constant 0 : index
    %c0_12 = arith.constant 0 : index
    %12 = vector.load %arg5[%c0_11, %c0_12] : memref<1x32xf32, #tpu.memory_space<vmem>>, vector<1x32xf32>
    %13 = arith.mulf %2, %2 : vector<24x32xf32>
    %cst_13 = arith.constant dense<0.000000e+00> : vector<32xf32>
    %14 = vector.multi_reduction <add>, %13, %cst_13 [0] : vector<24x32xf32> to vector<32xf32>
    %15 = vector.shape_cast %14 : vector<32xf32> to vector<1x32xf32>
    %16 = arith.addf %12, %15 : vector<1x32xf32>
    %c0_14 = arith.constant 0 : index
    %c0_15 = arith.constant 0 : index
    %17 = vector.load %arg5[%c0_14, %c0_15] : memref<1x32xf32, #tpu.memory_space<vmem>>, vector<1x32xf32>
    tpu.vector_store %arg5[%c0_14, %c0_15], %16 {strides = array<i32>} : memref<1x32xf32, #tpu.memory_space<vmem>>, vector<1x32xf32>,
    return
  }
  func.func @transform_0(%arg0: i32) -> (i32, i32) {
    %c0_i32 = arith.constant 0 : i32
    %c0_i32_0 = arith.constant 0 : i32
    return %arg0, %c0_i32 : i32, i32
  }
  func.func @transform_1(%arg0: i32) -> (i32, i32) {
    %c0_i32 = arith.constant 0 : i32
    %c0_i32_0 = arith.constant 0 : i32
    %c0_i32_1 = arith.constant 0 : i32
    return %c0_i32, %c0_i32_0 : i32, i32
  }
  func.func @transform_2(%arg0: i32) -> (i32, i32) {
    %c0_i32 = arith.constant 0 : i32
    %c0_i32_0 = arith.constant 0 : i32
    return %arg0, %c0_i32 : i32, i32
  }
  func.func @transform_3(%arg0: i32) -> (i32, i32) {
    %c0_i32 = arith.constant 0 : i32
    %c0_i32_0 = arith.constant 0 : i32
    %c0_i32_1 = arith.constant 0 : i32
    return %c0_i32, %c0_i32_0 : i32, i32
  }
  func.func @transform_4(%arg0: i32) -> (i32, i32) {
    %c0_i32 = arith.constant 0 : i32
    %c0_i32_0 = arith.constant 0 : i32
    %c0_i32_1 = arith.constant 0 : i32
    return %c0_i32, %c0_i32_0 : i32, i32
  }
}

module attributes {stable_mosaic.version = 11 : i64} {
  func.func @_bn_relu_kernel(%arg0: i32, %arg1: memref<24x32xf32, #tpu.memory_space<vmem>>, %arg2: memref<1x32xf32, #tpu.memory_space<vmem>>, %arg3: memref<1x32xf32, #tpu.memory_space<vmem>>, %arg4: memref<24x32xf32, #tpu.memory_space<vmem>>) attributes {dimension_semantics = [#tpu.dimension_semantics<parallel>], iteration_bounds = array<i64: 1>, scalar_prefetch = 0 : i64, scratch_operands = 0 : i64, tpu.core_type = #tpu.core_type<tc>, window_params = [{transform_indices = @transform_0, window_bounds = array<i64: 24, 32>}, {pipeline_mode = #tpu.pipeline_mode<synchronous>, transform_indices = @transform_1, window_bounds = array<i64: 1, 32>}, {pipeline_mode = #tpu.pipeline_mode<synchronous>, transform_indices = @transform_2, window_bounds = array<i64: 1, 32>}, {transform_indices = @transform_3, window_bounds = array<i64: 24, 32>}]} {
    %c0 = arith.constant 0 : index
    %c0_0 = arith.constant 0 : index
    %0 = vector.load %arg1[%c0, %c0_0] : memref<24x32xf32, #tpu.memory_space<vmem>>, vector<24x32xf32>
    %c0_1 = arith.constant 0 : index
    %c0_2 = arith.constant 0 : index
    %1 = vector.load %arg2[%c0_1, %c0_2] : memref<1x32xf32, #tpu.memory_space<vmem>>, vector<1x32xf32>
    %2 = vector.broadcast %1 : vector<1x32xf32> to vector<24x32xf32>
    %3 = arith.subf %0, %2 : vector<24x32xf32>
    %c0_3 = arith.constant 0 : index
    %c0_4 = arith.constant 0 : index
    %4 = vector.load %arg3[%c0_3, %c0_4] : memref<1x32xf32, #tpu.memory_space<vmem>>, vector<1x32xf32>
    %5 = vector.broadcast %4 : vector<1x32xf32> to vector<24x32xf32>
    %6 = arith.mulf %3, %5 : vector<24x32xf32>
    %cst = arith.constant 0.000000e+00 : f32
    %7 = vector.broadcast %cst : f32 to vector<24x32xf32>
    %8 = arith.maximumf %6, %7 : vector<24x32xf32>
    %c0_5 = arith.constant 0 : index
    %c0_6 = arith.constant 0 : index
    %9 = vector.load %arg4[%c0_5, %c0_6] : memref<24x32xf32, #tpu.memory_space<vmem>>, vector<24x32xf32>
    tpu.vector_store %arg4[%c0_5, %c0_6], %8 {strides = array<i32>} : memref<24x32xf32, #tpu.memory_space<vmem>>, vector<24x32xf32>,
    return
  }
  func.func @transform_0(%arg0: i32) -> (i32, i32) {
    %c0_i32 = arith.constant 0 : i32
    %c0_i32_0 = arith.constant 0 : i32
    return %arg0, %c0_i32 : i32, i32
  }
  func.func @transform_1(%arg0: i32) -> (i32, i32) {
    %c0_i32 = arith.constant 0 : i32
    %c0_i32_0 = arith.constant 0 : i32
    %c0_i32_1 = arith.constant 0 : i32
    return %c0_i32, %c0_i32_0 : i32, i32
  }
  func.func @transform_2(%arg0: i32) -> (i32, i32) {
    %c0_i32 = arith.constant 0 : i32
    %c0_i32_0 = arith.constant 0 : i32
    %c0_i32_1 = arith.constant 0 : i32
    return %c0_i32, %c0_i32_0 : i32, i32
  }
  func.func @transform_3(%arg0: i32) -> (i32, i32) {
    %c0_i32 = arith.constant 0 : i32
    %c0_i32_0 = arith.constant 0 : i32
    return %arg0, %c0_i32 : i32, i32
  }
}

module attributes {stable_mosaic.version = 11 : i64} {
  func.func @_mm_stats_kernel(%arg0: i32, %arg1: memref<96x288xbf16, #tpu.memory_space<vmem>>, %arg2: memref<288x16xbf16, #tpu.memory_space<vmem>>, %arg3: memref<96x16xf32, #tpu.memory_space<vmem>>, %arg4: memref<1x16xf32, #tpu.memory_space<vmem>>, %arg5: memref<1x16xf32, #tpu.memory_space<vmem>>) attributes {dimension_semantics = [#tpu.dimension_semantics<arbitrary>], iteration_bounds = array<i64: 1>, scalar_prefetch = 0 : i64, scratch_operands = 0 : i64, tpu.core_type = #tpu.core_type<tc>, window_params = [{transform_indices = @transform_0, window_bounds = array<i64: 96, 288>}, {pipeline_mode = #tpu.pipeline_mode<synchronous>, transform_indices = @transform_1, window_bounds = array<i64: 288, 16>}, {transform_indices = @transform_2, window_bounds = array<i64: 96, 16>}, {pipeline_mode = #tpu.pipeline_mode<synchronous>, transform_indices = @transform_3, window_bounds = array<i64: 1, 16>}, {pipeline_mode = #tpu.pipeline_mode<synchronous>, transform_indices = @transform_4, window_bounds = array<i64: 1, 16>}]} {
    %c0 = arith.constant 0 : index
    %c0_0 = arith.constant 0 : index
    %0 = vector.load %arg1[%c0, %c0_0] : memref<96x288xbf16, #tpu.memory_space<vmem>>, vector<96x288xbf16>
    %c0_1 = arith.constant 0 : index
    %c0_2 = arith.constant 0 : index
    %1 = vector.load %arg2[%c0_1, %c0_2] : memref<288x16xbf16, #tpu.memory_space<vmem>>, vector<288x16xbf16>
    %cst = arith.constant dense<0.000000e+00> : vector<96x16xf32>
    %2 = tpu.matmul %0, %1, %cst {dimension_numbers = #tpu.dot_dimension_numbers<[1], [0], [0], [1], [0, 0, 1, 1], [], []>} : vector<96x288xbf16>, vector<288x16xbf16>, vector<96x16xf32> -> vector<96x16xf32>
    %c0_3 = arith.constant 0 : index
    %c0_4 = arith.constant 0 : index
    %3 = vector.load %arg3[%c0_3, %c0_4] : memref<96x16xf32, #tpu.memory_space<vmem>>, vector<96x16xf32>
    tpu.vector_store %arg3[%c0_3, %c0_4], %2 {strides = array<i32>} : memref<96x16xf32, #tpu.memory_space<vmem>>, vector<96x16xf32>,
    %c0_i32 = arith.constant 0 : i32
    %4 = arith.cmpi eq, %arg0, %c0_i32 : i32
    %5 = arith.extui %4 : i1 to i32
    %c0_i32_5 = arith.constant 0 : i32
    %6 = arith.cmpi ne, %5, %c0_i32_5 : i32
    scf.if %6 {
      %cst_16 = arith.constant 0.000000e+00 : f32
      %18 = vector.broadcast %cst_16 : f32 to vector<1x16xf32>
      %c0_17 = arith.constant 0 : index
      %c0_18 = arith.constant 0 : index
      %19 = vector.load %arg4[%c0_17, %c0_18] : memref<1x16xf32, #tpu.memory_space<vmem>>, vector<1x16xf32>
      tpu.vector_store %arg4[%c0_17, %c0_18], %18 {strides = array<i32>} : memref<1x16xf32, #tpu.memory_space<vmem>>, vector<1x16xf32>,
      %cst_19 = arith.constant 0.000000e+00 : f32
      %20 = vector.broadcast %cst_19 : f32 to vector<1x16xf32>
      %c0_20 = arith.constant 0 : index
      %c0_21 = arith.constant 0 : index
      %21 = vector.load %arg5[%c0_20, %c0_21] : memref<1x16xf32, #tpu.memory_space<vmem>>, vector<1x16xf32>
      tpu.vector_store %arg5[%c0_20, %c0_21], %20 {strides = array<i32>} : memref<1x16xf32, #tpu.memory_space<vmem>>, vector<1x16xf32>,
    } else {
    }
    %c0_6 = arith.constant 0 : index
    %c0_7 = arith.constant 0 : index
    %7 = vector.load %arg4[%c0_6, %c0_7] : memref<1x16xf32, #tpu.memory_space<vmem>>, vector<1x16xf32>
    %cst_8 = arith.constant dense<0.000000e+00> : vector<16xf32>
    %8 = vector.multi_reduction <add>, %2, %cst_8 [0] : vector<96x16xf32> to vector<16xf32>
    %9 = vector.shape_cast %8 : vector<16xf32> to vector<1x16xf32>
    %10 = arith.addf %7, %9 : vector<1x16xf32>
    %c0_9 = arith.constant 0 : index
    %c0_10 = arith.constant 0 : index
    %11 = vector.load %arg4[%c0_9, %c0_10] : memref<1x16xf32, #tpu.memory_space<vmem>>, vector<1x16xf32>
    tpu.vector_store %arg4[%c0_9, %c0_10], %10 {strides = array<i32>} : memref<1x16xf32, #tpu.memory_space<vmem>>, vector<1x16xf32>,
    %c0_11 = arith.constant 0 : index
    %c0_12 = arith.constant 0 : index
    %12 = vector.load %arg5[%c0_11, %c0_12] : memref<1x16xf32, #tpu.memory_space<vmem>>, vector<1x16xf32>
    %13 = arith.mulf %2, %2 : vector<96x16xf32>
    %cst_13 = arith.constant dense<0.000000e+00> : vector<16xf32>
    %14 = vector.multi_reduction <add>, %13, %cst_13 [0] : vector<96x16xf32> to vector<16xf32>
    %15 = vector.shape_cast %14 : vector<16xf32> to vector<1x16xf32>
    %16 = arith.addf %12, %15 : vector<1x16xf32>
    %c0_14 = arith.constant 0 : index
    %c0_15 = arith.constant 0 : index
    %17 = vector.load %arg5[%c0_14, %c0_15] : memref<1x16xf32, #tpu.memory_space<vmem>>, vector<1x16xf32>
    tpu.vector_store %arg5[%c0_14, %c0_15], %16 {strides = array<i32>} : memref<1x16xf32, #tpu.memory_space<vmem>>, vector<1x16xf32>,
    return
  }
  func.func @transform_0(%arg0: i32) -> (i32, i32) {
    %c0_i32 = arith.constant 0 : i32
    %c0_i32_0 = arith.constant 0 : i32
    return %arg0, %c0_i32 : i32, i32
  }
  func.func @transform_1(%arg0: i32) -> (i32, i32) {
    %c0_i32 = arith.constant 0 : i32
    %c0_i32_0 = arith.constant 0 : i32
    %c0_i32_1 = arith.constant 0 : i32
    return %c0_i32, %c0_i32_0 : i32, i32
  }
  func.func @transform_2(%arg0: i32) -> (i32, i32) {
    %c0_i32 = arith.constant 0 : i32
    %c0_i32_0 = arith.constant 0 : i32
    return %arg0, %c0_i32 : i32, i32
  }
  func.func @transform_3(%arg0: i32) -> (i32, i32) {
    %c0_i32 = arith.constant 0 : i32
    %c0_i32_0 = arith.constant 0 : i32
    %c0_i32_1 = arith.constant 0 : i32
    return %c0_i32, %c0_i32_0 : i32, i32
  }
  func.func @transform_4(%arg0: i32) -> (i32, i32) {
    %c0_i32 = arith.constant 0 : i32
    %c0_i32_0 = arith.constant 0 : i32
    %c0_i32_1 = arith.constant 0 : i32
    return %c0_i32, %c0_i32_0 : i32, i32
  }
}

module attributes {stable_mosaic.version = 11 : i64} {
  func.func @_bn_relu_kernel(%arg0: i32, %arg1: memref<96x16xf32, #tpu.memory_space<vmem>>, %arg2: memref<1x16xf32, #tpu.memory_space<vmem>>, %arg3: memref<1x16xf32, #tpu.memory_space<vmem>>, %arg4: memref<96x16xf32, #tpu.memory_space<vmem>>) attributes {dimension_semantics = [#tpu.dimension_semantics<parallel>], iteration_bounds = array<i64: 1>, scalar_prefetch = 0 : i64, scratch_operands = 0 : i64, tpu.core_type = #tpu.core_type<tc>, window_params = [{transform_indices = @transform_0, window_bounds = array<i64: 96, 16>}, {pipeline_mode = #tpu.pipeline_mode<synchronous>, transform_indices = @transform_1, window_bounds = array<i64: 1, 16>}, {pipeline_mode = #tpu.pipeline_mode<synchronous>, transform_indices = @transform_2, window_bounds = array<i64: 1, 16>}, {transform_indices = @transform_3, window_bounds = array<i64: 96, 16>}]} {
    %c0 = arith.constant 0 : index
    %c0_0 = arith.constant 0 : index
    %0 = vector.load %arg1[%c0, %c0_0] : memref<96x16xf32, #tpu.memory_space<vmem>>, vector<96x16xf32>
    %c0_1 = arith.constant 0 : index
    %c0_2 = arith.constant 0 : index
    %1 = vector.load %arg2[%c0_1, %c0_2] : memref<1x16xf32, #tpu.memory_space<vmem>>, vector<1x16xf32>
    %2 = vector.broadcast %1 : vector<1x16xf32> to vector<96x16xf32>
    %3 = arith.subf %0, %2 : vector<96x16xf32>
    %c0_3 = arith.constant 0 : index
    %c0_4 = arith.constant 0 : index
    %4 = vector.load %arg3[%c0_3, %c0_4] : memref<1x16xf32, #tpu.memory_space<vmem>>, vector<1x16xf32>
    %5 = vector.broadcast %4 : vector<1x16xf32> to vector<96x16xf32>
    %6 = arith.mulf %3, %5 : vector<96x16xf32>
    %cst = arith.constant 0.000000e+00 : f32
    %7 = vector.broadcast %cst : f32 to vector<96x16xf32>
    %8 = arith.maximumf %6, %7 : vector<96x16xf32>
    %c0_5 = arith.constant 0 : index
    %c0_6 = arith.constant 0 : index
    %9 = vector.load %arg4[%c0_5, %c0_6] : memref<96x16xf32, #tpu.memory_space<vmem>>, vector<96x16xf32>
    tpu.vector_store %arg4[%c0_5, %c0_6], %8 {strides = array<i32>} : memref<96x16xf32, #tpu.memory_space<vmem>>, vector<96x16xf32>,
    return
  }
  func.func @transform_0(%arg0: i32) -> (i32, i32) {
    %c0_i32 = arith.constant 0 : i32
    %c0_i32_0 = arith.constant 0 : i32
    return %arg0, %c0_i32 : i32, i32
  }
  func.func @transform_1(%arg0: i32) -> (i32, i32) {
    %c0_i32 = arith.constant 0 : i32
    %c0_i32_0 = arith.constant 0 : i32
    %c0_i32_1 = arith.constant 0 : i32
    return %c0_i32, %c0_i32_0 : i32, i32
  }
  func.func @transform_2(%arg0: i32) -> (i32, i32) {
    %c0_i32 = arith.constant 0 : i32
    %c0_i32_0 = arith.constant 0 : i32
    %c0_i32_1 = arith.constant 0 : i32
    return %c0_i32, %c0_i32_0 : i32, i32
  }
  func.func @transform_3(%arg0: i32) -> (i32, i32) {
    %c0_i32 = arith.constant 0 : i32
    %c0_i32_0 = arith.constant 0 : i32
    return %arg0, %c0_i32 : i32, i32
  }
}

module attributes {stable_mosaic.version = 11 : i64} {
  func.func @_mm_stats_kernel(%arg0: i32, %arg1: memref<256x144xbf16, #tpu.memory_space<vmem>>, %arg2: memref<144x8xbf16, #tpu.memory_space<vmem>>, %arg3: memref<256x8xf32, #tpu.memory_space<vmem>>, %arg4: memref<1x8xf32, #tpu.memory_space<vmem>>, %arg5: memref<1x8xf32, #tpu.memory_space<vmem>>) attributes {dimension_semantics = [#tpu.dimension_semantics<arbitrary>], iteration_bounds = array<i64: 2>, scalar_prefetch = 0 : i64, scratch_operands = 0 : i64, tpu.core_type = #tpu.core_type<tc>, window_params = [{transform_indices = @transform_0, window_bounds = array<i64: 256, 144>}, {pipeline_mode = #tpu.pipeline_mode<synchronous>, transform_indices = @transform_1, window_bounds = array<i64: 144, 8>}, {transform_indices = @transform_2, window_bounds = array<i64: 256, 8>}, {pipeline_mode = #tpu.pipeline_mode<synchronous>, transform_indices = @transform_3, window_bounds = array<i64: 1, 8>}, {pipeline_mode = #tpu.pipeline_mode<synchronous>, transform_indices = @transform_4, window_bounds = array<i64: 1, 8>}]} {
    %c0 = arith.constant 0 : index
    %c0_0 = arith.constant 0 : index
    %0 = vector.load %arg1[%c0, %c0_0] : memref<256x144xbf16, #tpu.memory_space<vmem>>, vector<256x144xbf16>
    %c0_1 = arith.constant 0 : index
    %c0_2 = arith.constant 0 : index
    %1 = vector.load %arg2[%c0_1, %c0_2] : memref<144x8xbf16, #tpu.memory_space<vmem>>, vector<144x8xbf16>
    %cst = arith.constant dense<0.000000e+00> : vector<256x8xf32>
    %2 = tpu.matmul %0, %1, %cst {dimension_numbers = #tpu.dot_dimension_numbers<[1], [0], [0], [1], [0, 0, 1, 1], [], []>} : vector<256x144xbf16>, vector<144x8xbf16>, vector<256x8xf32> -> vector<256x8xf32>
    %c0_3 = arith.constant 0 : index
    %c0_4 = arith.constant 0 : index
    %3 = vector.load %arg3[%c0_3, %c0_4] : memref<256x8xf32, #tpu.memory_space<vmem>>, vector<256x8xf32>
    tpu.vector_store %arg3[%c0_3, %c0_4], %2 {strides = array<i32>} : memref<256x8xf32, #tpu.memory_space<vmem>>, vector<256x8xf32>,
    %c0_i32 = arith.constant 0 : i32
    %4 = arith.cmpi eq, %arg0, %c0_i32 : i32
    %5 = arith.extui %4 : i1 to i32
    %c0_i32_5 = arith.constant 0 : i32
    %6 = arith.cmpi ne, %5, %c0_i32_5 : i32
    scf.if %6 {
      %cst_16 = arith.constant 0.000000e+00 : f32
      %18 = vector.broadcast %cst_16 : f32 to vector<1x8xf32>
      %c0_17 = arith.constant 0 : index
      %c0_18 = arith.constant 0 : index
      %19 = vector.load %arg4[%c0_17, %c0_18] : memref<1x8xf32, #tpu.memory_space<vmem>>, vector<1x8xf32>
      tpu.vector_store %arg4[%c0_17, %c0_18], %18 {strides = array<i32>} : memref<1x8xf32, #tpu.memory_space<vmem>>, vector<1x8xf32>,
      %cst_19 = arith.constant 0.000000e+00 : f32
      %20 = vector.broadcast %cst_19 : f32 to vector<1x8xf32>
      %c0_20 = arith.constant 0 : index
      %c0_21 = arith.constant 0 : index
      %21 = vector.load %arg5[%c0_20, %c0_21] : memref<1x8xf32, #tpu.memory_space<vmem>>, vector<1x8xf32>
      tpu.vector_store %arg5[%c0_20, %c0_21], %20 {strides = array<i32>} : memref<1x8xf32, #tpu.memory_space<vmem>>, vector<1x8xf32>,
    } else {
    }
    %c0_6 = arith.constant 0 : index
    %c0_7 = arith.constant 0 : index
    %7 = vector.load %arg4[%c0_6, %c0_7] : memref<1x8xf32, #tpu.memory_space<vmem>>, vector<1x8xf32>
    %cst_8 = arith.constant dense<0.000000e+00> : vector<8xf32>
    %8 = vector.multi_reduction <add>, %2, %cst_8 [0] : vector<256x8xf32> to vector<8xf32>
    %9 = vector.shape_cast %8 : vector<8xf32> to vector<1x8xf32>
    %10 = arith.addf %7, %9 : vector<1x8xf32>
    %c0_9 = arith.constant 0 : index
    %c0_10 = arith.constant 0 : index
    %11 = vector.load %arg4[%c0_9, %c0_10] : memref<1x8xf32, #tpu.memory_space<vmem>>, vector<1x8xf32>
    tpu.vector_store %arg4[%c0_9, %c0_10], %10 {strides = array<i32>} : memref<1x8xf32, #tpu.memory_space<vmem>>, vector<1x8xf32>,
    %c0_11 = arith.constant 0 : index
    %c0_12 = arith.constant 0 : index
    %12 = vector.load %arg5[%c0_11, %c0_12] : memref<1x8xf32, #tpu.memory_space<vmem>>, vector<1x8xf32>
    %13 = arith.mulf %2, %2 : vector<256x8xf32>
    %cst_13 = arith.constant dense<0.000000e+00> : vector<8xf32>
    %14 = vector.multi_reduction <add>, %13, %cst_13 [0] : vector<256x8xf32> to vector<8xf32>
    %15 = vector.shape_cast %14 : vector<8xf32> to vector<1x8xf32>
    %16 = arith.addf %12, %15 : vector<1x8xf32>
    %c0_14 = arith.constant 0 : index
    %c0_15 = arith.constant 0 : index
    %17 = vector.load %arg5[%c0_14, %c0_15] : memref<1x8xf32, #tpu.memory_space<vmem>>, vector<1x8xf32>
    tpu.vector_store %arg5[%c0_14, %c0_15], %16 {strides = array<i32>} : memref<1x8xf32, #tpu.memory_space<vmem>>, vector<1x8xf32>,
    return
  }
  func.func @transform_0(%arg0: i32) -> (i32, i32) {
    %c0_i32 = arith.constant 0 : i32
    %c0_i32_0 = arith.constant 0 : i32
    return %arg0, %c0_i32 : i32, i32
  }
  func.func @transform_1(%arg0: i32) -> (i32, i32) {
    %c0_i32 = arith.constant 0 : i32
    %c0_i32_0 = arith.constant 0 : i32
    %c0_i32_1 = arith.constant 0 : i32
    return %c0_i32, %c0_i32_0 : i32, i32
  }
  func.func @transform_2(%arg0: i32) -> (i32, i32) {
    %c0_i32 = arith.constant 0 : i32
    %c0_i32_0 = arith.constant 0 : i32
    return %arg0, %c0_i32 : i32, i32
  }
  func.func @transform_3(%arg0: i32) -> (i32, i32) {
    %c0_i32 = arith.constant 0 : i32
    %c0_i32_0 = arith.constant 0 : i32
    %c0_i32_1 = arith.constant 0 : i32
    return %c0_i32, %c0_i32_0 : i32, i32
  }
  func.func @transform_4(%arg0: i32) -> (i32, i32) {
    %c0_i32 = arith.constant 0 : i32
    %c0_i32_0 = arith.constant 0 : i32
    %c0_i32_1 = arith.constant 0 : i32
    return %c0_i32, %c0_i32_0 : i32, i32
  }
}

module attributes {stable_mosaic.version = 11 : i64} {
  func.func @_bn_relu_kernel(%arg0: i32, %arg1: memref<512x8xf32, #tpu.memory_space<vmem>>, %arg2: memref<1x8xf32, #tpu.memory_space<vmem>>, %arg3: memref<1x8xf32, #tpu.memory_space<vmem>>, %arg4: memref<512x8xf32, #tpu.memory_space<vmem>>) attributes {dimension_semantics = [#tpu.dimension_semantics<parallel>], iteration_bounds = array<i64: 1>, scalar_prefetch = 0 : i64, scratch_operands = 0 : i64, tpu.core_type = #tpu.core_type<tc>, window_params = [{transform_indices = @transform_0, window_bounds = array<i64: 512, 8>}, {pipeline_mode = #tpu.pipeline_mode<synchronous>, transform_indices = @transform_1, window_bounds = array<i64: 1, 8>}, {pipeline_mode = #tpu.pipeline_mode<synchronous>, transform_indices = @transform_2, window_bounds = array<i64: 1, 8>}, {transform_indices = @transform_3, window_bounds = array<i64: 512, 8>}]} {
    %c0 = arith.constant 0 : index
    %c0_0 = arith.constant 0 : index
    %0 = vector.load %arg1[%c0, %c0_0] : memref<512x8xf32, #tpu.memory_space<vmem>>, vector<512x8xf32>
    %c0_1 = arith.constant 0 : index
    %c0_2 = arith.constant 0 : index
    %1 = vector.load %arg2[%c0_1, %c0_2] : memref<1x8xf32, #tpu.memory_space<vmem>>, vector<1x8xf32>
    %2 = vector.broadcast %1 : vector<1x8xf32> to vector<512x8xf32>
    %3 = arith.subf %0, %2 : vector<512x8xf32>
    %c0_3 = arith.constant 0 : index
    %c0_4 = arith.constant 0 : index
    %4 = vector.load %arg3[%c0_3, %c0_4] : memref<1x8xf32, #tpu.memory_space<vmem>>, vector<1x8xf32>
    %5 = vector.broadcast %4 : vector<1x8xf32> to vector<512x8xf32>
    %6 = arith.mulf %3, %5 : vector<512x8xf32>
    %cst = arith.constant 0.000000e+00 : f32
    %7 = vector.broadcast %cst : f32 to vector<512x8xf32>
    %8 = arith.maximumf %6, %7 : vector<512x8xf32>
    %c0_5 = arith.constant 0 : index
    %c0_6 = arith.constant 0 : index
    %9 = vector.load %arg4[%c0_5, %c0_6] : memref<512x8xf32, #tpu.memory_space<vmem>>, vector<512x8xf32>
    tpu.vector_store %arg4[%c0_5, %c0_6], %8 {strides = array<i32>} : memref<512x8xf32, #tpu.memory_space<vmem>>, vector<512x8xf32>,
    return
  }
  func.func @transform_0(%arg0: i32) -> (i32, i32) {
    %c0_i32 = arith.constant 0 : i32
    %c0_i32_0 = arith.constant 0 : i32
    return %arg0, %c0_i32 : i32, i32
  }
  func.func @transform_1(%arg0: i32) -> (i32, i32) {
    %c0_i32 = arith.constant 0 : i32
    %c0_i32_0 = arith.constant 0 : i32
    %c0_i32_1 = arith.constant 0 : i32
    return %c0_i32, %c0_i32_0 : i32, i32
  }
  func.func @transform_2(%arg0: i32) -> (i32, i32) {
    %c0_i32 = arith.constant 0 : i32
    %c0_i32_0 = arith.constant 0 : i32
    %c0_i32_1 = arith.constant 0 : i32
    return %c0_i32, %c0_i32_0 : i32, i32
  }
  func.func @transform_3(%arg0: i32) -> (i32, i32) {
    %c0_i32 = arith.constant 0 : i32
    %c0_i32_0 = arith.constant 0 : i32
    return %arg0, %c0_i32 : i32, i32
  }
}

module attributes {stable_mosaic.version = 11 : i64} {
  func.func @_mm_stats_kernel(%arg0: i32, %arg1: memref<256x72xbf16, #tpu.memory_space<vmem>>, %arg2: memref<72x4xbf16, #tpu.memory_space<vmem>>, %arg3: memref<256x4xf32, #tpu.memory_space<vmem>>, %arg4: memref<1x4xf32, #tpu.memory_space<vmem>>, %arg5: memref<1x4xf32, #tpu.memory_space<vmem>>) attributes {dimension_semantics = [#tpu.dimension_semantics<arbitrary>], iteration_bounds = array<i64: 6>, scalar_prefetch = 0 : i64, scratch_operands = 0 : i64, tpu.core_type = #tpu.core_type<tc>, window_params = [{transform_indices = @transform_0, window_bounds = array<i64: 256, 72>}, {pipeline_mode = #tpu.pipeline_mode<synchronous>, transform_indices = @transform_1, window_bounds = array<i64: 72, 4>}, {transform_indices = @transform_2, window_bounds = array<i64: 256, 4>}, {pipeline_mode = #tpu.pipeline_mode<synchronous>, transform_indices = @transform_3, window_bounds = array<i64: 1, 4>}, {pipeline_mode = #tpu.pipeline_mode<synchronous>, transform_indices = @transform_4, window_bounds = array<i64: 1, 4>}]} {
    %c0 = arith.constant 0 : index
    %c0_0 = arith.constant 0 : index
    %0 = vector.load %arg1[%c0, %c0_0] : memref<256x72xbf16, #tpu.memory_space<vmem>>, vector<256x72xbf16>
    %c0_1 = arith.constant 0 : index
    %c0_2 = arith.constant 0 : index
    %1 = vector.load %arg2[%c0_1, %c0_2] : memref<72x4xbf16, #tpu.memory_space<vmem>>, vector<72x4xbf16>
    %cst = arith.constant dense<0.000000e+00> : vector<256x4xf32>
    %2 = tpu.matmul %0, %1, %cst {dimension_numbers = #tpu.dot_dimension_numbers<[1], [0], [0], [1], [0, 0, 1, 1], [], []>} : vector<256x72xbf16>, vector<72x4xbf16>, vector<256x4xf32> -> vector<256x4xf32>
    %c0_3 = arith.constant 0 : index
    %c0_4 = arith.constant 0 : index
    %3 = vector.load %arg3[%c0_3, %c0_4] : memref<256x4xf32, #tpu.memory_space<vmem>>, vector<256x4xf32>
    tpu.vector_store %arg3[%c0_3, %c0_4], %2 {strides = array<i32>} : memref<256x4xf32, #tpu.memory_space<vmem>>, vector<256x4xf32>,
    %c0_i32 = arith.constant 0 : i32
    %4 = arith.cmpi eq, %arg0, %c0_i32 : i32
    %5 = arith.extui %4 : i1 to i32
    %c0_i32_5 = arith.constant 0 : i32
    %6 = arith.cmpi ne, %5, %c0_i32_5 : i32
    scf.if %6 {
      %cst_16 = arith.constant 0.000000e+00 : f32
      %18 = vector.broadcast %cst_16 : f32 to vector<1x4xf32>
      %c0_17 = arith.constant 0 : index
      %c0_18 = arith.constant 0 : index
      %19 = vector.load %arg4[%c0_17, %c0_18] : memref<1x4xf32, #tpu.memory_space<vmem>>, vector<1x4xf32>
      tpu.vector_store %arg4[%c0_17, %c0_18], %18 {strides = array<i32>} : memref<1x4xf32, #tpu.memory_space<vmem>>, vector<1x4xf32>,
      %cst_19 = arith.constant 0.000000e+00 : f32
      %20 = vector.broadcast %cst_19 : f32 to vector<1x4xf32>
      %c0_20 = arith.constant 0 : index
      %c0_21 = arith.constant 0 : index
      %21 = vector.load %arg5[%c0_20, %c0_21] : memref<1x4xf32, #tpu.memory_space<vmem>>, vector<1x4xf32>
      tpu.vector_store %arg5[%c0_20, %c0_21], %20 {strides = array<i32>} : memref<1x4xf32, #tpu.memory_space<vmem>>, vector<1x4xf32>,
    } else {
    }
    %c0_6 = arith.constant 0 : index
    %c0_7 = arith.constant 0 : index
    %7 = vector.load %arg4[%c0_6, %c0_7] : memref<1x4xf32, #tpu.memory_space<vmem>>, vector<1x4xf32>
    %cst_8 = arith.constant dense<0.000000e+00> : vector<4xf32>
    %8 = vector.multi_reduction <add>, %2, %cst_8 [0] : vector<256x4xf32> to vector<4xf32>
    %9 = vector.shape_cast %8 : vector<4xf32> to vector<1x4xf32>
    %10 = arith.addf %7, %9 : vector<1x4xf32>
    %c0_9 = arith.constant 0 : index
    %c0_10 = arith.constant 0 : index
    %11 = vector.load %arg4[%c0_9, %c0_10] : memref<1x4xf32, #tpu.memory_space<vmem>>, vector<1x4xf32>
    tpu.vector_store %arg4[%c0_9, %c0_10], %10 {strides = array<i32>} : memref<1x4xf32, #tpu.memory_space<vmem>>, vector<1x4xf32>,
    %c0_11 = arith.constant 0 : index
    %c0_12 = arith.constant 0 : index
    %12 = vector.load %arg5[%c0_11, %c0_12] : memref<1x4xf32, #tpu.memory_space<vmem>>, vector<1x4xf32>
    %13 = arith.mulf %2, %2 : vector<256x4xf32>
    %cst_13 = arith.constant dense<0.000000e+00> : vector<4xf32>
    %14 = vector.multi_reduction <add>, %13, %cst_13 [0] : vector<256x4xf32> to vector<4xf32>
    %15 = vector.shape_cast %14 : vector<4xf32> to vector<1x4xf32>
    %16 = arith.addf %12, %15 : vector<1x4xf32>
    %c0_14 = arith.constant 0 : index
    %c0_15 = arith.constant 0 : index
    %17 = vector.load %arg5[%c0_14, %c0_15] : memref<1x4xf32, #tpu.memory_space<vmem>>, vector<1x4xf32>
    tpu.vector_store %arg5[%c0_14, %c0_15], %16 {strides = array<i32>} : memref<1x4xf32, #tpu.memory_space<vmem>>, vector<1x4xf32>,
    return
  }
  func.func @transform_0(%arg0: i32) -> (i32, i32) {
    %c0_i32 = arith.constant 0 : i32
    %c0_i32_0 = arith.constant 0 : i32
    return %arg0, %c0_i32 : i32, i32
  }
  func.func @transform_1(%arg0: i32) -> (i32, i32) {
    %c0_i32 = arith.constant 0 : i32
    %c0_i32_0 = arith.constant 0 : i32
    %c0_i32_1 = arith.constant 0 : i32
    return %c0_i32, %c0_i32_0 : i32, i32
  }
  func.func @transform_2(%arg0: i32) -> (i32, i32) {
    %c0_i32 = arith.constant 0 : i32
    %c0_i32_0 = arith.constant 0 : i32
    return %arg0, %c0_i32 : i32, i32
  }
  func.func @transform_3(%arg0: i32) -> (i32, i32) {
    %c0_i32 = arith.constant 0 : i32
    %c0_i32_0 = arith.constant 0 : i32
    %c0_i32_1 = arith.constant 0 : i32
    return %c0_i32, %c0_i32_0 : i32, i32
  }
  func.func @transform_4(%arg0: i32) -> (i32, i32) {
    %c0_i32 = arith.constant 0 : i32
    %c0_i32_0 = arith.constant 0 : i32
    %c0_i32_1 = arith.constant 0 : i32
    return %c0_i32, %c0_i32_0 : i32, i32
  }
}

module attributes {stable_mosaic.version = 11 : i64} {
  func.func @_bn_relu_kernel(%arg0: i32, %arg1: memref<512x4xf32, #tpu.memory_space<vmem>>, %arg2: memref<1x4xf32, #tpu.memory_space<vmem>>, %arg3: memref<1x4xf32, #tpu.memory_space<vmem>>, %arg4: memref<512x4xf32, #tpu.memory_space<vmem>>) attributes {dimension_semantics = [#tpu.dimension_semantics<parallel>], iteration_bounds = array<i64: 3>, scalar_prefetch = 0 : i64, scratch_operands = 0 : i64, tpu.core_type = #tpu.core_type<tc>, window_params = [{transform_indices = @transform_0, window_bounds = array<i64: 512, 4>}, {pipeline_mode = #tpu.pipeline_mode<synchronous>, transform_indices = @transform_1, window_bounds = array<i64: 1, 4>}, {pipeline_mode = #tpu.pipeline_mode<synchronous>, transform_indices = @transform_2, window_bounds = array<i64: 1, 4>}, {transform_indices = @transform_3, window_bounds = array<i64: 512, 4>}]} {
    %c0 = arith.constant 0 : index
    %c0_0 = arith.constant 0 : index
    %0 = vector.load %arg1[%c0, %c0_0] : memref<512x4xf32, #tpu.memory_space<vmem>>, vector<512x4xf32>
    %c0_1 = arith.constant 0 : index
    %c0_2 = arith.constant 0 : index
    %1 = vector.load %arg2[%c0_1, %c0_2] : memref<1x4xf32, #tpu.memory_space<vmem>>, vector<1x4xf32>
    %2 = vector.broadcast %1 : vector<1x4xf32> to vector<512x4xf32>
    %3 = arith.subf %0, %2 : vector<512x4xf32>
    %c0_3 = arith.constant 0 : index
    %c0_4 = arith.constant 0 : index
    %4 = vector.load %arg3[%c0_3, %c0_4] : memref<1x4xf32, #tpu.memory_space<vmem>>, vector<1x4xf32>
    %5 = vector.broadcast %4 : vector<1x4xf32> to vector<512x4xf32>
    %6 = arith.mulf %3, %5 : vector<512x4xf32>
    %cst = arith.constant 0.000000e+00 : f32
    %7 = vector.broadcast %cst : f32 to vector<512x4xf32>
    %8 = arith.maximumf %6, %7 : vector<512x4xf32>
    %c0_5 = arith.constant 0 : index
    %c0_6 = arith.constant 0 : index
    %9 = vector.load %arg4[%c0_5, %c0_6] : memref<512x4xf32, #tpu.memory_space<vmem>>, vector<512x4xf32>
    tpu.vector_store %arg4[%c0_5, %c0_6], %8 {strides = array<i32>} : memref<512x4xf32, #tpu.memory_space<vmem>>, vector<512x4xf32>,
    return
  }
  func.func @transform_0(%arg0: i32) -> (i32, i32) {
    %c0_i32 = arith.constant 0 : i32
    %c0_i32_0 = arith.constant 0 : i32
    return %arg0, %c0_i32 : i32, i32
  }
  func.func @transform_1(%arg0: i32) -> (i32, i32) {
    %c0_i32 = arith.constant 0 : i32
    %c0_i32_0 = arith.constant 0 : i32
    %c0_i32_1 = arith.constant 0 : i32
    return %c0_i32, %c0_i32_0 : i32, i32
  }
  func.func @transform_2(%arg0: i32) -> (i32, i32) {
    %c0_i32 = arith.constant 0 : i32
    %c0_i32_0 = arith.constant 0 : i32
    %c0_i32_1 = arith.constant 0 : i32
    return %c0_i32, %c0_i32_0 : i32, i32
  }
  func.func @transform_3(%arg0: i32) -> (i32, i32) {
    %c0_i32 = arith.constant 0 : i32
    %c0_i32_0 = arith.constant 0 : i32
    return %arg0, %c0_i32 : i32, i32
  }
}

module attributes {stable_mosaic.version = 11 : i64} {
  func.func @_mm_stats_kernel(%arg0: i32, %arg1: memref<256x36xbf16, #tpu.memory_space<vmem>>, %arg2: memref<36x1xbf16, #tpu.memory_space<vmem>>, %arg3: memref<256x1xf32, #tpu.memory_space<vmem>>, %arg4: memref<1x1xf32, #tpu.memory_space<vmem>>, %arg5: memref<1x1xf32, #tpu.memory_space<vmem>>) attributes {dimension_semantics = [#tpu.dimension_semantics<arbitrary>], iteration_bounds = array<i64: 6>, scalar_prefetch = 0 : i64, scratch_operands = 0 : i64, tpu.core_type = #tpu.core_type<tc>, window_params = [{transform_indices = @transform_0, window_bounds = array<i64: 256, 36>}, {pipeline_mode = #tpu.pipeline_mode<synchronous>, transform_indices = @transform_1, window_bounds = array<i64: 36, 1>}, {transform_indices = @transform_2, window_bounds = array<i64: 256, 1>}, {pipeline_mode = #tpu.pipeline_mode<synchronous>, transform_indices = @transform_3, window_bounds = array<i64: 1, 1>}, {pipeline_mode = #tpu.pipeline_mode<synchronous>, transform_indices = @transform_4, window_bounds = array<i64: 1, 1>}]} {
    %c0 = arith.constant 0 : index
    %c0_0 = arith.constant 0 : index
    %0 = vector.load %arg1[%c0, %c0_0] : memref<256x36xbf16, #tpu.memory_space<vmem>>, vector<256x36xbf16>
    %c0_1 = arith.constant 0 : index
    %c0_2 = arith.constant 0 : index
    %1 = vector.load %arg2[%c0_1, %c0_2] : memref<36x1xbf16, #tpu.memory_space<vmem>>, vector<36x1xbf16>
    %cst = arith.constant dense<0.000000e+00> : vector<256x1xf32>
    %2 = tpu.matmul %0, %1, %cst {dimension_numbers = #tpu.dot_dimension_numbers<[1], [0], [0], [1], [0, 0, 1, 1], [], []>} : vector<256x36xbf16>, vector<36x1xbf16>, vector<256x1xf32> -> vector<256x1xf32>
    %c0_3 = arith.constant 0 : index
    %c0_4 = arith.constant 0 : index
    %3 = vector.load %arg3[%c0_3, %c0_4] : memref<256x1xf32, #tpu.memory_space<vmem>>, vector<256x1xf32>
    tpu.vector_store %arg3[%c0_3, %c0_4], %2 {strides = array<i32>} : memref<256x1xf32, #tpu.memory_space<vmem>>, vector<256x1xf32>,
    %c0_i32 = arith.constant 0 : i32
    %4 = arith.cmpi eq, %arg0, %c0_i32 : i32
    %5 = arith.extui %4 : i1 to i32
    %c0_i32_5 = arith.constant 0 : i32
    %6 = arith.cmpi ne, %5, %c0_i32_5 : i32
    scf.if %6 {
      %cst_16 = arith.constant 0.000000e+00 : f32
      %18 = vector.broadcast %cst_16 : f32 to vector<1x1xf32>
      %c0_17 = arith.constant 0 : index
      %c0_18 = arith.constant 0 : index
      %19 = vector.load %arg4[%c0_17, %c0_18] : memref<1x1xf32, #tpu.memory_space<vmem>>, vector<1x1xf32>
      tpu.vector_store %arg4[%c0_17, %c0_18], %18 {strides = array<i32>} : memref<1x1xf32, #tpu.memory_space<vmem>>, vector<1x1xf32>,
      %cst_19 = arith.constant 0.000000e+00 : f32
      %20 = vector.broadcast %cst_19 : f32 to vector<1x1xf32>
      %c0_20 = arith.constant 0 : index
      %c0_21 = arith.constant 0 : index
      %21 = vector.load %arg5[%c0_20, %c0_21] : memref<1x1xf32, #tpu.memory_space<vmem>>, vector<1x1xf32>
      tpu.vector_store %arg5[%c0_20, %c0_21], %20 {strides = array<i32>} : memref<1x1xf32, #tpu.memory_space<vmem>>, vector<1x1xf32>,
    } else {
    }
    %c0_6 = arith.constant 0 : index
    %c0_7 = arith.constant 0 : index
    %7 = vector.load %arg4[%c0_6, %c0_7] : memref<1x1xf32, #tpu.memory_space<vmem>>, vector<1x1xf32>
    %cst_8 = arith.constant dense<0.000000e+00> : vector<1xf32>
    %8 = vector.multi_reduction <add>, %2, %cst_8 [0] : vector<256x1xf32> to vector<1xf32>
    %9 = vector.shape_cast %8 : vector<1xf32> to vector<1x1xf32>
    %10 = arith.addf %7, %9 : vector<1x1xf32>
    %c0_9 = arith.constant 0 : index
    %c0_10 = arith.constant 0 : index
    %11 = vector.load %arg4[%c0_9, %c0_10] : memref<1x1xf32, #tpu.memory_space<vmem>>, vector<1x1xf32>
    tpu.vector_store %arg4[%c0_9, %c0_10], %10 {strides = array<i32>} : memref<1x1xf32, #tpu.memory_space<vmem>>, vector<1x1xf32>,
    %c0_11 = arith.constant 0 : index
    %c0_12 = arith.constant 0 : index
    %12 = vector.load %arg5[%c0_11, %c0_12] : memref<1x1xf32, #tpu.memory_space<vmem>>, vector<1x1xf32>
    %13 = arith.mulf %2, %2 : vector<256x1xf32>
    %cst_13 = arith.constant dense<0.000000e+00> : vector<1xf32>
    %14 = vector.multi_reduction <add>, %13, %cst_13 [0] : vector<256x1xf32> to vector<1xf32>
    %15 = vector.shape_cast %14 : vector<1xf32> to vector<1x1xf32>
    %16 = arith.addf %12, %15 : vector<1x1xf32>
    %c0_14 = arith.constant 0 : index
    %c0_15 = arith.constant 0 : index
    %17 = vector.load %arg5[%c0_14, %c0_15] : memref<1x1xf32, #tpu.memory_space<vmem>>, vector<1x1xf32>
    tpu.vector_store %arg5[%c0_14, %c0_15], %16 {strides = array<i32>} : memref<1x1xf32, #tpu.memory_space<vmem>>, vector<1x1xf32>,
    return
  }
  func.func @transform_0(%arg0: i32) -> (i32, i32) {
    %c0_i32 = arith.constant 0 : i32
    %c0_i32_0 = arith.constant 0 : i32
    return %arg0, %c0_i32 : i32, i32
  }
  func.func @transform_1(%arg0: i32) -> (i32, i32) {
    %c0_i32 = arith.constant 0 : i32
    %c0_i32_0 = arith.constant 0 : i32
    %c0_i32_1 = arith.constant 0 : i32
    return %c0_i32, %c0_i32_0 : i32, i32
  }
  func.func @transform_2(%arg0: i32) -> (i32, i32) {
    %c0_i32 = arith.constant 0 : i32
    %c0_i32_0 = arith.constant 0 : i32
    return %arg0, %c0_i32 : i32, i32
  }
  func.func @transform_3(%arg0: i32) -> (i32, i32) {
    %c0_i32 = arith.constant 0 : i32
    %c0_i32_0 = arith.constant 0 : i32
    %c0_i32_1 = arith.constant 0 : i32
    return %c0_i32, %c0_i32_0 : i32, i32
  }
  func.func @transform_4(%arg0: i32) -> (i32, i32) {
    %c0_i32 = arith.constant 0 : i32
    %c0_i32_0 = arith.constant 0 : i32
    %c0_i32_1 = arith.constant 0 : i32
    return %c0_i32, %c0_i32_0 : i32, i32
  }
}

module attributes {stable_mosaic.version = 11 : i64} {
  func.func @_bn_relu_kernel(%arg0: i32, %arg1: memref<512x1xf32, #tpu.memory_space<vmem>>, %arg2: memref<1x1xf32, #tpu.memory_space<vmem>>, %arg3: memref<1x1xf32, #tpu.memory_space<vmem>>, %arg4: memref<512x1xf32, #tpu.memory_space<vmem>>) attributes {dimension_semantics = [#tpu.dimension_semantics<parallel>], iteration_bounds = array<i64: 3>, scalar_prefetch = 0 : i64, scratch_operands = 0 : i64, tpu.core_type = #tpu.core_type<tc>, window_params = [{transform_indices = @transform_0, window_bounds = array<i64: 512, 1>}, {pipeline_mode = #tpu.pipeline_mode<synchronous>, transform_indices = @transform_1, window_bounds = array<i64: 1, 1>}, {pipeline_mode = #tpu.pipeline_mode<synchronous>, transform_indices = @transform_2, window_bounds = array<i64: 1, 1>}, {transform_indices = @transform_3, window_bounds = array<i64: 512, 1>}]} {
    %c0 = arith.constant 0 : index
    %c0_0 = arith.constant 0 : index
    %0 = vector.load %arg1[%c0, %c0_0] : memref<512x1xf32, #tpu.memory_space<vmem>>, vector<512x1xf32>
    %c0_1 = arith.constant 0 : index
    %c0_2 = arith.constant 0 : index
    %1 = vector.load %arg2[%c0_1, %c0_2] : memref<1x1xf32, #tpu.memory_space<vmem>>, vector<1x1xf32>
    %2 = vector.broadcast %1 : vector<1x1xf32> to vector<512x1xf32>
    %3 = arith.subf %0, %2 : vector<512x1xf32>
    %c0_3 = arith.constant 0 : index
    %c0_4 = arith.constant 0 : index
    %4 = vector.load %arg3[%c0_3, %c0_4] : memref<1x1xf32, #tpu.memory_space<vmem>>, vector<1x1xf32>
    %5 = vector.broadcast %4 : vector<1x1xf32> to vector<512x1xf32>
    %6 = arith.mulf %3, %5 : vector<512x1xf32>
    %cst = arith.constant 0.000000e+00 : f32
    %7 = vector.broadcast %cst : f32 to vector<512x1xf32>
    %8 = arith.maximumf %6, %7 : vector<512x1xf32>
    %c0_5 = arith.constant 0 : index
    %c0_6 = arith.constant 0 : index
    %9 = vector.load %arg4[%c0_5, %c0_6] : memref<512x1xf32, #tpu.memory_space<vmem>>, vector<512x1xf32>
    tpu.vector_store %arg4[%c0_5, %c0_6], %8 {strides = array<i32>} : memref<512x1xf32, #tpu.memory_space<vmem>>, vector<512x1xf32>,
    return
  }
  func.func @transform_0(%arg0: i32) -> (i32, i32) {
    %c0_i32 = arith.constant 0 : i32
    %c0_i32_0 = arith.constant 0 : i32
    return %arg0, %c0_i32 : i32, i32
  }
  func.func @transform_1(%arg0: i32) -> (i32, i32) {
    %c0_i32 = arith.constant 0 : i32
    %c0_i32_0 = arith.constant 0 : i32
    %c0_i32_1 = arith.constant 0 : i32
    return %c0_i32, %c0_i32_0 : i32, i32
  }
  func.func @transform_2(%arg0: i32) -> (i32, i32) {
    %c0_i32 = arith.constant 0 : i32
    %c0_i32_0 = arith.constant 0 : i32
    %c0_i32_1 = arith.constant 0 : i32
    return %c0_i32, %c0_i32_0 : i32, i32
  }
  func.func @transform_3(%arg0: i32) -> (i32, i32) {
    %c0_i32 = arith.constant 0 : i32
    %c0_i32_0 = arith.constant 0 : i32
    return %arg0, %c0_i32 : i32, i32
  }
}

module attributes {stable_mosaic.version = 11 : i64} {
  func.func @_mm_kernel(%arg0: i32, %arg1: memref<8x768xbf16, #tpu.memory_space<vmem>>, %arg2: memref<768x198xbf16, #tpu.memory_space<vmem>>, %arg3: memref<8x198xf32, #tpu.memory_space<vmem>>) attributes {dimension_semantics = [#tpu.dimension_semantics<parallel>], iteration_bounds = array<i64: 1>, scalar_prefetch = 0 : i64, scratch_operands = 0 : i64, tpu.core_type = #tpu.core_type<tc>, window_params = [{transform_indices = @transform_0, window_bounds = array<i64: 8, 768>}, {pipeline_mode = #tpu.pipeline_mode<synchronous>, transform_indices = @transform_1, window_bounds = array<i64: 768, 198>}, {transform_indices = @transform_2, window_bounds = array<i64: 8, 198>}]} {
    %c0 = arith.constant 0 : index
    %c0_0 = arith.constant 0 : index
    %0 = vector.load %arg1[%c0, %c0_0] : memref<8x768xbf16, #tpu.memory_space<vmem>>, vector<8x768xbf16>
    %c0_1 = arith.constant 0 : index
    %c0_2 = arith.constant 0 : index
    %1 = vector.load %arg2[%c0_1, %c0_2] : memref<768x198xbf16, #tpu.memory_space<vmem>>, vector<768x198xbf16>
    %cst = arith.constant dense<0.000000e+00> : vector<8x198xf32>
    %2 = tpu.matmul %0, %1, %cst {dimension_numbers = #tpu.dot_dimension_numbers<[1], [0], [0], [1], [0, 0, 1, 1], [], []>} : vector<8x768xbf16>, vector<768x198xbf16>, vector<8x198xf32> -> vector<8x198xf32>
    %c0_3 = arith.constant 0 : index
    %c0_4 = arith.constant 0 : index
    %3 = vector.load %arg3[%c0_3, %c0_4] : memref<8x198xf32, #tpu.memory_space<vmem>>, vector<8x198xf32>
    tpu.vector_store %arg3[%c0_3, %c0_4], %2 {strides = array<i32>} : memref<8x198xf32, #tpu.memory_space<vmem>>, vector<8x198xf32>,
    return
  }
  func.func @transform_0(%arg0: i32) -> (i32, i32) {
    %c0_i32 = arith.constant 0 : i32
    %c0_i32_0 = arith.constant 0 : i32
    return %arg0, %c0_i32 : i32, i32
  }
  func.func @transform_1(%arg0: i32) -> (i32, i32) {
    %c0_i32 = arith.constant 0 : i32
    %c0_i32_0 = arith.constant 0 : i32
    %c0_i32_1 = arith.constant 0 : i32
    return %c0_i32, %c0_i32_0 : i32, i32
  }
  func.func @transform_2(%arg0: i32) -> (i32, i32) {
    %c0_i32 = arith.constant 0 : i32
    %c0_i32_0 = arith.constant 0 : i32
    return %arg0, %c0_i32 : i32, i32
  }
}

module attributes {stable_mosaic.version = 11 : i64} {
  func.func @_sigmoid_mul_kernel(%arg0: i32, %arg1: memref<8x198xf32, #tpu.memory_space<vmem>>, %arg2: memref<8x198xf32, #tpu.memory_space<vmem>>, %arg3: memref<8x198xf32, #tpu.memory_space<vmem>>) attributes {dimension_semantics = [#tpu.dimension_semantics<parallel>], iteration_bounds = array<i64: 1>, scalar_prefetch = 0 : i64, scratch_operands = 0 : i64, tpu.core_type = #tpu.core_type<tc>, window_params = [{transform_indices = @transform_0, window_bounds = array<i64: 8, 198>}, {transform_indices = @transform_1, window_bounds = array<i64: 8, 198>}, {transform_indices = @transform_2, window_bounds = array<i64: 8, 198>}]} {
    %c0 = arith.constant 0 : index
    %c0_0 = arith.constant 0 : index
    %0 = vector.load %arg2[%c0, %c0_0] : memref<8x198xf32, #tpu.memory_space<vmem>>, vector<8x198xf32>
    %c0_1 = arith.constant 0 : index
    %c0_2 = arith.constant 0 : index
    %1 = vector.load %arg1[%c0_1, %c0_2] : memref<8x198xf32, #tpu.memory_space<vmem>>, vector<8x198xf32>
    %cst = arith.constant 0.000000e+00 : f32
    %2 = vector.broadcast %cst : f32 to vector<8x198xf32>
    %3 = arith.subf %2, %1 : vector<8x198xf32>
    %4 = math.exp %3 : vector<8x198xf32>
    %cst_3 = arith.constant 1.000000e+00 : f32
    %5 = vector.broadcast %cst_3 : f32 to vector<8x198xf32>
    %6 = arith.addf %5, %4 : vector<8x198xf32>
    %cst_4 = arith.constant 1.000000e+00 : f32
    %7 = vector.broadcast %cst_4 : f32 to vector<8x198xf32>
    %8 = arith.divf %7, %6 : vector<8x198xf32>
    %9 = arith.mulf %0, %8 : vector<8x198xf32>
    %c0_5 = arith.constant 0 : index
    %c0_6 = arith.constant 0 : index
    %10 = vector.load %arg3[%c0_5, %c0_6] : memref<8x198xf32, #tpu.memory_space<vmem>>, vector<8x198xf32>
    tpu.vector_store %arg3[%c0_5, %c0_6], %9 {strides = array<i32>} : memref<8x198xf32, #tpu.memory_space<vmem>>, vector<8x198xf32>,
    return
  }
  func.func @transform_0(%arg0: i32) -> (i32, i32) {
    %c0_i32 = arith.constant 0 : i32
    %c0_i32_0 = arith.constant 0 : i32
    return %arg0, %c0_i32 : i32, i32
  }
  func.func @transform_1(%arg0: i32) -> (i32, i32) {
    %c0_i32 = arith.constant 0 : i32
    %c0_i32_0 = arith.constant 0 : i32
    return %arg0, %c0_i32 : i32, i32
  }
  func.func @transform_2(%arg0: i32) -> (i32, i32) {
    %c0_i32 = arith.constant 0 : i32
    %c0_i32_0 = arith.constant 0 : i32
    return %arg0, %c0_i32 : i32, i32
  }
}

</mosaic_0001>

<bundles_post_ra>
// kernel: _lambda_.29
= control target key start
LH: loop header
LB: loop body
LE: loop exit
PB: predicated region body
PF: predicated region fallthrough
CT: control target
= control target key end

     0   :  { %vm284_vm0 = vcmask 31744   ;;  %s961_s0 = inlined_call_operand.vmem [shape: f32[512,4], index: 0, kind: input, shape index: {}]   ;;  %s962_s1 = inlined_call_operand.vmem [shape: f32[1,4], index: 1, kind: input, shape index: {}]   ;;  %s963_s2 = inlined_call_operand.vmem [shape: f32[1,4], index: 2, kind: input, shape index: {}]   ;;  %s964_s3 = inlined_call_operand.vmem [shape: f32[512,4], index: 3, kind: output, shape index: {}]  }
   0x1   :  { %v14_v0 = vld [vmem:[%s961_s0] sm:$0xff]  ;;  %v15_v4 = vld [vmem:[%s961_s0 + $0x8] sm:$0xff]  ;;  %v16_v5 = vld [vmem:[%s961_s0 + $0x10] sm:$0xff] }
   0x2   :  { %v381_v1 = vld [vmem:[%s962_s1] ss:$0 sm:$0xff]  ;;  %v17_v6 = vld [vmem:[%s961_s0 + $0x18] sm:$0xff]  ;;  %v19_v11 = vld [vmem:[%s961_s0 + $0x28] sm:$0xff] }
   0x3   :  { %v386_v2 = vld [vmem:[%s963_s2] ss:$0 sm:$0xff]  ;;  %v85_v3 = vsub.f32 %v14_v0, %v381_v1  ;;  %v86_v7 = vsub.f32 %v15_v4, %v381_v1  ;;  %v87_v8 = vsub.f32 %v16_v5, %v381_v1  ;;  %v88_v9 = vsub.f32 %v17_v6, %v381_v1  ;;  %v20_v12 = vld [vmem:[%s961_s0 + $0x30] sm:$0xff]  ;;  %v21_v17 = vld [vmem:[%s961_s0 + $0x38] sm:$0xff] }
   0x4   :  { %v18_v10 = vld [vmem:[%s961_s0 + $0x20] sm:$0xff]  ;;  %v90_v15 = vsub.f32 %v19_v11, %v381_v1  ;;  %v91_v16 = vsub.f32 %v20_v12, %v381_v1  ;;  %v92_v21 = vsub.f32 %v21_v17, %v381_v1  ;;  %v23_v27 = vld [vmem:[%s961_s0 + $0x48] sm:$0xff]  ;;  %v24_v28 = vld [vmem:[%s961_s0 + $0x50] sm:$0xff] }
   0x5   :  { %v156_v13 = vmul.f32 %v386_v2, %v85_v3  ;;  %v89_v14 = vsub.f32 %v18_v10, %v381_v1  ;;  %v157_v18 = vmul.f32 %v386_v2, %v86_v7  ;;  %v158_v19 = vmul.f32 %v386_v2, %v87_v8  ;;  %v22_v22 = vld [vmem:[%s961_s0 + $0x40] sm:$0xff]  ;;  %v25_v29 = vld [vmem:[%s961_s0 + $0x58] sm:$0xff]  ;;  %v27_v35 = vld [vmem:[%s961_s0 + $0x68] sm:$0xff] }
   0x6   :  { %v159_v20 = vmul.f32 %v386_v2, %v88_v9  ;;  %v161_v25 = vmul.f32 %v386_v2, %v90_v15  ;;  %v162_v26 = vmul.f32 %v386_v2, %v91_v16  ;;  %v163_v33 = vmul.f32 %v386_v2, %v92_v21  ;;  %v26_v34 = vld [vmem:[%s961_s0 + $0x60] sm:$0xff]  ;;  %v28_v36 = vld [vmem:[%s961_s0 + $0x70] sm:$0xff]  ;;  %v29_v41 = vld [vmem:[%s961_s0 + $0x78] sm:$0xff] }
   0x7   :  { %v220_v23 = vmax.f32 %v156_v13, 0.0  ;;  %v160_v24 = vmul.f32 %v386_v2, %v89_v14  ;;  %v221_v30 = vmax.f32 %v157_v18, 0.0  ;;  %v222_v31 = vmax.f32 %v158_v19, 0.0  ;;  %v30_v54 = vld [vmem:[%s961_s0 + $0x80] sm:$0xff]  ;;  %v31_v59 = vld [vmem:[%s961_s0 + $0x88] sm:$0xff]  ;;  %v32_v60 = vld [vmem:[%s961_s0 + $0x90] sm:$0xff] }
   0x8   :  { %v223_v32 = vmax.f32 %v159_v20, 0.0  ;;  %v225_v38 = vmax.f32 %v161_v25, 0.0  ;;  %v226_v39 = vmax.f32 %v162_v26, 0.0  ;;  %v93_v40 = vsub.f32 %v22_v22, %v381_v1  ;;  %v33_v61 = vld [vmem:[%s961_s0 + $0x98] sm:$0xff]  ;;  %v34_v4 = vld [vmem:[%s961_s0 + $0xa0] sm:$0xff]  ;;  %v35_v5 = vld [vmem:[%s961_s0 + $0xa8] sm:$0xff] }
   0x9   :  { %285 = vst.msk [vmem:[%s964_s3] sm:$0xff] %vm284_vm0, %v220_v23  ;;  %v224_v37 = vmax.f32 %v160_v24, 0.0  ;;  %286 = vst.msk [vmem:[%s964_s3 + $0x8] sm:$0xff] %vm284_vm0, %v221_v30  ;;  %v227_v42 = vmax.f32 %v163_v33, 0.0  ;;  %v94_v43 = vsub.f32 %v23_v27, %v381_v1  ;;  %v95_v44 = vsub.f32 %v24_v28, %v381_v1  ;;  %v36_v6 = vld [vmem:[%s961_s0 + $0xb0] sm:$0xff]  ;;  %v37_v11 = vld [vmem:[%s961_s0 + $0xb8] sm:$0xff] }
   0xa   :  { %287 = vst.msk [vmem:[%s964_s3 + $0x10] sm:$0xff] %vm284_vm0, %v222_v31  ;;  %288 = vst.msk [vmem:[%s964_s3 + $0x18] sm:$0xff] %vm284_vm0, %v223_v32  ;;  %v96_v45 = vsub.f32 %v25_v29, %v381_v1  ;;  %v164_v46 = vmul.f32 %v386_v2, %v93_v40  ;;  %v97_v47 = vsub.f32 %v26_v34, %v381_v1  ;;  %v38_v24 = vld [vmem:[%s961_s0 + $0xc0] sm:$0xff]  ;;  %v39_v29 = vld [vmem:[%s961_s0 + $0xc8] sm:$0xff] }
   0xb   :  { %289 = vst.msk [vmem:[%s964_s3 + $0x20] sm:$0xff] %vm284_vm0, %v224_v37  ;;  %290 = vst.msk [vmem:[%s964_s3 + $0x28] sm:$0xff] %vm284_vm0, %v225_v38  ;;  %v98_v48 = vsub.f32 %v27_v35, %v381_v1  ;;  %v99_v49 = vsub.f32 %v28_v36, %v381_v1  ;;  %v165_v50 = vmul.f32 %v386_v2, %v94_v43  ;;  %v40_v30 = vld [vmem:[%s961_s0 + $0xd0] sm:$0xff]  ;;  %v41_v31 = vld [vmem:[%s961_s0 + $0xd8] sm:$0xff] }
   0xc   :  { %291 = vst.msk [vmem:[%s964_s3 + $0x30] sm:$0xff] %vm284_vm0, %v226_v39  ;;  %292 = vst.msk [vmem:[%s964_s3 + $0x38] sm:$0xff] %vm284_vm0, %v227_v42  ;;  %v166_v51 = vmul.f32 %v386_v2, %v95_v44  ;;  %v167_v52 = vmul.f32 %v386_v2, %v96_v45  ;;  %v100_v53 = vsub.f32 %v29_v41, %v381_v1  ;;  %v228_v55 = vmax.f32 %v164_v46, 0.0  ;;  %v42_v36 = vld [vmem:[%s961_s0 + $0xe0] sm:$0xff]  ;;  %v43_v37 = vld [vmem:[%s961_s0 + $0xe8] sm:$0xff] }
   0xd   :  { %v168_v56 = vmul.f32 %v386_v2, %v97_v47  ;;  %v169_v57 = vmul.f32 %v386_v2, %v98_v48  ;;  %v170_v58 = vmul.f32 %v386_v2, %v99_v49  ;;  %v229_v62 = vmax.f32 %v165_v50, 0.0  ;;  %v44_v38 = vld [vmem:[%s961_s0 + $0xf0] sm:$0xff]  ;;  %v45_v43 = vld [vmem:[%s961_s0 + $0xf8] sm:$0xff] }
   0xe   :  { %v230_v63 = vmax.f32 %v166_v51, 0.0  ;;  %v231_v0 = vmax.f32 %v167_v52, 0.0  ;;  %v171_v3 = vmul.f32 %v386_v2, %v100_v53  ;;  %293 = vst.msk [vmem:[%s964_s3 + $0x40] sm:$0xff] %vm284_vm0, %v228_v55  ;;  %v101_v10 = vsub.f32 %v30_v54, %v381_v1 }
   0xf   :  { %v232_v7 = vmax.f32 %v168_v56, 0.0  ;;  %v233_v8 = vmax.f32 %v169_v57, 0.0  ;;  %v234_v9 = vmax.f32 %v170_v58, 0.0  ;;  %294 = vst.msk [vmem:[%s964_s3 + $0x48] sm:$0xff] %vm284_vm0, %v229_v62  ;;  %v102_v13 = vsub.f32 %v31_v59, %v381_v1  ;;  %v46_v56 = vld [vmem:[%s961_s0 + $0x100] sm:$0xff]  ;;  %v48_v62 = vld [vmem:[%s961_s0 + $0x110] sm:$0xff] }
  0x10   :  { %295 = vst.msk [vmem:[%s964_s3 + $0x50] sm:$0xff] %vm284_vm0, %v230_v63  ;;  %296 = vst.msk [vmem:[%s964_s3 + $0x58] sm:$0xff] %vm284_vm0, %v231_v0  ;;  %v235_v12 = vmax.f32 %v171_v3, 0.0  ;;  %v103_v14 = vsub.f32 %v32_v60, %v381_v1  ;;  %v104_v15 = vsub.f32 %v33_v61, %v381_v1  ;;  %v172_v16 = vmul.f32 %v386_v2, %v101_v10  ;;  %v47_v61 = vld [vmem:[%s961_s0 + $0x108] sm:$0xff]  ;;  %v49_v63 = vld [vmem:[%s961_s0 + $0x118] sm:$0xff] }
  0x11   :  { %297 = vst.msk [vmem:[%s964_s3 + $0x60] sm:$0xff] %vm284_vm0, %v232_v7  ;;  %298 = vst.msk [vmem:[%s964_s3 + $0x68] sm:$0xff] %vm284_vm0, %v233_v8  ;;  %v105_v17 = vsub.f32 %v34_v4, %v381_v1  ;;  %v106_v18 = vsub.f32 %v35_v5, %v381_v1  ;;  %v107_v19 = vsub.f32 %v36_v6, %v381_v1  ;;  %v50_v6 = vld [vmem:[%s961_s0 + $0x120] sm:$0xff]  ;;  %v51_v7 = vld [vmem:[%s961_s0 + $0x128] sm:$0xff] }
  0x12   :  { %299 = vst.msk [vmem:[%s964_s3 + $0x70] sm:$0xff] %vm284_vm0, %v234_v9  ;;  %300 = vst.msk [vmem:[%s964_s3 + $0x78] sm:$0xff] %vm284_vm0, %v235_v12  ;;  %v173_v20 = vmul.f32 %v386_v2, %v102_v13  ;;  %v174_v21 = vmul.f32 %v386_v2, %v103_v14  ;;  %v175_v22 = vmul.f32 %v386_v2, %v104_v15  ;;  %v236_v25 = vmax.f32 %v172_v16, 0.0  ;;  %v52_v8 = vld [vmem:[%s961_s0 + $0x130] sm:$0xff]  ;;  %v53_v13 = vld [vmem:[%s961_s0 + $0x138] sm:$0xff] }
  0x13   :  { %v108_v23 = vsub.f32 %v37_v11, %v381_v1  ;;  %v176_v26 = vmul.f32 %v386_v2, %v105_v17  ;;  %v177_v27 = vmul.f32 %v386_v2, %v106_v18  ;;  %v178_v28 = vmul.f32 %v386_v2, %v107_v19 }
  0x14   :  { %v237_v32 = vmax.f32 %v173_v20, 0.0  ;;  %v238_v33 = vmax.f32 %v174_v21, 0.0  ;;  %v239_v34 = vmax.f32 %v175_v22, 0.0  ;;  %301 = vst.msk [vmem:[%s964_s3 + $0x80] sm:$0xff] %vm284_vm0, %v236_v25  ;;  %v109_v42 = vsub.f32 %v38_v24, %v381_v1 }
  0x15   :  { %v179_v35 = vmul.f32 %v386_v2, %v108_v23  ;;  %v240_v39 = vmax.f32 %v176_v26, 0.0  ;;  %v241_v40 = vmax.f32 %v177_v27, 0.0  ;;  %v242_v41 = vmax.f32 %v178_v28, 0.0  ;;  %v54_v26 = vld [vmem:[%s961_s0 + $0x140] sm:$0xff] }
  0x16   :  { %302 = vst.msk [vmem:[%s964_s3 + $0x88] sm:$0xff] %vm284_vm0, %v237_v32  ;;  %303 = vst.msk [vmem:[%s964_s3 + $0x90] sm:$0xff] %vm284_vm0, %v238_v33  ;;  %v110_v45 = vsub.f32 %v39_v29, %v381_v1  ;;  %v111_v46 = vsub.f32 %v40_v30, %v381_v1  ;;  %v112_v47 = vsub.f32 %v41_v31, %v381_v1  ;;  %v55_v31 = vld [vmem:[%s961_s0 + $0x148] sm:$0xff]  ;;  %v56_v32 = vld [vmem:[%s961_s0 + $0x150] sm:$0xff] }
  0x17   :  { %304 = vst.msk [vmem:[%s964_s3 + $0x98] sm:$0xff] %vm284_vm0, %v239_v34  ;;  %v243_v44 = vmax.f32 %v179_v35, 0.0  ;;  %305 = vst.msk [vmem:[%s964_s3 + $0xa0] sm:$0xff] %vm284_vm0, %v240_v39  ;;  %v180_v48 = vmul.f32 %v386_v2, %v109_v42  ;;  %v113_v49 = vsub.f32 %v42_v36, %v381_v1  ;;  %v114_v50 = vsub.f32 %v43_v37, %v381_v1  ;;  %v57_v33 = vld [vmem:[%s961_s0 + $0x158] sm:$0xff]  ;;  %v59_v39 = vld [vmem:[%s961_s0 + $0x168] sm:$0xff] }
  0x18   :  { %306 = vst.msk [vmem:[%s964_s3 + $0xa8] sm:$0xff] %vm284_vm0, %v241_v40  ;;  %307 = vst.msk [vmem:[%s964_s3 + $0xb0] sm:$0xff] %vm284_vm0, %v242_v41  ;;  %v115_v51 = vsub.f32 %v44_v38, %v381_v1  ;;  %v181_v52 = vmul.f32 %v386_v2, %v110_v45  ;;  %v182_v53 = vmul.f32 %v386_v2, %v111_v46  ;;  %v58_v38 = vld [vmem:[%s961_s0 + $0x160] sm:$0xff]  ;;  %v60_v40 = vld [vmem:[%s961_s0 + $0x170] sm:$0xff] }
  0x19   :  { %308 = vst.msk [vmem:[%s964_s3 + $0xb8] sm:$0xff] %vm284_vm0, %v243_v44  ;;  %v183_v54 = vmul.f32 %v386_v2, %v112_v47  ;;  %v116_v55 = vsub.f32 %v45_v43, %v381_v1  ;;  %v244_v57 = vmax.f32 %v180_v48, 0.0  ;;  %v184_v58 = vmul.f32 %v386_v2, %v113_v49  ;;  %v61_v45 = vld [vmem:[%s961_s0 + $0x178] sm:$0xff] }
  0x1a   :  { %v185_v59 = vmul.f32 %v386_v2, %v114_v50  ;;  %v186_v60 = vmul.f32 %v386_v2, %v115_v51  ;;  %v245_v0 = vmax.f32 %v181_v52, 0.0  ;;  %v246_v3 = vmax.f32 %v182_v53, 0.0 }
  0x1b   :  { %v247_v4 = vmax.f32 %v183_v54, 0.0  ;;  %v187_v5 = vmul.f32 %v386_v2, %v116_v55  ;;  %309 = vst.msk [vmem:[%s964_s3 + $0xc0] sm:$0xff] %vm284_vm0, %v244_v57  ;;  %v248_v9 = vmax.f32 %v184_v58, 0.0  ;;  %v117_v12 = vsub.f32 %v46_v56, %v381_v1  ;;  %v62_v58 = vld [vmem:[%s961_s0 + $0x180] sm:$0xff] }
  0x1c   :  { %v249_v10 = vmax.f32 %v185_v59, 0.0  ;;  %v250_v11 = vmax.f32 %v186_v60, 0.0  ;;  %310 = vst.msk [vmem:[%s964_s3 + $0xc8] sm:$0xff] %vm284_vm0, %v245_v0  ;;  %311 = vst.msk [vmem:[%s964_s3 + $0xd0] sm:$0xff] %vm284_vm0, %v246_v3  ;;  %v118_v15 = vsub.f32 %v47_v61, %v381_v1  ;;  %v119_v16 = vsub.f32 %v48_v62, %v381_v1  ;;  %v64_v0 = vld [vmem:[%s961_s0 + $0x190] sm:$0xff]  ;;  %v65_v3 = vld [vmem:[%s961_s0 + $0x198] sm:$0xff] }
  0x1d   :  { %312 = vst.msk [vmem:[%s964_s3 + $0xd8] sm:$0xff] %vm284_vm0, %v247_v4  ;;  %v251_v14 = vmax.f32 %v187_v5, 0.0  ;;  %v120_v17 = vsub.f32 %v49_v63, %v381_v1  ;;  %313 = vst.msk [vmem:[%s964_s3 + $0xe0] sm:$0xff] %vm284_vm0, %v248_v9  ;;  %v188_v18 = vmul.f32 %v386_v2, %v117_v12  ;;  %v121_v19 = vsub.f32 %v50_v6, %v381_v1  ;;  %v63_v63 = vld [vmem:[%s961_s0 + $0x188] sm:$0xff] }
  0x1e   :  { %314 = vst.msk [vmem:[%s964_s3 + $0xe8] sm:$0xff] %vm284_vm0, %v249_v10  ;;  %315 = vst.msk [vmem:[%s964_s3 + $0xf0] sm:$0xff] %vm284_vm0, %v250_v11  ;;  %v122_v20 = vsub.f32 %v51_v7, %v381_v1  ;;  %v123_v21 = vsub.f32 %v52_v8, %v381_v1  ;;  %v189_v22 = vmul.f32 %v386_v2, %v118_v15  ;;  %v66_v8 = vld [vmem:[%s961_s0 + $0x1a0] sm:$0xff]  ;;  %v67_v9 = vld [vmem:[%s961_s0 + $0x1a8] sm:$0xff] }
  0x1f   :  { %316 = vst.msk [vmem:[%s964_s3 + $0xf8] sm:$0xff] %vm284_vm0, %v251_v14  ;;  %v190_v23 = vmul.f32 %v386_v2, %v119_v16  ;;  %v191_v24 = vmul.f32 %v386_v2, %v120_v17  ;;  %v124_v25 = vsub.f32 %v53_v13, %v381_v1  ;;  %v252_v27 = vmax.f32 %v188_v18, 0.0  ;;  %v68_v10 = vld [vmem:[%s961_s0 + $0x1b0] sm:$0xff]  ;;  %v69_v15 = vld [vmem:[%s961_s0 + $0x1b8] sm:$0xff] }
  0x20   :  { %v192_v28 = vmul.f32 %v386_v2, %v121_v19  ;;  %v193_v29 = vmul.f32 %v386_v2, %v122_v20  ;;  %v194_v30 = vmul.f32 %v386_v2, %v123_v21  ;;  %v253_v34 = vmax.f32 %v189_v22, 0.0 }
  0x21   :  { %v254_v35 = vmax.f32 %v190_v23, 0.0  ;;  %v255_v36 = vmax.f32 %v191_v24, 0.0  ;;  %v195_v37 = vmul.f32 %v386_v2, %v124_v25  ;;  %317 = vst.msk [vmem:[%s964_s3 + $0x100] sm:$0xff] %vm284_vm0, %v252_v27  ;;  %v125_v44 = vsub.f32 %v54_v26, %v381_v1 }
  0x22   :  { %v256_v41 = vmax.f32 %v192_v28, 0.0  ;;  %v257_v42 = vmax.f32 %v193_v29, 0.0  ;;  %v258_v43 = vmax.f32 %v194_v30, 0.0  ;;  %318 = vst.msk [vmem:[%s964_s3 + $0x108] sm:$0xff] %vm284_vm0, %v253_v34  ;;  %v126_v47 = vsub.f32 %v55_v31, %v381_v1  ;;  %v70_v28 = vld [vmem:[%s961_s0 + $0x1c0] sm:$0xff]  ;;  %v72_v34 = vld [vmem:[%s961_s0 + $0x1d0] sm:$0xff] }
  0x23   :  { %319 = vst.msk [vmem:[%s964_s3 + $0x110] sm:$0xff] %vm284_vm0, %v254_v35  ;;  %320 = vst.msk [vmem:[%s964_s3 + $0x118] sm:$0xff] %vm284_vm0, %v255_v36  ;;  %v259_v46 = vmax.f32 %v195_v37, 0.0  ;;  %v127_v48 = vsub.f32 %v56_v32, %v381_v1  ;;  %v128_v49 = vsub.f32 %v57_v33, %v381_v1  ;;  %v196_v50 = vmul.f32 %v386_v2, %v125_v44  ;;  %v71_v33 = vld [vmem:[%s961_s0 + $0x1c8] sm:$0xff]  ;;  %v73_v35 = vld [vmem:[%s961_s0 + $0x1d8] sm:$0xff] }
  0x24   :  { %321 = vst.msk [vmem:[%s964_s3 + $0x120] sm:$0xff] %vm284_vm0, %v256_v41  ;;  %322 = vst.msk [vmem:[%s964_s3 + $0x128] sm:$0xff] %vm284_vm0, %v257_v42  ;;  %v129_v51 = vsub.f32 %v58_v38, %v381_v1  ;;  %v130_v52 = vsub.f32 %v59_v39, %v381_v1  ;;  %v131_v53 = vsub.f32 %v60_v40, %v381_v1  ;;  %v74_v40 = vld [vmem:[%s961_s0 + $0x1e0] sm:$0xff]  ;;  %v75_v41 = vld [vmem:[%s961_s0 + $0x1e8] sm:$0xff] }
  0x25   :  { %323 = vst.msk [vmem:[%s964_s3 + $0x130] sm:$0xff] %vm284_vm0, %v258_v43  ;;  %324 = vst.msk [vmem:[%s964_s3 + $0x138] sm:$0xff] %vm284_vm0, %v259_v46  ;;  %v197_v54 = vmul.f32 %v386_v2, %v126_v47  ;;  %v198_v55 = vmul.f32 %v386_v2, %v127_v48  ;;  %v199_v56 = vmul.f32 %v386_v2, %v128_v49  ;;  %v260_v59 = vmax.f32 %v196_v50, 0.0  ;;  %v76_v42 = vld [vmem:[%s961_s0 + $0x1f0] sm:$0xff]  ;;  %v77_v47 = vld [vmem:[%s961_s0 + $0x1f8] sm:$0xff] }
  0x26   :  { %v132_v57 = vsub.f32 %v61_v45, %v381_v1  ;;  %v200_v60 = vmul.f32 %v386_v2, %v129_v51  ;;  %v201_v61 = vmul.f32 %v386_v2, %v130_v52  ;;  %v202_v62 = vmul.f32 %v386_v2, %v131_v53 }
  0x27   :  { %v261_v4 = vmax.f32 %v197_v54, 0.0  ;;  %v262_v5 = vmax.f32 %v198_v55, 0.0  ;;  %v263_v6 = vmax.f32 %v199_v56, 0.0  ;;  %325 = vst.msk [vmem:[%s964_s3 + $0x140] sm:$0xff] %vm284_vm0, %v260_v59  ;;  %v133_v14 = vsub.f32 %v62_v58, %v381_v1 }
  0x28   :  { %v203_v7 = vmul.f32 %v386_v2, %v132_v57  ;;  %v264_v11 = vmax.f32 %v200_v60, 0.0  ;;  %v265_v12 = vmax.f32 %v201_v61, 0.0  ;;  %v266_v13 = vmax.f32 %v202_v62, 0.0 }
  0x29   :  { %326 = vst.msk [vmem:[%s964_s3 + $0x148] sm:$0xff] %vm284_vm0, %v261_v4  ;;  %327 = vst.msk [vmem:[%s964_s3 + $0x150] sm:$0xff] %vm284_vm0, %v262_v5  ;;  %v134_v17 = vsub.f32 %v63_v63, %v381_v1  ;;  %v135_v18 = vsub.f32 %v64_v0, %v381_v1  ;;  %v136_v19 = vsub.f32 %v65_v3, %v381_v1 }
  0x2a   :  { %328 = vst.msk [vmem:[%s964_s3 + $0x158] sm:$0xff] %vm284_vm0, %v263_v6  ;;  %v267_v16 = vmax.f32 %v203_v7, 0.0  ;;  %329 = vst.msk [vmem:[%s964_s3 + $0x160] sm:$0xff] %vm284_vm0, %v264_v11  ;;  %v204_v20 = vmul.f32 %v386_v2, %v133_v14  ;;  %v137_v21 = vsub.f32 %v66_v8, %v381_v1  ;;  %v138_v22 = vsub.f32 %v67_v9, %v381_v1 }
  0x2b   :  { %330 = vst.msk [vmem:[%s964_s3 + $0x168] sm:$0xff] %vm284_vm0, %v265_v12  ;;  %331 = vst.msk [vmem:[%s964_s3 + $0x170] sm:$0xff] %vm284_vm0, %v266_v13  ;;  %v139_v23 = vsub.f32 %v68_v10, %v381_v1  ;;  %v205_v24 = vmul.f32 %v386_v2, %v134_v17  ;;  %v206_v25 = vmul.f32 %v386_v2, %v135_v18 }
  0x2c   :  { %332 = vst.msk [vmem:[%s964_s3 + $0x178] sm:$0xff] %vm284_vm0, %v267_v16  ;;  %v207_v26 = vmul.f32 %v386_v2, %v136_v19  ;;  %v140_v27 = vsub.f32 %v69_v15, %v381_v1  ;;  %v268_v29 = vmax.f32 %v204_v20, 0.0  ;;  %v208_v30 = vmul.f32 %v386_v2, %v137_v21 }
  0x2d   :  { %v209_v31 = vmul.f32 %v386_v2, %v138_v22  ;;  %v210_v32 = vmul.f32 %v386_v2, %v139_v23  ;;  %v269_v36 = vmax.f32 %v205_v24, 0.0  ;;  %v270_v37 = vmax.f32 %v206_v25, 0.0 }
  0x2e   :  { %v271_v38 = vmax.f32 %v207_v26, 0.0  ;;  %v211_v39 = vmul.f32 %v386_v2, %v140_v27  ;;  %333 = vst.msk [vmem:[%s964_s3 + $0x180] sm:$0xff] %vm284_vm0, %v268_v29  ;;  %v272_v43 = vmax.f32 %v208_v30, 0.0  ;;  %v141_v46 = vsub.f32 %v70_v28, %v381_v1 }
  0x2f   :  { %v273_v44 = vmax.f32 %v209_v31, 0.0  ;;  %v274_v45 = vmax.f32 %v210_v32, 0.0  ;;  %334 = vst.msk [vmem:[%s964_s3 + $0x188] sm:$0xff] %vm284_vm0, %v269_v36  ;;  %335 = vst.msk [vmem:[%s964_s3 + $0x190] sm:$0xff] %vm284_vm0, %v270_v37  ;;  %v142_v49 = vsub.f32 %v71_v33, %v381_v1  ;;  %v143_v50 = vsub.f32 %v72_v34, %v381_v1 }
  0x30   :  { %336 = vst.msk [vmem:[%s964_s3 + $0x198] sm:$0xff] %vm284_vm0, %v271_v38  ;;  %v275_v48 = vmax.f32 %v211_v39, 0.0  ;;  %v144_v51 = vsub.f32 %v73_v35, %v381_v1  ;;  %337 = vst.msk [vmem:[%s964_s3 + $0x1a0] sm:$0xff] %vm284_vm0, %v272_v43  ;;  %v212_v52 = vmul.f32 %v386_v2, %v141_v46  ;;  %v145_v53 = vsub.f32 %v74_v40, %v381_v1 }
  0x31   :  { %338 = vst.msk [vmem:[%s964_s3 + $0x1a8] sm:$0xff] %vm284_vm0, %v273_v44  ;;  %339 = vst.msk [vmem:[%s964_s3 + $0x1b0] sm:$0xff] %vm284_vm0, %v274_v45  ;;  %v146_v54 = vsub.f32 %v75_v41, %v381_v1  ;;  %v147_v55 = vsub.f32 %v76_v42, %v381_v1  ;;  %v213_v56 = vmul.f32 %v386_v2, %v142_v49 }
  0x32   :  { %340 = vst.msk [vmem:[%s964_s3 + $0x1b8] sm:$0xff] %vm284_vm0, %v275_v48  ;;  %v214_v57 = vmul.f32 %v386_v2, %v143_v50  ;;  %v215_v58 = vmul.f32 %v386_v2, %v144_v51  ;;  %v148_v59 = vsub.f32 %v77_v47, %v381_v1  ;;  %v276_v60 = vmax.f32 %v212_v52, 0.0 }
  0x33   :  { %v216_v61 = vmul.f32 %v386_v2, %v145_v53  ;;  %v217_v62 = vmul.f32 %v386_v2, %v146_v54  ;;  %v218_v63 = vmul.f32 %v386_v2, %v147_v55  ;;  %v277_v0 = vmax.f32 %v213_v56, 0.0 }
  0x34   :  { %v278_v3 = vmax.f32 %v214_v57, 0.0  ;;  %v279_v4 = vmax.f32 %v215_v58, 0.0  ;;  %v219_v5 = vmul.f32 %v386_v2, %v148_v59  ;;  %341 = vst.msk [vmem:[%s964_s3 + $0x1c0] sm:$0xff] %vm284_vm0, %v276_v60 }
  0x35   :  { %v280_v6 = vmax.f32 %v216_v61, 0.0  ;;  %v281_v7 = vmax.f32 %v217_v62, 0.0  ;;  %v282_v1 = vmax.f32 %v218_v63, 0.0  ;;  %342 = vst.msk [vmem:[%s964_s3 + $0x1c8] sm:$0xff] %vm284_vm0, %v277_v0 }
  0x36   :  { %343 = vst.msk [vmem:[%s964_s3 + $0x1d0] sm:$0xff] %vm284_vm0, %v278_v3  ;;  %344 = vst.msk [vmem:[%s964_s3 + $0x1d8] sm:$0xff] %vm284_vm0, %v279_v4  ;;  %v283_v2 = vmax.f32 %v219_v5, 0.0 }
  0x37   :  { %345 = vst.msk [vmem:[%s964_s3 + $0x1e0] sm:$0xff] %vm284_vm0, %v280_v6  ;;  %346 = vst.msk [vmem:[%s964_s3 + $0x1e8] sm:$0xff] %vm284_vm0, %v281_v7 }
  0x38   :  { %347 = vst.msk [vmem:[%s964_s3 + $0x1f0] sm:$0xff] %vm284_vm0, %v282_v1  ;;  %348 = vst.msk [vmem:[%s964_s3 + $0x1f8] sm:$0xff] %vm284_vm0, %v283_v2 }

// kernel: _lambda_.28
= control target key start
LH: loop header
LB: loop body
LE: loop exit
PB: predicated region body
PF: predicated region fallthrough
CT: control target
= control target key end

     0   :  { %s978_s15 = smov 0   ;;  %s1382_s0 = inlined_call_operand.vmem [shape: bf16[512,9], index: 0, kind: input, shape index: {}]   ;;  %s1383_s1 = inlined_call_operand.vmem [shape: bf16[9,4], index: 1, kind: input, shape index: {}]   ;;  %s1384_s2 = inlined_call_operand.vmem [shape: f32[512,4], index: 2, kind: output, shape index: {0}]   ;;  %s1385_s3 = inlined_call_operand.vmem [shape: f32[1,4], index: 3, kind: output, shape index: {1}]   ;;  %s1386_s4 = inlined_call_operand.vmem [shape: f32[1,4], index: 4, kind: output, shape index: {2}]  }
   0x1 LB: > { %s818_s16 = sadd.s32 4294967295, %s949_s15   ;;  %p822_p0 = scmp.ge.s32.totalorder %s949_s15, 1  ;;  %s949_s15 = sphi %s978_s15, %s15_s15  }
   0x2   : > { %p158_p1 = scmp.lt.s32.totalorder %s949_s15, 3 }
   0x4   : > { %p159_p2 = pnand %p822_p0, %p158_p1 }
   0x5   : > { %v926_v0 = vld [vmem:[%s1383_s1] sm:$0x1f] (!%p159_p2)   ;;  %vm365_vm0 = vcmask (!%p159_p2), 1043456   ;;  %vm366_vm1 = vcmask (!%p159_p2), 1044480   ;;  %s823_s19 = sshll.u32 (!%p159_p2), %s818_s16, 5  ;;  %v951_v1 = vmov (!%p159_p2), 65535  }
   0x6   : > { %162 = sbr.rel (%p159_p2) target bundleno = 342 (0x156), region = 28  ;;  %v367_v2 = vsel (!%p159_p2), %vm365_vm0, 4294967295, %v951_v1  ;;  %p185_p3 = scmp.lt.s32.totalorder (!%p159_p2), %s823_s19, 63  ;;  %vm316_vm2 = vcmask (!%p159_p2), 72704   ;;  %vm533_vm3 = vcmask (!%p159_p2), 31744  }
   0x7   : > { %v368_v3 = vsel (!%p159_p2), %vm366_vm1, %v367_v2, 0  ;;  %p860_p4 = scmp.ne.s32.totalorder (!%p159_p2), %s818_s16, 0 }
   0x8   : > { %v370_v4 = vand.u32 (!%p159_p2), %v926_v0, %v368_v3 }
   0xa   : > { %880 = vmatprep.subr.bf16.mxu0 (!%p159_p2), %v370_v4  ;;  %914 = vmatprep.subr.bf16.mxu1 (!%p159_p2), %v370_v4 }
   0xb   : > { %881 = vmatpush3.bf16.msra.mxu0 (!%p159_p2), %v370_v4  ;;  %915 = vmatpush3.bf16.msra.mxu1 (!%p159_p2), %v370_v4 }
   0xd   : > { %s1388_s19 = smov (!%p185_p3, %s823_s19), 63  ;;  %vm570_vm4 = vcmask (!%p860_p4), 24576   ;;  %v952_v53 = vmov (!%p860_p4), 0.0  }
   0xe   : > { %s824_s20 = sshll.u32 %s1388_s19, 2  ;;  %s826_s24 = sshll.u32 %s1388_s19, 3  ;;  %571 = vst.msk [vmem:[%s1385_s3] sm:$0x1] (!%p860_p4), %vm570_vm4, %v952_v53  ;;  %572 = vst.msk [vmem:[%s1386_s4] sm:$0x1] (!%p860_p4), %vm570_vm4, %v952_v53 }
   0xf   : > { %s997_s23 = scalar_lea.vmem %s1382_s0, %s824_s20  ;;  %s1035_s27 = scalar_lea.vmem %s1384_s2, %s826_s24 }
  0x10   : > { %v927_v5 = vld [vmem:[%s997_s23] sm:$0xff]   ;;  %v929_v7 = vld [vmem:[%s997_s23 + $0x8] sm:$0xff]   ;;  %v931_v9 = vld [vmem:[%s997_s23 + $0x10] sm:$0xff]  }
  0x11   : > { %v928_v6 = vld [vmem:[%s997_s23 + $0x40] sm:$0xff]   ;;  %882 = vmatprep.mubr.msk.bf16.mxu0 %vm316_vm2, %v927_v5  ;;  %v930_v8 = vld [vmem:[%s997_s23 + $0x48] sm:$0xff]   ;;  %v932_v10 = vld [vmem:[%s997_s23 + $0x50] sm:$0xff]  }
  0x12   : > { %898 = vmatprep.mubr.msk.bf16.mxu1 %vm316_vm2, %v928_v6  ;;  %883 = vmatmul.mubr.msk.bf16.vlgmr.msra.gmra.mrb[0].mxu0 %vm316_vm2, %v929_v7  ;;  %v933_v11 = vld [vmem:[%s997_s23 + $0x18] sm:$0xff]   ;;  %v935_v13 = vld [vmem:[%s997_s23 + $0x20] sm:$0xff]   ;;  %v937_v15 = vld [vmem:[%s997_s23 + $0x28] sm:$0xff]  }
  0x13   : > { %899 = vmatmul.mubr.msk.bf16.vlgmr.msra.gmra.mrb[0].mxu1 %vm316_vm2, %v930_v8  ;;  %886 = vmatprep.mubr.msk.bf16.mxu0 %vm316_vm2, %v931_v9  ;;  %v934_v12 = vld [vmem:[%s997_s23 + $0x58] sm:$0xff]   ;;  %v936_v14 = vld [vmem:[%s997_s23 + $0x60] sm:$0xff]   ;;  %v938_v16 = vld [vmem:[%s997_s23 + $0x68] sm:$0xff]  }
  0x14   : > { %902 = vmatprep.mubr.msk.bf16.mxu1 %vm316_vm2, %v932_v10  ;;  %v939_v17 = vld [vmem:[%s997_s23 + $0x30] sm:$0xff]   ;;  %v941_v19 = vld [vmem:[%s997_s23 + $0x38] sm:$0xff]  }
  0x15   : > { %v940_v18 = vld [vmem:[%s997_s23 + $0x70] sm:$0xff]   ;;  %v942_v20 = vld [vmem:[%s997_s23 + $0x78] sm:$0xff]  }
  0x1a   : > { %887 = vmatmul.mubr.msk.bf16.gmra.mrb[4].mxu0 %vm316_vm2, %v933_v11 }
  0x1b   : > { %903 = vmatmul.mubr.msk.bf16.gmra.mrb[4].mxu1 %vm316_vm2, %v934_v12  ;;  %890 = vmatprep.mubr.msk.bf16.mxu0 %vm316_vm2, %v935_v13 }
  0x1c   : > { %906 = vmatprep.mubr.msk.bf16.mxu1 %vm316_vm2, %v936_v14 }
  0x22   : > { %891 = vmatmul.mubr.msk.bf16.gmra.mrb[8].mxu0 %vm316_vm2, %v937_v15 }
  0x23   : > { %907 = vmatmul.mubr.msk.bf16.gmra.mrb[8].mxu1 %vm316_vm2, %v938_v16  ;;  %894 = vmatprep.mubr.msk.bf16.mxu0 %vm316_vm2, %v939_v17 }
  0x24   : > { %910 = vmatprep.mubr.msk.bf16.mxu1 %vm316_vm2, %v940_v18 }
  0x2a   : > { %895 = vmatmul.mubr.msk.bf16.gmra.mrb[12].mxu0 %vm316_vm2, %v941_v19 }
  0x2b   : > { %911 = vmatmul.mubr.msk.bf16.gmra.mrb[12].mxu1 %vm316_vm2, %v942_v20 }
  0xe5   : > { %v1037_v21 = vpop.f32.mrb[0].mxu0 }
  0xe6   : > { %536 = vst.msk [vmem:[%s1035_s27 + $0x10] sm:$0xff] %vm533_vm3, %v1037_v21  ;;  %v1042_v22 = vpop.f32.mrb[0].mxu1  ;;  %v1044_v23 = vpop.f32.mrb[1].mxu0 }
  0xe7   : > { %552 = vst.msk [vmem:[%s1035_s27 + $0x90] sm:$0xff] %vm533_vm3, %v1042_v22  ;;  %534 = vst.msk [vmem:[%s1035_s27] sm:$0xff] %vm533_vm3, %v1044_v23  ;;  %v1052_v24 = vpop.f32.mrb[1].mxu1  ;;  %v1054_v25 = vpop.f32.mrb[2].mxu0 }
  0xe8   : > { %550 = vst.msk [vmem:[%s1035_s27 + $0x80] sm:$0xff] %vm533_vm3, %v1052_v24  ;;  %537 = vst.msk [vmem:[%s1035_s27 + $0x18] sm:$0xff] %vm533_vm3, %v1054_v25  ;;  %v1062_v26 = vpop.f32.mrb[2].mxu1  ;;  %v1064_v27 = vpop.f32.mrb[3].mxu0 }
  0xe9   : > { %553 = vst.msk [vmem:[%s1035_s27 + $0x98] sm:$0xff] %vm533_vm3, %v1062_v26  ;;  %535 = vst.msk [vmem:[%s1035_s27 + $0x8] sm:$0xff] %vm533_vm3, %v1064_v27  ;;  %v1072_v28 = vpop.f32.mrb[3].mxu1 }
  0xea   : > { %551 = vst.msk [vmem:[%s1035_s27 + $0x88] sm:$0xff] %vm533_vm3, %v1072_v28 }
  0xed   : > { %v1077_v29 = vpop.f32.mrb[4].mxu0 }
  0xee   : > { %540 = vst.msk [vmem:[%s1035_s27 + $0x30] sm:$0xff] %vm533_vm3, %v1077_v29  ;;  %v1082_v30 = vpop.f32.mrb[4].mxu1  ;;  %v1084_v31 = vpop.f32.mrb[5].mxu0 }
  0xef   : > { %556 = vst.msk [vmem:[%s1035_s27 + $0xb0] sm:$0xff] %vm533_vm3, %v1082_v30  ;;  %538 = vst.msk [vmem:[%s1035_s27 + $0x20] sm:$0xff] %vm533_vm3, %v1084_v31  ;;  %v1092_v32 = vpop.f32.mrb[5].mxu1  ;;  %v1094_v33 = vpop.f32.mrb[6].mxu0 }
  0xf0   : > { %554 = vst.msk [vmem:[%s1035_s27 + $0xa0] sm:$0xff] %vm533_vm3, %v1092_v32  ;;  %541 = vst.msk [vmem:[%s1035_s27 + $0x38] sm:$0xff] %vm533_vm3, %v1094_v33  ;;  %v1102_v34 = vpop.f32.mrb[6].mxu1  ;;  %v1104_v35 = vpop.f32.mrb[7].mxu0 }
  0xf1   : > { %557 = vst.msk [vmem:[%s1035_s27 + $0xb8] sm:$0xff] %vm533_vm3, %v1102_v34  ;;  %539 = vst.msk [vmem:[%s1035_s27 + $0x28] sm:$0xff] %vm533_vm3, %v1104_v35  ;;  %v1112_v36 = vpop.f32.mrb[7].mxu1 }
  0xf2   : > { %555 = vst.msk [vmem:[%s1035_s27 + $0xa8] sm:$0xff] %vm533_vm3, %v1112_v36 }
  0xf5   : > { %v1117_v37 = vpop.f32.mrb[8].mxu0 }
  0xf6   : > { %544 = vst.msk [vmem:[%s1035_s27 + $0x50] sm:$0xff] %vm533_vm3, %v1117_v37  ;;  %v1122_v38 = vpop.f32.mrb[8].mxu1  ;;  %v1124_v39 = vpop.f32.mrb[9].mxu0 }
  0xf7   : > { %560 = vst.msk [vmem:[%s1035_s27 + $0xd0] sm:$0xff] %vm533_vm3, %v1122_v38  ;;  %542 = vst.msk [vmem:[%s1035_s27 + $0x40] sm:$0xff] %vm533_vm3, %v1124_v39  ;;  %v1132_v40 = vpop.f32.mrb[9].mxu1  ;;  %v1134_v41 = vpop.f32.mrb[10].mxu0 }
  0xf8   : > { %558 = vst.msk [vmem:[%s1035_s27 + $0xc0] sm:$0xff] %vm533_vm3, %v1132_v40  ;;  %545 = vst.msk [vmem:[%s1035_s27 + $0x58] sm:$0xff] %vm533_vm3, %v1134_v41  ;;  %v1142_v42 = vpop.f32.mrb[10].mxu1  ;;  %v1144_v43 = vpop.f32.mrb[11].mxu0 }
  0xf9   : > { %561 = vst.msk [vmem:[%s1035_s27 + $0xd8] sm:$0xff] %vm533_vm3, %v1142_v42  ;;  %543 = vst.msk [vmem:[%s1035_s27 + $0x48] sm:$0xff] %vm533_vm3, %v1144_v43  ;;  %v1152_v44 = vpop.f32.mrb[11].mxu1 }
  0xfa   : > { %559 = vst.msk [vmem:[%s1035_s27 + $0xc8] sm:$0xff] %vm533_vm3, %v1152_v44 }
  0xfc   : > { %569 = sbr.rel (%p860_p4) target bundleno = 259 (0x103), region = 32 }
  0xfd   : > { %v1157_v45 = vpop.f32.mrb[12].mxu0 }
  0xfe   : > { %548 = vst.msk [vmem:[%s1035_s27 + $0x70] sm:$0xff] %vm533_vm3, %v1157_v45  ;;  %v1162_v46 = vpop.f32.mrb[12].mxu1  ;;  %v1164_v47 = vpop.f32.mrb[13].mxu0 }
  0xff   : > { %564 = vst.msk [vmem:[%s1035_s27 + $0xf0] sm:$0xff] %vm533_vm3, %v1162_v46  ;;  %546 = vst.msk [vmem:[%s1035_s27 + $0x60] sm:$0xff] %vm533_vm3, %v1164_v47  ;;  %v1172_v48 = vpop.f32.mrb[13].mxu1  ;;  %v1174_v49 = vpop.f32.mrb[14].mxu0 }
 0x100   : > { %562 = vst.msk [vmem:[%s1035_s27 + $0xe0] sm:$0xff] %vm533_vm3, %v1172_v48  ;;  %549 = vst.msk [vmem:[%s1035_s27 + $0x78] sm:$0xff] %vm533_vm3, %v1174_v49  ;;  %v1182_v50 = vpop.f32.mrb[14].mxu1  ;;  %v1184_v51 = vpop.f32.mrb[15].mxu0 }
 0x101   : > { %565 = vst.msk [vmem:[%s1035_s27 + $0xf8] sm:$0xff] %vm533_vm3, %v1182_v50  ;;  %547 = vst.msk [vmem:[%s1035_s27 + $0x68] sm:$0xff] %vm533_vm3, %v1184_v51  ;;  %v1192_v52 = vpop.f32.mrb[15].mxu1 }
 0x102   : > { %563 = vst.msk [vmem:[%s1035_s27 + $0xe8] sm:$0xff] %vm533_vm3, %v1192_v52 }
 0x103 PF: > { %v574_v54 = vsel %vm533_vm3, %v1044_v23, 0.0  ;;  %v575_v55 = vsel %vm533_vm3, %v1064_v27, 0.0  ;;  %v577_v56 = vsel %vm533_vm3, %v1037_v21, 0.0  ;;  %v579_v58 = vsel %vm533_vm3, %v1054_v25, 0.0 }
 0x104   : > { %v576_v57 = vadd.f32 %v575_v55, %v574_v54  ;;  %v581_v60 = vsel %vm533_vm3, %v1084_v31, 0.0  ;;  %v583_v62 = vsel %vm533_vm3, %v1104_v35, 0.0  ;;  %v585_v0 = vsel %vm533_vm3, %v1077_v29, 0.0 }
 0x105   : > { %v587_v2 = vsel %vm533_vm3, %v1094_v33, 0.0  ;;  %v589_v4 = vsel %vm533_vm3, %v1124_v39, 0.0  ;;  %v591_v6 = vsel %vm533_vm3, %v1144_v43, 0.0  ;;  %v647_v7 = vmul.f32 %v1044_v23, %v1044_v23 }
 0x106   : > { %v578_v59 = vadd.f32 %v577_v56, %v576_v57  ;;  %v648_v8 = vmul.f32 %v1064_v27, %v1064_v27  ;;  %v649_v10 = vmul.f32 %v1037_v21, %v1037_v21  ;;  %v593_v11 = vsel %vm533_vm3, %v1117_v37, 0.0 }
 0x107   : > { %v650_v12 = vmul.f32 %v1054_v25, %v1054_v25  ;;  %v595_v14 = vsel %vm533_vm3, %v1134_v41, 0.0  ;;  %v651_v15 = vmul.f32 %v1084_v31, %v1084_v31  ;;  %v679_v16 = vsel %vm533_vm3, %v647_v7, 0.0 }
 0x108   : > { %v580_v61 = vadd.f32 %v579_v58, %v578_v59  ;;  %v680_v17 = vsel %vm533_vm3, %v648_v8, 0.0  ;;  %v682_v20 = vsel %vm533_vm3, %v649_v10, 0.0  ;;  %v597_v21 = vsel %vm533_vm3, %v1164_v47, 0.0 }
 0x109   : > { %v681_v19 = vadd.f32 %v680_v17, %v679_v16  ;;  %v652_v23 = vmul.f32 %v1104_v35, %v1104_v35  ;;  %v684_v25 = vsel %vm533_vm3, %v650_v12, 0.0  ;;  %v599_v31 = vsel %vm533_vm3, %v1184_v51, 0.0 }
 0x10a   : > { %v582_v63 = vadd.f32 %v581_v60, %v580_v61  ;;  %v653_v54 = vmul.f32 %v1077_v29, %v1077_v29  ;;  %v686_v55 = vsel %vm533_vm3, %v651_v15, 0.0  ;;  %v601_v58 = vsel %vm533_vm3, %v1157_v45, 0.0 }
 0x10b   : > { %v683_v53 = vadd.f32 %v682_v20, %v681_v19  ;;  %v654_v35 = vmul.f32 %v1094_v33, %v1094_v33  ;;  %v688_v59 = vsel %vm533_vm3, %v652_v23, 0.0  ;;  %v655_v29 = vmul.f32 %v1124_v39, %v1124_v39 }
 0x10c   : > { %v584_v1 = vadd.f32 %v583_v62, %v582_v63  ;;  %v603_v62 = vsel %vm533_vm3, %v1174_v49, 0.0  ;;  %v690_v63 = vsel %vm533_vm3, %v653_v54, 0.0  ;;  %v656_v33 = vmul.f32 %v1144_v43, %v1144_v43 }
 0x10d   : > { %v685_v57 = vadd.f32 %v684_v25, %v683_v53  ;;  %v657_v39 = vmul.f32 %v1117_v37, %v1117_v37  ;;  %v694_v7 = vsel %vm533_vm3, %v655_v29, 0.0  ;;  %v609_v10 = vsel %vm533_vm3, %v1042_v22, 0.0 }
 0x10e   : > { %v586_v3 = vadd.f32 %v585_v0, %v584_v1  ;;  %v658_v43 = vmul.f32 %v1134_v41, %v1134_v41  ;;  %v659_v37 = vmul.f32 %v1164_v47, %v1164_v47  ;;  %v660_v41 = vmul.f32 %v1184_v51, %v1184_v51 }
 0x10f   : > { %v687_v61 = vadd.f32 %v686_v55, %v685_v57  ;;  %v698_v15 = vsel %vm533_vm3, %v657_v39, 0.0  ;;  %v615_v23 = vsel %vm533_vm3, %v1112_v36, 0.0  ;;  %v661_v47 = vmul.f32 %v1157_v45, %v1157_v45 }
 0x110   : > { %v588_v5 = vadd.f32 %v587_v2, %v586_v3  ;;  %v605_v2 = vsel %vm533_vm3, %v1052_v24, 0.0  ;;  %v692_v3 = vsel %vm533_vm3, %v654_v35, 0.0  ;;  %v700_v19 = vsel %vm533_vm3, %v658_v43, 0.0 }
 0x111   : > { %v689_v1 = vadd.f32 %v688_v59, %v687_v61  ;;  %v702_v25 = vsel %vm533_vm3, %v659_v37, 0.0  ;;  %v662_v51 = vmul.f32 %v1174_v49, %v1174_v49  ;;  %v704_v54 = vsel %vm533_vm3, %v660_v41, 0.0 }
 0x112   : > { %v590_v9 = vadd.f32 %v589_v4, %v588_v5  ;;  %v619_v57 = vsel %vm533_vm3, %v1102_v34, 0.0  ;;  %v663_v45 = vmul.f32 %v1052_v24, %v1052_v24  ;;  %v664_v49 = vmul.f32 %v1072_v28, %v1072_v28 }
 0x113   : > { %v691_v5 = vadd.f32 %v690_v63, %v689_v1  ;;  %v708_v61 = vsel %vm533_vm3, %v662_v51, 0.0  ;;  %v623_v63 = vsel %vm533_vm3, %v1152_v44, 0.0  ;;  %v665_v24 = vmul.f32 %v1042_v22, %v1042_v22 }
 0x114   : > { %v592_v13 = vadd.f32 %v591_v6, %v590_v9  ;;  %v607_v6 = vsel %vm533_vm3, %v1072_v28, 0.0  ;;  %v666_v28 = vmul.f32 %v1062_v26, %v1062_v26  ;;  %v667_v22 = vmul.f32 %v1092_v32, %v1092_v32 }
 0x115   : > { %v693_v9 = vadd.f32 %v692_v3, %v691_v5  ;;  %v712_v3 = vsel %vm533_vm3, %v664_v49, 0.0  ;;  %v714_v39 = vsel %vm533_vm3, %v665_v24, 0.0  ;;  %v635_v41 = vsel %vm533_vm3, %v1182_v50, 0.0 }
 0x116   : > { %v594_v18 = vadd.f32 %v593_v11, %v592_v13  ;;  %v696_v11 = vsel %vm533_vm3, %v656_v33, 0.0  ;;  %v625_v33 = vsel %vm533_vm3, %v1122_v38, 0.0  ;;  %vm644_vm5 = vcmask 24576  }
 0x117   : > { %v695_v13 = vadd.f32 %v694_v7, %v693_v9  ;;  %v629_v9 = vsel %vm533_vm3, %v1172_v48, 0.0 }
 0x118   : > { %v596_v27 = vadd.f32 %v595_v14, %v594_v18  ;;  %v611_v14 = vsel %vm533_vm3, %v1062_v26, 0.0  ;;  %v613_v18 = vsel %vm533_vm3, %v1092_v32, 0.0  ;;  %v668_v26 = vmul.f32 %v1112_v36, %v1112_v36 }
 0x119   : > { %v697_v17 = vadd.f32 %v696_v11, %v695_v13  ;;  %v669_v32 = vmul.f32 %v1082_v30, %v1082_v30  ;;  %v718_v13 = vsel %vm533_vm3, %v667_v22, 0.0  ;;  %v670_v36 = vmul.f32 %v1102_v34, %v1102_v34  ;;  %v646_v22 = vld [vmem:[%s1386_s4] sm:$0x1] }
 0x11a   : > { %v598_v56 = vadd.f32 %v597_v21, %v596_v27 }
 0x11b   : > { %v699_v21 = vadd.f32 %v698_v15, %v697_v17  ;;  %v633_v15 = vsel %vm533_vm3, %v1162_v46, 0.0 }
 0x11c   : > { %v600_v60 = vadd.f32 %v599_v31, %v598_v56  ;;  %v617_v31 = vsel %vm533_vm3, %v1082_v30, 0.0  ;;  %v671_v30 = vmul.f32 %v1132_v40, %v1132_v40 }
 0x11d   : > { %v701_v53 = vadd.f32 %v700_v19, %v699_v21  ;;  %v722_v19 = vsel %vm533_vm3, %v669_v32, 0.0 }
 0x11e   : > { %v602_v0 = vadd.f32 %v601_v58, %v600_v60  ;;  %v706_v58 = vsel %vm533_vm3, %v661_v47, 0.0  ;;  %v621_v60 = vsel %vm533_vm3, %v1132_v40, 0.0  ;;  %v724_v47 = vsel %vm533_vm3, %v670_v36, 0.0 }
 0x11f   : > { %v703_v56 = vadd.f32 %v702_v25, %v701_v53  ;;  %v726_v53 = vsel %vm533_vm3, %v671_v30, 0.0  ;;  %v674_v40 = vmul.f32 %v1142_v42, %v1142_v42 }
 0x120   : > { %v604_v4 = vadd.f32 %v603_v62, %v602_v0  ;;  %v710_v0 = vsel %vm533_vm3, %v663_v45, 0.0 }
 0x121   : > { %v705_v59 = vadd.f32 %v704_v54, %v703_v56 }
 0x122   : > { %v606_v8 = vadd.f32 %v605_v2, %v604_v4 }
 0x123   : > { %v707_v29 = vadd.f32 %v706_v58, %v705_v59 }
 0x124   : > { %v608_v12 = vadd.f32 %v607_v6, %v606_v8  ;;  %v627_v6 = vsel %vm533_vm3, %v1142_v42, 0.0  ;;  %v677_v42 = vmul.f32 %v1162_v46, %v1162_v46 }
 0x125   : > { %v709_v2 = vadd.f32 %v708_v61, %v707_v29  ;;  %v678_v29 = vmul.f32 %v1182_v50, %v1182_v50 }
 0x126   : > { %v610_v16 = vadd.f32 %v609_v10, %v608_v12  ;;  %v716_v10 = vsel %vm533_vm3, %v666_v28, 0.0  ;;  %v631_v12 = vsel %vm533_vm3, %v1192_v52, 0.0 }
 0x127   : > { %v711_v5 = vadd.f32 %v710_v0, %v709_v2  ;;  %v738_v0 = vsel %vm533_vm3, %v677_v42, 0.0  ;;  %v740_v2 = vsel %vm533_vm3, %v678_v29, 0.0 }
 0x128   : > { %v612_v20 = vadd.f32 %v611_v14, %v610_v16  ;;  %v720_v16 = vsel %vm533_vm3, %v668_v26, 0.0 }
 0x129   : > { %v713_v8 = vadd.f32 %v712_v3, %v711_v5 }
 0x12a   : > { %v614_v27 = vadd.f32 %v613_v18, %v612_v20 }
 0x12b   : > { %v715_v11 = vadd.f32 %v714_v39, %v713_v8 }
 0x12c   : > { %v616_v55 = vadd.f32 %v615_v23, %v614_v27  ;;  %v672_v23 = vmul.f32 %v1152_v44, %v1152_v44  ;;  %v673_v27 = vmul.f32 %v1122_v38, %v1122_v38  ;;  %v675_v44 = vmul.f32 %v1172_v48, %v1172_v48  ;;  %v573_v48 = vld [vmem:[%s1385_s3] sm:$0x1] }
 0x12d   : > { %v717_v37 = vadd.f32 %v716_v10, %v715_v11  ;;  %v676_v38 = vmul.f32 %v1192_v52, %v1192_v52 }
 0x12e   : > { %v618_v35 = vadd.f32 %v617_v31, %v616_v55  ;;  %v728_v54 = vsel %vm533_vm3, %v672_v23, 0.0  ;;  %v734_v49 = vsel %vm533_vm3, %v675_v44, 0.0 }
 0x12f   : > { %v719_v18 = vadd.f32 %v718_v13, %v717_v37  ;;  %v736_v52 = vsel %vm533_vm3, %v676_v38, 0.0 }
 0x130   : > { %v620_v62 = vadd.f32 %v619_v57, %v618_v35  ;;  %v730_v57 = vsel %vm533_vm3, %v673_v27, 0.0  ;;  %v732_v35 = vsel %vm533_vm3, %v674_v40, 0.0 }
 0x131   : > { %v721_v21 = vadd.f32 %v720_v16, %v719_v18 }
 0x132   : > { %v622_v1 = vadd.f32 %v621_v60, %v620_v62 }
 0x133   : > { %v723_v25 = vadd.f32 %v722_v19, %v721_v21 }
 0x134   : > { %v624_v4 = vadd.f32 %v623_v63, %v622_v1 }
 0x135   : > { %v725_v51 = vadd.f32 %v724_v47, %v723_v25 }
 0x136   : > { %v626_v7 = vadd.f32 %v625_v33, %v624_v4 }
 0x137   : > { %v727_v56 = vadd.f32 %v726_v53, %v725_v51 }
 0x138   : > { %v628_v43 = vadd.f32 %v627_v6, %v626_v7 }
 0x139   : > { %v729_v58 = vadd.f32 %v728_v54, %v727_v56 }
 0x13a   : > { %v630_v14 = vadd.f32 %v629_v9, %v628_v43 }
 0x13b   : > { %v731_v60 = vadd.f32 %v730_v57, %v729_v58 }
 0x13c   : > { %v632_v17 = vadd.f32 %v631_v12, %v630_v14 }
 0x13d   : > { %v733_v62 = vadd.f32 %v732_v35, %v731_v60 }
 0x13e   : > { %v634_v20 = vadd.f32 %v633_v15, %v632_v17 }
 0x13f   : > { %v735_v24 = vadd.f32 %v734_v49, %v733_v62 }
 0x140   : > { %v636_v34 = vadd.f32 %v635_v41, %v634_v20 }
 0x141   : > { %v737_v46 = vadd.f32 %v736_v52, %v735_v24 }
 0x142   : > { %v637_v31 = vrot.slane %v636_v34, 4 }
 0x143   : > { %v739_v33 = vadd.f32 %v738_v0, %v737_v46 }
 0x144   : > { %v638_v55 = vadd.f32 %v637_v31, %v636_v34 }
 0x145   : > { %v741_v28 = vadd.f32 %v740_v2, %v739_v33 }
 0x146   : > { %v639_v45 = vrot.slane %v638_v55, 2 }
 0x147   : > { %v742_v3 = vrot.slane %v741_v28, 4 }
 0x148   : > { %v640_v59 = vadd.f32 %v639_v45, %v638_v55 }
 0x149   : > { %v743_v50 = vadd.f32 %v742_v3, %v741_v28 }
 0x14a   : > { %v641_v61 = vrot.slane %v640_v59, 1 }
 0x14b   : > { %v744_v4 = vrot.slane %v743_v50, 2 }
 0x14c   : > { %v642_v63 = vadd.f32 %v641_v61, %v640_v59 }
 0x14d   : > { %v745_v5 = vadd.f32 %v744_v4, %v743_v50 }
 0x14e   : > { %v643_v1 = vadd.f32 %v642_v63, %v573_v48 }
 0x14f   : > { %v746_v6 = vrot.slane %v745_v5, 1 }
 0x150   : > { %645 = vst.msk [vmem:[%s1385_s3] sm:$0x1] %vm644_vm5, %v643_v1 }
 0x151   : > { %v747_v39 = vadd.f32 %v746_v6, %v745_v5 }
 0x153   : > { %v748_v7 = vadd.f32 %v747_v39, %v646_v22 }
 0x155   : > { %749 = vst.msk [vmem:[%s1386_s4] sm:$0x1] %vm644_vm5, %v748_v7 }
 0x156 PF: > { %s15_s15 = sadd.s32 1, %s949_s15  }
 0x157   : > { %p12_p5 = scmp.ge.s32.totalorder %s15_s15, 4  }
 0x159   :  { %14 = sbr.rel (!%p12_p5) target bundleno = 1 (0x1), region = 78 }

// kernel: _lambda_.30
= control target key start
LH: loop header
LB: loop body
LE: loop exit
PB: predicated region body
PF: predicated region fallthrough
CT: control target
= control target key end

     0   :  { %v389_v0 = vmov 0.0   ;;  %vm390_vm0 = vmmov 0   ;;  %vm103_vm1 = vcmask 1041408   ;;  %vm81_vm2 = vcmask 293888   ;;  %s584_s1 = inlined_call_operand.vmem [shape: bf16[36,8], index: 1, kind: input, shape index: {}]   ;;  %s585_s0 = inlined_call_operand.vmem [shape: bf16[104,36], index: 0, kind: input, shape index: {}]   ;;  %s586_s3 = inlined_call_operand.vmem [shape: f32[1,8], index: 3, kind: output, shape index: {1}]   ;;  %s587_s4 = inlined_call_operand.vmem [shape: f32[1,8], index: 4, kind: output, shape index: {2}]   ;;  %s588_s2 = inlined_call_operand.vmem [shape: f32[104,8], index: 2, kind: output, shape index: {0}]  }
   0x1   :  { %337 = vmatprep.subr.bf16.mxu0 %v389_v0  ;;  %v379_v1 = vld [vmem:[%s584_s1] sm:$0xff]   ;;  %343 = vmatprep.mubr.msk.bf16.mxu0 %vm390_vm0, %v389_v0  ;;  %v380_v2 = vld [vmem:[%s584_s1 + $0x8] sm:$0xff]   ;;  %v381_v3 = vld [vmem:[%s584_s1 + $0x10] ss:$0 sps:$4 sm:$0x33]   ;;  %vm213_vm3 = vcmask 57344  }
   0x2   :  { %371 = vmatprep.subr.bf16.mxu1 %v389_v0  ;;  %359 = vmatprep.mubr.msk.bf16.mxu1 %vm390_vm0, %v389_v0  ;;  %v105_v4 = vsel %vm103_vm1, %v381_v3, 0  ;;  %v382_v5 = vld [vmem:[%s585_s0] sm:$0xff]   ;;  %v383_v7 = vld [vmem:[%s585_s0 + $0x8] sm:$0xff]   ;;  %v384_v9 = vld [vmem:[%s585_s0 + $0x10] sm:$0xff]   ;;  %214 = vst.msk [vmem:[%s586_s3] sm:$0x1] %vm213_vm3, %v389_v0 }
   0x3   :  { %338 = vmatpush3.bf16.msra.mxu0 %v379_v1  ;;  %374 = vmatpush3.bf16.msra.mxu1 %v379_v1  ;;  %v385_v6 = vld [vmem:[%s585_s0 + $0x20] sm:$0xff]   ;;  %v387_v8 = vld [vmem:[%s585_s0 + $0x28] sm:$0xff]   ;;  %v388_v10 = vld [vmem:[%s585_s0 + $0x30] ss:$0 sps:$4 sm:$0xff]   ;;  %215 = vst.msk [vmem:[%s587_s4] sm:$0x1] %vm213_vm3, %v389_v0 }
   0x4   :  { %339 = vmatprep.subr.bf16.mxu0 %v389_v0  ;;  %372 = vmatprep.subr.bf16.mxu1 %v389_v0  ;;  %v386_v11 = vld [vmem:[%s585_s0 + $0x18] sm:$0xff]   ;;  %vm195_vm4 = vcmask 64512  }
   0x7   :  { %340 = vmatpush3.bf16.msra.mxu0 %v380_v2  ;;  %375 = vmatpush3.bf16.msra.mxu1 %v380_v2 }
   0x8   :  { %341 = vmatprep.subr.bf16.mxu0 %v389_v0  ;;  %373 = vmatprep.subr.bf16.mxu1 %v389_v0 }
   0xb   :  { %342 = vmatpush3.bf16.msra.mxu0 %v105_v4  ;;  %376 = vmatpush3.bf16.msra.mxu1 %v105_v4 }
   0xe   :  { %344 = vmatmul.mubr.msk.bf16.vlgmr.msra.gmra.mrb[0].mxu0 %vm81_vm2, %v382_v5  ;;  %360 = vmatmul.mubr.msk.bf16.vlgmr.msra.gmra.mrb[0].mxu1 %vm81_vm2, %v385_v6 }
   0xf   :  { %347 = vmatprep.mubr.msk.bf16.mxu0 %vm390_vm0, %v389_v0  ;;  %363 = vmatprep.mubr.msk.bf16.mxu1 %vm390_vm0, %v389_v0 }
  0x16   :  { %348 = vmatmul.mubr.msk.bf16.gmra.mrb[4].mxu0 %vm81_vm2, %v383_v7  ;;  %364 = vmatmul.mubr.msk.bf16.gmra.mrb[4].mxu1 %vm81_vm2, %v387_v8 }
  0x17   :  { %351 = vmatprep.mubr.msk.bf16.mxu0 %vm390_vm0, %v389_v0  ;;  %367 = vmatprep.mubr.msk.bf16.mxu1 %vm390_vm0, %v389_v0 }
  0x1e   :  { %352 = vmatmul.mubr.msk.bf16.gmra.mrb[8].mxu0 %vm81_vm2, %v384_v9  ;;  %368 = vmatmul.mubr.msk.bf16.gmra.mrb[8].mxu1 %vm81_vm2, %v388_v10 }
  0x1f   :  { %355 = vmatprep.mubr.msk.bf16.mxu0 %vm390_vm0, %v389_v0 }
  0x26   :  { %356 = vmatmul.mubr.msk.bf16.gmra.mrb[12].mxu0 %vm81_vm2, %v386_v11 }
  0xe1   :  { %v141_v12 = vpop.f32.mrb[0].mxu0  ;;  %v468_v13 = vpop.f32.mrb[0].mxu1 }
  0xe2   :  { %196 = vst.msk [vmem:[%s588_s2] sm:$0xff] %vm195_vm4, %v141_v12  ;;  %v252_v14 = vmul.f32 %v141_v12, %v141_v12  ;;  %v345_v15 = vpop.f32.mrb[1].mxu0  ;;  %204 = vst.msk [vmem:[%s588_s2 + $0x40] sm:$0xff] %vm195_vm4, %v468_v13  ;;  %v361_v16 = vpop.f32.mrb[1].mxu1  ;;  %v217_v19 = vsel %vm195_vm4, %v141_v12, 0.0  ;;  %v260_v6 = vmul.f32 %v468_v13, %v468_v13 }
  0xe3   :  { %v144_v17 = vpop.f32.mrb[2].mxu0  ;;  %v479_v18 = vpop.f32.mrb[2].mxu1 }
  0xe4   :  { %197 = vst.msk [vmem:[%s588_s2 + $0x8] sm:$0xff] %vm195_vm4, %v144_v17  ;;  %v218_v20 = vsel %vm195_vm4, %v144_v17, 0.0  ;;  %v253_v21 = vmul.f32 %v144_v17, %v144_v17  ;;  %v346_v22 = vpop.f32.mrb[3].mxu0  ;;  %205 = vst.msk [vmem:[%s588_s2 + $0x48] sm:$0xff] %vm195_vm4, %v479_v18  ;;  %v362_v23 = vpop.f32.mrb[3].mxu1  ;;  %v265_v25 = vsel %vm195_vm4, %v252_v14, 0.0  ;;  %v261_v15 = vmul.f32 %v479_v18, %v479_v18 }
  0xe5   :  { %v219_v24 = vadd.f32 %v218_v20, %v217_v19  ;;  %v232_v14 = vsel %vm195_vm4, %v468_v13, 0.0  ;;  %v280_v20 = vsel %vm195_vm4, %v260_v6, 0.0 }
  0xe6   :  { %v266_v26 = vsel %vm195_vm4, %v253_v21, 0.0  ;;  %v234_v21 = vsel %vm195_vm4, %v479_v18, 0.0 }
  0xe7   :  { %v267_v27 = vadd.f32 %v266_v26, %v265_v25  ;;  %v282_v25 = vsel %vm195_vm4, %v261_v15, 0.0 }
  0xe9   :  { %v149_v28 = vpop.f32.mrb[4].mxu0  ;;  %v494_v29 = vpop.f32.mrb[4].mxu1 }
  0xea   :  { %198 = vst.msk [vmem:[%s588_s2 + $0x10] sm:$0xff] %vm195_vm4, %v149_v28  ;;  %v220_v30 = vsel %vm195_vm4, %v149_v28, 0.0  ;;  %v254_v31 = vmul.f32 %v149_v28, %v149_v28  ;;  %v349_v32 = vpop.f32.mrb[5].mxu0  ;;  %206 = vst.msk [vmem:[%s588_s2 + $0x50] sm:$0xff] %vm195_vm4, %v494_v29  ;;  %v365_v33 = vpop.f32.mrb[5].mxu1  ;;  %v262_v22 = vmul.f32 %v494_v29, %v494_v29  ;;  %v236_v13 = vsel %vm195_vm4, %v494_v29, 0.0 }
  0xeb   :  { %v221_v34 = vadd.f32 %v220_v30, %v219_v24  ;;  %v152_v35 = vpop.f32.mrb[6].mxu0  ;;  %v506_v36 = vpop.f32.mrb[6].mxu1 }
  0xec   :  { %v268_v37 = vsel %vm195_vm4, %v254_v31, 0.0  ;;  %199 = vst.msk [vmem:[%s588_s2 + $0x18] sm:$0xff] %vm195_vm4, %v152_v35  ;;  %v222_v38 = vsel %vm195_vm4, %v152_v35, 0.0  ;;  %v255_v39 = vmul.f32 %v152_v35, %v152_v35  ;;  %v350_v40 = vpop.f32.mrb[7].mxu0  ;;  %207 = vst.msk [vmem:[%s588_s2 + $0x58] sm:$0xff] %vm195_vm4, %v506_v36  ;;  %v366_v41 = vpop.f32.mrb[7].mxu1  ;;  %v263_v26 = vmul.f32 %v506_v36, %v506_v36 }
  0xed   :  { %v269_v42 = vadd.f32 %v268_v37, %v267_v27  ;;  %v223_v43 = vadd.f32 %v222_v38, %v221_v34  ;;  %v284_v31 = vsel %vm195_vm4, %v262_v22, 0.0  ;;  %v238_v18 = vsel %vm195_vm4, %v506_v36, 0.0 }
  0xee   :  { %v270_v44 = vsel %vm195_vm4, %v255_v39, 0.0  ;;  %v286_v35 = vsel %vm195_vm4, %v263_v26, 0.0 }
  0xef   :  { %v271_v45 = vadd.f32 %v270_v44, %v269_v42 }
  0xf1   :  { %v157_v46 = vpop.f32.mrb[8].mxu0  ;;  %v189_v47 = vpop.f32.mrb[8].mxu1 }
  0xf2   :  { %200 = vst.msk [vmem:[%s588_s2 + $0x20] sm:$0xff] %vm195_vm4, %v157_v46  ;;  %v224_v48 = vsel %vm195_vm4, %v157_v46, 0.0  ;;  %v256_v49 = vmul.f32 %v157_v46, %v157_v46  ;;  %v353_v50 = vpop.f32.mrb[9].mxu0  ;;  %208 = vst.msk [vmem:[%s588_s2 + $0x60] sm:$0xff] %vm195_vm4, %v189_v47  ;;  %v369_v51 = vpop.f32.mrb[9].mxu1  ;;  %v264_v27 = vmul.f32 %v189_v47, %v189_v47  ;;  %v240_v32 = vsel %vm195_vm4, %v189_v47, 0.0 }
  0xf3   :  { %v225_v52 = vadd.f32 %v224_v48, %v223_v43  ;;  %v160_v53 = vpop.f32.mrb[10].mxu0  ;;  %v192_v54 = vpop.f32.mrb[10].mxu1  ;;  %v216_v47 = vld [vmem:[%s586_s3] sm:$0x1] }
  0xf4   :  { %v272_v55 = vsel %vm195_vm4, %v256_v49, 0.0  ;;  %201 = vst.msk [vmem:[%s588_s2 + $0x28] sm:$0xff] %vm195_vm4, %v160_v53  ;;  %v226_v56 = vsel %vm195_vm4, %v160_v53, 0.0  ;;  %v257_v57 = vmul.f32 %v160_v53, %v160_v53  ;;  %v354_v58 = vpop.f32.mrb[11].mxu0  ;;  %v370_v59 = vpop.f32.mrb[11].mxu1  ;;  %v288_v37 = vsel %vm195_vm4, %v264_v27, 0.0 }
  0xf5   :  { %v273_v60 = vadd.f32 %v272_v55, %v271_v45  ;;  %v227_v61 = vadd.f32 %v226_v56, %v225_v52  ;;  %v251_v51 = vld [vmem:[%s587_s4] sm:$0x1] }
  0xf6   :  { %v274_v62 = vsel %vm195_vm4, %v257_v57, 0.0 }
  0xf7   :  { %v275_v63 = vadd.f32 %v274_v62, %v273_v60 }
  0xf9   :  { %v165_v0 = vpop.f32.mrb[12].mxu0 }
  0xfa   :  { %202 = vst.msk [vmem:[%s588_s2 + $0x30] sm:$0xff] %vm195_vm4, %v165_v0  ;;  %v228_v1 = vsel %vm195_vm4, %v165_v0, 0.0  ;;  %v258_v2 = vmul.f32 %v165_v0, %v165_v0  ;;  %v357_v3 = vpop.f32.mrb[13].mxu0 }
  0xfb   :  { %v229_v4 = vadd.f32 %v228_v1, %v227_v61  ;;  %v168_v5 = vpop.f32.mrb[14].mxu0 }
  0xfc   :  { %v276_v7 = vsel %vm195_vm4, %v258_v2, 0.0  ;;  %203 = vst.msk [vmem:[%s588_s2 + $0x38] sm:$0xff] %vm195_vm4, %v168_v5  ;;  %v230_v8 = vsel %vm195_vm4, %v168_v5, 0.0  ;;  %v259_v9 = vmul.f32 %v168_v5, %v168_v5  ;;  %v358_v10 = vpop.f32.mrb[15].mxu0 }
  0xfd   :  { %v277_v11 = vadd.f32 %v276_v7, %v275_v63  ;;  %v231_v12 = vadd.f32 %v230_v8, %v229_v4 }
  0xfe   :  { %v278_v16 = vsel %vm195_vm4, %v259_v9, 0.0 }
  0xff   :  { %v233_v17 = vadd.f32 %v232_v14, %v231_v12  ;;  %v279_v19 = vadd.f32 %v278_v16, %v277_v11 }
 0x101   :  { %v281_v23 = vadd.f32 %v280_v20, %v279_v19  ;;  %v235_v24 = vadd.f32 %v234_v21, %v233_v17 }
 0x103   :  { %v237_v28 = vadd.f32 %v236_v13, %v235_v24  ;;  %v283_v30 = vadd.f32 %v282_v25, %v281_v23 }
 0x105   :  { %v239_v33 = vadd.f32 %v238_v18, %v237_v28  ;;  %v285_v34 = vadd.f32 %v284_v31, %v283_v30 }
 0x107   :  { %v287_v29 = vadd.f32 %v286_v35, %v285_v34  ;;  %v241_v38 = vadd.f32 %v240_v32, %v239_v33 }
 0x109   :  { %v242_v39 = vrot.slane %v241_v38, 4  ;;  %v289_v40 = vadd.f32 %v288_v37, %v287_v29 }
 0x10b   :  { %v243_v41 = vadd.f32 %v242_v39, %v241_v38  ;;  %v290_v42 = vrot.slane %v289_v40, 4 }
 0x10d   :  { %v244_v43 = vrot.slane %v243_v41, 2  ;;  %v291_v44 = vadd.f32 %v290_v42, %v289_v40 }
 0x10f   :  { %v245_v45 = vadd.f32 %v244_v43, %v243_v41  ;;  %v292_v46 = vrot.slane %v291_v44, 2 }
 0x111   :  { %v246_v48 = vrot.slane %v245_v45, 1  ;;  %v293_v36 = vadd.f32 %v292_v46, %v291_v44 }
 0x113   :  { %v247_v49 = vadd.f32 %v246_v48, %v245_v45  ;;  %v294_v50 = vrot.slane %v293_v36, 1 }
 0x115   :  { %v248_v52 = vadd.f32 %v247_v49, %v216_v47  ;;  %v295_v53 = vadd.f32 %v294_v50, %v293_v36 }
 0x117   :  { %250 = vst.msk [vmem:[%s586_s3] sm:$0x1] %vm213_vm3, %v248_v52  ;;  %v296_v54 = vadd.f32 %v295_v53, %v251_v51 }
 0x119   :  { %297 = vst.msk [vmem:[%s587_s4] sm:$0x1] %vm213_vm3, %v296_v54 }

// kernel: _lambda_.31
= control target key start
LH: loop header
LB: loop body
LE: loop exit
PB: predicated region body
PF: predicated region fallthrough
CT: control target
= control target key end

     0   :  { %vm80_vm0 = vcmask 64512   ;;  %s217_s0 = inlined_call_operand.vmem [shape: f32[104,8], index: 0, kind: input, shape index: {}]   ;;  %s218_s1 = inlined_call_operand.vmem [shape: f32[1,8], index: 1, kind: input, shape index: {}]   ;;  %s219_s2 = inlined_call_operand.vmem [shape: f32[1,8], index: 2, kind: input, shape index: {}]   ;;  %s220_s3 = inlined_call_operand.vmem [shape: f32[104,8], index: 3, kind: output, shape index: {}]  }
   0x1   :  { %v14_v0 = vld [vmem:[%s217_s0] sm:$0xff]  ;;  %v15_v4 = vld [vmem:[%s217_s0 + $0x8] sm:$0xff]  ;;  %v16_v5 = vld [vmem:[%s217_s0 + $0x10] sm:$0xff] }
   0x2   :  { %v98_v1 = vld [vmem:[%s218_s1] ss:$0 sm:$0xff]  ;;  %v17_v6 = vld [vmem:[%s217_s0 + $0x18] sm:$0xff]  ;;  %v19_v11 = vld [vmem:[%s217_s0 + $0x28] sm:$0xff] }
   0x3   :  { %v99_v2 = vld [vmem:[%s219_s2] ss:$0 sm:$0xff]  ;;  %v34_v3 = vsub.f32 %v14_v0, %v98_v1  ;;  %v35_v7 = vsub.f32 %v15_v4, %v98_v1  ;;  %v36_v8 = vsub.f32 %v16_v5, %v98_v1  ;;  %v37_v9 = vsub.f32 %v17_v6, %v98_v1  ;;  %v20_v12 = vld [vmem:[%s217_s0 + $0x30] sm:$0xff]  ;;  %v21_v17 = vld [vmem:[%s217_s0 + $0x38] sm:$0xff] }
   0x4   :  { %v18_v10 = vld [vmem:[%s217_s0 + $0x20] sm:$0xff]  ;;  %v39_v15 = vsub.f32 %v19_v11, %v98_v1  ;;  %v40_v16 = vsub.f32 %v20_v12, %v98_v1  ;;  %v41_v21 = vsub.f32 %v21_v17, %v98_v1  ;;  %v23_v27 = vld [vmem:[%s217_s0 + $0x48] sm:$0xff]  ;;  %v24_v28 = vld [vmem:[%s217_s0 + $0x50] sm:$0xff] }
   0x5   :  { %v54_v13 = vmul.f32 %v99_v2, %v34_v3  ;;  %v38_v14 = vsub.f32 %v18_v10, %v98_v1  ;;  %v55_v18 = vmul.f32 %v99_v2, %v35_v7  ;;  %v56_v19 = vmul.f32 %v99_v2, %v36_v8  ;;  %v22_v22 = vld [vmem:[%s217_s0 + $0x40] sm:$0xff]  ;;  %v25_v29 = vld [vmem:[%s217_s0 + $0x58] sm:$0xff] }
   0x6   :  { %v57_v20 = vmul.f32 %v99_v2, %v37_v9  ;;  %v59_v25 = vmul.f32 %v99_v2, %v39_v15  ;;  %v60_v26 = vmul.f32 %v99_v2, %v40_v16  ;;  %v61_v33 = vmul.f32 %v99_v2, %v41_v21  ;;  %v26_v34 = vld [vmem:[%s217_s0 + $0x60] sm:$0xff] }
   0x7   :  { %v67_v23 = vmax.f32 %v54_v13, 0.0  ;;  %v58_v24 = vmul.f32 %v99_v2, %v38_v14  ;;  %v68_v30 = vmax.f32 %v55_v18, 0.0  ;;  %v69_v31 = vmax.f32 %v56_v19, 0.0 }
   0x8   :  { %v70_v32 = vmax.f32 %v57_v20, 0.0  ;;  %v72_v36 = vmax.f32 %v59_v25, 0.0  ;;  %v73_v37 = vmax.f32 %v60_v26, 0.0  ;;  %v42_v38 = vsub.f32 %v22_v22, %v98_v1 }
   0x9   :  { %81 = vst.msk [vmem:[%s220_s3] sm:$0xff] %vm80_vm0, %v67_v23  ;;  %v71_v35 = vmax.f32 %v58_v24, 0.0  ;;  %82 = vst.msk [vmem:[%s220_s3 + $0x8] sm:$0xff] %vm80_vm0, %v68_v30  ;;  %v74_v39 = vmax.f32 %v61_v33, 0.0  ;;  %v43_v40 = vsub.f32 %v23_v27, %v98_v1  ;;  %v44_v41 = vsub.f32 %v24_v28, %v98_v1 }
   0xa   :  { %83 = vst.msk [vmem:[%s220_s3 + $0x10] sm:$0xff] %vm80_vm0, %v69_v31  ;;  %84 = vst.msk [vmem:[%s220_s3 + $0x18] sm:$0xff] %vm80_vm0, %v70_v32  ;;  %v45_v42 = vsub.f32 %v25_v29, %v98_v1  ;;  %v62_v43 = vmul.f32 %v99_v2, %v42_v38  ;;  %v46_v44 = vsub.f32 %v26_v34, %v98_v1 }
   0xb   :  { %85 = vst.msk [vmem:[%s220_s3 + $0x20] sm:$0xff] %vm80_vm0, %v71_v35  ;;  %86 = vst.msk [vmem:[%s220_s3 + $0x28] sm:$0xff] %vm80_vm0, %v72_v36  ;;  %v63_v45 = vmul.f32 %v99_v2, %v43_v40  ;;  %v64_v46 = vmul.f32 %v99_v2, %v44_v41 }
   0xc   :  { %87 = vst.msk [vmem:[%s220_s3 + $0x30] sm:$0xff] %vm80_vm0, %v73_v37  ;;  %88 = vst.msk [vmem:[%s220_s3 + $0x38] sm:$0xff] %vm80_vm0, %v74_v39  ;;  %v65_v47 = vmul.f32 %v99_v2, %v45_v42  ;;  %v75_v48 = vmax.f32 %v62_v43, 0.0  ;;  %v66_v49 = vmul.f32 %v99_v2, %v46_v44 }
   0xd   :  { %v76_v50 = vmax.f32 %v63_v45, 0.0  ;;  %v77_v51 = vmax.f32 %v64_v46, 0.0 }
   0xe   :  { %v78_v52 = vmax.f32 %v65_v47, 0.0  ;;  %89 = vst.msk [vmem:[%s220_s3 + $0x40] sm:$0xff] %vm80_vm0, %v75_v48  ;;  %v79_v53 = vmax.f32 %v66_v49, 0.0 }
   0xf   :  { %90 = vst.msk [vmem:[%s220_s3 + $0x48] sm:$0xff] %vm80_vm0, %v76_v50  ;;  %91 = vst.msk [vmem:[%s220_s3 + $0x50] sm:$0xff] %vm80_vm0, %v77_v51 }
  0x10   :  { %92 = vst.msk [vmem:[%s220_s3 + $0x58] sm:$0xff] %vm80_vm0, %v78_v52  ;;  %93 = vst.msk [vmem:[%s220_s3 + $0x60] sm:$0xff] %vm80_vm0, %v79_v53 }

// kernel: _lambda_.33
= control target key start
LH: loop header
LB: loop body
LE: loop exit
PB: predicated region body
PF: predicated region fallthrough
CT: control target
= control target key end

     0   :  { %vm48_vm0 = vcmask 130048   ;;  %s116_s0 = inlined_call_operand.vmem [shape: f32[40,16], index: 0, kind: input, shape index: {}]   ;;  %s117_s1 = inlined_call_operand.vmem [shape: f32[1,16], index: 1, kind: input, shape index: {}]   ;;  %s118_s2 = inlined_call_operand.vmem [shape: f32[1,16], index: 2, kind: input, shape index: {}]   ;;  %s119_s3 = inlined_call_operand.vmem [shape: f32[40,16], index: 3, kind: output, shape index: {}]  }
   0x1   :  { %v14_v0 = vld [vmem:[%s116_s0] sm:$0xff]  ;;  %v15_v4 = vld [vmem:[%s116_s0 + $0x8] sm:$0xff]  ;;  %v16_v5 = vld [vmem:[%s116_s0 + $0x10] sm:$0xff] }
   0x2   :  { %v58_v1 = vld [vmem:[%s117_s1] ss:$0 sm:$0xff]  ;;  %v17_v6 = vld [vmem:[%s116_s0 + $0x18] sm:$0xff] }
   0x3   :  { %v59_v2 = vld [vmem:[%s118_s2] ss:$0 sm:$0xff]  ;;  %v26_v3 = vsub.f32 %v14_v0, %v58_v1  ;;  %v27_v7 = vsub.f32 %v15_v4, %v58_v1  ;;  %v28_v8 = vsub.f32 %v16_v5, %v58_v1  ;;  %v29_v9 = vsub.f32 %v17_v6, %v58_v1 }
   0x4   :  { %v18_v10 = vld [vmem:[%s116_s0 + $0x20] sm:$0xff] }
   0x5   :  { %v38_v11 = vmul.f32 %v59_v2, %v26_v3  ;;  %v30_v12 = vsub.f32 %v18_v10, %v58_v1  ;;  %v39_v13 = vmul.f32 %v59_v2, %v27_v7  ;;  %v40_v14 = vmul.f32 %v59_v2, %v28_v8 }
   0x6   :  { %v41_v15 = vmul.f32 %v59_v2, %v29_v9 }
   0x7   :  { %v43_v16 = vmax.f32 %v38_v11, 0.0  ;;  %v42_v17 = vmul.f32 %v59_v2, %v30_v12  ;;  %v44_v18 = vmax.f32 %v39_v13, 0.0  ;;  %v45_v19 = vmax.f32 %v40_v14, 0.0 }
   0x8   :  { %v46_v20 = vmax.f32 %v41_v15, 0.0 }
   0x9   :  { %49 = vst.msk [vmem:[%s119_s3] sm:$0xff] %vm48_vm0, %v43_v16  ;;  %v47_v21 = vmax.f32 %v42_v17, 0.0  ;;  %50 = vst.msk [vmem:[%s119_s3 + $0x8] sm:$0xff] %vm48_vm0, %v44_v18 }
   0xa   :  { %51 = vst.msk [vmem:[%s119_s3 + $0x10] sm:$0xff] %vm48_vm0, %v45_v19  ;;  %52 = vst.msk [vmem:[%s119_s3 + $0x18] sm:$0xff] %vm48_vm0, %v46_v20 }
   0xb   :  { %53 = vst.msk [vmem:[%s119_s3 + $0x20] sm:$0xff] %vm48_vm0, %v47_v21 }

// kernel: _lambda_.32
= control target key start
LH: loop header
LB: loop body
LE: loop exit
PB: predicated region body
PF: predicated region fallthrough
CT: control target
= control target key end

     0   :  { %v267_v0 = vmov 0.0   ;;  %vm268_vm0 = vmmov 0   ;;  %vm79_vm1 = vcmask 1043456   ;;  %vm69_vm2 = vcmask 588800   ;;  %s373_s1 = inlined_call_operand.vmem [shape: bf16[72,16], index: 1, kind: input, shape index: {}]   ;;  %s374_s0 = inlined_call_operand.vmem [shape: bf16[40,72], index: 0, kind: input, shape index: {}]   ;;  %s375_s3 = inlined_call_operand.vmem [shape: f32[1,16], index: 3, kind: output, shape index: {1}]   ;;  %s376_s4 = inlined_call_operand.vmem [shape: f32[1,16], index: 4, kind: output, shape index: {2}]   ;;  %s377_s2 = inlined_call_operand.vmem [shape: f32[40,16], index: 2, kind: output, shape index: {0}]  }
   0x1   :  { %225 = vmatprep.subr.bf16.mxu0 %v267_v0  ;;  %247 = vmatprep.subr.bf16.mxu1 %v267_v0  ;;  %v259_v1 = vld [vmem:[%s373_s1] sm:$0xff]   ;;  %v260_v2 = vld [vmem:[%s373_s1 + $0x8] sm:$0xff]   ;;  %v261_v3 = vld [vmem:[%s373_s1 + $0x10] sm:$0xff]   ;;  %vm149_vm3 = vcmask 122880   ;;  %vm139_vm4 = vcmask 130048  }
   0x2   :  { %235 = vmatprep.mubr.msk.bf16.mxu0 %vm268_vm0, %v267_v0  ;;  %239 = vmatprep.mubr.msk.bf16.mxu1 %vm268_vm0, %v267_v0  ;;  %v262_v4 = vld [vmem:[%s373_s1 + $0x18] sm:$0xff]   ;;  %v263_v5 = vld [vmem:[%s373_s1 + $0x20] ss:$0 sps:$4 sm:$0xff]   ;;  %v265_v8 = vld [vmem:[%s374_s0 + $0x8] sm:$0xff]   ;;  %150 = vst.msk [vmem:[%s375_s3] sm:$0x1] %vm149_vm3, %v267_v0 }
   0x3   :  { %226 = vmatpush3.bf16.msra.mxu0 %v259_v1  ;;  %252 = vmatpush3.bf16.msra.mxu1 %v259_v1  ;;  %v81_v6 = vsel %vm79_vm1, %v263_v5, 0  ;;  %v264_v7 = vld [vmem:[%s374_s0] sm:$0xff]   ;;  %v266_v9 = vld [vmem:[%s374_s0 + $0x10] ss:$0 sps:$4 sm:$0xff]   ;;  %151 = vst.msk [vmem:[%s376_s4] sm:$0x1] %vm149_vm3, %v267_v0 }
   0x4   :  { %227 = vmatprep.subr.bf16.mxu0 %v267_v0  ;;  %248 = vmatprep.subr.bf16.mxu1 %v267_v0 }
   0x7   :  { %228 = vmatpush3.bf16.msra.mxu0 %v260_v2  ;;  %253 = vmatpush3.bf16.msra.mxu1 %v260_v2 }
   0x8   :  { %229 = vmatprep.subr.bf16.mxu0 %v267_v0  ;;  %249 = vmatprep.subr.bf16.mxu1 %v267_v0 }
   0x9   :  { %v152_v54 = vld [vmem:[%s375_s3] sm:$0x1] }
   0xa   :  { %v171_v57 = vld [vmem:[%s376_s4] sm:$0x1] }
   0xb   :  { %230 = vmatpush3.bf16.msra.mxu0 %v261_v3  ;;  %254 = vmatpush3.bf16.msra.mxu1 %v261_v3 }
   0xc   :  { %231 = vmatprep.subr.bf16.mxu0 %v267_v0  ;;  %250 = vmatprep.subr.bf16.mxu1 %v267_v0 }
   0xf   :  { %232 = vmatpush3.bf16.msra.mxu0 %v262_v4  ;;  %255 = vmatpush3.bf16.msra.mxu1 %v262_v4 }
  0x10   :  { %233 = vmatprep.subr.bf16.mxu0 %v267_v0  ;;  %251 = vmatprep.subr.bf16.mxu1 %v267_v0 }
  0x13   :  { %234 = vmatpush3.bf16.msra.mxu0 %v81_v6  ;;  %256 = vmatpush3.bf16.msra.mxu1 %v81_v6 }
  0x16   :  { %236 = vmatmul.mubr.msk.bf16.vlgmr.msra.gmra.mrb[0].mxu0 %vm69_vm2, %v264_v7  ;;  %240 = vmatmul.mubr.msk.bf16.vlgmr.msra.gmra.mrb[0].mxu1 %vm69_vm2, %v265_v8 }
  0x17   :  { %243 = vmatprep.mubr.msk.bf16.mxu1 %vm268_vm0, %v267_v0 }
  0x1e   :  { %244 = vmatmul.mubr.msk.bf16.gmra.mrb[4].mxu1 %vm69_vm2, %v266_v9 }
  0xe9   :  { %v117_v10 = vpop.f32.mrb[0].mxu0  ;;  %v125_v11 = vpop.f32.mrb[0].mxu1 }
  0xea   :  { %140 = vst.msk [vmem:[%s377_s2] sm:$0xff] %vm139_vm4, %v117_v10  ;;  %v172_v12 = vmul.f32 %v117_v10, %v117_v10  ;;  %142 = vst.msk [vmem:[%s377_s2 + $0x10] sm:$0xff] %vm139_vm4, %v125_v11  ;;  %v237_v13 = vpop.f32.mrb[1].mxu0  ;;  %v241_v14 = vpop.f32.mrb[1].mxu1  ;;  %v153_v17 = vsel %vm139_vm4, %v117_v10, 0.0  ;;  %v174_v18 = vmul.f32 %v125_v11, %v125_v11  ;;  %v156_v25 = vsel %vm139_vm4, %v125_v11, 0.0 }
  0xeb   :  { %v120_v15 = vpop.f32.mrb[2].mxu0  ;;  %v128_v16 = vpop.f32.mrb[2].mxu1 }
  0xec   :  { %141 = vst.msk [vmem:[%s377_s2 + $0x8] sm:$0xff] %vm139_vm4, %v120_v15  ;;  %v154_v19 = vsel %vm139_vm4, %v120_v15, 0.0  ;;  %v173_v20 = vmul.f32 %v120_v15, %v120_v15  ;;  %143 = vst.msk [vmem:[%s377_s2 + $0x18] sm:$0xff] %vm139_vm4, %v128_v16  ;;  %v238_v21 = vpop.f32.mrb[3].mxu0  ;;  %v242_v22 = vpop.f32.mrb[3].mxu1  ;;  %v177_v24 = vsel %vm139_vm4, %v172_v12, 0.0  ;;  %v175_v27 = vmul.f32 %v128_v16, %v128_v16 }
  0xed   :  { %v155_v23 = vadd.f32 %v154_v19, %v153_v17  ;;  %v180_v30 = vsel %vm139_vm4, %v174_v18, 0.0  ;;  %v158_v31 = vsel %vm139_vm4, %v128_v16, 0.0 }
  0xee   :  { %v178_v26 = vsel %vm139_vm4, %v173_v20, 0.0  ;;  %v182_v35 = vsel %vm139_vm4, %v175_v27, 0.0 }
  0xef   :  { %v179_v28 = vadd.f32 %v178_v26, %v177_v24  ;;  %v157_v29 = vadd.f32 %v156_v25, %v155_v23 }
  0xf1   :  { %v159_v32 = vadd.f32 %v158_v31, %v157_v29  ;;  %v181_v33 = vadd.f32 %v180_v30, %v179_v28  ;;  %v133_v34 = vpop.f32.mrb[4].mxu1 }
  0xf2   :  { %144 = vst.msk [vmem:[%s377_s2 + $0x20] sm:$0xff] %vm139_vm4, %v133_v34  ;;  %v160_v36 = vsel %vm139_vm4, %v133_v34, 0.0  ;;  %v176_v37 = vmul.f32 %v133_v34, %v133_v34  ;;  %v245_v38 = vpop.f32.mrb[5].mxu1 }
  0xf3   :  { %v183_v39 = vadd.f32 %v182_v35, %v181_v33  ;;  %v161_v40 = vadd.f32 %v160_v36, %v159_v32  ;;  %v136_v41 = vpop.f32.mrb[6].mxu1 }
  0xf4   :  { %v184_v42 = vsel %vm139_vm4, %v176_v37, 0.0  ;;  %v246_v43 = vpop.f32.mrb[7].mxu1 }
  0xf5   :  { %v162_v44 = vrot.slane %v161_v40, 4  ;;  %v185_v45 = vadd.f32 %v184_v42, %v183_v39 }
  0xf7   :  { %v163_v46 = vadd.f32 %v162_v44, %v161_v40  ;;  %v186_v47 = vrot.slane %v185_v45, 4 }
  0xf9   :  { %v164_v48 = vrot.slane %v163_v46, 2  ;;  %v187_v49 = vadd.f32 %v186_v47, %v185_v45 }
  0xfb   :  { %v165_v50 = vadd.f32 %v164_v48, %v163_v46  ;;  %v188_v51 = vrot.slane %v187_v49, 2 }
  0xfd   :  { %v166_v52 = vrot.slane %v165_v50, 1  ;;  %v189_v53 = vadd.f32 %v188_v51, %v187_v49 }
  0xff   :  { %v167_v55 = vadd.f32 %v166_v52, %v165_v50  ;;  %v190_v56 = vrot.slane %v189_v53, 1 }
 0x101   :  { %v168_v58 = vadd.f32 %v167_v55, %v152_v54  ;;  %v191_v59 = vadd.f32 %v190_v56, %v189_v53 }
 0x103   :  { %170 = vst.msk [vmem:[%s375_s3] sm:$0x1] %vm149_vm3, %v168_v58  ;;  %v192_v60 = vadd.f32 %v191_v59, %v171_v57 }
 0x105   :  { %193 = vst.msk [vmem:[%s376_s4] sm:$0x1] %vm149_vm3, %v192_v60 }

// kernel: _lambda_.35
= control target key start
LH: loop header
LB: loop body
LE: loop exit
PB: predicated region body
PF: predicated region fallthrough
CT: control target
= control target key end

     0   :  { %vm36_vm0 = vcmask 261120   ;;  %s83_s0 = inlined_call_operand.vmem [shape: f32[16,32], index: 0, kind: input, shape index: {}]   ;;  %s84_s1 = inlined_call_operand.vmem [shape: f32[1,32], index: 1, kind: input, shape index: {}]   ;;  %s85_s2 = inlined_call_operand.vmem [shape: f32[1,32], index: 2, kind: input, shape index: {}]   ;;  %s86_s3 = inlined_call_operand.vmem [shape: f32[16,32], index: 3, kind: output, shape index: {}]  }
   0x1   :  { %v14_v0 = vld [vmem:[%s83_s0] sm:$0xff]  ;;  %v15_v4 = vld [vmem:[%s83_s0 + $0x8] sm:$0xff] }
   0x2   :  { %v43_v1 = vld [vmem:[%s84_s1] ss:$0 sm:$0xff] }
   0x3   :  { %v44_v2 = vld [vmem:[%s85_s2] ss:$0 sm:$0xff]  ;;  %v23_v3 = vsub.f32 %v14_v0, %v43_v1  ;;  %v24_v5 = vsub.f32 %v15_v4, %v43_v1 }
   0x5   :  { %v32_v6 = vmul.f32 %v44_v2, %v23_v3  ;;  %v33_v7 = vmul.f32 %v44_v2, %v24_v5 }
   0x7   :  { %v34_v8 = vmax.f32 %v32_v6, 0.0  ;;  %v35_v9 = vmax.f32 %v33_v7, 0.0 }
   0x9   :  { %37 = vst.msk [vmem:[%s86_s3] sm:$0xff] %vm36_vm0, %v34_v8  ;;  %38 = vst.msk [vmem:[%s86_s3 + $0x8] sm:$0xff] %vm36_vm0, %v35_v9 }

// kernel: _lambda_.34
= control target key start
LH: loop header
LB: loop body
LE: loop exit
PB: predicated region body
PF: predicated region fallthrough
CT: control target
= control target key end

     0   :  { %v218_v0 = vmov 0   ;;  %vm98_vm0 = vcmask 130048   ;;  %vm150_vm1 = vcmask 253952   ;;  %v219_v12 = vmov 0.0   ;;  %s306_s1 = inlined_call_operand.vmem [shape: bf16[144,32], index: 1, kind: input, shape index: {}]   ;;  %s307_s0 = inlined_call_operand.vmem [shape: bf16[16,144], index: 0, kind: input, shape index: {}]   ;;  %s308_s3 = inlined_call_operand.vmem [shape: f32[1,32], index: 3, kind: output, shape index: {1}]   ;;  %s309_s4 = inlined_call_operand.vmem [shape: f32[1,32], index: 4, kind: output, shape index: {2}]   ;;  %s310_s2 = inlined_call_operand.vmem [shape: f32[16,32], index: 2, kind: output, shape index: {0}]  }
   0x1   :  { %102 = vmatprep.subr.bf16.mxu0 %v218_v0  ;;  %v206_v1 = vld [vmem:[%s306_s1] sm:$0xff]   ;;  %v207_v2 = vld [vmem:[%s306_s1 + $0x8] sm:$0xff]   ;;  %v208_v3 = vld [vmem:[%s306_s1 + $0x10] sm:$0xff]   ;;  %151 = vst.msk [vmem:[%s308_s3] sm:$0x1] %vm150_vm1, %v219_v12  ;;  %vm143_vm2 = vcmask 261120  }
   0x2   :  { %103 = vmatpush1.bf16.msra.mxu0 %v206_v1  ;;  %v209_v4 = vld [vmem:[%s306_s1 + $0x18] sm:$0xff]   ;;  %v217_v5 = vld [vmem:[%s307_s0 + $0x4] ss:$8 sps:$4 sm:$0xff]   ;;  %v212_v8 = vld [vmem:[%s306_s1 + $0x30] sm:$0xff]   ;;  %152 = vst.msk [vmem:[%s309_s4] sm:$0x1] %vm150_vm1, %v219_v12 }
   0x3   :  { %104 = vmatprep.subr.bf16.mxu0 %v218_v0  ;;  %203 = vmatprep.mubr.msk.bf16.mxu0 %vm98_vm0, %v217_v5  ;;  %v210_v6 = vld [vmem:[%s306_s1 + $0x20] sm:$0xff]   ;;  %v211_v7 = vld [vmem:[%s306_s1 + $0x28] sm:$0xff]   ;;  %v213_v9 = vld [vmem:[%s306_s1 + $0x38] sm:$0xff]  }
   0x4   :  { %v214_v10 = vld [vmem:[%s306_s1 + $0x40] sm:$0xff]  }
   0x5   :  { %v215_v11 = vld [vmem:[%s307_s0] ss:$8 sps:$4 sm:$0xff]  }
   0x6   :  { %105 = vmatpush1.bf16.msra.mxu0 %v207_v2 }
   0x7   :  { %106 = vmatprep.subr.bf16.mxu0 %v218_v0 }
   0x8   :  { %v153_v34 = vld [vmem:[%s308_s3] sm:$0x1] }
   0x9   :  { %v166_v37 = vld [vmem:[%s309_s4] sm:$0x1] }
   0xa   :  { %107 = vmatpush1.bf16.msra.mxu0 %v208_v3 }
   0xb   :  { %108 = vmatprep.subr.bf16.mxu0 %v218_v0 }
   0xe   :  { %109 = vmatpush1.bf16.msra.mxu0 %v209_v4 }
   0xf   :  { %110 = vmatprep.subr.bf16.mxu0 %v218_v0 }
  0x12   :  { %111 = vmatpush1.bf16.msra.mxu0 %v210_v6 }
  0x13   :  { %112 = vmatprep.subr.bf16.mxu0 %v218_v0 }
  0x16   :  { %113 = vmatpush1.bf16.msra.mxu0 %v211_v7 }
  0x17   :  { %114 = vmatprep.subr.bf16.mxu0 %v218_v0 }
  0x1a   :  { %115 = vmatpush1.bf16.msra.mxu0 %v212_v8 }
  0x1b   :  { %116 = vmatprep.subr.bf16.mxu0 %v218_v0 }
  0x1e   :  { %117 = vmatpush1.bf16.msra.mxu0 %v213_v9 }
  0x1f   :  { %118 = vmatprep.subr.bf16.mxu0 %v218_v0 }
  0x22   :  { %119 = vmatpush1.bf16.msra.mxu0 %v214_v10 }
  0x25   :  { %135 = vmatmul.mubr.bf16.vlgmr.msra.gmra.mrb[0].mxu0 %v215_v11 }
  0xf8   :  { %v136_v13 = vpop.f32.mrb[0].mxu0 }
  0xf9   :  { %144 = vst.msk [vmem:[%s310_s2] sm:$0xff] %vm143_vm2, %v136_v13  ;;  %v167_v14 = vmul.f32 %v136_v13, %v136_v13  ;;  %v138_v15 = vpop.f32.mrb[1].mxu0  ;;  %v154_v17 = vsel %vm143_vm2, %v136_v13, 0.0 }
  0xfa   :  { %v139_v16 = vpop.f32.mrb[2].mxu0 }
  0xfb   :  { %145 = vst.msk [vmem:[%s310_s2 + $0x8] sm:$0xff] %vm143_vm2, %v139_v16  ;;  %v155_v18 = vsel %vm143_vm2, %v139_v16, 0.0  ;;  %v168_v19 = vmul.f32 %v139_v16, %v139_v16  ;;  %v141_v20 = vpop.f32.mrb[3].mxu0  ;;  %v169_v22 = vsel %vm143_vm2, %v167_v14, 0.0 }
  0xfc   :  { %v156_v21 = vadd.f32 %v155_v18, %v154_v17 }
  0xfd   :  { %v170_v23 = vsel %vm143_vm2, %v168_v19, 0.0 }
  0xfe   :  { %v157_v24 = vrot.slane %v156_v21, 4  ;;  %v171_v25 = vadd.f32 %v170_v23, %v169_v22 }
 0x100   :  { %v158_v26 = vadd.f32 %v157_v24, %v156_v21  ;;  %v172_v27 = vrot.slane %v171_v25, 4 }
 0x102   :  { %v159_v28 = vrot.slane %v158_v26, 2  ;;  %v173_v29 = vadd.f32 %v172_v27, %v171_v25 }
 0x104   :  { %v160_v30 = vadd.f32 %v159_v28, %v158_v26  ;;  %v174_v31 = vrot.slane %v173_v29, 2 }
 0x106   :  { %v161_v32 = vrot.slane %v160_v30, 1  ;;  %v175_v33 = vadd.f32 %v174_v31, %v173_v29 }
 0x108   :  { %v162_v35 = vadd.f32 %v161_v32, %v160_v30  ;;  %v176_v36 = vrot.slane %v175_v33, 1 }
 0x10a   :  { %v163_v38 = vadd.f32 %v162_v35, %v153_v34  ;;  %v177_v39 = vadd.f32 %v176_v36, %v175_v33 }
 0x10c   :  { %165 = vst.msk [vmem:[%s308_s3] sm:$0x1] %vm150_vm1, %v163_v38  ;;  %v178_v40 = vadd.f32 %v177_v39, %v166_v37 }
 0x10e   :  { %179 = vst.msk [vmem:[%s309_s4] sm:$0x1] %vm150_vm1, %v178_v40 }

// kernel: _lambda_.37
= control target key start
LH: loop header
LB: loop body
LE: loop exit
PB: predicated region body
PF: predicated region fallthrough
CT: control target
= control target key end

     0   :  { %vm32_vm0 = vcmask 523264   ;;  %s72_s0 = inlined_call_operand.vmem [shape: f32[8,64], index: 0, kind: input, shape index: {}]   ;;  %s73_s1 = inlined_call_operand.vmem [shape: f32[1,64], index: 1, kind: input, shape index: {}]   ;;  %s74_s2 = inlined_call_operand.vmem [shape: f32[1,64], index: 2, kind: input, shape index: {}]   ;;  %s75_s3 = inlined_call_operand.vmem [shape: f32[8,64], index: 3, kind: output, shape index: {}]  }
   0x1   :  { %v14_v0 = vld [vmem:[%s72_s0] sm:$0xff] }
   0x2   :  { %v38_v1 = vld [vmem:[%s73_s1] ss:$0 sm:$0xff] }
   0x3   :  { %v39_v2 = vld [vmem:[%s74_s2] ss:$0 sm:$0xff]  ;;  %v22_v3 = vsub.f32 %v14_v0, %v38_v1 }
   0x5   :  { %v30_v4 = vmul.f32 %v39_v2, %v22_v3 }
   0x7   :  { %v31_v5 = vmax.f32 %v30_v4, 0.0 }
   0x9   :  { %33 = vst.msk [vmem:[%s75_s3] sm:$0xff] %vm32_vm0, %v31_v5 }

// kernel: _lambda_.36
= control target key start
LH: loop header
LB: loop body
LE: loop exit
PB: predicated region body
PF: predicated region fallthrough
CT: control target
= control target key end

     0   :  { %vm261_vm0 = vcmask 516096   ;;  %v376_v1 = vmov 0.0   ;;  %vm377_vm1 = vmmov 0   ;;  %vm171_vm2 = vcmask 261120   ;;  %s488_s1 = inlined_call_operand.vmem [shape: bf16[288,64], index: 1, kind: input, shape index: {}]   ;;  %s489_s3 = inlined_call_operand.vmem [shape: f32[1,64], index: 3, kind: output, shape index: {1}]   ;;  %s490_s4 = inlined_call_operand.vmem [shape: f32[1,64], index: 4, kind: output, shape index: {2}]   ;;  %s491_s0 = inlined_call_operand.vmem [shape: bf16[8,288], index: 0, kind: input, shape index: {}]   ;;  %s492_s2 = inlined_call_operand.vmem [shape: f32[8,64], index: 2, kind: output, shape index: {0}]  }
   0x1   :  { %v355_v0 = vld [vmem:[%s488_s1 + $0x40] sm:$0xff]   ;;  %345 = vmatprep.subr.bf16.mxu1 %v376_v1  ;;  %262 = vst.msk [vmem:[%s489_s3] sm:$0x1] %vm261_vm0, %v376_v1  ;;  %263 = vst.msk [vmem:[%s490_s4] sm:$0x1] %vm261_vm0, %v376_v1  ;;  %349 = vmatprep.mubr.msk.bf16.mxu1 %vm377_vm1, %v376_v1  ;;  %v357_v3 = vld [vmem:[%s488_s1 + $0x48] sm:$0xff]  }
   0x2   :  { %v356_v2 = vld [vmem:[%s488_s1] sm:$0xff]   ;;  %320 = vmatprep.subr.bf16.mxu0 %v355_v0  ;;  %v358_v4 = vld [vmem:[%s488_s1 + $0x8] sm:$0xff]   ;;  %v359_v5 = vld [vmem:[%s488_s1 + $0x50] sm:$0xff]   ;;  %vm255_vm3 = vcmask 523264  }
   0x3   :  { %321 = vmatpush3.bf16.msra.mxu0 %v356_v2  ;;  %v360_v6 = vld [vmem:[%s488_s1 + $0x10] sm:$0xff]   ;;  %v361_v7 = vld [vmem:[%s488_s1 + $0x58] sm:$0xff]   ;;  %v363_v9 = vld [vmem:[%s488_s1 + $0x60] sm:$0xff]  }
   0x4   :  { %322 = vmatprep.subr.bf16.mxu0 %v357_v3  ;;  %v362_v8 = vld [vmem:[%s488_s1 + $0x18] sm:$0xff]   ;;  %v364_v10 = vld [vmem:[%s488_s1 + $0x20] sm:$0xff]   ;;  %v365_v12 = vld [vmem:[%s488_s1 + $0x68] sm:$0xff]  }
   0x5   :  { %v369_v11 = vld [vmem:[%s488_s1 + $0x80] sm:$0xff]   ;;  %v372_v13 = vld [vmem:[%s488_s1 + $0x88] sm:$0xff]   ;;  %v367_v17 = vld [vmem:[%s488_s1 + $0x70] sm:$0xff]  }
   0x6   :  { %346 = vmatpush3.bf16.msra.mxu1 %v369_v11  ;;  %v15_v14 = vld [vmem:[%s491_s0] sm:$0xff]  ;;  %v366_v15 = vld [vmem:[%s488_s1 + $0x28] sm:$0xff]   ;;  %v368_v19 = vld [vmem:[%s488_s1 + $0x30] sm:$0xff]  }
   0x7   :  { %323 = vmatpush3.bf16.msra.mxu0 %v358_v4  ;;  %347 = vmatprep.subr.bf16.mxu1 %v376_v1  ;;  %v299_v16 = vcombine.high %v15_v14, %v15_v14  ;;  %v375_v18 = vld [vmem:[%s491_s0 + $0x8] ss:$0 sps:$4 sm:$0xff]   ;;  %v370_v20 = vld [vmem:[%s488_s1 + $0x78] sm:$0xff]   ;;  %v298_v22 = vcombine.low %v15_v14, %v15_v14 }
   0x8   :  { %324 = vmatprep.subr.bf16.mxu0 %v359_v5  ;;  %v371_v21 = vld [vmem:[%s488_s1 + $0x38] sm:$0xff]   ;;  %v264_v45 = vld [vmem:[%s489_s3] sm:$0x1] }
   0x9   :  { %207 = vmatprep.mubr.bf16.mxu0 %v299_v16  ;;  %v275_v48 = vld [vmem:[%s490_s4] sm:$0x1] }
   0xa   :  { %348 = vmatpush3.bf16.msra.mxu1 %v372_v13 }
   0xb   :  { %325 = vmatpush3.bf16.msra.mxu0 %v360_v6 }
   0xc   :  { %326 = vmatprep.subr.bf16.mxu0 %v361_v7 }
   0xd   :  { %350 = vmatmul.mubr.msk.bf16.vlgmr.msra.gmra.mrb[0].mxu1 %vm171_vm2, %v375_v18 }
   0xf   :  { %327 = vmatpush3.bf16.msra.mxu0 %v362_v8 }
  0x10   :  { %328 = vmatprep.subr.bf16.mxu0 %v363_v9 }
  0x13   :  { %329 = vmatpush3.bf16.msra.mxu0 %v364_v10 }
  0x14   :  { %330 = vmatprep.subr.bf16.mxu0 %v365_v12 }
  0x17   :  { %331 = vmatpush3.bf16.msra.mxu0 %v366_v15 }
  0x18   :  { %332 = vmatprep.subr.bf16.mxu0 %v367_v17 }
  0x1b   :  { %333 = vmatpush3.bf16.msra.mxu0 %v368_v19 }
  0x1c   :  { %334 = vmatprep.subr.bf16.mxu0 %v370_v20 }
  0x1f   :  { %335 = vmatpush3.bf16.msra.mxu0 %v371_v21 }
  0x22   :  { %208 = vmatmul.mubr.bf16.vlgmr.msra.gmra.mrb[0].mxu0 %v298_v22 }
  0xe0   :  { %v249_v23 = vpop.f32.mrb[0].mxu1 }
  0xe1   :  { %v351_v24 = vpop.f32.mrb[1].mxu1 }
  0xe2   :  { %v252_v25 = vpop.f32.mrb[2].mxu1 }
  0xe3   :  { %v352_v26 = vpop.f32.mrb[3].mxu1 }
  0xf5   :  { %v336_v27 = vpop.f32.mrb[0].mxu0 }
  0xf6   :  { %v337_v28 = vpop.f32.mrb[1].mxu0 }
  0xf7   :  { %v338_v29 = vadd.f32 %v337_v28, %v336_v27  ;;  %v339_v30 = vpop.f32.mrb[2].mxu0 }
  0xf8   :  { %v340_v31 = vpop.f32.mrb[3].mxu0 }
  0xf9   :  { %v250_v32 = vadd.f32 %v338_v29, %v249_v23 }
  0xfb   :  { %256 = vst.msk [vmem:[%s492_s2] sm:$0xff] %vm255_vm3, %v250_v32  ;;  %v265_v33 = vsel %vm255_vm3, %v250_v32, 0.0  ;;  %v276_v34 = vmul.f32 %v250_v32, %v250_v32 }
  0xfc   :  { %v266_v35 = vrot.slane %v265_v33, 4 }
  0xfd   :  { %v277_v36 = vsel %vm255_vm3, %v276_v34, 0.0 }
  0xfe   :  { %v267_v37 = vadd.f32 %v266_v35, %v265_v33  ;;  %v278_v38 = vrot.slane %v277_v36, 4 }
 0x100   :  { %v268_v39 = vrot.slane %v267_v37, 2  ;;  %v279_v40 = vadd.f32 %v278_v38, %v277_v36 }
 0x102   :  { %v269_v41 = vadd.f32 %v268_v39, %v267_v37  ;;  %v280_v42 = vrot.slane %v279_v40, 2 }
 0x104   :  { %v270_v43 = vrot.slane %v269_v41, 1  ;;  %v281_v44 = vadd.f32 %v280_v42, %v279_v40 }
 0x106   :  { %v271_v46 = vadd.f32 %v270_v43, %v269_v41  ;;  %v282_v47 = vrot.slane %v281_v44, 1 }
 0x108   :  { %v272_v49 = vadd.f32 %v271_v46, %v264_v45  ;;  %v283_v50 = vadd.f32 %v282_v47, %v281_v44 }
 0x10a   :  { %274 = vst.msk [vmem:[%s489_s3] sm:$0x1] %vm261_vm0, %v272_v49  ;;  %v284_v51 = vadd.f32 %v283_v50, %v275_v48 }
 0x10c   :  { %285 = vst.msk [vmem:[%s490_s4] sm:$0x1] %vm261_vm0, %v284_v51 }

// kernel: _lambda_.38
= control target key start
LH: loop header
LB: loop body
LE: loop exit
PB: predicated region body
PF: predicated region fallthrough
CT: control target
= control target key end

     0   :  { %v235_v0 = vmov 0   ;;  %vm118_vm0 = vcmask 523264   ;;  %vm167_vm1 = vcmask 516096   ;;  %v236_v16 = vmov 0.0   ;;  %s330_s1 = inlined_call_operand.vmem [shape: bf16[192,64], index: 1, kind: input, shape index: {}]   ;;  %s331_s0 = inlined_call_operand.vmem [shape: bf16[8,192], index: 0, kind: input, shape index: {}]   ;;  %s332_s3 = inlined_call_operand.vmem [shape: f32[1,64], index: 3, kind: output, shape index: {1}]   ;;  %s333_s4 = inlined_call_operand.vmem [shape: f32[1,64], index: 4, kind: output, shape index: {2}]   ;;  %s334_s2 = inlined_call_operand.vmem [shape: f32[8,64], index: 2, kind: output, shape index: {0}]  }
   0x1   :  { %122 = vmatprep.subr.bf16.mxu0 %v235_v0  ;;  %v221_v1 = vld [vmem:[%s330_s1] sm:$0xff]   ;;  %v222_v2 = vld [vmem:[%s330_s1 + $0x8] sm:$0xff]   ;;  %v223_v3 = vld [vmem:[%s330_s1 + $0x10] sm:$0xff]   ;;  %168 = vst.msk [vmem:[%s332_s3] sm:$0x1] %vm167_vm1, %v236_v16 }
   0x2   :  { %123 = vmatpush1.bf16.msra.mxu0 %v221_v1  ;;  %v224_v4 = vld [vmem:[%s330_s1 + $0x18] sm:$0xff]   ;;  %v15_v5 = vld [vmem:[%s331_s0] sm:$0xff]  ;;  %v226_v8 = vld [vmem:[%s330_s1 + $0x28] sm:$0xff]   ;;  %169 = vst.msk [vmem:[%s333_s4] sm:$0x1] %vm167_vm1, %v236_v16 }
   0x3   :  { %124 = vmatprep.subr.bf16.mxu0 %v235_v0  ;;  %v205_v6 = vcombine.high %v15_v5, %v15_v5  ;;  %v225_v7 = vld [vmem:[%s330_s1 + $0x20] sm:$0xff]   ;;  %v227_v9 = vld [vmem:[%s330_s1 + $0x30] sm:$0xff]   ;;  %v228_v10 = vld [vmem:[%s330_s1 + $0x38] sm:$0xff]   ;;  %v204_v15 = vcombine.low %v15_v5, %v15_v5 }
   0x4   :  { %v229_v11 = vld [vmem:[%s330_s1 + $0x40] sm:$0xff]   ;;  %v230_v12 = vld [vmem:[%s330_s1 + $0x48] sm:$0xff]   ;;  %v231_v13 = vld [vmem:[%s330_s1 + $0x50] sm:$0xff]  }
   0x5   :  { %218 = vmatprep.mubr.msk.bf16.mxu0 %vm118_vm0, %v205_v6  ;;  %v232_v14 = vld [vmem:[%s330_s1 + $0x58] sm:$0xff]  }
   0x6   :  { %125 = vmatpush1.bf16.msra.mxu0 %v222_v2 }
   0x7   :  { %126 = vmatprep.subr.bf16.mxu0 %v235_v0 }
   0x8   :  { %v170_v33 = vld [vmem:[%s332_s3] sm:$0x1] }
   0x9   :  { %v181_v36 = vld [vmem:[%s333_s4] sm:$0x1] }
   0xa   :  { %127 = vmatpush1.bf16.msra.mxu0 %v223_v3 }
   0xb   :  { %128 = vmatprep.subr.bf16.mxu0 %v235_v0 }
   0xe   :  { %129 = vmatpush1.bf16.msra.mxu0 %v224_v4 }
   0xf   :  { %130 = vmatprep.subr.bf16.mxu0 %v235_v0 }
  0x12   :  { %131 = vmatpush1.bf16.msra.mxu0 %v225_v7 }
  0x13   :  { %132 = vmatprep.subr.bf16.mxu0 %v235_v0 }
  0x16   :  { %133 = vmatpush1.bf16.msra.mxu0 %v226_v8 }
  0x17   :  { %134 = vmatprep.subr.bf16.mxu0 %v235_v0 }
  0x1a   :  { %135 = vmatpush1.bf16.msra.mxu0 %v227_v9 }
  0x1b   :  { %136 = vmatprep.subr.bf16.mxu0 %v235_v0 }
  0x1e   :  { %137 = vmatpush1.bf16.msra.mxu0 %v228_v10 }
  0x1f   :  { %138 = vmatprep.subr.bf16.mxu0 %v235_v0 }
  0x22   :  { %139 = vmatpush1.bf16.msra.mxu0 %v229_v11 }
  0x23   :  { %140 = vmatprep.subr.bf16.mxu0 %v235_v0 }
  0x26   :  { %141 = vmatpush1.bf16.msra.mxu0 %v230_v12 }
  0x27   :  { %142 = vmatprep.subr.bf16.mxu0 %v235_v0 }
  0x2a   :  { %143 = vmatpush1.bf16.msra.mxu0 %v231_v13 }
  0x2b   :  { %144 = vmatprep.subr.bf16.mxu0 %v235_v0 }
  0x2e   :  { %145 = vmatpush1.bf16.msra.mxu0 %v232_v14 }
  0x31   :  { %155 = vmatmul.mubr.bf16.vlgmr.msra.gmra.mrb[0].mxu0 %v204_v15 }
 0x104   :  { %v156_v17 = vpop.f32.mrb[0].mxu0 }
 0x105   :  { %162 = vst.msk [vmem:[%s334_s2] sm:$0xff] %vm118_vm0, %v156_v17  ;;  %v171_v18 = vsel %vm118_vm0, %v156_v17, 0.0  ;;  %v182_v19 = vmul.f32 %v156_v17, %v156_v17  ;;  %v158_v20 = vpop.f32.mrb[1].mxu0 }
 0x106   :  { %v172_v21 = vrot.slane %v171_v18, 4  ;;  %v159_v22 = vpop.f32.mrb[2].mxu0 }
 0x107   :  { %v183_v23 = vsel %vm118_vm0, %v182_v19, 0.0  ;;  %v160_v24 = vpop.f32.mrb[3].mxu0 }
 0x108   :  { %v173_v25 = vadd.f32 %v172_v21, %v171_v18  ;;  %v184_v26 = vrot.slane %v183_v23, 4 }
 0x10a   :  { %v174_v27 = vrot.slane %v173_v25, 2  ;;  %v185_v28 = vadd.f32 %v184_v26, %v183_v23 }
 0x10c   :  { %v175_v29 = vadd.f32 %v174_v27, %v173_v25  ;;  %v186_v30 = vrot.slane %v185_v28, 2 }
 0x10e   :  { %v176_v31 = vrot.slane %v175_v29, 1  ;;  %v187_v32 = vadd.f32 %v186_v30, %v185_v28 }
 0x110   :  { %v177_v34 = vadd.f32 %v176_v31, %v175_v29  ;;  %v188_v35 = vrot.slane %v187_v32, 1 }
 0x112   :  { %v178_v37 = vadd.f32 %v177_v34, %v170_v33  ;;  %v189_v38 = vadd.f32 %v188_v35, %v187_v32 }
 0x114   :  { %180 = vst.msk [vmem:[%s332_s3] sm:$0x1] %vm167_vm1, %v178_v37  ;;  %v190_v39 = vadd.f32 %v189_v38, %v181_v36 }
 0x116   :  { %191 = vst.msk [vmem:[%s333_s4] sm:$0x1] %vm167_vm1, %v190_v39 }

// kernel: _lambda_.40
= control target key start
LH: loop header
LB: loop body
LE: loop exit
PB: predicated region body
PF: predicated region fallthrough
CT: control target
= control target key end

     0   :  { %v123_v0 = vmov 0.0   ;;  %vm124_vm0 = vmmov 0   ;;  %vm45_vm1 = vcmask 523264   ;;  %vm89_vm2 = vcmask 64512   ;;  %s158_s1 = inlined_call_operand.vmem [shape: bf16[64,8], index: 1, kind: input, shape index: {}]   ;;  %s159_s0 = inlined_call_operand.vmem [shape: bf16[8,64], index: 0, kind: input, shape index: {}]   ;;  %s160_s2 = inlined_call_operand.vmem [shape: f32[8,8], index: 2, kind: output, shape index: {}]  }
   0x1   :  { %105 = vmatprep.subr.bf16.mxu0 %v123_v0  ;;  %v119_v1 = vld [vmem:[%s158_s1] sm:$0xff]   ;;  %113 = vmatprep.mubr.msk.bf16.mxu0 %vm124_vm0, %v123_v0  ;;  %v120_v2 = vld [vmem:[%s158_s1 + $0x8] sm:$0xff]   ;;  %v121_v3 = vld [vmem:[%s158_s1 + $0x10] sm:$0xff]  }
   0x2   :  { %106 = vmatpush3.bf16.msra.mxu0 %v119_v1  ;;  %v122_v4 = vld [vmem:[%s158_s1 + $0x18] sm:$0xff]   ;;  %v12_v5 = vld [vmem:[%s159_s0] sm:$0xf] }
   0x3   :  { %107 = vmatprep.subr.bf16.mxu0 %v123_v0 }
   0x6   :  { %108 = vmatpush3.bf16.msra.mxu0 %v120_v2 }
   0x7   :  { %109 = vmatprep.subr.bf16.mxu0 %v123_v0 }
   0xa   :  { %110 = vmatpush3.bf16.msra.mxu0 %v121_v3 }
   0xb   :  { %111 = vmatprep.subr.bf16.mxu0 %v123_v0 }
   0xe   :  { %112 = vmatpush3.bf16.msra.mxu0 %v122_v4 }
  0x11   :  { %114 = vmatmul.mubr.msk.bf16.vlgmr.msra.gmra.mrb[0].mxu0 %vm45_vm1, %v12_v5 }
  0xe4   :  { %v83_v6 = vpop.f32.mrb[0].mxu0 }
  0xe5   :  { %90 = vst.msk [vmem:[%s160_s2] sm:$0xff] %vm89_vm2, %v83_v6  ;;  %v115_v7 = vpop.f32.mrb[1].mxu0 }
  0xe6   :  { %v86_v8 = vpop.f32.mrb[2].mxu0 }
  0xe7   :  { %v116_v9 = vpop.f32.mrb[3].mxu0 }

// kernel: _lambda_.42
= control target key start
LH: loop header
LB: loop body
LE: loop exit
PB: predicated region body
PF: predicated region fallthrough
CT: control target
= control target key end

     0   :  { %vm26_vm0 = vcmask 1043456   ;;  %v182_v1 = vmov 0   ;;  %vm22_vm1 = vcmask 64512   ;;  %v81_v6 = vlaneseq  ;;  %s255_s1 = inlined_call_operand.vmem [shape: bf16[8,192], index: 1, kind: input, shape index: {}]   ;;  %s256_s0 = inlined_call_operand.vmem [shape: bf16[8,8], index: 0, kind: input, shape index: {}]   ;;  %s257_s3 = inlined_call_operand.vmem [shape: f32[1,192], index: 3, kind: output, shape index: {1}]   ;;  %s258_s4 = inlined_call_operand.vmem [shape: f32[1,192], index: 4, kind: output, shape index: {2}]   ;;  %s259_s2 = inlined_call_operand.vmem [shape: f32[8,192], index: 2, kind: output, shape index: {0}]  }
   0x1   :  { %v16_v0 = vld [vmem:[%s255_s1] sm:$0xff]  ;;  %65 = vmatprep.mubr.bf16.mxu0 %v182_v1  ;;  %v183_v8 = vmov 0.0   ;;  %vm75_vm3 = vcmask 523264   ;;  %v184_v20 = vmov 1966171168  }
   0x2   :  { %v174_v2 = vcombine.high %v16_v0, %v16_v0  ;;  %v173_v3 = vcombine.low %v16_v0, %v16_v0  ;;  %v15_v5 = vld [vmem:[%s256_s0] sm:$0xf]  ;;  %vm216_vm2 = vcmp.lt.s32.totalorder %v81_v6, 192  ;;  %v105_v21 = vunpack.c.l.s4 %v184_v20 }
   0x3   :  { %85 = vst.msk [vmem:[%s257_s3] sm:$0x3] %vm216_vm2, %v183_v8  ;;  %86 = vst.msk [vmem:[%s258_s4] sm:$0x3] %vm216_vm2, %v183_v8  ;;  %v108_v32 = vshrl.u32 %v81_v6, 7 }
   0x4   :  { %175 = vmatprep.subr.msk.bf16.mxu0 %vm26_vm0, %v174_v2  ;;  %v28_v4 = vsel %vm26_vm0, %v173_v3, 0  ;;  %v106_v31 = vunpack.c.0.s8 %v105_v21 }
   0x5   :  { %34 = vmatpush1.bf16.msra.mxu0 %v28_v4 }
   0x6   :  { %v109_v42 = vsub.s32 %v106_v31, %v108_v32 }
   0x8   :  { %176 = vmatmul.mubr.msk.bf16.vlgmr.msra.gmra.mrb[0].mxu0 %vm22_vm1, %v15_v5 }
   0xa   :  { %v87_v49 = vld [vmem:[%s257_s3] sm:$0x3] }
   0xb   :  { %v125_v52 = vld [vmem:[%s258_s4] sm:$0x3] }
  0xdb   :  { %v67_v9 = vpop.f32.mrb[0].mxu0 }
  0xdc   :  { %74 = vst [vmem:[%s259_s2] sm:$0xff] %v67_v9  ;;  %v88_v10 = vrot.slane %v67_v9, 4  ;;  %v126_v11 = vmul.f32 %v67_v9, %v67_v9  ;;  %v69_v12 = vpop.f32.mrb[1].mxu0 }
  0xdd   :  { %76 = vst.msk [vmem:[%s259_s2 + $0x8] sm:$0xff] %vm75_vm3, %v69_v12  ;;  %v94_v13 = vsel %vm75_vm3, %v69_v12, 0.0  ;;  %v127_v14 = vmul.f32 %v69_v12, %v69_v12  ;;  %v71_v15 = vpop.f32.mrb[2].mxu0 }
  0xde   :  { %v89_v16 = vadd.f32 %v88_v10, %v67_v9  ;;  %v128_v17 = vrot.slane %v126_v11, 4  ;;  %v95_v18 = vrot.slane %v94_v13, 4  ;;  %v72_v19 = vpop.f32.mrb[3].mxu0 }
  0xdf   :  { %v134_v22 = vsel %vm75_vm3, %v127_v14, 0.0 }
  0xe0   :  { %v90_v23 = vrot.slane %v89_v16, 2  ;;  %v129_v24 = vadd.f32 %v128_v17, %v126_v11  ;;  %v96_v25 = vadd.f32 %v95_v18, %v94_v13  ;;  %v135_v26 = vrot.slane %v134_v22, 4 }
  0xe2   :  { %v91_v27 = vadd.f32 %v90_v23, %v89_v16  ;;  %v130_v28 = vrot.slane %v129_v24, 2  ;;  %v97_v29 = vrot.slane %v96_v25, 2  ;;  %v136_v30 = vadd.f32 %v135_v26, %v134_v22 }
  0xe4   :  { %v92_v33 = vrot.slane %v91_v27, 1  ;;  %v131_v34 = vadd.f32 %v130_v28, %v129_v24  ;;  %v98_v35 = vadd.f32 %v97_v29, %v96_v25  ;;  %v137_v36 = vrot.slane %v136_v30, 2 }
  0xe6   :  { %v132_v37 = vrot.slane %v131_v34, 1  ;;  %v99_v38 = vrot.slane %v98_v35, 1  ;;  %v138_v39 = vadd.f32 %v137_v36, %v136_v30  ;;  %v93_v40 = vadd.f32 %v92_v33, %v91_v27 }
  0xe8   :  { %v100_v41 = vadd.f32 %v99_v38, %v98_v35  ;;  %v139_v43 = vrot.slane %v138_v39, 1  ;;  %v133_v44 = vadd.f32 %v132_v37, %v131_v34 }
  0xea   :  { %v103_v45 = vcombine.low %v93_v40, %v100_v41  ;;  %v140_v46 = vadd.f32 %v139_v43, %v138_v39 }
  0xec   :  { %v110_v47 = vrot.slane %v103_v45, %v109_v42  ;;  %v143_v48 = vcombine.low %v133_v44, %v140_v46 }
  0xee   :  { %v117_v50 = vrot.slane %v110_v47, %v109_v42  ;;  %v150_v51 = vrot.slane %v143_v48, %v109_v42 }
  0xf0   :  { %v119_v53 = vadd.f32 %v117_v50, %v87_v49  ;;  %v157_v54 = vrot.slane %v150_v51, %v109_v42 }
  0xf2   :  { %124 = vst.msk [vmem:[%s257_s3] sm:$0x3] %vm216_vm2, %v119_v53  ;;  %v159_v55 = vadd.f32 %v157_v54, %v125_v52 }
  0xf4   :  { %160 = vst.msk [vmem:[%s258_s4] sm:$0x3] %vm216_vm2, %v159_v55 }

// kernel: _lambda_.43
= control target key start
LH: loop header
LB: loop body
LE: loop exit
PB: predicated region body
PF: predicated region fallthrough
CT: control target
= control target key end

     0   :  { %v18_v0 = vlaneseq  ;;  %vm47_vm0 = vcmask 523264   ;;  %s91_s1 = inlined_call_operand.vmem [shape: f32[1,192], index: 1, kind: input, shape index: {}]   ;;  %s92_s2 = inlined_call_operand.vmem [shape: f32[1,192], index: 2, kind: input, shape index: {}]   ;;  %s93_s0 = inlined_call_operand.vmem [shape: f32[8,192], index: 0, kind: input, shape index: {}]   ;;  %s94_s3 = inlined_call_operand.vmem [shape: f32[8,192], index: 3, kind: output, shape index: {}]  }
   0x1   :  { %v16_v2 = vld [vmem:[%s91_s1] sm:$0x3]  ;;  %v15_v7 = vld [vmem:[%s93_s0 + $0x8] sm:$0xff] }
   0x2   :  { %v19_v1 = vshrl.u32 %v18_v0, 7  ;;  %v30_v3 = vld [vmem:[%s92_s2] sm:$0x3] }
   0x3   :  { %v14_v6 = vld [vmem:[%s93_s0] sm:$0xff] }
   0x4   :  { %v20_v4 = vsub.s32 0, %v19_v1  ;;  %v24_v5 = vsub.s32 1, %v19_v1 }
   0x6   :  { %v21_v8 = vrot.slane %v16_v2, %v20_v4  ;;  %v25_v9 = vrot.slane %v16_v2, %v24_v5  ;;  %v35_v10 = vrot.slane %v30_v3, %v20_v4  ;;  %v39_v11 = vrot.slane %v30_v3, %v24_v5 }
   0x8   :  { %v28_v12 = vsub.f32 %v14_v6, %v21_v8  ;;  %v29_v13 = vsub.f32 %v15_v7, %v25_v9 }
   0xa   :  { %v42_v14 = vmul.f32 %v35_v10, %v28_v12  ;;  %v43_v15 = vmul.f32 %v39_v11, %v29_v13 }
   0xc   :  { %v44_v16 = vmax.f32 %v42_v14, 0.0  ;;  %v45_v17 = vmax.f32 %v43_v15, 0.0 }
   0xe   :  { %46 = vst [vmem:[%s94_s3] sm:$0xff] %v44_v16  ;;  %48 = vst.msk [vmem:[%s94_s3 + $0x8] sm:$0xff] %vm47_vm0, %v45_v17 }

// kernel: _lambda_.44
= control target key start
LH: loop header
LB: loop body
LE: loop exit
PB: predicated region body
PF: predicated region fallthrough
CT: control target
= control target key end

     0   :  { %vm354_vm0 = vcmask 523264   ;;  %vm513_vm1 = vcmask 253952   ;;  %v731_v48 = vmov 0.0   ;;  %vm505_vm2 = vcmask 261120   ;;  %s929_s1 = inlined_call_operand.vmem [shape: bf16[576,32], index: 1, kind: input, shape index: {}]   ;;  %s930_s0 = inlined_call_operand.vmem [shape: bf16[24,576], index: 0, kind: input, shape index: {}]   ;;  %s931_s3 = inlined_call_operand.vmem [shape: f32[1,32], index: 3, kind: output, shape index: {1}]   ;;  %s932_s4 = inlined_call_operand.vmem [shape: f32[1,32], index: 4, kind: output, shape index: {2}]   ;;  %s933_s2 = inlined_call_operand.vmem [shape: f32[24,32], index: 2, kind: output, shape index: {0}]  }
   0x1   :  { %v683_v0 = vld [vmem:[%s929_s1 + $0x40] sm:$0xff]   ;;  %v687_v4 = vld [vmem:[%s929_s1 + $0x48] sm:$0xff]   ;;  %v691_v8 = vld [vmem:[%s929_s1 + $0x50] sm:$0xff]   ;;  %514 = vst.msk [vmem:[%s931_s3] sm:$0x1] %vm513_vm1, %v731_v48 }
   0x2   :  { %v684_v1 = vld [vmem:[%s929_s1 + $0xc0] sm:$0xff]   ;;  %608 = vmatprep.subr.bf16.mxu0 %v683_v0  ;;  %v688_v5 = vld [vmem:[%s929_s1 + $0xc8] sm:$0xff]   ;;  %v692_v9 = vld [vmem:[%s929_s1 + $0xd0] sm:$0xff]   ;;  %515 = vst.msk [vmem:[%s932_s4] sm:$0x1] %vm513_vm1, %v731_v48 }
   0x3   :  { %v685_v2 = vld [vmem:[%s929_s1] sm:$0xff]   ;;  %636 = vmatprep.subr.bf16.mxu1 %v684_v1  ;;  %v689_v6 = vld [vmem:[%s929_s1 + $0x8] sm:$0xff]   ;;  %v693_v10 = vld [vmem:[%s929_s1 + $0x10] sm:$0xff]  }
   0x4   :  { %v686_v3 = vld [vmem:[%s929_s1 + $0x80] sm:$0xff]   ;;  %609 = vmatpush3.bf16.msra.mxu0 %v685_v2  ;;  %v690_v7 = vld [vmem:[%s929_s1 + $0x88] sm:$0xff]   ;;  %v694_v11 = vld [vmem:[%s929_s1 + $0x90] sm:$0xff]  }
   0x5   :  { %637 = vmatpush3.bf16.msra.mxu1 %v686_v3  ;;  %610 = vmatprep.subr.bf16.mxu0 %v687_v4  ;;  %v695_v12 = vld [vmem:[%s929_s1 + $0x58] sm:$0xff]   ;;  %v699_v16 = vld [vmem:[%s929_s1 + $0x60] sm:$0xff]   ;;  %v703_v20 = vld [vmem:[%s929_s1 + $0x68] sm:$0xff]  }
   0x6   :  { %638 = vmatprep.subr.bf16.mxu1 %v688_v5  ;;  %v696_v13 = vld [vmem:[%s929_s1 + $0xd8] sm:$0xff]   ;;  %v700_v17 = vld [vmem:[%s929_s1 + $0xe0] sm:$0xff]   ;;  %v704_v21 = vld [vmem:[%s929_s1 + $0xe8] sm:$0xff]  }
   0x7   :  { %v697_v14 = vld [vmem:[%s929_s1 + $0x18] sm:$0xff]   ;;  %v701_v18 = vld [vmem:[%s929_s1 + $0x20] sm:$0xff]   ;;  %v705_v22 = vld [vmem:[%s929_s1 + $0x28] sm:$0xff]  }
   0x8   :  { %611 = vmatpush3.bf16.msra.mxu0 %v689_v6  ;;  %v698_v15 = vld [vmem:[%s929_s1 + $0x98] sm:$0xff]   ;;  %v702_v19 = vld [vmem:[%s929_s1 + $0xa0] sm:$0xff]   ;;  %v706_v23 = vld [vmem:[%s929_s1 + $0xa8] sm:$0xff]  }
   0x9   :  { %639 = vmatpush3.bf16.msra.mxu1 %v690_v7  ;;  %612 = vmatprep.subr.bf16.mxu0 %v691_v8  ;;  %v707_v24 = vld [vmem:[%s929_s1 + $0x70] sm:$0xff]   ;;  %v711_v28 = vld [vmem:[%s929_s1 + $0x78] sm:$0xff]   ;;  %v720_v35 = vld [vmem:[%s930_s0 + $0xc] ss:$20 sps:$4 sm:$0xff]  }
   0xa   :  { %640 = vmatprep.subr.bf16.mxu1 %v692_v9  ;;  %v708_v25 = vld [vmem:[%s929_s1 + $0xf0] sm:$0xff]   ;;  %v712_v29 = vld [vmem:[%s929_s1 + $0xf8] sm:$0xff]   ;;  %v721_v36 = vld [vmem:[%s929_s1 + $0x100] sm:$0xff]   ;;  %441 = vmatprep.mubr.bf16.mxu1 %v720_v35 }
   0xb   :  { %v709_v26 = vld [vmem:[%s929_s1 + $0x30] sm:$0xff]   ;;  %v713_v30 = vld [vmem:[%s929_s1 + $0x38] sm:$0xff]   ;;  %v722_v37 = vld [vmem:[%s929_s1 + $0x108] sm:$0xff]  }
   0xc   :  { %613 = vmatpush3.bf16.msra.mxu0 %v693_v10  ;;  %v710_v27 = vld [vmem:[%s929_s1 + $0xb0] sm:$0xff]   ;;  %v714_v31 = vld [vmem:[%s929_s1 + $0xb8] sm:$0xff]   ;;  %v21_v38 = vld [vmem:[%s930_s0 + $0x28] sm:$0xff] }
   0xd   :  { %641 = vmatpush3.bf16.msra.mxu1 %v694_v11  ;;  %614 = vmatprep.subr.bf16.mxu0 %v695_v12  ;;  %v715_v32 = vld [vmem:[%s930_s0] ss:$20 sps:$4 sm:$0xff]   ;;  %v717_v33 = vld [vmem:[%s930_s0 + $0x4] ss:$20 sps:$4 sm:$0xff]   ;;  %v718_v34 = vld [vmem:[%s930_s0 + $0x8] ss:$20 sps:$4 sm:$0xff]   ;;  %v566_v39 = vcombine.high %v21_v38, %v21_v38  ;;  %v565_v43 = vcombine.low %v21_v38, %v21_v38 }
   0xe   :  { %642 = vmatprep.subr.bf16.mxu1 %v696_v13  ;;  %393 = vmatprep.mubr.bf16.mxu0 %v717_v33  ;;  %v22_v40 = vld [vmem:[%s930_s0 + $0x30] sm:$0xff]  ;;  %v728_v46 = vld [vmem:[%s929_s1 + $0x118] sm:$0xff]  }
   0xf   :  { %v568_v41 = vcombine.high %v22_v40, %v22_v40  ;;  %v727_v42 = vld [vmem:[%s929_s1 + $0x110] sm:$0xff]   ;;  %v567_v44 = vcombine.low %v22_v40, %v22_v40  ;;  %v730_v47 = vld [vmem:[%s930_s0 + $0x38] ss:$0 sps:$4 sm:$0xff]  }
  0x10   :  { %615 = vmatpush3.bf16.msra.mxu0 %v697_v14  ;;  %v729_v45 = vld [vmem:[%s930_s0 + $0x10] ss:$20 sps:$4 sm:$0xff]  }
  0x11   :  { %643 = vmatpush3.bf16.msra.mxu1 %v698_v15  ;;  %616 = vmatprep.subr.bf16.mxu0 %v699_v16 }
  0x12   :  { %644 = vmatprep.subr.bf16.mxu1 %v700_v17 }
  0x14   :  { %617 = vmatpush3.bf16.msra.mxu0 %v701_v18 }
  0x15   :  { %645 = vmatpush3.bf16.msra.mxu1 %v702_v19  ;;  %618 = vmatprep.subr.bf16.mxu0 %v703_v20 }
  0x16   :  { %646 = vmatprep.subr.bf16.mxu1 %v704_v21 }
  0x18   :  { %619 = vmatpush3.bf16.msra.mxu0 %v705_v22 }
  0x19   :  { %647 = vmatpush3.bf16.msra.mxu1 %v706_v23  ;;  %620 = vmatprep.subr.bf16.mxu0 %v707_v24 }
  0x1a   :  { %648 = vmatprep.subr.bf16.mxu1 %v708_v25 }
  0x1c   :  { %621 = vmatpush3.bf16.msra.mxu0 %v709_v26 }
  0x1d   :  { %649 = vmatpush3.bf16.msra.mxu1 %v710_v27  ;;  %622 = vmatprep.subr.bf16.mxu0 %v711_v28 }
  0x1e   :  { %650 = vmatprep.subr.bf16.mxu1 %v712_v29 }
  0x20   :  { %623 = vmatpush3.bf16.msra.mxu0 %v713_v30 }
  0x21   :  { %651 = vmatpush3.bf16.msra.mxu1 %v714_v31  ;;  %670 = vmatprep.subr.bf16.mxu0 %v721_v36 }
  0x23   :  { %394 = vmatmul.mubr.bf16.vlgmr.msra.gmra.mrb[0].mxu0 %v715_v32 }
  0x24   :  { %442 = vmatmul.mubr.bf16.vlgmr.msra.gmra.mrb[0].mxu1 %v718_v34  ;;  %671 = vmatpush3.bf16.msra.mxu0 %v721_v36 }
  0x25   :  { %672 = vmatprep.subr.bf16.mxu0 %v722_v37  ;;  %401 = vmatprep.mubr.bf16.mxu0 %v566_v39  ;;  %v516_v39 = vld [vmem:[%s931_s3] sm:$0x1] }
  0x26   :  { %449 = vmatprep.mubr.bf16.mxu1 %v568_v41 }
  0x28   :  { %673 = vmatpush3.bf16.msra.mxu0 %v722_v37 }
  0x29   :  { %674 = vmatprep.subr.bf16.mxu0 %v727_v42 }
  0x2b   :  { %402 = vmatmul.mubr.bf16.gmra.mrb[4].mxu0 %v565_v43 }
  0x2c   :  { %450 = vmatmul.mubr.bf16.gmra.mrb[4].mxu1 %v567_v44  ;;  %678 = vmatprep.mubr.msk.bf16.mxu0 %vm354_vm0, %v729_v45 }
  0x2d   :  { %675 = vmatpush3.bf16.msra.mxu0 %v727_v42  ;;  %v531_v42 = vld [vmem:[%s932_s4] sm:$0x1] }
  0x2e   :  { %676 = vmatprep.subr.bf16.mxu0 %v728_v46 }
  0x31   :  { %677 = vmatpush3.bf16.msra.mxu0 %v728_v46 }
  0x34   :  { %679 = vmatmul.mubr.msk.bf16.vlgmr.msra.gmra.mrb[8].mxu0 %vm354_vm0, %v730_v47 }
  0xf6   :  { %v624_v49 = vpop.f32.mrb[0].mxu0 }
  0xf7   :  { %v652_v50 = vpop.f32.mrb[0].mxu1  ;;  %v625_v51 = vpop.f32.mrb[1].mxu0 }
  0xf8   :  { %v626_v52 = vadd.f32 %v625_v51, %v624_v49  ;;  %v653_v53 = vpop.f32.mrb[1].mxu1  ;;  %v627_v54 = vpop.f32.mrb[2].mxu0 }
  0xf9   :  { %v654_v55 = vadd.f32 %v653_v53, %v652_v50  ;;  %v655_v56 = vpop.f32.mrb[2].mxu1  ;;  %v628_v57 = vpop.f32.mrb[3].mxu0 }
  0xfa   :  { %v629_v58 = vadd.f32 %v628_v57, %v627_v54  ;;  %v656_v59 = vpop.f32.mrb[3].mxu1 }
  0xfb   :  { %v657_v60 = vadd.f32 %v656_v59, %v655_v56  ;;  %v444_v61 = vadd.f32 %v654_v55, %v626_v52 }
  0xfd   :  { %v447_v62 = vadd.f32 %v657_v60, %v629_v58 }
  0xfe   :  { %v630_v63 = vpop.f32.mrb[4].mxu0 }
  0xff   :  { %v658_v0 = vpop.f32.mrb[4].mxu1  ;;  %v631_v1 = vpop.f32.mrb[5].mxu0 }
 0x100   :  { %v632_v2 = vadd.f32 %v631_v1, %v630_v63  ;;  %v659_v3 = vpop.f32.mrb[5].mxu1  ;;  %v633_v4 = vpop.f32.mrb[6].mxu0 }
 0x101   :  { %v660_v5 = vadd.f32 %v659_v3, %v658_v0  ;;  %v634_v6 = vpop.f32.mrb[7].mxu0  ;;  %v661_v7 = vpop.f32.mrb[6].mxu1 }
 0x102   :  { %v662_v8 = vpop.f32.mrb[7].mxu1 }
 0x103   :  { %v452_v9 = vadd.f32 %v660_v5, %v632_v2 }
 0x107   :  { %v680_v10 = vpop.f32.mrb[8].mxu0 }
 0x108   :  { %v500_v11 = vadd.f32 %v680_v10, %v452_v9  ;;  %v491_v12 = vpop.f32.mrb[9].mxu0 }
 0x109   :  { %v492_v13 = vadd.f32 %v491_v12, %v444_v61  ;;  %v681_v14 = vpop.f32.mrb[10].mxu0 }
 0x10a   :  { %508 = vst.msk [vmem:[%s933_s2 + $0x10] sm:$0xff] %vm505_vm2, %v500_v11  ;;  %v494_v15 = vpop.f32.mrb[11].mxu0  ;;  %v534_v18 = vmul.f32 %v500_v11, %v500_v11  ;;  %v520_v23 = vsel %vm505_vm2, %v500_v11, 0.0 }
 0x10b   :  { %506 = vst.msk [vmem:[%s933_s2] sm:$0xff] %vm505_vm2, %v492_v13  ;;  %v532_v16 = vmul.f32 %v492_v13, %v492_v13  ;;  %v495_v17 = vadd.f32 %v494_v15, %v447_v62  ;;  %v517_v19 = vsel %vm505_vm2, %v492_v13, 0.0 }
 0x10c   :  { %v538_v28 = vsel %vm505_vm2, %v534_v18, 0.0 }
 0x10d   :  { %507 = vst.msk [vmem:[%s933_s2 + $0x8] sm:$0xff] %vm505_vm2, %v495_v17  ;;  %v518_v20 = vsel %vm505_vm2, %v495_v17, 0.0  ;;  %v533_v21 = vmul.f32 %v495_v17, %v495_v17  ;;  %v535_v24 = vsel %vm505_vm2, %v532_v16, 0.0 }
 0x10e   :  { %v519_v22 = vadd.f32 %v518_v20, %v517_v19 }
 0x10f   :  { %v536_v25 = vsel %vm505_vm2, %v533_v21, 0.0 }
 0x110   :  { %v521_v26 = vadd.f32 %v520_v23, %v519_v22  ;;  %v537_v27 = vadd.f32 %v536_v25, %v535_v24 }
 0x112   :  { %v522_v29 = vrot.slane %v521_v26, 4  ;;  %v539_v30 = vadd.f32 %v538_v28, %v537_v27 }
 0x114   :  { %v523_v31 = vadd.f32 %v522_v29, %v521_v26  ;;  %v540_v32 = vrot.slane %v539_v30, 4 }
 0x116   :  { %v524_v33 = vrot.slane %v523_v31, 2  ;;  %v541_v34 = vadd.f32 %v540_v32, %v539_v30 }
 0x118   :  { %v525_v35 = vadd.f32 %v524_v33, %v523_v31  ;;  %v542_v36 = vrot.slane %v541_v34, 2 }
 0x11a   :  { %v526_v37 = vrot.slane %v525_v35, 1  ;;  %v543_v38 = vadd.f32 %v542_v36, %v541_v34 }
 0x11c   :  { %v527_v40 = vadd.f32 %v526_v37, %v525_v35  ;;  %v544_v41 = vrot.slane %v543_v38, 1 }
 0x11e   :  { %v528_v43 = vadd.f32 %v527_v40, %v516_v39  ;;  %v545_v44 = vadd.f32 %v544_v41, %v543_v38 }
 0x120   :  { %530 = vst.msk [vmem:[%s931_s3] sm:$0x1] %vm513_vm1, %v528_v43  ;;  %v546_v45 = vadd.f32 %v545_v44, %v531_v42 }
 0x122   :  { %547 = vst.msk [vmem:[%s932_s4] sm:$0x1] %vm513_vm1, %v546_v45 }

// kernel: _lambda_.45
= control target key start
LH: loop header
LB: loop body
LE: loop exit
PB: predicated region body
PF: predicated region fallthrough
CT: control target
= control target key end

     0   :  { %vm40_vm0 = vcmask 261120   ;;  %s94_s0 = inlined_call_operand.vmem [shape: f32[24,32], index: 0, kind: input, shape index: {}]   ;;  %s95_s1 = inlined_call_operand.vmem [shape: f32[1,32], index: 1, kind: input, shape index: {}]   ;;  %s96_s2 = inlined_call_operand.vmem [shape: f32[1,32], index: 2, kind: input, shape index: {}]   ;;  %s97_s3 = inlined_call_operand.vmem [shape: f32[24,32], index: 3, kind: output, shape index: {}]  }
   0x1   :  { %v14_v0 = vld [vmem:[%s94_s0] sm:$0xff]  ;;  %v15_v4 = vld [vmem:[%s94_s0 + $0x8] sm:$0xff]  ;;  %v16_v5 = vld [vmem:[%s94_s0 + $0x10] sm:$0xff] }
   0x2   :  { %v48_v1 = vld [vmem:[%s95_s1] ss:$0 sm:$0xff] }
   0x3   :  { %v49_v2 = vld [vmem:[%s96_s2] ss:$0 sm:$0xff]  ;;  %v24_v3 = vsub.f32 %v14_v0, %v48_v1  ;;  %v25_v6 = vsub.f32 %v15_v4, %v48_v1  ;;  %v26_v7 = vsub.f32 %v16_v5, %v48_v1 }
   0x5   :  { %v34_v8 = vmul.f32 %v49_v2, %v24_v3  ;;  %v35_v9 = vmul.f32 %v49_v2, %v25_v6  ;;  %v36_v10 = vmul.f32 %v49_v2, %v26_v7 }
   0x7   :  { %v37_v11 = vmax.f32 %v34_v8, 0.0  ;;  %v38_v12 = vmax.f32 %v35_v9, 0.0  ;;  %v39_v13 = vmax.f32 %v36_v10, 0.0 }
   0x9   :  { %41 = vst.msk [vmem:[%s97_s3] sm:$0xff] %vm40_vm0, %v37_v11  ;;  %42 = vst.msk [vmem:[%s97_s3 + $0x8] sm:$0xff] %vm40_vm0, %v38_v12 }
   0xa   :  { %43 = vst.msk [vmem:[%s97_s3 + $0x10] sm:$0xff] %vm40_vm0, %v39_v13 }

// kernel: _lambda_.46
= control target key start
LH: loop header
LB: loop body
LE: loop exit
PB: predicated region body
PF: predicated region fallthrough
CT: control target
= control target key end

     0   :  { %vm273_vm0 = vcmask 261120   ;;  %vm471_vm1 = vcmask 122880   ;;  %v740_v36 = vmov 0.0   ;;  %vm454_vm2 = vcmask 130048   ;;  %s980_s1 = inlined_call_operand.vmem [shape: bf16[288,16], index: 1, kind: input, shape index: {}]   ;;  %s981_s0 = inlined_call_operand.vmem [shape: bf16[96,288], index: 0, kind: input, shape index: {}]   ;;  %s982_s3 = inlined_call_operand.vmem [shape: f32[1,16], index: 3, kind: output, shape index: {1}]   ;;  %s983_s4 = inlined_call_operand.vmem [shape: f32[1,16], index: 4, kind: output, shape index: {2}]   ;;  %s984_s2 = inlined_call_operand.vmem [shape: f32[96,16], index: 2, kind: output, shape index: {0}]  }
   0x1   :  { %v698_v0 = vld [vmem:[%s980_s1 + $0x40] sm:$0xff]   ;;  %v700_v2 = vld [vmem:[%s980_s1 + $0x48] sm:$0xff]   ;;  %v702_v4 = vld [vmem:[%s980_s1 + $0x50] sm:$0xff]   ;;  %472 = vst.msk [vmem:[%s982_s3] sm:$0x1] %vm471_vm1, %v740_v36 }
   0x2   :  { %v699_v1 = vld [vmem:[%s980_s1] sm:$0xff]   ;;  %605 = vmatprep.subr.bf16.mxu0 %v698_v0  ;;  %681 = vmatprep.subr.bf16.mxu1 %v698_v0  ;;  %v701_v3 = vld [vmem:[%s980_s1 + $0x8] sm:$0xff]   ;;  %v703_v5 = vld [vmem:[%s980_s1 + $0x10] sm:$0xff]   ;;  %473 = vst.msk [vmem:[%s983_s4] sm:$0x1] %vm471_vm1, %v740_v36 }
   0x3   :  { %606 = vmatpush3.bf16.msra.mxu0 %v699_v1  ;;  %689 = vmatpush3.bf16.msra.mxu1 %v699_v1  ;;  %v704_v6 = vld [vmem:[%s980_s1 + $0x58] sm:$0xff]   ;;  %v706_v8 = vld [vmem:[%s980_s1 + $0x60] sm:$0xff]   ;;  %v708_v10 = vld [vmem:[%s980_s1 + $0x68] sm:$0xff]  }
   0x4   :  { %607 = vmatprep.subr.bf16.mxu0 %v700_v2  ;;  %682 = vmatprep.subr.bf16.mxu1 %v700_v2  ;;  %v705_v7 = vld [vmem:[%s980_s1 + $0x18] sm:$0xff]   ;;  %v707_v9 = vld [vmem:[%s980_s1 + $0x20] sm:$0xff]   ;;  %v709_v13 = vld [vmem:[%s980_s1 + $0x28] sm:$0xff]  }
   0x5   :  { %v716_v11 = vld [vmem:[%s981_s0 + $0x4] ss:$12 sps:$4 sm:$0xff]   ;;  %v719_v12 = vld [vmem:[%s981_s0 + $0x7c] ss:$12 sps:$4 sm:$0xff]   ;;  %v714_v19 = vld [vmem:[%s981_s0] ss:$12 sps:$4 sm:$0xff]  }
   0x6   :  { %v710_v14 = vld [vmem:[%s980_s1 + $0x70] sm:$0xff]   ;;  %324 = vmatprep.mubr.bf16.mxu0 %v716_v11  ;;  %364 = vmatprep.mubr.bf16.mxu1 %v719_v12  ;;  %v712_v16 = vld [vmem:[%s980_s1 + $0x78] sm:$0xff]   ;;  %v720_v18 = vld [vmem:[%s980_s1 + $0x80] sm:$0xff]  }
   0x7   :  { %608 = vmatpush3.bf16.msra.mxu0 %v701_v3  ;;  %690 = vmatpush3.bf16.msra.mxu1 %v701_v3  ;;  %v711_v15 = vld [vmem:[%s980_s1 + $0x30] sm:$0xff]   ;;  %v713_v17 = vld [vmem:[%s980_s1 + $0x38] sm:$0xff]   ;;  %v721_v22 = vld [vmem:[%s980_s1 + $0x88] sm:$0xff]  }
   0x8   :  { %609 = vmatprep.subr.bf16.mxu0 %v702_v4  ;;  %683 = vmatprep.subr.bf16.mxu1 %v702_v4  ;;  %v717_v20 = vld [vmem:[%s981_s0 + $0x78] ss:$12 sps:$4 sm:$0xff]   ;;  %v722_v21 = vld [vmem:[%s981_s0 + $0x1c] ss:$12 sps:$4 sm:$0xff]   ;;  %v726_v25 = vld [vmem:[%s981_s0 + $0x20] ss:$12 sps:$4 sm:$0xff]  }
   0x9   :  { %v724_v23 = vld [vmem:[%s981_s0 + $0x8] ss:$12 sps:$4 sm:$0xff]   ;;  %v725_v24 = vld [vmem:[%s981_s0 + $0x18] ss:$12 sps:$4 sm:$0xff]   ;;  %v730_v28 = vld [vmem:[%s981_s0 + $0x30] ss:$12 sps:$4 sm:$0xff]  }
   0xa   :  { %v727_v26 = vld [vmem:[%s981_s0 + $0x34] ss:$12 sps:$4 sm:$0xff]   ;;  %v729_v27 = vld [vmem:[%s981_s0 + $0x38] ss:$12 sps:$4 sm:$0xff]   ;;  %v731_v29 = vld [vmem:[%s981_s0 + $0x50] ss:$12 sps:$4 sm:$0xff]  }
   0xb   :  { %610 = vmatpush3.bf16.msra.mxu0 %v703_v5  ;;  %691 = vmatpush3.bf16.msra.mxu1 %v703_v5  ;;  %v732_v30 = vld [vmem:[%s981_s0 + $0x4c] ss:$12 sps:$4 sm:$0xff]   ;;  %v734_v31 = vld [vmem:[%s981_s0 + $0x68] ss:$12 sps:$4 sm:$0xff]   ;;  %v737_v34 = vld [vmem:[%s981_s0 + $0x64] ss:$12 sps:$4 sm:$0xff]  }
   0xc   :  { %611 = vmatprep.subr.bf16.mxu0 %v704_v6  ;;  %684 = vmatprep.subr.bf16.mxu1 %v704_v6  ;;  %v735_v32 = vld [vmem:[%s981_s0 + $0x48] ss:$12 sps:$4 sm:$0xff]   ;;  %v736_v33 = vld [vmem:[%s981_s0 + $0x80] ss:$12 sps:$4 sm:$0xff]  }
   0xd   :  { %v739_v35 = vld [vmem:[%s981_s0 + $0x60] ss:$12 sps:$4 sm:$0xff]  }
   0xf   :  { %612 = vmatpush3.bf16.msra.mxu0 %v705_v7  ;;  %692 = vmatpush3.bf16.msra.mxu1 %v705_v7 }
  0x10   :  { %613 = vmatprep.subr.bf16.mxu0 %v706_v8  ;;  %685 = vmatprep.subr.bf16.mxu1 %v706_v8 }
  0x13   :  { %614 = vmatpush3.bf16.msra.mxu0 %v707_v9  ;;  %693 = vmatpush3.bf16.msra.mxu1 %v707_v9 }
  0x14   :  { %615 = vmatprep.subr.bf16.mxu0 %v708_v10  ;;  %686 = vmatprep.subr.bf16.mxu1 %v708_v10 }
  0x17   :  { %616 = vmatpush3.bf16.msra.mxu0 %v709_v13  ;;  %694 = vmatpush3.bf16.msra.mxu1 %v709_v13 }
  0x18   :  { %617 = vmatprep.subr.bf16.mxu0 %v710_v14  ;;  %687 = vmatprep.subr.bf16.mxu1 %v710_v14 }
  0x1b   :  { %618 = vmatpush3.bf16.msra.mxu0 %v711_v15  ;;  %695 = vmatpush3.bf16.msra.mxu1 %v711_v15 }
  0x1c   :  { %619 = vmatprep.subr.bf16.mxu0 %v712_v16  ;;  %688 = vmatprep.subr.bf16.mxu1 %v712_v16 }
  0x1f   :  { %620 = vmatpush3.bf16.msra.mxu0 %v713_v17  ;;  %696 = vmatpush3.bf16.msra.mxu1 %v713_v17 }
  0x20   :  { %665 = vmatprep.subr.bf16.mxu1 %v720_v18 }
  0x22   :  { %325 = vmatmul.mubr.bf16.vlgmr.msra.gmra.mrb[0].mxu0 %v714_v19  ;;  %365 = vmatmul.mubr.bf16.vlgmr.msra.gmra.mrb[0].mxu1 %v717_v20 }
  0x23   :  { %666 = vmatpush3.bf16.msra.mxu1 %v720_v18  ;;  %332 = vmatprep.mubr.bf16.mxu0 %v722_v21 }
  0x24   :  { %667 = vmatprep.subr.bf16.mxu1 %v721_v22  ;;  %669 = vmatprep.mubr.msk.bf16.mxu1 %vm273_vm0, %v724_v23 }
  0x27   :  { %668 = vmatpush3.bf16.msra.mxu1 %v721_v22 }
  0x2a   :  { %333 = vmatmul.mubr.bf16.gmra.mrb[4].mxu0 %v725_v24  ;;  %670 = vmatmul.mubr.msk.bf16.vlgmr.msra.gmra.mrb[4].mxu1 %vm273_vm0, %v726_v25 }
  0x2b   :  { %340 = vmatprep.mubr.bf16.mxu0 %v727_v26  ;;  %673 = vmatprep.mubr.msk.bf16.mxu1 %vm273_vm0, %v729_v27 }
  0x32   :  { %341 = vmatmul.mubr.bf16.gmra.mrb[8].mxu0 %v730_v28  ;;  %674 = vmatmul.mubr.msk.bf16.gmra.mrb[8].mxu1 %vm273_vm0, %v731_v29 }
  0x33   :  { %348 = vmatprep.mubr.bf16.mxu0 %v732_v30  ;;  %677 = vmatprep.mubr.msk.bf16.mxu1 %vm273_vm0, %v734_v31 }
  0x3a   :  { %349 = vmatmul.mubr.bf16.gmra.mrb[12].mxu0 %v735_v32  ;;  %678 = vmatmul.mubr.msk.bf16.gmra.mrb[12].mxu1 %vm273_vm0, %v736_v33 }
  0x3b   :  { %356 = vmatprep.mubr.bf16.mxu0 %v737_v34 }
  0x42   :  { %357 = vmatmul.mubr.bf16.gmra.mrb[16].mxu0 %v739_v35 }
  0xf5   :  { %v621_v37 = vpop.f32.mrb[0].mxu0  ;;  %v651_v38 = vpop.f32.mrb[0].mxu1 }
  0xf6   :  { %v622_v39 = vpop.f32.mrb[1].mxu0  ;;  %v652_v40 = vpop.f32.mrb[1].mxu1 }
  0xf7   :  { %v623_v41 = vadd.f32 %v622_v39, %v621_v37  ;;  %v624_v42 = vpop.f32.mrb[2].mxu0  ;;  %v888_v43 = vadd.f32 %v652_v40, %v651_v38  ;;  %v654_v44 = vpop.f32.mrb[2].mxu1 }
  0xf8   :  { %v625_v45 = vpop.f32.mrb[3].mxu0  ;;  %v655_v46 = vpop.f32.mrb[3].mxu1 }
  0xf9   :  { %v626_v47 = vadd.f32 %v625_v45, %v624_v42  ;;  %v890_v48 = vadd.f32 %v655_v46, %v654_v44 }
  0xfd   :  { %v627_v49 = vpop.f32.mrb[4].mxu0  ;;  %v671_v50 = vpop.f32.mrb[4].mxu1 }
  0xfe   :  { %v628_v51 = vpop.f32.mrb[5].mxu0  ;;  %v407_v52 = vpop.f32.mrb[5].mxu1 }
  0xff   :  { %v629_v53 = vadd.f32 %v628_v51, %v627_v49  ;;  %v408_v54 = vadd.f32 %v623_v41, %v407_v52  ;;  %v630_v55 = vpop.f32.mrb[6].mxu0  ;;  %v672_v56 = vpop.f32.mrb[6].mxu1 }
 0x100   :  { %v631_v57 = vpop.f32.mrb[7].mxu0  ;;  %v410_v58 = vpop.f32.mrb[7].mxu1 }
 0x101   :  { %v416_v59 = vadd.f32 %v671_v50, %v629_v53  ;;  %455 = vst.msk [vmem:[%s984_s2] sm:$0xff] %vm454_vm2, %v408_v54  ;;  %v632_v60 = vadd.f32 %v631_v57, %v630_v55  ;;  %v508_v61 = vmul.f32 %v408_v54, %v408_v54  ;;  %v411_v62 = vadd.f32 %v626_v47, %v410_v58 }
 0x102   :  { %v475_v1 = vsel %vm454_vm2, %v408_v54, 0.0 }
 0x103   :  { %457 = vst.msk [vmem:[%s984_s2 + $0x10] sm:$0xff] %vm454_vm2, %v416_v59  ;;  %v419_v63 = vadd.f32 %v672_v56, %v632_v60  ;;  %v510_v0 = vmul.f32 %v416_v59, %v416_v59  ;;  %456 = vst.msk [vmem:[%s984_s2 + $0x8] sm:$0xff] %vm454_vm2, %v411_v62  ;;  %v476_v2 = vsel %vm454_vm2, %v411_v62, 0.0  ;;  %v509_v3 = vmul.f32 %v411_v62, %v411_v62 }
 0x104   :  { %v477_v4 = vadd.f32 %v476_v2, %v475_v1  ;;  %v478_v7 = vsel %vm454_vm2, %v416_v59, 0.0  ;;  %v520_v8 = vsel %vm454_vm2, %v508_v61, 0.0 }
 0x105   :  { %458 = vst.msk [vmem:[%s984_s2 + $0x18] sm:$0xff] %vm454_vm2, %v419_v63  ;;  %v633_v5 = vpop.f32.mrb[8].mxu0  ;;  %v675_v6 = vpop.f32.mrb[8].mxu1  ;;  %v511_v9 = vmul.f32 %v419_v63, %v419_v63  ;;  %v521_v10 = vsel %vm454_vm2, %v509_v3, 0.0  ;;  %v523_v18 = vsel %vm454_vm2, %v510_v0, 0.0  ;;  %v480_v19 = vsel %vm454_vm2, %v419_v63, 0.0 }
 0x106   :  { %v634_v11 = vpop.f32.mrb[9].mxu0  ;;  %v423_v12 = vpop.f32.mrb[9].mxu1  ;;  %v479_v13 = vadd.f32 %v478_v7, %v477_v4  ;;  %v522_v14 = vadd.f32 %v521_v10, %v520_v8 }
 0x107   :  { %v635_v15 = vadd.f32 %v634_v11, %v633_v5  ;;  %v636_v16 = vpop.f32.mrb[10].mxu0  ;;  %v676_v17 = vpop.f32.mrb[10].mxu1  ;;  %v525_v26 = vsel %vm454_vm2, %v511_v9, 0.0 }
 0x108   :  { %v637_v20 = vpop.f32.mrb[11].mxu0  ;;  %v426_v21 = vpop.f32.mrb[11].mxu1  ;;  %v524_v22 = vadd.f32 %v523_v18, %v522_v14  ;;  %v481_v25 = vadd.f32 %v480_v19, %v479_v13 }
 0x109   :  { %v638_v23 = vadd.f32 %v637_v20, %v636_v16  ;;  %v424_v24 = vadd.f32 %v635_v15, %v423_v12 }
 0x10a   :  { %v526_v29 = vadd.f32 %v525_v26, %v524_v22 }
 0x10b   :  { %459 = vst.msk [vmem:[%s984_s2 + $0x20] sm:$0xff] %vm454_vm2, %v424_v24  ;;  %v482_v27 = vsel %vm454_vm2, %v424_v24, 0.0  ;;  %v512_v28 = vmul.f32 %v424_v24, %v424_v24  ;;  %v427_v30 = vadd.f32 %v638_v23, %v426_v21 }
 0x10c   :  { %v483_v31 = vadd.f32 %v482_v27, %v481_v25 }
 0x10d   :  { %v527_v32 = vsel %vm454_vm2, %v512_v28, 0.0  ;;  %460 = vst.msk [vmem:[%s984_s2 + $0x28] sm:$0xff] %vm454_vm2, %v427_v30  ;;  %v484_v33 = vsel %vm454_vm2, %v427_v30, 0.0  ;;  %v513_v34 = vmul.f32 %v427_v30, %v427_v30  ;;  %v639_v35 = vpop.f32.mrb[12].mxu0  ;;  %v679_v36 = vpop.f32.mrb[12].mxu1 }
 0x10e   :  { %v528_v37 = vadd.f32 %v527_v32, %v526_v29  ;;  %v485_v38 = vadd.f32 %v484_v33, %v483_v31  ;;  %v448_v39 = vadd.f32 %v679_v36, %v888_v43  ;;  %v640_v40 = vpop.f32.mrb[13].mxu0  ;;  %v439_v41 = vpop.f32.mrb[13].mxu1  ;;  %v474_v36 = vld [vmem:[%s982_s3] sm:$0x1] }
 0x10f   :  { %v529_v42 = vsel %vm454_vm2, %v513_v34, 0.0  ;;  %v641_v44 = vadd.f32 %v640_v40, %v639_v35  ;;  %v642_v45 = vpop.f32.mrb[14].mxu0  ;;  %v680_v46 = vpop.f32.mrb[14].mxu1 }
 0x110   :  { %v530_v47 = vadd.f32 %v529_v42, %v528_v37  ;;  %465 = vst.msk [vmem:[%s984_s2 + $0x50] sm:$0xff] %vm454_vm2, %v448_v39  ;;  %v451_v49 = vadd.f32 %v680_v46, %v890_v48  ;;  %v643_v50 = vpop.f32.mrb[15].mxu0  ;;  %v442_v51 = vpop.f32.mrb[15].mxu1  ;;  %v518_v10 = vmul.f32 %v448_v39, %v448_v39  ;;  %v494_v16 = vsel %vm454_vm2, %v448_v39, 0.0  ;;  %v507_v39 = vld [vmem:[%s983_s4] sm:$0x1] }
 0x111   :  { %v432_v52 = vadd.f32 %v675_v6, %v641_v44  ;;  %v644_v53 = vadd.f32 %v643_v50, %v642_v45 }
 0x112   :  { %466 = vst.msk [vmem:[%s984_s2 + $0x58] sm:$0xff] %vm454_vm2, %v451_v49  ;;  %v539_v21 = vsel %vm454_vm2, %v518_v10, 0.0  ;;  %v496_v22 = vsel %vm454_vm2, %v451_v49, 0.0 }
 0x113   :  { %461 = vst.msk [vmem:[%s984_s2 + $0x30] sm:$0xff] %vm454_vm2, %v432_v52  ;;  %v486_v43 = vsel %vm454_vm2, %v432_v52, 0.0  ;;  %v514_v54 = vmul.f32 %v432_v52, %v432_v52  ;;  %v435_v55 = vadd.f32 %v676_v17, %v644_v53  ;;  %v519_v17 = vmul.f32 %v451_v49, %v451_v49 }
 0x114   :  { %v487_v56 = vadd.f32 %v486_v43, %v485_v38 }
 0x115   :  { %v531_v48 = vsel %vm454_vm2, %v514_v54, 0.0  ;;  %462 = vst.msk [vmem:[%s984_s2 + $0x38] sm:$0xff] %vm454_vm2, %v435_v55  ;;  %v488_v57 = vsel %vm454_vm2, %v435_v55, 0.0  ;;  %v515_v58 = vmul.f32 %v435_v55, %v435_v55  ;;  %v645_v59 = vpop.f32.mrb[16].mxu0  ;;  %v541_v25 = vsel %vm454_vm2, %v519_v17, 0.0 }
 0x116   :  { %v532_v60 = vadd.f32 %v531_v48, %v530_v47  ;;  %v489_v61 = vadd.f32 %v488_v57, %v487_v56  ;;  %v646_v62 = vpop.f32.mrb[17].mxu0 }
 0x117   :  { %v533_v63 = vsel %vm454_vm2, %v515_v58, 0.0  ;;  %v647_v0 = vadd.f32 %v646_v62, %v645_v59  ;;  %v648_v1 = vpop.f32.mrb[18].mxu0 }
 0x118   :  { %v534_v2 = vadd.f32 %v533_v63, %v532_v60  ;;  %v649_v3 = vpop.f32.mrb[19].mxu0 }
 0x119   :  { %v440_v4 = vadd.f32 %v647_v0, %v439_v41  ;;  %v650_v5 = vadd.f32 %v649_v3, %v648_v1 }
 0x11b   :  { %463 = vst.msk [vmem:[%s984_s2 + $0x40] sm:$0xff] %vm454_vm2, %v440_v4  ;;  %v490_v6 = vsel %vm454_vm2, %v440_v4, 0.0  ;;  %v516_v7 = vmul.f32 %v440_v4, %v440_v4  ;;  %v443_v8 = vadd.f32 %v650_v5, %v442_v51 }
 0x11c   :  { %v491_v9 = vadd.f32 %v490_v6, %v489_v61 }
 0x11d   :  { %v535_v11 = vsel %vm454_vm2, %v516_v7, 0.0  ;;  %464 = vst.msk [vmem:[%s984_s2 + $0x48] sm:$0xff] %vm454_vm2, %v443_v8  ;;  %v492_v12 = vsel %vm454_vm2, %v443_v8, 0.0  ;;  %v517_v13 = vmul.f32 %v443_v8, %v443_v8 }
 0x11e   :  { %v536_v14 = vadd.f32 %v535_v11, %v534_v2  ;;  %v493_v15 = vadd.f32 %v492_v12, %v491_v9 }
 0x11f   :  { %v537_v18 = vsel %vm454_vm2, %v517_v13, 0.0 }
 0x120   :  { %v495_v19 = vadd.f32 %v494_v16, %v493_v15  ;;  %v538_v20 = vadd.f32 %v537_v18, %v536_v14 }
 0x122   :  { %v497_v23 = vadd.f32 %v496_v22, %v495_v19  ;;  %v540_v24 = vadd.f32 %v539_v21, %v538_v20 }
 0x124   :  { %v498_v26 = vrot.slane %v497_v23, 4  ;;  %v542_v27 = vadd.f32 %v541_v25, %v540_v24 }
 0x126   :  { %v499_v28 = vadd.f32 %v498_v26, %v497_v23  ;;  %v543_v29 = vrot.slane %v542_v27, 4 }
 0x128   :  { %v500_v30 = vrot.slane %v499_v28, 2  ;;  %v544_v31 = vadd.f32 %v543_v29, %v542_v27 }
 0x12a   :  { %v501_v32 = vadd.f32 %v500_v30, %v499_v28  ;;  %v545_v33 = vrot.slane %v544_v31, 2 }
 0x12c   :  { %v502_v34 = vrot.slane %v501_v32, 1  ;;  %v546_v35 = vadd.f32 %v545_v33, %v544_v31 }
 0x12e   :  { %v503_v37 = vadd.f32 %v502_v34, %v501_v32  ;;  %v547_v38 = vrot.slane %v546_v35, 1 }
 0x130   :  { %v504_v40 = vadd.f32 %v503_v37, %v474_v36  ;;  %v548_v41 = vadd.f32 %v547_v38, %v546_v35 }
 0x132   :  { %506 = vst.msk [vmem:[%s982_s3] sm:$0x1] %vm471_vm1, %v504_v40  ;;  %v549_v42 = vadd.f32 %v548_v41, %v507_v39 }
 0x134   :  { %550 = vst.msk [vmem:[%s983_s4] sm:$0x1] %vm471_vm1, %v549_v42 }

// kernel: _lambda_.47
= control target key start
LH: loop header
LB: loop body
LE: loop exit
PB: predicated region body
PF: predicated region fallthrough
CT: control target
= control target key end

     0   :  { %vm76_vm0 = vcmask 130048   ;;  %s205_s0 = inlined_call_operand.vmem [shape: f32[96,16], index: 0, kind: input, shape index: {}]   ;;  %s206_s1 = inlined_call_operand.vmem [shape: f32[1,16], index: 1, kind: input, shape index: {}]   ;;  %s207_s2 = inlined_call_operand.vmem [shape: f32[1,16], index: 2, kind: input, shape index: {}]   ;;  %s208_s3 = inlined_call_operand.vmem [shape: f32[96,16], index: 3, kind: output, shape index: {}]  }
   0x1   :  { %v14_v0 = vld [vmem:[%s205_s0] sm:$0xff]  ;;  %v15_v4 = vld [vmem:[%s205_s0 + $0x8] sm:$0xff]  ;;  %v16_v5 = vld [vmem:[%s205_s0 + $0x10] sm:$0xff] }
   0x2   :  { %v93_v1 = vld [vmem:[%s206_s1] ss:$0 sm:$0xff]  ;;  %v17_v6 = vld [vmem:[%s205_s0 + $0x18] sm:$0xff]  ;;  %v19_v11 = vld [vmem:[%s205_s0 + $0x28] sm:$0xff] }
   0x3   :  { %v94_v2 = vld [vmem:[%s207_s2] ss:$0 sm:$0xff]  ;;  %v33_v3 = vsub.f32 %v14_v0, %v93_v1  ;;  %v34_v7 = vsub.f32 %v15_v4, %v93_v1  ;;  %v35_v8 = vsub.f32 %v16_v5, %v93_v1  ;;  %v36_v9 = vsub.f32 %v17_v6, %v93_v1  ;;  %v20_v12 = vld [vmem:[%s205_s0 + $0x30] sm:$0xff]  ;;  %v21_v17 = vld [vmem:[%s205_s0 + $0x38] sm:$0xff] }
   0x4   :  { %v18_v10 = vld [vmem:[%s205_s0 + $0x20] sm:$0xff]  ;;  %v38_v15 = vsub.f32 %v19_v11, %v93_v1  ;;  %v39_v16 = vsub.f32 %v20_v12, %v93_v1  ;;  %v40_v21 = vsub.f32 %v21_v17, %v93_v1  ;;  %v23_v27 = vld [vmem:[%s205_s0 + $0x48] sm:$0xff]  ;;  %v24_v28 = vld [vmem:[%s205_s0 + $0x50] sm:$0xff] }
   0x5   :  { %v52_v13 = vmul.f32 %v94_v2, %v33_v3  ;;  %v37_v14 = vsub.f32 %v18_v10, %v93_v1  ;;  %v53_v18 = vmul.f32 %v94_v2, %v34_v7  ;;  %v54_v19 = vmul.f32 %v94_v2, %v35_v8  ;;  %v22_v22 = vld [vmem:[%s205_s0 + $0x40] sm:$0xff]  ;;  %v25_v29 = vld [vmem:[%s205_s0 + $0x58] sm:$0xff] }
   0x6   :  { %v55_v20 = vmul.f32 %v94_v2, %v36_v9  ;;  %v57_v25 = vmul.f32 %v94_v2, %v38_v15  ;;  %v58_v26 = vmul.f32 %v94_v2, %v39_v16  ;;  %v59_v33 = vmul.f32 %v94_v2, %v40_v21 }
   0x7   :  { %v64_v23 = vmax.f32 %v52_v13, 0.0  ;;  %v56_v24 = vmul.f32 %v94_v2, %v37_v14  ;;  %v65_v30 = vmax.f32 %v53_v18, 0.0  ;;  %v66_v31 = vmax.f32 %v54_v19, 0.0 }
   0x8   :  { %v67_v32 = vmax.f32 %v55_v20, 0.0  ;;  %v69_v35 = vmax.f32 %v57_v25, 0.0  ;;  %v70_v36 = vmax.f32 %v58_v26, 0.0  ;;  %v41_v37 = vsub.f32 %v22_v22, %v93_v1 }
   0x9   :  { %77 = vst.msk [vmem:[%s208_s3] sm:$0xff] %vm76_vm0, %v64_v23  ;;  %v68_v34 = vmax.f32 %v56_v24, 0.0  ;;  %78 = vst.msk [vmem:[%s208_s3 + $0x8] sm:$0xff] %vm76_vm0, %v65_v30  ;;  %v71_v38 = vmax.f32 %v59_v33, 0.0  ;;  %v42_v39 = vsub.f32 %v23_v27, %v93_v1  ;;  %v43_v40 = vsub.f32 %v24_v28, %v93_v1 }
   0xa   :  { %79 = vst.msk [vmem:[%s208_s3 + $0x10] sm:$0xff] %vm76_vm0, %v66_v31  ;;  %80 = vst.msk [vmem:[%s208_s3 + $0x18] sm:$0xff] %vm76_vm0, %v67_v32  ;;  %v44_v41 = vsub.f32 %v25_v29, %v93_v1  ;;  %v60_v42 = vmul.f32 %v94_v2, %v41_v37 }
   0xb   :  { %81 = vst.msk [vmem:[%s208_s3 + $0x20] sm:$0xff] %vm76_vm0, %v68_v34  ;;  %82 = vst.msk [vmem:[%s208_s3 + $0x28] sm:$0xff] %vm76_vm0, %v69_v35  ;;  %v61_v43 = vmul.f32 %v94_v2, %v42_v39  ;;  %v62_v44 = vmul.f32 %v94_v2, %v43_v40 }
   0xc   :  { %83 = vst.msk [vmem:[%s208_s3 + $0x30] sm:$0xff] %vm76_vm0, %v70_v36  ;;  %84 = vst.msk [vmem:[%s208_s3 + $0x38] sm:$0xff] %vm76_vm0, %v71_v38  ;;  %v63_v45 = vmul.f32 %v94_v2, %v44_v41  ;;  %v72_v46 = vmax.f32 %v60_v42, 0.0 }
   0xd   :  { %v73_v47 = vmax.f32 %v61_v43, 0.0  ;;  %v74_v48 = vmax.f32 %v62_v44, 0.0 }
   0xe   :  { %v75_v49 = vmax.f32 %v63_v45, 0.0  ;;  %85 = vst.msk [vmem:[%s208_s3 + $0x40] sm:$0xff] %vm76_vm0, %v72_v46 }
   0xf   :  { %86 = vst.msk [vmem:[%s208_s3 + $0x48] sm:$0xff] %vm76_vm0, %v73_v47  ;;  %87 = vst.msk [vmem:[%s208_s3 + $0x50] sm:$0xff] %vm76_vm0, %v74_v48 }
  0x10   :  { %88 = vst.msk [vmem:[%s208_s3 + $0x58] sm:$0xff] %vm76_vm0, %v75_v49 }

// kernel: _lambda_.49
= control target key start
LH: loop header
LB: loop body
LE: loop exit
PB: predicated region body
PF: predicated region fallthrough
CT: control target
= control target key end

     0   :  { %vm284_vm0 = vcmask 64512   ;;  %s961_s0 = inlined_call_operand.vmem [shape: f32[512,8], index: 0, kind: input, shape index: {}]   ;;  %s962_s1 = inlined_call_operand.vmem [shape: f32[1,8], index: 1, kind: input, shape index: {}]   ;;  %s963_s2 = inlined_call_operand.vmem [shape: f32[1,8], index: 2, kind: input, shape index: {}]   ;;  %s964_s3 = inlined_call_operand.vmem [shape: f32[512,8], index: 3, kind: output, shape index: {}]  }
   0x1   :  { %v14_v0 = vld [vmem:[%s961_s0] sm:$0xff]  ;;  %v15_v4 = vld [vmem:[%s961_s0 + $0x8] sm:$0xff]  ;;  %v16_v5 = vld [vmem:[%s961_s0 + $0x10] sm:$0xff] }
   0x2   :  { %v381_v1 = vld [vmem:[%s962_s1] ss:$0 sm:$0xff]  ;;  %v17_v6 = vld [vmem:[%s961_s0 + $0x18] sm:$0xff]  ;;  %v19_v11 = vld [vmem:[%s961_s0 + $0x28] sm:$0xff] }
   0x3   :  { %v386_v2 = vld [vmem:[%s963_s2] ss:$0 sm:$0xff]  ;;  %v85_v3 = vsub.f32 %v14_v0, %v381_v1  ;;  %v86_v7 = vsub.f32 %v15_v4, %v381_v1  ;;  %v87_v8 = vsub.f32 %v16_v5, %v381_v1  ;;  %v88_v9 = vsub.f32 %v17_v6, %v381_v1  ;;  %v20_v12 = vld [vmem:[%s961_s0 + $0x30] sm:$0xff]  ;;  %v21_v17 = vld [vmem:[%s961_s0 + $0x38] sm:$0xff] }
   0x4   :  { %v18_v10 = vld [vmem:[%s961_s0 + $0x20] sm:$0xff]  ;;  %v90_v15 = vsub.f32 %v19_v11, %v381_v1  ;;  %v91_v16 = vsub.f32 %v20_v12, %v381_v1  ;;  %v92_v21 = vsub.f32 %v21_v17, %v381_v1  ;;  %v23_v27 = vld [vmem:[%s961_s0 + $0x48] sm:$0xff]  ;;  %v24_v28 = vld [vmem:[%s961_s0 + $0x50] sm:$0xff] }
   0x5   :  { %v156_v13 = vmul.f32 %v386_v2, %v85_v3  ;;  %v89_v14 = vsub.f32 %v18_v10, %v381_v1  ;;  %v157_v18 = vmul.f32 %v386_v2, %v86_v7  ;;  %v158_v19 = vmul.f32 %v386_v2, %v87_v8  ;;  %v22_v22 = vld [vmem:[%s961_s0 + $0x40] sm:$0xff]  ;;  %v25_v29 = vld [vmem:[%s961_s0 + $0x58] sm:$0xff]  ;;  %v27_v35 = vld [vmem:[%s961_s0 + $0x68] sm:$0xff] }
   0x6   :  { %v159_v20 = vmul.f32 %v386_v2, %v88_v9  ;;  %v161_v25 = vmul.f32 %v386_v2, %v90_v15  ;;  %v162_v26 = vmul.f32 %v386_v2, %v91_v16  ;;  %v163_v33 = vmul.f32 %v386_v2, %v92_v21  ;;  %v26_v34 = vld [vmem:[%s961_s0 + $0x60] sm:$0xff]  ;;  %v28_v36 = vld [vmem:[%s961_s0 + $0x70] sm:$0xff]  ;;  %v29_v41 = vld [vmem:[%s961_s0 + $0x78] sm:$0xff] }
   0x7   :  { %v220_v23 = vmax.f32 %v156_v13, 0.0  ;;  %v160_v24 = vmul.f32 %v386_v2, %v89_v14  ;;  %v221_v30 = vmax.f32 %v157_v18, 0.0  ;;  %v222_v31 = vmax.f32 %v158_v19, 0.0  ;;  %v30_v54 = vld [vmem:[%s961_s0 + $0x80] sm:$0xff]  ;;  %v31_v59 = vld [vmem:[%s961_s0 + $0x88] sm:$0xff]  ;;  %v32_v60 = vld [vmem:[%s961_s0 + $0x90] sm:$0xff] }
   0x8   :  { %v223_v32 = vmax.f32 %v159_v20, 0.0  ;;  %v225_v38 = vmax.f32 %v161_v25, 0.0  ;;  %v226_v39 = vmax.f32 %v162_v26, 0.0  ;;  %v93_v40 = vsub.f32 %v22_v22, %v381_v1  ;;  %v33_v61 = vld [vmem:[%s961_s0 + $0x98] sm:$0xff]  ;;  %v34_v4 = vld [vmem:[%s961_s0 + $0xa0] sm:$0xff]  ;;  %v35_v5 = vld [vmem:[%s961_s0 + $0xa8] sm:$0xff] }
   0x9   :  { %285 = vst.msk [vmem:[%s964_s3] sm:$0xff] %vm284_vm0, %v220_v23  ;;  %v224_v37 = vmax.f32 %v160_v24, 0.0  ;;  %286 = vst.msk [vmem:[%s964_s3 + $0x8] sm:$0xff] %vm284_vm0, %v221_v30  ;;  %v227_v42 = vmax.f32 %v163_v33, 0.0  ;;  %v94_v43 = vsub.f32 %v23_v27, %v381_v1  ;;  %v95_v44 = vsub.f32 %v24_v28, %v381_v1  ;;  %v36_v6 = vld [vmem:[%s961_s0 + $0xb0] sm:$0xff]  ;;  %v37_v11 = vld [vmem:[%s961_s0 + $0xb8] sm:$0xff] }
   0xa   :  { %287 = vst.msk [vmem:[%s964_s3 + $0x10] sm:$0xff] %vm284_vm0, %v222_v31  ;;  %288 = vst.msk [vmem:[%s964_s3 + $0x18] sm:$0xff] %vm284_vm0, %v223_v32  ;;  %v96_v45 = vsub.f32 %v25_v29, %v381_v1  ;;  %v164_v46 = vmul.f32 %v386_v2, %v93_v40  ;;  %v97_v47 = vsub.f32 %v26_v34, %v381_v1  ;;  %v38_v24 = vld [vmem:[%s961_s0 + $0xc0] sm:$0xff]  ;;  %v39_v29 = vld [vmem:[%s961_s0 + $0xc8] sm:$0xff] }
   0xb   :  { %289 = vst.msk [vmem:[%s964_s3 + $0x20] sm:$0xff] %vm284_vm0, %v224_v37  ;;  %290 = vst.msk [vmem:[%s964_s3 + $0x28] sm:$0xff] %vm284_vm0, %v225_v38  ;;  %v98_v48 = vsub.f32 %v27_v35, %v381_v1  ;;  %v99_v49 = vsub.f32 %v28_v36, %v381_v1  ;;  %v165_v50 = vmul.f32 %v386_v2, %v94_v43  ;;  %v40_v30 = vld [vmem:[%s961_s0 + $0xd0] sm:$0xff]  ;;  %v41_v31 = vld [vmem:[%s961_s0 + $0xd8] sm:$0xff] }
   0xc   :  { %291 = vst.msk [vmem:[%s964_s3 + $0x30] sm:$0xff] %vm284_vm0, %v226_v39  ;;  %292 = vst.msk [vmem:[%s964_s3 + $0x38] sm:$0xff] %vm284_vm0, %v227_v42  ;;  %v166_v51 = vmul.f32 %v386_v2, %v95_v44  ;;  %v167_v52 = vmul.f32 %v386_v2, %v96_v45  ;;  %v100_v53 = vsub.f32 %v29_v41, %v381_v1  ;;  %v228_v55 = vmax.f32 %v164_v46, 0.0  ;;  %v42_v36 = vld [vmem:[%s961_s0 + $0xe0] sm:$0xff]  ;;  %v43_v37 = vld [vmem:[%s961_s0 + $0xe8] sm:$0xff] }
   0xd   :  { %v168_v56 = vmul.f32 %v386_v2, %v97_v47  ;;  %v169_v57 = vmul.f32 %v386_v2, %v98_v48  ;;  %v170_v58 = vmul.f32 %v386_v2, %v99_v49  ;;  %v229_v62 = vmax.f32 %v165_v50, 0.0  ;;  %v44_v38 = vld [vmem:[%s961_s0 + $0xf0] sm:$0xff]  ;;  %v45_v43 = vld [vmem:[%s961_s0 + $0xf8] sm:$0xff] }
   0xe   :  { %v230_v63 = vmax.f32 %v166_v51, 0.0  ;;  %v231_v0 = vmax.f32 %v167_v52, 0.0  ;;  %v171_v3 = vmul.f32 %v386_v2, %v100_v53  ;;  %293 = vst.msk [vmem:[%s964_s3 + $0x40] sm:$0xff] %vm284_vm0, %v228_v55  ;;  %v101_v10 = vsub.f32 %v30_v54, %v381_v1 }
   0xf   :  { %v232_v7 = vmax.f32 %v168_v56, 0.0  ;;  %v233_v8 = vmax.f32 %v169_v57, 0.0  ;;  %v234_v9 = vmax.f32 %v170_v58, 0.0  ;;  %294 = vst.msk [vmem:[%s964_s3 + $0x48] sm:$0xff] %vm284_vm0, %v229_v62  ;;  %v102_v13 = vsub.f32 %v31_v59, %v381_v1  ;;  %v46_v56 = vld [vmem:[%s961_s0 + $0x100] sm:$0xff]  ;;  %v48_v62 = vld [vmem:[%s961_s0 + $0x110] sm:$0xff] }
  0x10   :  { %295 = vst.msk [vmem:[%s964_s3 + $0x50] sm:$0xff] %vm284_vm0, %v230_v63  ;;  %296 = vst.msk [vmem:[%s964_s3 + $0x58] sm:$0xff] %vm284_vm0, %v231_v0  ;;  %v235_v12 = vmax.f32 %v171_v3, 0.0  ;;  %v103_v14 = vsub.f32 %v32_v60, %v381_v1  ;;  %v104_v15 = vsub.f32 %v33_v61, %v381_v1  ;;  %v172_v16 = vmul.f32 %v386_v2, %v101_v10  ;;  %v47_v61 = vld [vmem:[%s961_s0 + $0x108] sm:$0xff]  ;;  %v49_v63 = vld [vmem:[%s961_s0 + $0x118] sm:$0xff] }
  0x11   :  { %297 = vst.msk [vmem:[%s964_s3 + $0x60] sm:$0xff] %vm284_vm0, %v232_v7  ;;  %298 = vst.msk [vmem:[%s964_s3 + $0x68] sm:$0xff] %vm284_vm0, %v233_v8  ;;  %v105_v17 = vsub.f32 %v34_v4, %v381_v1  ;;  %v106_v18 = vsub.f32 %v35_v5, %v381_v1  ;;  %v107_v19 = vsub.f32 %v36_v6, %v381_v1  ;;  %v50_v6 = vld [vmem:[%s961_s0 + $0x120] sm:$0xff]  ;;  %v51_v7 = vld [vmem:[%s961_s0 + $0x128] sm:$0xff] }
  0x12   :  { %299 = vst.msk [vmem:[%s964_s3 + $0x70] sm:$0xff] %vm284_vm0, %v234_v9  ;;  %300 = vst.msk [vmem:[%s964_s3 + $0x78] sm:$0xff] %vm284_vm0, %v235_v12  ;;  %v173_v20 = vmul.f32 %v386_v2, %v102_v13  ;;  %v174_v21 = vmul.f32 %v386_v2, %v103_v14  ;;  %v175_v22 = vmul.f32 %v386_v2, %v104_v15  ;;  %v236_v25 = vmax.f32 %v172_v16, 0.0  ;;  %v52_v8 = vld [vmem:[%s961_s0 + $0x130] sm:$0xff]  ;;  %v53_v13 = vld [vmem:[%s961_s0 + $0x138] sm:$0xff] }
  0x13   :  { %v108_v23 = vsub.f32 %v37_v11, %v381_v1  ;;  %v176_v26 = vmul.f32 %v386_v2, %v105_v17  ;;  %v177_v27 = vmul.f32 %v386_v2, %v106_v18  ;;  %v178_v28 = vmul.f32 %v386_v2, %v107_v19 }
  0x14   :  { %v237_v32 = vmax.f32 %v173_v20, 0.0  ;;  %v238_v33 = vmax.f32 %v174_v21, 0.0  ;;  %v239_v34 = vmax.f32 %v175_v22, 0.0  ;;  %301 = vst.msk [vmem:[%s964_s3 + $0x80] sm:$0xff] %vm284_vm0, %v236_v25  ;;  %v109_v42 = vsub.f32 %v38_v24, %v381_v1 }
  0x15   :  { %v179_v35 = vmul.f32 %v386_v2, %v108_v23  ;;  %v240_v39 = vmax.f32 %v176_v26, 0.0  ;;  %v241_v40 = vmax.f32 %v177_v27, 0.0  ;;  %v242_v41 = vmax.f32 %v178_v28, 0.0  ;;  %v54_v26 = vld [vmem:[%s961_s0 + $0x140] sm:$0xff] }
  0x16   :  { %302 = vst.msk [vmem:[%s964_s3 + $0x88] sm:$0xff] %vm284_vm0, %v237_v32  ;;  %303 = vst.msk [vmem:[%s964_s3 + $0x90] sm:$0xff] %vm284_vm0, %v238_v33  ;;  %v110_v45 = vsub.f32 %v39_v29, %v381_v1  ;;  %v111_v46 = vsub.f32 %v40_v30, %v381_v1  ;;  %v112_v47 = vsub.f32 %v41_v31, %v381_v1  ;;  %v55_v31 = vld [vmem:[%s961_s0 + $0x148] sm:$0xff]  ;;  %v56_v32 = vld [vmem:[%s961_s0 + $0x150] sm:$0xff] }
  0x17   :  { %304 = vst.msk [vmem:[%s964_s3 + $0x98] sm:$0xff] %vm284_vm0, %v239_v34  ;;  %v243_v44 = vmax.f32 %v179_v35, 0.0  ;;  %305 = vst.msk [vmem:[%s964_s3 + $0xa0] sm:$0xff] %vm284_vm0, %v240_v39  ;;  %v180_v48 = vmul.f32 %v386_v2, %v109_v42  ;;  %v113_v49 = vsub.f32 %v42_v36, %v381_v1  ;;  %v114_v50 = vsub.f32 %v43_v37, %v381_v1  ;;  %v57_v33 = vld [vmem:[%s961_s0 + $0x158] sm:$0xff]  ;;  %v59_v39 = vld [vmem:[%s961_s0 + $0x168] sm:$0xff] }
  0x18   :  { %306 = vst.msk [vmem:[%s964_s3 + $0xa8] sm:$0xff] %vm284_vm0, %v241_v40  ;;  %307 = vst.msk [vmem:[%s964_s3 + $0xb0] sm:$0xff] %vm284_vm0, %v242_v41  ;;  %v115_v51 = vsub.f32 %v44_v38, %v381_v1  ;;  %v181_v52 = vmul.f32 %v386_v2, %v110_v45  ;;  %v182_v53 = vmul.f32 %v386_v2, %v111_v46  ;;  %v58_v38 = vld [vmem:[%s961_s0 + $0x160] sm:$0xff]  ;;  %v60_v40 = vld [vmem:[%s961_s0 + $0x170] sm:$0xff] }
  0x19   :  { %308 = vst.msk [vmem:[%s964_s3 + $0xb8] sm:$0xff] %vm284_vm0, %v243_v44  ;;  %v183_v54 = vmul.f32 %v386_v2, %v112_v47  ;;  %v116_v55 = vsub.f32 %v45_v43, %v381_v1  ;;  %v244_v57 = vmax.f32 %v180_v48, 0.0  ;;  %v184_v58 = vmul.f32 %v386_v2, %v113_v49  ;;  %v61_v45 = vld [vmem:[%s961_s0 + $0x178] sm:$0xff] }
  0x1a   :  { %v185_v59 = vmul.f32 %v386_v2, %v114_v50  ;;  %v186_v60 = vmul.f32 %v386_v2, %v115_v51  ;;  %v245_v0 = vmax.f32 %v181_v52, 0.0  ;;  %v246_v3 = vmax.f32 %v182_v53, 0.0 }
  0x1b   :  { %v247_v4 = vmax.f32 %v183_v54, 0.0  ;;  %v187_v5 = vmul.f32 %v386_v2, %v116_v55  ;;  %309 = vst.msk [vmem:[%s964_s3 + $0xc0] sm:$0xff] %vm284_vm0, %v244_v57  ;;  %v248_v9 = vmax.f32 %v184_v58, 0.0  ;;  %v117_v12 = vsub.f32 %v46_v56, %v381_v1  ;;  %v62_v58 = vld [vmem:[%s961_s0 + $0x180] sm:$0xff] }
  0x1c   :  { %v249_v10 = vmax.f32 %v185_v59, 0.0  ;;  %v250_v11 = vmax.f32 %v186_v60, 0.0  ;;  %310 = vst.msk [vmem:[%s964_s3 + $0xc8] sm:$0xff] %vm284_vm0, %v245_v0  ;;  %311 = vst.msk [vmem:[%s964_s3 + $0xd0] sm:$0xff] %vm284_vm0, %v246_v3  ;;  %v118_v15 = vsub.f32 %v47_v61, %v381_v1  ;;  %v119_v16 = vsub.f32 %v48_v62, %v381_v1  ;;  %v64_v0 = vld [vmem:[%s961_s0 + $0x190] sm:$0xff]  ;;  %v65_v3 = vld [vmem:[%s961_s0 + $0x198] sm:$0xff] }
  0x1d   :  { %312 = vst.msk [vmem:[%s964_s3 + $0xd8] sm:$0xff] %vm284_vm0, %v247_v4  ;;  %v251_v14 = vmax.f32 %v187_v5, 0.0  ;;  %v120_v17 = vsub.f32 %v49_v63, %v381_v1  ;;  %313 = vst.msk [vmem:[%s964_s3 + $0xe0] sm:$0xff] %vm284_vm0, %v248_v9  ;;  %v188_v18 = vmul.f32 %v386_v2, %v117_v12  ;;  %v121_v19 = vsub.f32 %v50_v6, %v381_v1  ;;  %v63_v63 = vld [vmem:[%s961_s0 + $0x188] sm:$0xff] }
  0x1e   :  { %314 = vst.msk [vmem:[%s964_s3 + $0xe8] sm:$0xff] %vm284_vm0, %v249_v10  ;;  %315 = vst.msk [vmem:[%s964_s3 + $0xf0] sm:$0xff] %vm284_vm0, %v250_v11  ;;  %v122_v20 = vsub.f32 %v51_v7, %v381_v1  ;;  %v123_v21 = vsub.f32 %v52_v8, %v381_v1  ;;  %v189_v22 = vmul.f32 %v386_v2, %v118_v15  ;;  %v66_v8 = vld [vmem:[%s961_s0 + $0x1a0] sm:$0xff]  ;;  %v67_v9 = vld [vmem:[%s961_s0 + $0x1a8] sm:$0xff] }
  0x1f   :  { %316 = vst.msk [vmem:[%s964_s3 + $0xf8] sm:$0xff] %vm284_vm0, %v251_v14  ;;  %v190_v23 = vmul.f32 %v386_v2, %v119_v16  ;;  %v191_v24 = vmul.f32 %v386_v2, %v120_v17  ;;  %v124_v25 = vsub.f32 %v53_v13, %v381_v1  ;;  %v252_v27 = vmax.f32 %v188_v18, 0.0  ;;  %v68_v10 = vld [vmem:[%s961_s0 + $0x1b0] sm:$0xff]  ;;  %v69_v15 = vld [vmem:[%s961_s0 + $0x1b8] sm:$0xff] }
  0x20   :  { %v192_v28 = vmul.f32 %v386_v2, %v121_v19  ;;  %v193_v29 = vmul.f32 %v386_v2, %v122_v20  ;;  %v194_v30 = vmul.f32 %v386_v2, %v123_v21  ;;  %v253_v34 = vmax.f32 %v189_v22, 0.0 }
  0x21   :  { %v254_v35 = vmax.f32 %v190_v23, 0.0  ;;  %v255_v36 = vmax.f32 %v191_v24, 0.0  ;;  %v195_v37 = vmul.f32 %v386_v2, %v124_v25  ;;  %317 = vst.msk [vmem:[%s964_s3 + $0x100] sm:$0xff] %vm284_vm0, %v252_v27  ;;  %v125_v44 = vsub.f32 %v54_v26, %v381_v1 }
  0x22   :  { %v256_v41 = vmax.f32 %v192_v28, 0.0  ;;  %v257_v42 = vmax.f32 %v193_v29, 0.0  ;;  %v258_v43 = vmax.f32 %v194_v30, 0.0  ;;  %318 = vst.msk [vmem:[%s964_s3 + $0x108] sm:$0xff] %vm284_vm0, %v253_v34  ;;  %v126_v47 = vsub.f32 %v55_v31, %v381_v1  ;;  %v70_v28 = vld [vmem:[%s961_s0 + $0x1c0] sm:$0xff]  ;;  %v72_v34 = vld [vmem:[%s961_s0 + $0x1d0] sm:$0xff] }
  0x23   :  { %319 = vst.msk [vmem:[%s964_s3 + $0x110] sm:$0xff] %vm284_vm0, %v254_v35  ;;  %320 = vst.msk [vmem:[%s964_s3 + $0x118] sm:$0xff] %vm284_vm0, %v255_v36  ;;  %v259_v46 = vmax.f32 %v195_v37, 0.0  ;;  %v127_v48 = vsub.f32 %v56_v32, %v381_v1  ;;  %v128_v49 = vsub.f32 %v57_v33, %v381_v1  ;;  %v196_v50 = vmul.f32 %v386_v2, %v125_v44  ;;  %v71_v33 = vld [vmem:[%s961_s0 + $0x1c8] sm:$0xff]  ;;  %v73_v35 = vld [vmem:[%s961_s0 + $0x1d8] sm:$0xff] }
  0x24   :  { %321 = vst.msk [vmem:[%s964_s3 + $0x120] sm:$0xff] %vm284_vm0, %v256_v41  ;;  %322 = vst.msk [vmem:[%s964_s3 + $0x128] sm:$0xff] %vm284_vm0, %v257_v42  ;;  %v129_v51 = vsub.f32 %v58_v38, %v381_v1  ;;  %v130_v52 = vsub.f32 %v59_v39, %v381_v1  ;;  %v131_v53 = vsub.f32 %v60_v40, %v381_v1  ;;  %v74_v40 = vld [vmem:[%s961_s0 + $0x1e0] sm:$0xff]  ;;  %v75_v41 = vld [vmem:[%s961_s0 + $0x1e8] sm:$0xff] }
  0x25   :  { %323 = vst.msk [vmem:[%s964_s3 + $0x130] sm:$0xff] %vm284_vm0, %v258_v43  ;;  %324 = vst.msk [vmem:[%s964_s3 + $0x138] sm:$0xff] %vm284_vm0, %v259_v46  ;;  %v197_v54 = vmul.f32 %v386_v2, %v126_v47  ;;  %v198_v55 = vmul.f32 %v386_v2, %v127_v48  ;;  %v199_v56 = vmul.f32 %v386_v2, %v128_v49  ;;  %v260_v59 = vmax.f32 %v196_v50, 0.0  ;;  %v76_v42 = vld [vmem:[%s961_s0 + $0x1f0] sm:$0xff]  ;;  %v77_v47 = vld [vmem:[%s961_s0 + $0x1f8] sm:$0xff] }
  0x26   :  { %v132_v57 = vsub.f32 %v61_v45, %v381_v1  ;;  %v200_v60 = vmul.f32 %v386_v2, %v129_v51  ;;  %v201_v61 = vmul.f32 %v386_v2, %v130_v52  ;;  %v202_v62 = vmul.f32 %v386_v2, %v131_v53 }
  0x27   :  { %v261_v4 = vmax.f32 %v197_v54, 0.0  ;;  %v262_v5 = vmax.f32 %v198_v55, 0.0  ;;  %v263_v6 = vmax.f32 %v199_v56, 0.0  ;;  %325 = vst.msk [vmem:[%s964_s3 + $0x140] sm:$0xff] %vm284_vm0, %v260_v59  ;;  %v133_v14 = vsub.f32 %v62_v58, %v381_v1 }
  0x28   :  { %v203_v7 = vmul.f32 %v386_v2, %v132_v57  ;;  %v264_v11 = vmax.f32 %v200_v60, 0.0  ;;  %v265_v12 = vmax.f32 %v201_v61, 0.0  ;;  %v266_v13 = vmax.f32 %v202_v62, 0.0 }
  0x29   :  { %326 = vst.msk [vmem:[%s964_s3 + $0x148] sm:$0xff] %vm284_vm0, %v261_v4  ;;  %327 = vst.msk [vmem:[%s964_s3 + $0x150] sm:$0xff] %vm284_vm0, %v262_v5  ;;  %v134_v17 = vsub.f32 %v63_v63, %v381_v1  ;;  %v135_v18 = vsub.f32 %v64_v0, %v381_v1  ;;  %v136_v19 = vsub.f32 %v65_v3, %v381_v1 }
  0x2a   :  { %328 = vst.msk [vmem:[%s964_s3 + $0x158] sm:$0xff] %vm284_vm0, %v263_v6  ;;  %v267_v16 = vmax.f32 %v203_v7, 0.0  ;;  %329 = vst.msk [vmem:[%s964_s3 + $0x160] sm:$0xff] %vm284_vm0, %v264_v11  ;;  %v204_v20 = vmul.f32 %v386_v2, %v133_v14  ;;  %v137_v21 = vsub.f32 %v66_v8, %v381_v1  ;;  %v138_v22 = vsub.f32 %v67_v9, %v381_v1 }
  0x2b   :  { %330 = vst.msk [vmem:[%s964_s3 + $0x168] sm:$0xff] %vm284_vm0, %v265_v12  ;;  %331 = vst.msk [vmem:[%s964_s3 + $0x170] sm:$0xff] %vm284_vm0, %v266_v13  ;;  %v139_v23 = vsub.f32 %v68_v10, %v381_v1  ;;  %v205_v24 = vmul.f32 %v386_v2, %v134_v17  ;;  %v206_v25 = vmul.f32 %v386_v2, %v135_v18 }
  0x2c   :  { %332 = vst.msk [vmem:[%s964_s3 + $0x178] sm:$0xff] %vm284_vm0, %v267_v16  ;;  %v207_v26 = vmul.f32 %v386_v2, %v136_v19  ;;  %v140_v27 = vsub.f32 %v69_v15, %v381_v1  ;;  %v268_v29 = vmax.f32 %v204_v20, 0.0  ;;  %v208_v30 = vmul.f32 %v386_v2, %v137_v21 }
  0x2d   :  { %v209_v31 = vmul.f32 %v386_v2, %v138_v22  ;;  %v210_v32 = vmul.f32 %v386_v2, %v139_v23  ;;  %v269_v36 = vmax.f32 %v205_v24, 0.0  ;;  %v270_v37 = vmax.f32 %v206_v25, 0.0 }
  0x2e   :  { %v271_v38 = vmax.f32 %v207_v26, 0.0  ;;  %v211_v39 = vmul.f32 %v386_v2, %v140_v27  ;;  %333 = vst.msk [vmem:[%s964_s3 + $0x180] sm:$0xff] %vm284_vm0, %v268_v29  ;;  %v272_v43 = vmax.f32 %v208_v30, 0.0  ;;  %v141_v46 = vsub.f32 %v70_v28, %v381_v1 }
  0x2f   :  { %v273_v44 = vmax.f32 %v209_v31, 0.0  ;;  %v274_v45 = vmax.f32 %v210_v32, 0.0  ;;  %334 = vst.msk [vmem:[%s964_s3 + $0x188] sm:$0xff] %vm284_vm0, %v269_v36  ;;  %335 = vst.msk [vmem:[%s964_s3 + $0x190] sm:$0xff] %vm284_vm0, %v270_v37  ;;  %v142_v49 = vsub.f32 %v71_v33, %v381_v1  ;;  %v143_v50 = vsub.f32 %v72_v34, %v381_v1 }
  0x30   :  { %336 = vst.msk [vmem:[%s964_s3 + $0x198] sm:$0xff] %vm284_vm0, %v271_v38  ;;  %v275_v48 = vmax.f32 %v211_v39, 0.0  ;;  %v144_v51 = vsub.f32 %v73_v35, %v381_v1  ;;  %337 = vst.msk [vmem:[%s964_s3 + $0x1a0] sm:$0xff] %vm284_vm0, %v272_v43  ;;  %v212_v52 = vmul.f32 %v386_v2, %v141_v46  ;;  %v145_v53 = vsub.f32 %v74_v40, %v381_v1 }
  0x31   :  { %338 = vst.msk [vmem:[%s964_s3 + $0x1a8] sm:$0xff] %vm284_vm0, %v273_v44  ;;  %339 = vst.msk [vmem:[%s964_s3 + $0x1b0] sm:$0xff] %vm284_vm0, %v274_v45  ;;  %v146_v54 = vsub.f32 %v75_v41, %v381_v1  ;;  %v147_v55 = vsub.f32 %v76_v42, %v381_v1  ;;  %v213_v56 = vmul.f32 %v386_v2, %v142_v49 }
  0x32   :  { %340 = vst.msk [vmem:[%s964_s3 + $0x1b8] sm:$0xff] %vm284_vm0, %v275_v48  ;;  %v214_v57 = vmul.f32 %v386_v2, %v143_v50  ;;  %v215_v58 = vmul.f32 %v386_v2, %v144_v51  ;;  %v148_v59 = vsub.f32 %v77_v47, %v381_v1  ;;  %v276_v60 = vmax.f32 %v212_v52, 0.0 }
  0x33   :  { %v216_v61 = vmul.f32 %v386_v2, %v145_v53  ;;  %v217_v62 = vmul.f32 %v386_v2, %v146_v54  ;;  %v218_v63 = vmul.f32 %v386_v2, %v147_v55  ;;  %v277_v0 = vmax.f32 %v213_v56, 0.0 }
  0x34   :  { %v278_v3 = vmax.f32 %v214_v57, 0.0  ;;  %v279_v4 = vmax.f32 %v215_v58, 0.0  ;;  %v219_v5 = vmul.f32 %v386_v2, %v148_v59  ;;  %341 = vst.msk [vmem:[%s964_s3 + $0x1c0] sm:$0xff] %vm284_vm0, %v276_v60 }
  0x35   :  { %v280_v6 = vmax.f32 %v216_v61, 0.0  ;;  %v281_v7 = vmax.f32 %v217_v62, 0.0  ;;  %v282_v1 = vmax.f32 %v218_v63, 0.0  ;;  %342 = vst.msk [vmem:[%s964_s3 + $0x1c8] sm:$0xff] %vm284_vm0, %v277_v0 }
  0x36   :  { %343 = vst.msk [vmem:[%s964_s3 + $0x1d0] sm:$0xff] %vm284_vm0, %v278_v3  ;;  %344 = vst.msk [vmem:[%s964_s3 + $0x1d8] sm:$0xff] %vm284_vm0, %v279_v4  ;;  %v283_v2 = vmax.f32 %v219_v5, 0.0 }
  0x37   :  { %345 = vst.msk [vmem:[%s964_s3 + $0x1e0] sm:$0xff] %vm284_vm0, %v280_v6  ;;  %346 = vst.msk [vmem:[%s964_s3 + $0x1e8] sm:$0xff] %vm284_vm0, %v281_v7 }
  0x38   :  { %347 = vst.msk [vmem:[%s964_s3 + $0x1f0] sm:$0xff] %vm284_vm0, %v282_v1  ;;  %348 = vst.msk [vmem:[%s964_s3 + $0x1f8] sm:$0xff] %vm284_vm0, %v283_v2 }

// kernel: _lambda_.48
= control target key start
LH: loop header
LB: loop body
LE: loop exit
PB: predicated region body
PF: predicated region fallthrough
CT: control target
= control target key end

     0   :  { %s1134_s15 = smov 0   ;;  %s1581_s0 = inlined_call_operand.vmem [shape: bf16[512,144], index: 0, kind: input, shape index: {}]   ;;  %s1582_s1 = inlined_call_operand.vmem [shape: bf16[144,8], index: 1, kind: input, shape index: {}]   ;;  %s1583_s2 = inlined_call_operand.vmem [shape: f32[512,8], index: 2, kind: output, shape index: {0}]   ;;  %s1584_s3 = inlined_call_operand.vmem [shape: f32[1,8], index: 3, kind: output, shape index: {1}]   ;;  %s1585_s4 = inlined_call_operand.vmem [shape: f32[1,8], index: 4, kind: output, shape index: {2}]  }
   0x1 LB: > { %s943_s16 = sadd.s32 4294967295, %s1105_s15   ;;  %p947_p0 = scmp.ge.s32.totalorder %s1105_s15, 1  ;;  %s1105_s15 = sphi %s1134_s15, %s15_s15  }
   0x2   : > { %p159_p1 = scmp.lt.s32.totalorder %s1105_s15, 3 }
   0x4   : > { %p160_p2 = pnand %p947_p0, %p159_p1 }
   0x5   : > { %v1042_v0 = vld [vmem:[%s1582_s1] sm:$0xff] (!%p160_p2)   ;;  %v1107_v1 = vmov (!%p160_p2), 0   ;;  %s948_s19 = sshll.u32 (!%p160_p2), %s943_s16, 5  ;;  %v1043_v2 = vld [vmem:[%s1582_s1 + $0x8] sm:$0xff] (!%p160_p2)   ;;  %v1044_v3 = vld [vmem:[%s1582_s1 + $0x10] sm:$0xff] (!%p160_p2)   ;;  %vm448_vm0 = vcmask (!%p160_p2), 130048  }
   0x6   : > { %163 = sbr.rel (%p160_p2) target bundleno = 396 (0x18c), region = 28  ;;  %497 = vmatprep.subr.bf16.mxu0 (!%p160_p2), %v1107_v1  ;;  %1014 = vmatprep.subr.bf16.mxu1 (!%p160_p2), %v1107_v1  ;;  %p187_p3 = scmp.lt.s32.totalorder (!%p160_p2), %s948_s19, 63  ;;  %v1045_v4 = vld [vmem:[%s1582_s1 + $0x18] sm:$0xff] (!%p160_p2)   ;;  %v1046_v7 = vld [vmem:[%s1582_s1 + $0x20] sm:$0xff] (!%p160_p2)   ;;  %v1047_v8 = vld [vmem:[%s1582_s1 + $0x28] sm:$0xff] (!%p160_p2)   ;;  %vm658_vm1 = vcmask (!%p160_p2), 64512  }
   0x7   : > { %498 = vmatpush1.bf16.msra.mxu0 (!%p160_p2), %v1042_v0  ;;  %1023 = vmatpush1.bf16.msra.mxu1 (!%p160_p2), %v1042_v0  ;;  %v1048_v9 = vld [vmem:[%s1582_s1 + $0x30] sm:$0xff] (!%p160_p2)   ;;  %v1049_v10 = vld [vmem:[%s1582_s1 + $0x38] sm:$0xff] (!%p160_p2)   ;;  %v1050_v11 = vld [vmem:[%s1582_s1 + $0x40] sm:$0xff] (!%p160_p2)   ;;  %p1010_p4 = scmp.ne.s32.totalorder (!%p160_p2), %s943_s16, 0 }
   0x8   : > { %499 = vmatprep.subr.bf16.mxu0 (!%p160_p2), %v1107_v1  ;;  %1015 = vmatprep.subr.bf16.mxu1 (!%p160_p2), %v1107_v1 }
   0xb   : > { %500 = vmatpush1.bf16.msra.mxu0 (!%p160_p2), %v1043_v2  ;;  %1024 = vmatpush1.bf16.msra.mxu1 (!%p160_p2), %v1043_v2 }
   0xc   : > { %501 = vmatprep.subr.bf16.mxu0 (!%p160_p2), %v1107_v1  ;;  %1016 = vmatprep.subr.bf16.mxu1 (!%p160_p2), %v1107_v1 }
   0xd   : > { %s1587_s19 = smov (!%p187_p3, %s948_s19), 63  ;;  %vm695_vm2 = vcmask (!%p1010_p4), 57344  }
   0xe   : > { %s1013_s24 = sshll.u32 %s1587_s19, 3 }
   0xf   : > { %s1161_s27 = scalar_lea.vmem %s1581_s0, %s1013_s24  ;;  %502 = vmatpush1.bf16.msra.mxu0 %v1044_v3  ;;  %1025 = vmatpush1.bf16.msra.mxu1 %v1044_v3  ;;  %s1234_s18 = scalar_lea.vmem %s1583_s2, %s1013_s24 }
  0x10   : > { %v1053_v5 = vld [vmem:[%s1161_s27 + $0x4] ss:$8 sps:$4 sm:$0xff]   ;;  %503 = vmatprep.subr.bf16.mxu0 %v1107_v1  ;;  %1017 = vmatprep.subr.bf16.mxu1 %v1107_v1  ;;  %v1051_v12 = vld [vmem:[%s1161_s27] ss:$8 sps:$4 sm:$0xff]   ;;  %v1057_v14 = vld [vmem:[%s1161_s27 + $0x14] ss:$8 sps:$4 sm:$0xff]  }
  0x11   : > { %v1056_v6 = vld [vmem:[%s1161_s27 + $0x84] ss:$8 sps:$4 sm:$0xff]   ;;  %994 = vmatprep.mubr.msk.bf16.mxu0 %vm448_vm0, %v1053_v5  ;;  %v1054_v13 = vld [vmem:[%s1161_s27 + $0x80] ss:$8 sps:$4 sm:$0xff]   ;;  %v1059_v15 = vld [vmem:[%s1161_s27 + $0x94] ss:$8 sps:$4 sm:$0xff]  }
  0x12   : > { %1002 = vmatprep.mubr.msk.bf16.mxu1 %vm448_vm0, %v1056_v6  ;;  %v1061_v16 = vld [vmem:[%s1161_s27 + $0x10] ss:$8 sps:$4 sm:$0xff]   ;;  %v1063_v18 = vld [vmem:[%s1161_s27 + $0x24] ss:$8 sps:$4 sm:$0xff]   ;;  %v1067_v20 = vld [vmem:[%s1161_s27 + $0x20] ss:$8 sps:$4 sm:$0xff]  }
  0x13   : > { %504 = vmatpush1.bf16.msra.mxu0 %v1045_v4  ;;  %1026 = vmatpush1.bf16.msra.mxu1 %v1045_v4  ;;  %v1062_v17 = vld [vmem:[%s1161_s27 + $0x90] ss:$8 sps:$4 sm:$0xff]   ;;  %v1065_v19 = vld [vmem:[%s1161_s27 + $0xa4] ss:$8 sps:$4 sm:$0xff]   ;;  %v1068_v21 = vld [vmem:[%s1161_s27 + $0xa0] ss:$8 sps:$4 sm:$0xff]  }
  0x14   : > { %505 = vmatprep.subr.bf16.mxu0 %v1107_v1  ;;  %1018 = vmatprep.subr.bf16.mxu1 %v1107_v1  ;;  %v1069_v22 = vld [vmem:[%s1161_s27 + $0x34] ss:$8 sps:$4 sm:$0xff]   ;;  %v1073_v24 = vld [vmem:[%s1161_s27 + $0x30] ss:$8 sps:$4 sm:$0xff]   ;;  %v1075_v26 = vld [vmem:[%s1161_s27 + $0x44] ss:$8 sps:$4 sm:$0xff]  }
  0x15   : > { %v1071_v23 = vld [vmem:[%s1161_s27 + $0xb4] ss:$8 sps:$4 sm:$0xff]   ;;  %v1074_v25 = vld [vmem:[%s1161_s27 + $0xb0] ss:$8 sps:$4 sm:$0xff]   ;;  %v1077_v27 = vld [vmem:[%s1161_s27 + $0xc4] ss:$8 sps:$4 sm:$0xff]  }
  0x16   : > { %v1079_v28 = vld [vmem:[%s1161_s27 + $0x40] ss:$8 sps:$4 sm:$0xff]   ;;  %v1081_v30 = vld [vmem:[%s1161_s27 + $0x54] ss:$8 sps:$4 sm:$0xff]   ;;  %v1085_v32 = vld [vmem:[%s1161_s27 + $0x50] ss:$8 sps:$4 sm:$0xff]  }
  0x17   : > { %506 = vmatpush1.bf16.msra.mxu0 %v1046_v7  ;;  %1027 = vmatpush1.bf16.msra.mxu1 %v1046_v7  ;;  %v1080_v29 = vld [vmem:[%s1161_s27 + $0xc0] ss:$8 sps:$4 sm:$0xff]   ;;  %v1083_v31 = vld [vmem:[%s1161_s27 + $0xd4] ss:$8 sps:$4 sm:$0xff]   ;;  %v1086_v33 = vld [vmem:[%s1161_s27 + $0xd0] ss:$8 sps:$4 sm:$0xff]  }
  0x18   : > { %507 = vmatprep.subr.bf16.mxu0 %v1107_v1  ;;  %1019 = vmatprep.subr.bf16.mxu1 %v1107_v1  ;;  %v1087_v34 = vld [vmem:[%s1161_s27 + $0x64] ss:$8 sps:$4 sm:$0xff]   ;;  %v1091_v36 = vld [vmem:[%s1161_s27 + $0x60] ss:$8 sps:$4 sm:$0xff]   ;;  %v1093_v38 = vld [vmem:[%s1161_s27 + $0x74] ss:$8 sps:$4 sm:$0xff]  }
  0x19   : > { %v1089_v35 = vld [vmem:[%s1161_s27 + $0xe4] ss:$8 sps:$4 sm:$0xff]   ;;  %v1092_v37 = vld [vmem:[%s1161_s27 + $0xe0] ss:$8 sps:$4 sm:$0xff]   ;;  %v1095_v39 = vld [vmem:[%s1161_s27 + $0xf4] ss:$8 sps:$4 sm:$0xff]  }
  0x1a   : > { %v1097_v40 = vld [vmem:[%s1161_s27 + $0x70] ss:$8 sps:$4 sm:$0xff]  }
  0x1b   : > { %508 = vmatpush1.bf16.msra.mxu0 %v1047_v8  ;;  %1028 = vmatpush1.bf16.msra.mxu1 %v1047_v8  ;;  %v1098_v41 = vld [vmem:[%s1161_s27 + $0xf0] ss:$8 sps:$4 sm:$0xff]  }
  0x1c   : > { %509 = vmatprep.subr.bf16.mxu0 %v1107_v1  ;;  %1020 = vmatprep.subr.bf16.mxu1 %v1107_v1 }
  0x1f   : > { %510 = vmatpush1.bf16.msra.mxu0 %v1048_v9  ;;  %1029 = vmatpush1.bf16.msra.mxu1 %v1048_v9 }
  0x20   : > { %511 = vmatprep.subr.bf16.mxu0 %v1107_v1  ;;  %1021 = vmatprep.subr.bf16.mxu1 %v1107_v1 }
  0x23   : > { %512 = vmatpush1.bf16.msra.mxu0 %v1049_v10  ;;  %1030 = vmatpush1.bf16.msra.mxu1 %v1049_v10 }
  0x24   : > { %513 = vmatprep.subr.bf16.mxu0 %v1107_v1  ;;  %1022 = vmatprep.subr.bf16.mxu1 %v1107_v1 }
  0x27   : > { %514 = vmatpush1.bf16.msra.mxu0 %v1050_v11  ;;  %1031 = vmatpush1.bf16.msra.mxu1 %v1050_v11 }
  0x2a   : > { %530 = vmatmul.mubr.bf16.vlgmr.msra.gmra.mrb[0].mxu0 %v1051_v12  ;;  %594 = vmatmul.mubr.bf16.vlgmr.msra.gmra.mrb[0].mxu1 %v1054_v13 }
  0x2b   : > { %995 = vmatprep.mubr.msk.bf16.mxu0 %vm448_vm0, %v1057_v14  ;;  %1003 = vmatprep.mubr.msk.bf16.mxu1 %vm448_vm0, %v1059_v15 }
  0x32   : > { %538 = vmatmul.mubr.bf16.gmra.mrb[4].mxu0 %v1061_v16  ;;  %602 = vmatmul.mubr.bf16.gmra.mrb[4].mxu1 %v1062_v17 }
  0x33   : > { %996 = vmatprep.mubr.msk.bf16.mxu0 %vm448_vm0, %v1063_v18  ;;  %1004 = vmatprep.mubr.msk.bf16.mxu1 %vm448_vm0, %v1065_v19 }
  0x3a   : > { %546 = vmatmul.mubr.bf16.gmra.mrb[8].mxu0 %v1067_v20  ;;  %610 = vmatmul.mubr.bf16.gmra.mrb[8].mxu1 %v1068_v21 }
  0x3b   : > { %997 = vmatprep.mubr.msk.bf16.mxu0 %vm448_vm0, %v1069_v22  ;;  %1005 = vmatprep.mubr.msk.bf16.mxu1 %vm448_vm0, %v1071_v23 }
  0x42   : > { %554 = vmatmul.mubr.bf16.gmra.mrb[12].mxu0 %v1073_v24  ;;  %618 = vmatmul.mubr.bf16.gmra.mrb[12].mxu1 %v1074_v25 }
  0x43   : > { %998 = vmatprep.mubr.msk.bf16.mxu0 %vm448_vm0, %v1075_v26  ;;  %1006 = vmatprep.mubr.msk.bf16.mxu1 %vm448_vm0, %v1077_v27 }
  0x4a   : > { %562 = vmatmul.mubr.bf16.gmra.mrb[16].mxu0 %v1079_v28  ;;  %626 = vmatmul.mubr.bf16.gmra.mrb[16].mxu1 %v1080_v29 }
  0x4b   : > { %999 = vmatprep.mubr.msk.bf16.mxu0 %vm448_vm0, %v1081_v30  ;;  %1007 = vmatprep.mubr.msk.bf16.mxu1 %vm448_vm0, %v1083_v31 }
  0x52   : > { %570 = vmatmul.mubr.bf16.gmra.mrb[20].mxu0 %v1085_v32  ;;  %634 = vmatmul.mubr.bf16.gmra.mrb[20].mxu1 %v1086_v33 }
  0x53   : > { %1000 = vmatprep.mubr.msk.bf16.mxu0 %vm448_vm0, %v1087_v34  ;;  %1008 = vmatprep.mubr.msk.bf16.mxu1 %vm448_vm0, %v1089_v35 }
  0x5a   : > { %578 = vmatmul.mubr.bf16.gmra.mrb[24].mxu0 %v1091_v36  ;;  %642 = vmatmul.mubr.bf16.gmra.mrb[24].mxu1 %v1092_v37 }
  0x5b   : > { %1001 = vmatprep.mubr.msk.bf16.mxu0 %vm448_vm0, %v1093_v38  ;;  %1009 = vmatprep.mubr.msk.bf16.mxu1 %vm448_vm0, %v1095_v39 }
  0x62   : > { %586 = vmatmul.mubr.bf16.gmra.mrb[28].mxu0 %v1097_v40  ;;  %650 = vmatmul.mubr.bf16.gmra.mrb[28].mxu1 %v1098_v41 }
  0xfd   : > { %v1236_v42 = vpop.f32.mrb[0].mxu0  ;;  %v1238_v43 = vpop.f32.mrb[0].mxu1 }
  0xfe   : > { %659 = vst.msk [vmem:[%s1234_s18] sm:$0xff] %vm658_vm1, %v1236_v42  ;;  %675 = vst.msk [vmem:[%s1234_s18 + $0x80] sm:$0xff] %vm658_vm1, %v1238_v43  ;;  %v533_v44 = vpop.f32.mrb[1].mxu0  ;;  %v597_v45 = vpop.f32.mrb[1].mxu1 }
  0xff   : > { %v1246_v46 = vpop.f32.mrb[2].mxu0  ;;  %v1248_v47 = vpop.f32.mrb[2].mxu1  ;;  %v1108_v44 = vmov (!%p1010_p4), 0.0  }
 0x100   : > { %660 = vst.msk [vmem:[%s1234_s18 + $0x8] sm:$0xff] %vm658_vm1, %v1246_v46  ;;  %676 = vst.msk [vmem:[%s1234_s18 + $0x88] sm:$0xff] %vm658_vm1, %v1248_v47  ;;  %v536_v48 = vpop.f32.mrb[3].mxu0  ;;  %v600_v49 = vpop.f32.mrb[3].mxu1 }
 0x101   : > { %696 = vst.msk [vmem:[%s1584_s3] sm:$0x1] (!%p1010_p4), %vm695_vm2, %v1108_v44  ;;  %697 = vst.msk [vmem:[%s1585_s4] sm:$0x1] (!%p1010_p4), %vm695_vm2, %v1108_v44 }
 0x105   : > { %v1256_v50 = vpop.f32.mrb[4].mxu0  ;;  %v1258_v51 = vpop.f32.mrb[4].mxu1 }
 0x106   : > { %661 = vst.msk [vmem:[%s1234_s18 + $0x10] sm:$0xff] %vm658_vm1, %v1256_v50  ;;  %677 = vst.msk [vmem:[%s1234_s18 + $0x90] sm:$0xff] %vm658_vm1, %v1258_v51  ;;  %v541_v52 = vpop.f32.mrb[5].mxu0  ;;  %v605_v53 = vpop.f32.mrb[5].mxu1 }
 0x107   : > { %v1266_v54 = vpop.f32.mrb[6].mxu0  ;;  %v1268_v55 = vpop.f32.mrb[6].mxu1 }
 0x108   : > { %662 = vst.msk [vmem:[%s1234_s18 + $0x18] sm:$0xff] %vm658_vm1, %v1266_v54  ;;  %678 = vst.msk [vmem:[%s1234_s18 + $0x98] sm:$0xff] %vm658_vm1, %v1268_v55  ;;  %v544_v56 = vpop.f32.mrb[7].mxu0  ;;  %v608_v57 = vpop.f32.mrb[7].mxu1 }
 0x10d   : > { %v1276_v58 = vpop.f32.mrb[8].mxu0  ;;  %v1278_v59 = vpop.f32.mrb[8].mxu1 }
 0x10e   : > { %663 = vst.msk [vmem:[%s1234_s18 + $0x20] sm:$0xff] %vm658_vm1, %v1276_v58  ;;  %679 = vst.msk [vmem:[%s1234_s18 + $0xa0] sm:$0xff] %vm658_vm1, %v1278_v59  ;;  %v549_v60 = vpop.f32.mrb[9].mxu0  ;;  %v613_v61 = vpop.f32.mrb[9].mxu1 }
 0x10f   : > { %v1286_v62 = vpop.f32.mrb[10].mxu0  ;;  %v1288_v63 = vpop.f32.mrb[10].mxu1 }
 0x110   : > { %664 = vst.msk [vmem:[%s1234_s18 + $0x28] sm:$0xff] %vm658_vm1, %v1286_v62  ;;  %680 = vst.msk [vmem:[%s1234_s18 + $0xa8] sm:$0xff] %vm658_vm1, %v1288_v63  ;;  %v552_v0 = vpop.f32.mrb[11].mxu0  ;;  %v616_v1 = vpop.f32.mrb[11].mxu1 }
 0x115   : > { %v1296_v2 = vpop.f32.mrb[12].mxu0  ;;  %v1298_v3 = vpop.f32.mrb[12].mxu1 }
 0x116   : > { %665 = vst.msk [vmem:[%s1234_s18 + $0x30] sm:$0xff] %vm658_vm1, %v1296_v2  ;;  %681 = vst.msk [vmem:[%s1234_s18 + $0xb0] sm:$0xff] %vm658_vm1, %v1298_v3  ;;  %v557_v4 = vpop.f32.mrb[13].mxu0  ;;  %v621_v5 = vpop.f32.mrb[13].mxu1 }
 0x117   : > { %v1306_v6 = vpop.f32.mrb[14].mxu0  ;;  %v1308_v7 = vpop.f32.mrb[14].mxu1 }
 0x118   : > { %666 = vst.msk [vmem:[%s1234_s18 + $0x38] sm:$0xff] %vm658_vm1, %v1306_v6  ;;  %682 = vst.msk [vmem:[%s1234_s18 + $0xb8] sm:$0xff] %vm658_vm1, %v1308_v7  ;;  %v560_v8 = vpop.f32.mrb[15].mxu0  ;;  %v624_v9 = vpop.f32.mrb[15].mxu1 }
 0x11d   : > { %v1316_v10 = vpop.f32.mrb[16].mxu0  ;;  %v1318_v11 = vpop.f32.mrb[16].mxu1 }
 0x11e   : > { %667 = vst.msk [vmem:[%s1234_s18 + $0x40] sm:$0xff] %vm658_vm1, %v1316_v10  ;;  %683 = vst.msk [vmem:[%s1234_s18 + $0xc0] sm:$0xff] %vm658_vm1, %v1318_v11  ;;  %v565_v12 = vpop.f32.mrb[17].mxu0  ;;  %v629_v13 = vpop.f32.mrb[17].mxu1 }
 0x11f   : > { %v1326_v14 = vpop.f32.mrb[18].mxu0  ;;  %v1328_v15 = vpop.f32.mrb[18].mxu1 }
 0x120   : > { %668 = vst.msk [vmem:[%s1234_s18 + $0x48] sm:$0xff] %vm658_vm1, %v1326_v14  ;;  %684 = vst.msk [vmem:[%s1234_s18 + $0xc8] sm:$0xff] %vm658_vm1, %v1328_v15  ;;  %v568_v16 = vpop.f32.mrb[19].mxu0  ;;  %v632_v17 = vpop.f32.mrb[19].mxu1 }
 0x125   : > { %v1336_v18 = vpop.f32.mrb[20].mxu0  ;;  %v1338_v19 = vpop.f32.mrb[20].mxu1 }
 0x126   : > { %669 = vst.msk [vmem:[%s1234_s18 + $0x50] sm:$0xff] %vm658_vm1, %v1336_v18  ;;  %685 = vst.msk [vmem:[%s1234_s18 + $0xd0] sm:$0xff] %vm658_vm1, %v1338_v19  ;;  %v573_v20 = vpop.f32.mrb[21].mxu0  ;;  %v637_v21 = vpop.f32.mrb[21].mxu1 }
 0x127   : > { %v1346_v22 = vpop.f32.mrb[22].mxu0  ;;  %v1348_v23 = vpop.f32.mrb[22].mxu1 }
 0x128   : > { %670 = vst.msk [vmem:[%s1234_s18 + $0x58] sm:$0xff] %vm658_vm1, %v1346_v22  ;;  %686 = vst.msk [vmem:[%s1234_s18 + $0xd8] sm:$0xff] %vm658_vm1, %v1348_v23  ;;  %v576_v24 = vpop.f32.mrb[23].mxu0  ;;  %v640_v25 = vpop.f32.mrb[23].mxu1 }
 0x12d   : > { %v1356_v26 = vpop.f32.mrb[24].mxu0  ;;  %v1358_v27 = vpop.f32.mrb[24].mxu1 }
 0x12e   : > { %671 = vst.msk [vmem:[%s1234_s18 + $0x60] sm:$0xff] %vm658_vm1, %v1356_v26  ;;  %687 = vst.msk [vmem:[%s1234_s18 + $0xe0] sm:$0xff] %vm658_vm1, %v1358_v27  ;;  %v581_v28 = vpop.f32.mrb[25].mxu0  ;;  %v645_v29 = vpop.f32.mrb[25].mxu1 }
 0x12f   : > { %v1366_v30 = vpop.f32.mrb[26].mxu0  ;;  %v1368_v31 = vpop.f32.mrb[26].mxu1 }
 0x130   : > { %672 = vst.msk [vmem:[%s1234_s18 + $0x68] sm:$0xff] %vm658_vm1, %v1366_v30  ;;  %688 = vst.msk [vmem:[%s1234_s18 + $0xe8] sm:$0xff] %vm658_vm1, %v1368_v31  ;;  %v584_v32 = vpop.f32.mrb[27].mxu0  ;;  %v648_v33 = vpop.f32.mrb[27].mxu1 }
 0x132   : > { %694 = sbr.rel (%p1010_p4) target bundleno = 313 (0x139), region = 32 }
 0x135   : > { %v1376_v34 = vpop.f32.mrb[28].mxu0  ;;  %v1378_v35 = vpop.f32.mrb[28].mxu1 }
 0x136   : > { %673 = vst.msk [vmem:[%s1234_s18 + $0x70] sm:$0xff] %vm658_vm1, %v1376_v34  ;;  %689 = vst.msk [vmem:[%s1234_s18 + $0xf0] sm:$0xff] %vm658_vm1, %v1378_v35  ;;  %v589_v36 = vpop.f32.mrb[29].mxu0  ;;  %v653_v37 = vpop.f32.mrb[29].mxu1 }
 0x137   : > { %v1386_v38 = vpop.f32.mrb[30].mxu0  ;;  %v1388_v39 = vpop.f32.mrb[30].mxu1 }
 0x138   : > { %674 = vst.msk [vmem:[%s1234_s18 + $0x78] sm:$0xff] %vm658_vm1, %v1386_v38  ;;  %690 = vst.msk [vmem:[%s1234_s18 + $0xf8] sm:$0xff] %vm658_vm1, %v1388_v39  ;;  %v592_v40 = vpop.f32.mrb[31].mxu0  ;;  %v656_v41 = vpop.f32.mrb[31].mxu1 }
 0x139 PF: > { %v699_v45 = vsel %vm658_vm1, %v1236_v42, 0.0  ;;  %v700_v48 = vsel %vm658_vm1, %v1246_v46, 0.0  ;;  %v702_v49 = vsel %vm658_vm1, %v1256_v50, 0.0  ;;  %v704_v53 = vsel %vm658_vm1, %v1266_v54, 0.0 }
 0x13a   : > { %v701_v52 = vadd.f32 %v700_v48, %v699_v45  ;;  %v706_v57 = vsel %vm658_vm1, %v1276_v58, 0.0  ;;  %v708_v61 = vsel %vm658_vm1, %v1286_v62, 0.0  ;;  %v710_v1 = vsel %vm658_vm1, %v1296_v2, 0.0 }
 0x13b   : > { %v712_v5 = vsel %vm658_vm1, %v1306_v6, 0.0  ;;  %v714_v9 = vsel %vm658_vm1, %v1316_v10, 0.0  ;;  %v716_v13 = vsel %vm658_vm1, %v1326_v14, 0.0  ;;  %v772_v16 = vmul.f32 %v1236_v42, %v1236_v42 }
 0x13c   : > { %v703_v56 = vadd.f32 %v702_v49, %v701_v52  ;;  %v773_v17 = vmul.f32 %v1246_v46, %v1246_v46  ;;  %v774_v21 = vmul.f32 %v1256_v50, %v1256_v50  ;;  %v718_v24 = vsel %vm658_vm1, %v1336_v18, 0.0 }
 0x13d   : > { %v775_v25 = vmul.f32 %v1266_v54, %v1266_v54  ;;  %v720_v29 = vsel %vm658_vm1, %v1346_v22, 0.0  ;;  %v776_v42 = vmul.f32 %v1276_v58, %v1276_v58  ;;  %v804_v32 = vsel %vm658_vm1, %v772_v16, 0.0 }
 0x13e   : > { %v705_v60 = vadd.f32 %v704_v53, %v703_v56  ;;  %v805_v46 = vsel %vm658_vm1, %v773_v17, 0.0  ;;  %v807_v50 = vsel %vm658_vm1, %v774_v21, 0.0  ;;  %v722_v37 = vsel %vm658_vm1, %v1356_v26, 0.0 }
 0x13f   : > { %v806_v36 = vadd.f32 %v805_v46, %v804_v32  ;;  %v777_v54 = vmul.f32 %v1286_v62, %v1286_v62  ;;  %v809_v40 = vsel %vm658_vm1, %v775_v25, 0.0  ;;  %v724_v58 = vsel %vm658_vm1, %v1366_v30, 0.0 }
 0x140   : > { %v707_v0 = vadd.f32 %v706_v57, %v705_v60  ;;  %v778_v45 = vmul.f32 %v1296_v2, %v1296_v2  ;;  %v811_v48 = vsel %vm658_vm1, %v776_v42, 0.0  ;;  %v726_v53 = vsel %vm658_vm1, %v1376_v34, 0.0 }
 0x141   : > { %v808_v44 = vadd.f32 %v807_v50, %v806_v36  ;;  %v779_v62 = vmul.f32 %v1306_v6, %v1306_v6  ;;  %v813_v56 = vsel %vm658_vm1, %v777_v54, 0.0  ;;  %v780_v2 = vmul.f32 %v1316_v10, %v1316_v10 }
 0x142   : > { %v709_v4 = vadd.f32 %v708_v61, %v707_v0  ;;  %v728_v61 = vsel %vm658_vm1, %v1386_v38, 0.0  ;;  %v815_v0 = vsel %vm658_vm1, %v778_v45, 0.0  ;;  %v781_v6 = vmul.f32 %v1326_v14, %v1326_v14 }
 0x143   : > { %v810_v52 = vadd.f32 %v809_v40, %v808_v44  ;;  %v782_v10 = vmul.f32 %v1336_v18, %v1336_v18  ;;  %v819_v16 = vsel %vm658_vm1, %v780_v2, 0.0  ;;  %v734_v21 = vsel %vm658_vm1, %v1258_v51, 0.0 }
 0x144   : > { %v711_v8 = vadd.f32 %v710_v1, %v709_v4  ;;  %v783_v14 = vmul.f32 %v1346_v22, %v1346_v22  ;;  %v784_v18 = vmul.f32 %v1356_v26, %v1356_v26  ;;  %v785_v22 = vmul.f32 %v1366_v30, %v1366_v30 }
 0x145   : > { %v812_v60 = vadd.f32 %v811_v48, %v810_v52  ;;  %v823_v42 = vsel %vm658_vm1, %v782_v10, 0.0  ;;  %v740_v54 = vsel %vm658_vm1, %v1288_v63, 0.0  ;;  %v786_v26 = vmul.f32 %v1376_v34, %v1376_v34 }
 0x146   : > { %v713_v12 = vadd.f32 %v712_v5, %v711_v8  ;;  %v730_v5 = vsel %vm658_vm1, %v1238_v43, 0.0  ;;  %v817_v8 = vsel %vm658_vm1, %v779_v62, 0.0  ;;  %v825_v36 = vsel %vm658_vm1, %v783_v14, 0.0 }
 0x147   : > { %v814_v4 = vadd.f32 %v813_v56, %v812_v60  ;;  %v827_v40 = vsel %vm658_vm1, %v784_v18, 0.0  ;;  %v787_v30 = vmul.f32 %v1386_v38, %v1386_v38  ;;  %v829_v45 = vsel %vm658_vm1, %v785_v22, 0.0 }
 0x148   : > { %v715_v20 = vadd.f32 %v714_v9, %v713_v12  ;;  %v744_v52 = vsel %vm658_vm1, %v1308_v7, 0.0  ;;  %v788_v34 = vmul.f32 %v1238_v43, %v1238_v43  ;;  %v789_v38 = vmul.f32 %v1248_v47, %v1248_v47 }
 0x149   : > { %v816_v12 = vadd.f32 %v815_v0, %v814_v4  ;;  %v833_v60 = vsel %vm658_vm1, %v787_v30, 0.0  ;;  %v748_v0 = vsel %vm658_vm1, %v1328_v15, 0.0  ;;  %v790_v43 = vmul.f32 %v1258_v51, %v1258_v51 }
 0x14a   : > { %v717_v28 = vadd.f32 %v716_v13, %v715_v20  ;;  %v732_v13 = vsel %vm658_vm1, %v1248_v47, 0.0  ;;  %v791_v47 = vmul.f32 %v1268_v55, %v1268_v55  ;;  %v792_v51 = vmul.f32 %v1278_v59, %v1278_v59 }
 0x14b   : > { %v818_v20 = vadd.f32 %v817_v8, %v816_v12  ;;  %v837_v8 = vsel %vm658_vm1, %v789_v38, 0.0  ;;  %v839_v10 = vsel %vm658_vm1, %v790_v43, 0.0  ;;  %v760_v22 = vsel %vm658_vm1, %v1388_v39, 0.0 }
 0x14c   : > { %v719_v33 = vadd.f32 %v718_v24, %v717_v28  ;;  %v821_v24 = vsel %vm658_vm1, %v781_v6, 0.0  ;;  %v750_v6 = vsel %vm658_vm1, %v1338_v19, 0.0  ;;  %vm769_vm3 = vcmask 57344  }
 0x14d   : > { %v820_v28 = vadd.f32 %v819_v16, %v818_v20  ;;  %v754_v20 = vsel %vm658_vm1, %v1358_v27, 0.0 }
 0x14e   : > { %v721_v41 = vadd.f32 %v720_v29, %v719_v33  ;;  %v736_v29 = vsel %vm658_vm1, %v1268_v55, 0.0  ;;  %v738_v33 = vsel %vm658_vm1, %v1278_v59, 0.0  ;;  %v793_v55 = vmul.f32 %v1288_v63, %v1288_v63 }
 0x14f   : > { %v822_v46 = vadd.f32 %v821_v24, %v820_v28  ;;  %v794_v59 = vmul.f32 %v1298_v3, %v1298_v3  ;;  %v843_v28 = vsel %vm658_vm1, %v792_v51, 0.0  ;;  %v795_v63 = vmul.f32 %v1308_v7, %v1308_v7  ;;  %v771_v51 = vld [vmem:[%s1585_s4] sm:$0x1] }
 0x150   : > { %v723_v49 = vadd.f32 %v722_v37, %v721_v41 }
 0x151   : > { %v824_v37 = vadd.f32 %v823_v42, %v822_v46  ;;  %v758_v42 = vsel %vm658_vm1, %v1378_v35, 0.0 }
 0x152   : > { %v725_v57 = vadd.f32 %v724_v58, %v723_v49  ;;  %v742_v58 = vsel %vm658_vm1, %v1298_v3, 0.0  ;;  %v796_v3 = vmul.f32 %v1318_v11, %v1318_v11 }
 0x153   : > { %v826_v44 = vadd.f32 %v825_v36, %v824_v37  ;;  %v847_v36 = vsel %vm658_vm1, %v794_v59, 0.0 }
 0x154   : > { %v727_v1 = vadd.f32 %v726_v53, %v725_v57  ;;  %v831_v53 = vsel %vm658_vm1, %v786_v26, 0.0  ;;  %v746_v57 = vsel %vm658_vm1, %v1318_v11, 0.0  ;;  %v849_v26 = vsel %vm658_vm1, %v795_v63, 0.0 }
 0x155   : > { %v828_v49 = vadd.f32 %v827_v40, %v826_v44  ;;  %v851_v44 = vsel %vm658_vm1, %v796_v3, 0.0  ;;  %v799_v11 = vmul.f32 %v1348_v23, %v1348_v23 }
 0x156   : > { %v729_v9 = vadd.f32 %v728_v61, %v727_v1  ;;  %v835_v1 = vsel %vm658_vm1, %v788_v34, 0.0 }
 0x157   : > { %v830_v56 = vadd.f32 %v829_v45, %v828_v49 }
 0x158   : > { %v731_v17 = vadd.f32 %v730_v5, %v729_v9 }
 0x159   : > { %v832_v2 = vadd.f32 %v831_v53, %v830_v56 }
 0x15a   : > { %v733_v25 = vadd.f32 %v732_v13, %v731_v17  ;;  %v752_v13 = vsel %vm658_vm1, %v1348_v23, 0.0  ;;  %v802_v23 = vmul.f32 %v1378_v35, %v1378_v35 }
 0x15b   : > { %v834_v5 = vadd.f32 %v833_v60, %v832_v2  ;;  %v803_v2 = vmul.f32 %v1388_v39, %v1388_v39 }
 0x15c   : > { %v735_v32 = vadd.f32 %v734_v21, %v733_v25  ;;  %v841_v21 = vsel %vm658_vm1, %v791_v47, 0.0  ;;  %v756_v25 = vsel %vm658_vm1, %v1368_v31, 0.0 }
 0x15d   : > { %v836_v12 = vadd.f32 %v835_v1, %v834_v5  ;;  %v863_v1 = vsel %vm658_vm1, %v802_v23, 0.0  ;;  %v865_v5 = vsel %vm658_vm1, %v803_v2, 0.0 }
 0x15e   : > { %v737_v50 = vadd.f32 %v736_v29, %v735_v32  ;;  %v845_v32 = vsel %vm658_vm1, %v793_v55, 0.0 }
 0x15f   : > { %v838_v17 = vadd.f32 %v837_v8, %v836_v12 }
 0x160   : > { %v739_v41 = vadd.f32 %v738_v33, %v737_v50 }
 0x161   : > { %v840_v24 = vadd.f32 %v839_v10, %v838_v17 }
 0x162   : > { %v741_v48 = vadd.f32 %v740_v54, %v739_v41  ;;  %v797_v54 = vmul.f32 %v1328_v15, %v1328_v15  ;;  %v798_v41 = vmul.f32 %v1338_v19, %v1338_v19  ;;  %v800_v15 = vmul.f32 %v1358_v27, %v1358_v27  ;;  %v698_v27 = vld [vmem:[%s1584_s3] sm:$0x1] }
 0x163   : > { %v842_v18 = vadd.f32 %v841_v21, %v840_v24  ;;  %v801_v19 = vmul.f32 %v1368_v31, %v1368_v31 }
 0x164   : > { %v743_v62 = vadd.f32 %v742_v58, %v741_v48  ;;  %v853_v45 = vsel %vm658_vm1, %v797_v54, 0.0  ;;  %v859_v38 = vsel %vm658_vm1, %v800_v15, 0.0 }
 0x165   : > { %v844_v33 = vadd.f32 %v843_v28, %v842_v18  ;;  %v861_v31 = vsel %vm658_vm1, %v801_v19, 0.0 }
 0x166   : > { %v745_v61 = vadd.f32 %v744_v52, %v743_v62  ;;  %v855_v52 = vsel %vm658_vm1, %v798_v41, 0.0  ;;  %v857_v62 = vsel %vm658_vm1, %v799_v11, 0.0 }
 0x167   : > { %v846_v37 = vadd.f32 %v845_v32, %v844_v33 }
 0x168   : > { %v747_v4 = vadd.f32 %v746_v57, %v745_v61 }
 0x169   : > { %v848_v40 = vadd.f32 %v847_v36, %v846_v37 }
 0x16a   : > { %v749_v9 = vadd.f32 %v748_v0, %v747_v4 }
 0x16b   : > { %v850_v30 = vadd.f32 %v849_v26, %v848_v40 }
 0x16c   : > { %v751_v16 = vadd.f32 %v750_v6, %v749_v9 }
 0x16d   : > { %v852_v49 = vadd.f32 %v851_v44, %v850_v30 }
 0x16e   : > { %v753_v14 = vadd.f32 %v752_v13, %v751_v16 }
 0x16f   : > { %v854_v53 = vadd.f32 %v853_v45, %v852_v49 }
 0x170   : > { %v755_v29 = vadd.f32 %v754_v20, %v753_v14 }
 0x171   : > { %v856_v57 = vadd.f32 %v855_v52, %v854_v53 }
 0x172   : > { %v757_v46 = vadd.f32 %v756_v25, %v755_v29 }
 0x173   : > { %v858_v61 = vadd.f32 %v857_v62, %v856_v57 }
 0x174   : > { %v759_v50 = vadd.f32 %v758_v42, %v757_v46 }
 0x175   : > { %v860_v43 = vadd.f32 %v859_v38, %v858_v61 }
 0x176   : > { %v761_v7 = vadd.f32 %v760_v22, %v759_v50 }
 0x177   : > { %v862_v35 = vadd.f32 %v861_v31, %v860_v43 }
 0x178   : > { %v762_v58 = vrot.slane %v761_v7, 4 }
 0x179   : > { %v864_v6 = vadd.f32 %v863_v1, %v862_v35 }
 0x17a   : > { %v763_v48 = vadd.f32 %v762_v58, %v761_v7 }
 0x17b   : > { %v866_v47 = vadd.f32 %v865_v5, %v864_v6 }
 0x17c   : > { %v764_v34 = vrot.slane %v763_v48, 2 }
 0x17d   : > { %v867_v8 = vrot.slane %v866_v47, 4 }
 0x17e   : > { %v765_v56 = vadd.f32 %v764_v34, %v763_v48 }
 0x17f   : > { %v868_v39 = vadd.f32 %v867_v8, %v866_v47 }
 0x180   : > { %v766_v60 = vrot.slane %v765_v56, 1 }
 0x181   : > { %v869_v9 = vrot.slane %v868_v39, 2 }
 0x182   : > { %v767_v0 = vadd.f32 %v766_v60, %v765_v56 }
 0x183   : > { %v870_v12 = vadd.f32 %v869_v9, %v868_v39 }
 0x184   : > { %v768_v4 = vadd.f32 %v767_v0, %v698_v27 }
 0x185   : > { %v871_v13 = vrot.slane %v870_v12, 1 }
 0x186   : > { %770 = vst.msk [vmem:[%s1584_s3] sm:$0x1] %vm769_vm3, %v768_v4 }
 0x187   : > { %v872_v10 = vadd.f32 %v871_v13, %v870_v12 }
 0x189   : > { %v873_v16 = vadd.f32 %v872_v10, %v771_v51 }
 0x18b   : > { %874 = vst.msk [vmem:[%s1585_s4] sm:$0x1] %vm769_vm3, %v873_v16 }
 0x18c PF: > { %s15_s15 = sadd.s32 1, %s1105_s15  }
 0x18d   : > { %p12_p5 = scmp.ge.s32.totalorder %s15_s15, 4  }
 0x18f   :  { %14 = sbr.rel (!%p12_p5) target bundleno = 1 (0x1), region = 78 }

// kernel: _lambda_.50
= control target key start
LH: loop header
LB: loop body
LE: loop exit
PB: predicated region body
PF: predicated region fallthrough
CT: control target
= control target key end

     0   :  { %s1032_s15 = smov 0   ;;  %s1448_s0 = inlined_call_operand.vmem [shape: bf16[1536,72], index: 0, kind: input, shape index: {}]   ;;  %s1449_s1 = inlined_call_operand.vmem [shape: bf16[72,4], index: 1, kind: input, shape index: {}]   ;;  %s1450_s2 = inlined_call_operand.vmem [shape: f32[1536,4], index: 2, kind: output, shape index: {0}]   ;;  %s1451_s3 = inlined_call_operand.vmem [shape: f32[1,4], index: 3, kind: output, shape index: {1}]   ;;  %s1452_s4 = inlined_call_operand.vmem [shape: f32[1,4], index: 4, kind: output, shape index: {2}]  }
   0x1 LB: > { %s844_s16 = sadd.s32 4294967295, %s1004_s15   ;;  %p848_p0 = scmp.ge.s32.totalorder %s1004_s15, 1  ;;  %s1004_s15 = sphi %s1032_s15, %s15_s15  }
   0x2   : > { %p158_p1 = scmp.lt.s32.totalorder %s1004_s15, 7 }
   0x4   : > { %p159_p2 = pnand %p848_p0, %p158_p1 }
   0x5   : > { %v977_v0 = vld [vmem:[%s1449_s1] sm:$0xff] (!%p159_p2)   ;;  %v978_v1 = vld [vmem:[%s1449_s1 + $0x8] sm:$0xff] (!%p159_p2)   ;;  %s849_s21 = sshll.u32 (!%p159_p2), %s844_s16, 5  ;;  %v979_v2 = vld [vmem:[%s1449_s1 + $0x10] sm:$0xff] (!%p159_p2)   ;;  %vm345_vm0 = vcmask (!%p159_p2), 588800   ;;  %vm394_vm1 = vcmask (!%p159_p2), 1043456  }
   0x6   : > { %162 = sbr.rel (%p159_p2) target bundleno = 349 (0x15d), region = 28  ;;  %914 = vmatprep.subr.bf16.mxu0 (!%p159_p2), %v977_v0  ;;  %956 = vmatprep.subr.bf16.mxu1 (!%p159_p2), %v977_v0  ;;  %p185_p3 = scmp.lt.s32.totalorder (!%p159_p2), %s849_s21, 191  ;;  %v980_v3 = vld [vmem:[%s1449_s1 + $0x18] sm:$0xff] (!%p159_p2)   ;;  %v981_v6 = vld [vmem:[%s1449_s1 + $0x20] ss:$0 sps:$4 sm:$0xff] (!%p159_p2)   ;;  %vm559_vm2 = vcmask (!%p159_p2), 31744  }
   0x7   : > { %915 = vmatpush3.bf16.msra.mxu0 (!%p159_p2), %v977_v0  ;;  %961 = vmatpush3.bf16.msra.mxu1 (!%p159_p2), %v977_v0  ;;  %v396_v7 = vsel (!%p159_p2), %vm394_vm1, %v981_v6, 0  ;;  %p890_p4 = scmp.ne.s32.totalorder (!%p159_p2), %s844_s16, 0 }
   0x8   : > { %916 = vmatprep.subr.bf16.mxu0 (!%p159_p2), %v978_v1  ;;  %957 = vmatprep.subr.bf16.mxu1 (!%p159_p2), %v978_v1 }
   0xb   : > { %917 = vmatpush3.bf16.msra.mxu0 (!%p159_p2), %v978_v1  ;;  %962 = vmatpush3.bf16.msra.mxu1 (!%p159_p2), %v978_v1 }
   0xc   : > { %918 = vmatprep.subr.bf16.mxu0 (!%p159_p2), %v979_v2  ;;  %958 = vmatprep.subr.bf16.mxu1 (!%p159_p2), %v979_v2 }
   0xd   : > { %s1454_s21 = smov (!%p185_p3, %s849_s21), 191  ;;  %vm596_vm3 = vcmask (!%p890_p4), 24576   ;;  %v1006_v54 = vmov (!%p890_p4), 0.0  }
   0xe   : > { %s850_s24 = sshll.u32 %s1454_s21, 2  ;;  %s852_s6 = sshll.u32 %s1454_s21, 3  ;;  %597 = vst.msk [vmem:[%s1451_s3] sm:$0x1] (!%p890_p4), %vm596_vm3, %v1006_v54  ;;  %598 = vst.msk [vmem:[%s1452_s4] sm:$0x1] (!%p890_p4), %vm596_vm3, %v1006_v54 }
   0xf   : > { %s1060_s29 = scalar_lea.vmem %s1448_s0, %s850_s24  ;;  %919 = vmatpush3.bf16.msra.mxu0 %v979_v2  ;;  %963 = vmatpush3.bf16.msra.mxu1 %v979_v2  ;;  %s1101_s9 = scalar_lea.vmem %s1450_s2, %s852_s6 }
  0x10   : > { %v982_v4 = vld [vmem:[%s1060_s29] sm:$0xff]   ;;  %920 = vmatprep.subr.bf16.mxu0 %v980_v3  ;;  %959 = vmatprep.subr.bf16.mxu1 %v980_v3  ;;  %v984_v8 = vld [vmem:[%s1060_s29 + $0x8] sm:$0xff]   ;;  %v986_v10 = vld [vmem:[%s1060_s29 + $0x10] sm:$0xff]  }
  0x11   : > { %v983_v5 = vld [vmem:[%s1060_s29 + $0x40] sm:$0xff]   ;;  %924 = vmatprep.mubr.msk.bf16.mxu0 %vm345_vm0, %v982_v4  ;;  %v985_v9 = vld [vmem:[%s1060_s29 + $0x48] sm:$0xff]   ;;  %v987_v11 = vld [vmem:[%s1060_s29 + $0x50] sm:$0xff]  }
  0x12   : > { %940 = vmatprep.mubr.msk.bf16.mxu1 %vm345_vm0, %v983_v5  ;;  %v988_v12 = vld [vmem:[%s1060_s29 + $0x18] sm:$0xff]   ;;  %v990_v14 = vld [vmem:[%s1060_s29 + $0x20] sm:$0xff]   ;;  %v992_v16 = vld [vmem:[%s1060_s29 + $0x28] sm:$0xff]  }
  0x13   : > { %921 = vmatpush3.bf16.msra.mxu0 %v980_v3  ;;  %964 = vmatpush3.bf16.msra.mxu1 %v980_v3  ;;  %v989_v13 = vld [vmem:[%s1060_s29 + $0x58] sm:$0xff]   ;;  %v991_v15 = vld [vmem:[%s1060_s29 + $0x60] sm:$0xff]   ;;  %v993_v17 = vld [vmem:[%s1060_s29 + $0x68] sm:$0xff]  }
  0x14   : > { %966 = vmatprep.subr.msk.bf16.mxu0 %vm394_vm1, %v981_v6  ;;  %967 = vmatprep.subr.msk.bf16.mxu1 %vm394_vm1, %v981_v6  ;;  %v994_v18 = vld [vmem:[%s1060_s29 + $0x30] sm:$0xff]   ;;  %v996_v20 = vld [vmem:[%s1060_s29 + $0x38] sm:$0xff]  }
  0x15   : > { %v995_v19 = vld [vmem:[%s1060_s29 + $0x70] sm:$0xff]   ;;  %v997_v21 = vld [vmem:[%s1060_s29 + $0x78] sm:$0xff]  }
  0x17   : > { %923 = vmatpush3.bf16.msra.mxu0 %v396_v7  ;;  %965 = vmatpush3.bf16.msra.mxu1 %v396_v7 }
  0x1a   : > { %925 = vmatmul.mubr.msk.bf16.vlgmr.msra.gmra.mrb[0].mxu0 %vm345_vm0, %v984_v8  ;;  %941 = vmatmul.mubr.msk.bf16.vlgmr.msra.gmra.mrb[0].mxu1 %vm345_vm0, %v985_v9 }
  0x1b   : > { %928 = vmatprep.mubr.msk.bf16.mxu0 %vm345_vm0, %v986_v10  ;;  %944 = vmatprep.mubr.msk.bf16.mxu1 %vm345_vm0, %v987_v11 }
  0x22   : > { %929 = vmatmul.mubr.msk.bf16.gmra.mrb[4].mxu0 %vm345_vm0, %v988_v12  ;;  %945 = vmatmul.mubr.msk.bf16.gmra.mrb[4].mxu1 %vm345_vm0, %v989_v13 }
  0x23   : > { %932 = vmatprep.mubr.msk.bf16.mxu0 %vm345_vm0, %v990_v14  ;;  %948 = vmatprep.mubr.msk.bf16.mxu1 %vm345_vm0, %v991_v15 }
  0x2a   : > { %933 = vmatmul.mubr.msk.bf16.gmra.mrb[8].mxu0 %vm345_vm0, %v992_v16  ;;  %949 = vmatmul.mubr.msk.bf16.gmra.mrb[8].mxu1 %vm345_vm0, %v993_v17 }
  0x2b   : > { %936 = vmatprep.mubr.msk.bf16.mxu0 %vm345_vm0, %v994_v18  ;;  %952 = vmatprep.mubr.msk.bf16.mxu1 %vm345_vm0, %v995_v19 }
  0x32   : > { %937 = vmatmul.mubr.msk.bf16.gmra.mrb[12].mxu0 %vm345_vm0, %v996_v20  ;;  %953 = vmatmul.mubr.msk.bf16.gmra.mrb[12].mxu1 %vm345_vm0, %v997_v21 }
  0xed   : > { %v1103_v22 = vpop.f32.mrb[0].mxu0  ;;  %v1105_v23 = vpop.f32.mrb[0].mxu1 }
  0xee   : > { %562 = vst.msk [vmem:[%s1101_s9 + $0x10] sm:$0xff] %vm559_vm2, %v1103_v22  ;;  %578 = vst.msk [vmem:[%s1101_s9 + $0x90] sm:$0xff] %vm559_vm2, %v1105_v23  ;;  %v1113_v24 = vpop.f32.mrb[1].mxu0  ;;  %v1115_v25 = vpop.f32.mrb[1].mxu1 }
  0xef   : > { %560 = vst.msk [vmem:[%s1101_s9] sm:$0xff] %vm559_vm2, %v1113_v24  ;;  %576 = vst.msk [vmem:[%s1101_s9 + $0x80] sm:$0xff] %vm559_vm2, %v1115_v25  ;;  %v1123_v26 = vpop.f32.mrb[2].mxu0  ;;  %v1125_v27 = vpop.f32.mrb[2].mxu1 }
  0xf0   : > { %563 = vst.msk [vmem:[%s1101_s9 + $0x18] sm:$0xff] %vm559_vm2, %v1123_v26  ;;  %579 = vst.msk [vmem:[%s1101_s9 + $0x98] sm:$0xff] %vm559_vm2, %v1125_v27  ;;  %v1133_v28 = vpop.f32.mrb[3].mxu0  ;;  %v1135_v29 = vpop.f32.mrb[3].mxu1 }
  0xf1   : > { %561 = vst.msk [vmem:[%s1101_s9 + $0x8] sm:$0xff] %vm559_vm2, %v1133_v28  ;;  %577 = vst.msk [vmem:[%s1101_s9 + $0x88] sm:$0xff] %vm559_vm2, %v1135_v29 }
  0xf5   : > { %v1143_v30 = vpop.f32.mrb[4].mxu0  ;;  %v1145_v31 = vpop.f32.mrb[4].mxu1 }
  0xf6   : > { %566 = vst.msk [vmem:[%s1101_s9 + $0x30] sm:$0xff] %vm559_vm2, %v1143_v30  ;;  %582 = vst.msk [vmem:[%s1101_s9 + $0xb0] sm:$0xff] %vm559_vm2, %v1145_v31  ;;  %v1153_v32 = vpop.f32.mrb[5].mxu0  ;;  %v1155_v33 = vpop.f32.mrb[5].mxu1 }
  0xf7   : > { %564 = vst.msk [vmem:[%s1101_s9 + $0x20] sm:$0xff] %vm559_vm2, %v1153_v32  ;;  %580 = vst.msk [vmem:[%s1101_s9 + $0xa0] sm:$0xff] %vm559_vm2, %v1155_v33  ;;  %v1163_v34 = vpop.f32.mrb[6].mxu0  ;;  %v1165_v35 = vpop.f32.mrb[6].mxu1 }
  0xf8   : > { %567 = vst.msk [vmem:[%s1101_s9 + $0x38] sm:$0xff] %vm559_vm2, %v1163_v34  ;;  %583 = vst.msk [vmem:[%s1101_s9 + $0xb8] sm:$0xff] %vm559_vm2, %v1165_v35  ;;  %v1173_v36 = vpop.f32.mrb[7].mxu0  ;;  %v1175_v37 = vpop.f32.mrb[7].mxu1 }
  0xf9   : > { %565 = vst.msk [vmem:[%s1101_s9 + $0x28] sm:$0xff] %vm559_vm2, %v1173_v36  ;;  %581 = vst.msk [vmem:[%s1101_s9 + $0xa8] sm:$0xff] %vm559_vm2, %v1175_v37 }
  0xfd   : > { %v1183_v38 = vpop.f32.mrb[8].mxu0  ;;  %v1185_v39 = vpop.f32.mrb[8].mxu1 }
  0xfe   : > { %570 = vst.msk [vmem:[%s1101_s9 + $0x50] sm:$0xff] %vm559_vm2, %v1183_v38  ;;  %586 = vst.msk [vmem:[%s1101_s9 + $0xd0] sm:$0xff] %vm559_vm2, %v1185_v39  ;;  %v1193_v40 = vpop.f32.mrb[9].mxu0  ;;  %v1195_v41 = vpop.f32.mrb[9].mxu1 }
  0xff   : > { %568 = vst.msk [vmem:[%s1101_s9 + $0x40] sm:$0xff] %vm559_vm2, %v1193_v40  ;;  %584 = vst.msk [vmem:[%s1101_s9 + $0xc0] sm:$0xff] %vm559_vm2, %v1195_v41  ;;  %v1203_v42 = vpop.f32.mrb[10].mxu0  ;;  %v1205_v43 = vpop.f32.mrb[10].mxu1 }
 0x100   : > { %571 = vst.msk [vmem:[%s1101_s9 + $0x58] sm:$0xff] %vm559_vm2, %v1203_v42  ;;  %587 = vst.msk [vmem:[%s1101_s9 + $0xd8] sm:$0xff] %vm559_vm2, %v1205_v43  ;;  %v1213_v44 = vpop.f32.mrb[11].mxu0  ;;  %v1215_v45 = vpop.f32.mrb[11].mxu1 }
 0x101   : > { %569 = vst.msk [vmem:[%s1101_s9 + $0x48] sm:$0xff] %vm559_vm2, %v1213_v44  ;;  %585 = vst.msk [vmem:[%s1101_s9 + $0xc8] sm:$0xff] %vm559_vm2, %v1215_v45 }
 0x103   : > { %595 = sbr.rel (%p890_p4) target bundleno = 266 (0x10a), region = 32 }
 0x105   : > { %v1223_v46 = vpop.f32.mrb[12].mxu0  ;;  %v1225_v47 = vpop.f32.mrb[12].mxu1 }
 0x106   : > { %574 = vst.msk [vmem:[%s1101_s9 + $0x70] sm:$0xff] %vm559_vm2, %v1223_v46  ;;  %590 = vst.msk [vmem:[%s1101_s9 + $0xf0] sm:$0xff] %vm559_vm2, %v1225_v47  ;;  %v1233_v48 = vpop.f32.mrb[13].mxu0  ;;  %v1235_v49 = vpop.f32.mrb[13].mxu1 }
 0x107   : > { %572 = vst.msk [vmem:[%s1101_s9 + $0x60] sm:$0xff] %vm559_vm2, %v1233_v48  ;;  %588 = vst.msk [vmem:[%s1101_s9 + $0xe0] sm:$0xff] %vm559_vm2, %v1235_v49  ;;  %v1243_v50 = vpop.f32.mrb[14].mxu0  ;;  %v1245_v51 = vpop.f32.mrb[14].mxu1 }
 0x108   : > { %575 = vst.msk [vmem:[%s1101_s9 + $0x78] sm:$0xff] %vm559_vm2, %v1243_v50  ;;  %591 = vst.msk [vmem:[%s1101_s9 + $0xf8] sm:$0xff] %vm559_vm2, %v1245_v51  ;;  %v1253_v52 = vpop.f32.mrb[15].mxu0  ;;  %v1255_v53 = vpop.f32.mrb[15].mxu1 }
 0x109   : > { %573 = vst.msk [vmem:[%s1101_s9 + $0x68] sm:$0xff] %vm559_vm2, %v1253_v52  ;;  %589 = vst.msk [vmem:[%s1101_s9 + $0xe8] sm:$0xff] %vm559_vm2, %v1255_v53 }
 0x10a PF: > { %v600_v55 = vsel %vm559_vm2, %v1113_v24, 0.0  ;;  %v601_v56 = vsel %vm559_vm2, %v1133_v28, 0.0  ;;  %v603_v57 = vsel %vm559_vm2, %v1103_v22, 0.0  ;;  %v605_v59 = vsel %vm559_vm2, %v1123_v26, 0.0 }
 0x10b   : > { %v602_v58 = vadd.f32 %v601_v56, %v600_v55  ;;  %v607_v61 = vsel %vm559_vm2, %v1153_v32, 0.0  ;;  %v609_v63 = vsel %vm559_vm2, %v1173_v36, 0.0  ;;  %v611_v1 = vsel %vm559_vm2, %v1143_v30, 0.0 }
 0x10c   : > { %v613_v3 = vsel %vm559_vm2, %v1163_v34, 0.0  ;;  %v615_v5 = vsel %vm559_vm2, %v1193_v40, 0.0  ;;  %v617_v7 = vsel %vm559_vm2, %v1213_v44, 0.0  ;;  %v673_v8 = vmul.f32 %v1113_v24, %v1113_v24 }
 0x10d   : > { %v604_v60 = vadd.f32 %v603_v57, %v602_v58  ;;  %v674_v9 = vmul.f32 %v1133_v28, %v1133_v28  ;;  %v675_v11 = vmul.f32 %v1103_v22, %v1103_v22  ;;  %v619_v12 = vsel %vm559_vm2, %v1183_v38, 0.0 }
 0x10e   : > { %v676_v13 = vmul.f32 %v1123_v26, %v1123_v26  ;;  %v621_v15 = vsel %vm559_vm2, %v1203_v42, 0.0  ;;  %v677_v16 = vmul.f32 %v1153_v32, %v1153_v32  ;;  %v705_v17 = vsel %vm559_vm2, %v673_v8, 0.0 }
 0x10f   : > { %v606_v62 = vadd.f32 %v605_v59, %v604_v60  ;;  %v706_v18 = vsel %vm559_vm2, %v674_v9, 0.0  ;;  %v708_v21 = vsel %vm559_vm2, %v675_v11, 0.0  ;;  %v623_v22 = vsel %vm559_vm2, %v1233_v48, 0.0 }
 0x110   : > { %v707_v20 = vadd.f32 %v706_v18, %v705_v17  ;;  %v678_v24 = vmul.f32 %v1173_v36, %v1173_v36  ;;  %v710_v26 = vsel %vm559_vm2, %v676_v13, 0.0  ;;  %v625_v32 = vsel %vm559_vm2, %v1253_v52, 0.0 }
 0x111   : > { %v608_v0 = vadd.f32 %v607_v61, %v606_v62  ;;  %v679_v55 = vmul.f32 %v1143_v30, %v1143_v30  ;;  %v712_v56 = vsel %vm559_vm2, %v677_v16, 0.0  ;;  %v627_v59 = vsel %vm559_vm2, %v1223_v46, 0.0 }
 0x112   : > { %v709_v54 = vadd.f32 %v708_v21, %v707_v20  ;;  %v680_v36 = vmul.f32 %v1163_v34, %v1163_v34  ;;  %v714_v60 = vsel %vm559_vm2, %v678_v24, 0.0  ;;  %v681_v30 = vmul.f32 %v1193_v40, %v1193_v40 }
 0x113   : > { %v610_v2 = vadd.f32 %v609_v63, %v608_v0  ;;  %v629_v63 = vsel %vm559_vm2, %v1243_v50, 0.0  ;;  %v716_v0 = vsel %vm559_vm2, %v679_v55, 0.0  ;;  %v682_v34 = vmul.f32 %v1213_v44, %v1213_v44 }
 0x114   : > { %v711_v58 = vadd.f32 %v710_v26, %v709_v54  ;;  %v683_v40 = vmul.f32 %v1183_v38, %v1183_v38  ;;  %v720_v8 = vsel %vm559_vm2, %v681_v30, 0.0  ;;  %v635_v11 = vsel %vm559_vm2, %v1105_v23, 0.0 }
 0x115   : > { %v612_v4 = vadd.f32 %v611_v1, %v610_v2  ;;  %v684_v44 = vmul.f32 %v1203_v42, %v1203_v42  ;;  %v685_v38 = vmul.f32 %v1233_v48, %v1233_v48  ;;  %v686_v42 = vmul.f32 %v1253_v52, %v1253_v52 }
 0x116   : > { %v713_v62 = vadd.f32 %v712_v56, %v711_v58  ;;  %v724_v16 = vsel %vm559_vm2, %v683_v40, 0.0  ;;  %v641_v24 = vsel %vm559_vm2, %v1175_v37, 0.0  ;;  %v687_v48 = vmul.f32 %v1223_v46, %v1223_v46 }
 0x117   : > { %v614_v6 = vadd.f32 %v613_v3, %v612_v4  ;;  %v631_v3 = vsel %vm559_vm2, %v1115_v25, 0.0  ;;  %v718_v4 = vsel %vm559_vm2, %v680_v36, 0.0  ;;  %v726_v20 = vsel %vm559_vm2, %v684_v44, 0.0 }
 0x118   : > { %v715_v2 = vadd.f32 %v714_v60, %v713_v62  ;;  %v728_v26 = vsel %vm559_vm2, %v685_v38, 0.0  ;;  %v688_v52 = vmul.f32 %v1243_v50, %v1243_v50  ;;  %v730_v55 = vsel %vm559_vm2, %v686_v42, 0.0 }
 0x119   : > { %v616_v10 = vadd.f32 %v615_v5, %v614_v6  ;;  %v645_v58 = vsel %vm559_vm2, %v1165_v35, 0.0  ;;  %v689_v46 = vmul.f32 %v1115_v25, %v1115_v25  ;;  %v690_v50 = vmul.f32 %v1135_v29, %v1135_v29 }
 0x11a   : > { %v717_v6 = vadd.f32 %v716_v0, %v715_v2  ;;  %v734_v62 = vsel %vm559_vm2, %v688_v52, 0.0  ;;  %v649_v0 = vsel %vm559_vm2, %v1215_v45, 0.0  ;;  %v691_v25 = vmul.f32 %v1105_v23, %v1105_v23 }
 0x11b   : > { %v618_v14 = vadd.f32 %v617_v7, %v616_v10  ;;  %v633_v7 = vsel %vm559_vm2, %v1135_v29, 0.0  ;;  %v692_v29 = vmul.f32 %v1125_v27, %v1125_v27  ;;  %v693_v23 = vmul.f32 %v1155_v33, %v1155_v33 }
 0x11c   : > { %v719_v10 = vadd.f32 %v718_v4, %v717_v6  ;;  %v738_v4 = vsel %vm559_vm2, %v690_v50, 0.0  ;;  %v740_v40 = vsel %vm559_vm2, %v691_v25, 0.0  ;;  %v661_v42 = vsel %vm559_vm2, %v1245_v51, 0.0 }
 0x11d   : > { %v620_v19 = vadd.f32 %v619_v12, %v618_v14  ;;  %v722_v12 = vsel %vm559_vm2, %v682_v34, 0.0  ;;  %v651_v34 = vsel %vm559_vm2, %v1185_v39, 0.0  ;;  %vm670_vm4 = vcmask 24576  }
 0x11e   : > { %v721_v14 = vadd.f32 %v720_v8, %v719_v10  ;;  %v655_v10 = vsel %vm559_vm2, %v1235_v49, 0.0 }
 0x11f   : > { %v622_v28 = vadd.f32 %v621_v15, %v620_v19  ;;  %v637_v15 = vsel %vm559_vm2, %v1125_v27, 0.0  ;;  %v639_v19 = vsel %vm559_vm2, %v1155_v33, 0.0  ;;  %v694_v27 = vmul.f32 %v1175_v37, %v1175_v37 }
 0x120   : > { %v723_v18 = vadd.f32 %v722_v12, %v721_v14  ;;  %v695_v33 = vmul.f32 %v1145_v31, %v1145_v31  ;;  %v744_v14 = vsel %vm559_vm2, %v693_v23, 0.0  ;;  %v696_v37 = vmul.f32 %v1165_v35, %v1165_v35  ;;  %v672_v23 = vld [vmem:[%s1452_s4] sm:$0x1] }
 0x121   : > { %v624_v57 = vadd.f32 %v623_v22, %v622_v28 }
 0x122   : > { %v725_v22 = vadd.f32 %v724_v16, %v723_v18  ;;  %v659_v16 = vsel %vm559_vm2, %v1225_v47, 0.0 }
 0x123   : > { %v626_v61 = vadd.f32 %v625_v32, %v624_v57  ;;  %v643_v32 = vsel %vm559_vm2, %v1145_v31, 0.0  ;;  %v697_v31 = vmul.f32 %v1195_v41, %v1195_v41 }
 0x124   : > { %v727_v54 = vadd.f32 %v726_v20, %v725_v22  ;;  %v748_v20 = vsel %vm559_vm2, %v695_v33, 0.0 }
 0x125   : > { %v628_v1 = vadd.f32 %v627_v59, %v626_v61  ;;  %v732_v59 = vsel %vm559_vm2, %v687_v48, 0.0  ;;  %v647_v61 = vsel %vm559_vm2, %v1195_v41, 0.0  ;;  %v750_v48 = vsel %vm559_vm2, %v696_v37, 0.0 }
 0x126   : > { %v729_v57 = vadd.f32 %v728_v26, %v727_v54  ;;  %v752_v54 = vsel %vm559_vm2, %v697_v31, 0.0  ;;  %v700_v41 = vmul.f32 %v1205_v43, %v1205_v43 }
 0x127   : > { %v630_v5 = vadd.f32 %v629_v63, %v628_v1  ;;  %v736_v1 = vsel %vm559_vm2, %v689_v46, 0.0 }
 0x128   : > { %v731_v60 = vadd.f32 %v730_v55, %v729_v57 }
 0x129   : > { %v632_v9 = vadd.f32 %v631_v3, %v630_v5 }
 0x12a   : > { %v733_v30 = vadd.f32 %v732_v59, %v731_v60 }
 0x12b   : > { %v634_v13 = vadd.f32 %v633_v7, %v632_v9  ;;  %v653_v7 = vsel %vm559_vm2, %v1205_v43, 0.0  ;;  %v703_v43 = vmul.f32 %v1225_v47, %v1225_v47 }
 0x12c   : > { %v735_v3 = vadd.f32 %v734_v62, %v733_v30  ;;  %v704_v30 = vmul.f32 %v1245_v51, %v1245_v51 }
 0x12d   : > { %v636_v17 = vadd.f32 %v635_v11, %v634_v13  ;;  %v742_v11 = vsel %vm559_vm2, %v692_v29, 0.0  ;;  %v657_v13 = vsel %vm559_vm2, %v1255_v53, 0.0 }
 0x12e   : > { %v737_v6 = vadd.f32 %v736_v1, %v735_v3  ;;  %v764_v1 = vsel %vm559_vm2, %v703_v43, 0.0  ;;  %v766_v3 = vsel %vm559_vm2, %v704_v30, 0.0 }
 0x12f   : > { %v638_v21 = vadd.f32 %v637_v15, %v636_v17  ;;  %v746_v17 = vsel %vm559_vm2, %v694_v27, 0.0 }
 0x130   : > { %v739_v9 = vadd.f32 %v738_v4, %v737_v6 }
 0x131   : > { %v640_v28 = vadd.f32 %v639_v19, %v638_v21 }
 0x132   : > { %v741_v12 = vadd.f32 %v740_v40, %v739_v9 }
 0x133   : > { %v642_v56 = vadd.f32 %v641_v24, %v640_v28  ;;  %v698_v24 = vmul.f32 %v1215_v45, %v1215_v45  ;;  %v699_v28 = vmul.f32 %v1185_v39, %v1185_v39  ;;  %v701_v45 = vmul.f32 %v1235_v49, %v1235_v49  ;;  %v599_v49 = vld [vmem:[%s1451_s3] sm:$0x1] }
 0x134   : > { %v743_v38 = vadd.f32 %v742_v11, %v741_v12  ;;  %v702_v39 = vmul.f32 %v1255_v53, %v1255_v53 }
 0x135   : > { %v644_v36 = vadd.f32 %v643_v32, %v642_v56  ;;  %v754_v55 = vsel %vm559_vm2, %v698_v24, 0.0  ;;  %v760_v50 = vsel %vm559_vm2, %v701_v45, 0.0 }
 0x136   : > { %v745_v19 = vadd.f32 %v744_v14, %v743_v38  ;;  %v762_v53 = vsel %vm559_vm2, %v702_v39, 0.0 }
 0x137   : > { %v646_v63 = vadd.f32 %v645_v58, %v644_v36  ;;  %v756_v58 = vsel %vm559_vm2, %v699_v28, 0.0  ;;  %v758_v36 = vsel %vm559_vm2, %v700_v41, 0.0 }
 0x138   : > { %v747_v22 = vadd.f32 %v746_v17, %v745_v19 }
 0x139   : > { %v648_v2 = vadd.f32 %v647_v61, %v646_v63 }
 0x13a   : > { %v749_v26 = vadd.f32 %v748_v20, %v747_v22 }
 0x13b   : > { %v650_v5 = vadd.f32 %v649_v0, %v648_v2 }
 0x13c   : > { %v751_v52 = vadd.f32 %v750_v48, %v749_v26 }
 0x13d   : > { %v652_v8 = vadd.f32 %v651_v34, %v650_v5 }
 0x13e   : > { %v753_v57 = vadd.f32 %v752_v54, %v751_v52 }
 0x13f   : > { %v654_v44 = vadd.f32 %v653_v7, %v652_v8 }
 0x140   : > { %v755_v59 = vadd.f32 %v754_v55, %v753_v57 }
 0x141   : > { %v656_v15 = vadd.f32 %v655_v10, %v654_v44 }
 0x142   : > { %v757_v61 = vadd.f32 %v756_v58, %v755_v59 }
 0x143   : > { %v658_v18 = vadd.f32 %v657_v13, %v656_v15 }
 0x144   : > { %v759_v63 = vadd.f32 %v758_v36, %v757_v61 }
 0x145   : > { %v660_v21 = vadd.f32 %v659_v16, %v658_v18 }
 0x146   : > { %v761_v25 = vadd.f32 %v760_v50, %v759_v63 }
 0x147   : > { %v662_v35 = vadd.f32 %v661_v42, %v660_v21 }
 0x148   : > { %v763_v47 = vadd.f32 %v762_v53, %v761_v25 }
 0x149   : > { %v663_v32 = vrot.slane %v662_v35, 4 }
 0x14a   : > { %v765_v34 = vadd.f32 %v764_v1, %v763_v47 }
 0x14b   : > { %v664_v56 = vadd.f32 %v663_v32, %v662_v35 }
 0x14c   : > { %v767_v29 = vadd.f32 %v766_v3, %v765_v34 }
 0x14d   : > { %v665_v46 = vrot.slane %v664_v56, 2 }
 0x14e   : > { %v768_v4 = vrot.slane %v767_v29, 4 }
 0x14f   : > { %v666_v60 = vadd.f32 %v665_v46, %v664_v56 }
 0x150   : > { %v769_v51 = vadd.f32 %v768_v4, %v767_v29 }
 0x151   : > { %v667_v62 = vrot.slane %v666_v60, 1 }
 0x152   : > { %v770_v5 = vrot.slane %v769_v51, 2 }
 0x153   : > { %v668_v0 = vadd.f32 %v667_v62, %v666_v60 }
 0x154   : > { %v771_v6 = vadd.f32 %v770_v5, %v769_v51 }
 0x155   : > { %v669_v2 = vadd.f32 %v668_v0, %v599_v49 }
 0x156   : > { %v772_v7 = vrot.slane %v771_v6, 1 }
 0x157   : > { %671 = vst.msk [vmem:[%s1451_s3] sm:$0x1] %vm670_vm4, %v669_v2 }
 0x158   : > { %v773_v40 = vadd.f32 %v772_v7, %v771_v6 }
 0x15a   : > { %v774_v8 = vadd.f32 %v773_v40, %v672_v23 }
 0x15c   : > { %775 = vst.msk [vmem:[%s1452_s4] sm:$0x1] %vm670_vm4, %v774_v8 }
 0x15d PF: > { %s15_s15 = sadd.s32 1, %s1004_s15  }
 0x15e   : > { %p12_p5 = scmp.ge.s32.totalorder %s15_s15, 8  }
 0x160   :  { %14 = sbr.rel (!%p12_p5) target bundleno = 1 (0x1), region = 78 }

// kernel: _lambda_.51
= control target key start
LH: loop header
LB: loop body
LE: loop exit
PB: predicated region body
PF: predicated region fallthrough
CT: control target
= control target key end

     0   :  { %s614_s12 = smov 0   ;;  %s965_s0 = inlined_call_operand.vmem [shape: f32[1536,4], index: 0, kind: input, shape index: {}]   ;;  %s966_s1 = inlined_call_operand.vmem [shape: f32[1,4], index: 1, kind: input, shape index: {}]   ;;  %s967_s2 = inlined_call_operand.vmem [shape: f32[1,4], index: 2, kind: input, shape index: {}]   ;;  %s968_s3 = inlined_call_operand.vmem [shape: f32[1536,4], index: 3, kind: output, shape index: {}]  }
   0x1 LB: > { %s565_s13 = sadd.s32 4294967295, %s592_s12   ;;  %p569_p0 = scmp.ge.s32.totalorder %s592_s12, 1  ;;  %s592_s12 = sphi %s614_s12, %s13_s12  }
   0x2   : > { %p138_p1 = scmp.lt.s32.totalorder %s592_s12, 4 }
   0x4   : > { %p139_p2 = pnand %p569_p0, %p138_p1 }
   0x5   : > { %s570_s14 = sshll.u32 (!%p139_p2), %s565_s13, 6  ;;  %v625_v0 = vld [vmem:[%s966_s1] ss:$0 sm:$0xff] (!%p139_p2)  ;;  %vm444_vm0 = vcmask (!%p139_p2), 31744  }
   0x6   : > { %142 = sbr.rel (%p139_p2) target bundleno = 70 (0x46), region = 32  ;;  %p163_p3 = scmp.lt.s32.totalorder (!%p139_p2), %s570_s14, 191  ;;  %v635_v1 = vld [vmem:[%s967_s2] ss:$0 sm:$0xff] (!%p139_p2) }
   0xd   : > { %s970_s14 = smov (!%p163_p3, %s570_s14), 191 }
   0xe   : > { %s571_s15 = sshll.u32 %s970_s14, 3 }
   0xf   : > { %s630_s20 = scalar_lea.vmem %s965_s0, %s571_s15  ;;  %s658_s25 = scalar_lea.vmem %s968_s3, %s571_s15 }
  0x10   : > { %v174_v2 = vld [vmem:[%s630_s20] sm:$0xff]  ;;  %v175_v3 = vld [vmem:[%s630_s20 + $0x8] sm:$0xff]  ;;  %v176_v4 = vld [vmem:[%s630_s20 + $0x10] sm:$0xff] }
  0x11   : > { %v245_v5 = vsub.f32 %v174_v2, %v625_v0  ;;  %v246_v6 = vsub.f32 %v175_v3, %v625_v0  ;;  %v247_v7 = vsub.f32 %v176_v4, %v625_v0  ;;  %v177_v8 = vld [vmem:[%s630_s20 + $0x18] sm:$0xff]  ;;  %v178_v9 = vld [vmem:[%s630_s20 + $0x20] sm:$0xff]  ;;  %v179_v10 = vld [vmem:[%s630_s20 + $0x28] sm:$0xff] }
  0x12   : > { %v248_v11 = vsub.f32 %v177_v8, %v625_v0  ;;  %v249_v12 = vsub.f32 %v178_v9, %v625_v0  ;;  %v250_v13 = vsub.f32 %v179_v10, %v625_v0  ;;  %v180_v14 = vld [vmem:[%s630_s20 + $0x30] sm:$0xff]  ;;  %v181_v15 = vld [vmem:[%s630_s20 + $0x38] sm:$0xff]  ;;  %v182_v24 = vld [vmem:[%s630_s20 + $0x40] sm:$0xff] }
  0x13   : > { %v316_v16 = vmul.f32 %v635_v1, %v245_v5  ;;  %v317_v17 = vmul.f32 %v635_v1, %v246_v6  ;;  %v318_v18 = vmul.f32 %v635_v1, %v247_v7  ;;  %v251_v19 = vsub.f32 %v180_v14, %v625_v0  ;;  %v183_v25 = vld [vmem:[%s630_s20 + $0x48] sm:$0xff]  ;;  %v184_v26 = vld [vmem:[%s630_s20 + $0x50] sm:$0xff]  ;;  %v185_v31 = vld [vmem:[%s630_s20 + $0x58] sm:$0xff] }
  0x14   : > { %v319_v20 = vmul.f32 %v635_v1, %v248_v11  ;;  %v320_v21 = vmul.f32 %v635_v1, %v249_v12  ;;  %v321_v22 = vmul.f32 %v635_v1, %v250_v13  ;;  %v252_v23 = vsub.f32 %v181_v15, %v625_v0  ;;  %v186_v32 = vld [vmem:[%s630_s20 + $0x60] sm:$0xff]  ;;  %v187_v33 = vld [vmem:[%s630_s20 + $0x68] sm:$0xff]  ;;  %v188_v38 = vld [vmem:[%s630_s20 + $0x70] sm:$0xff] }
  0x15   : > { %v380_v27 = vmax.f32 %v316_v16, 0.0  ;;  %v381_v28 = vmax.f32 %v317_v17, 0.0  ;;  %v382_v29 = vmax.f32 %v318_v18, 0.0  ;;  %v322_v30 = vmul.f32 %v635_v1, %v251_v19  ;;  %v189_v43 = vld [vmem:[%s630_s20 + $0x78] sm:$0xff]  ;;  %v190_v56 = vld [vmem:[%s630_s20 + $0x80] sm:$0xff]  ;;  %v191_v57 = vld [vmem:[%s630_s20 + $0x88] sm:$0xff] }
  0x16   : > { %v383_v34 = vmax.f32 %v319_v20, 0.0  ;;  %v384_v35 = vmax.f32 %v320_v21, 0.0  ;;  %v385_v36 = vmax.f32 %v321_v22, 0.0  ;;  %v323_v37 = vmul.f32 %v635_v1, %v252_v23  ;;  %v192_v58 = vld [vmem:[%s630_s20 + $0x90] sm:$0xff]  ;;  %v193_v63 = vld [vmem:[%s630_s20 + $0x98] sm:$0xff]  ;;  %v194_v2 = vld [vmem:[%s630_s20 + $0xa0] sm:$0xff] }
  0x17   : > { %445 = vst.msk [vmem:[%s658_s25] sm:$0xff] %vm444_vm0, %v380_v27  ;;  %446 = vst.msk [vmem:[%s658_s25 + $0x8] sm:$0xff] %vm444_vm0, %v381_v28  ;;  %v386_v39 = vmax.f32 %v322_v30, 0.0  ;;  %v253_v40 = vsub.f32 %v182_v24, %v625_v0  ;;  %v254_v41 = vsub.f32 %v183_v25, %v625_v0  ;;  %v255_v42 = vsub.f32 %v184_v26, %v625_v0  ;;  %v195_v3 = vld [vmem:[%s630_s20 + $0xa8] sm:$0xff]  ;;  %v196_v8 = vld [vmem:[%s630_s20 + $0xb0] sm:$0xff] }
  0x18   : > { %447 = vst.msk [vmem:[%s658_s25 + $0x10] sm:$0xff] %vm444_vm0, %v382_v29  ;;  %448 = vst.msk [vmem:[%s658_s25 + $0x18] sm:$0xff] %vm444_vm0, %v383_v34  ;;  %v387_v44 = vmax.f32 %v323_v37, 0.0  ;;  %v256_v45 = vsub.f32 %v185_v31, %v625_v0  ;;  %v257_v46 = vsub.f32 %v186_v32, %v625_v0  ;;  %v258_v47 = vsub.f32 %v187_v33, %v625_v0  ;;  %v197_v13 = vld [vmem:[%s630_s20 + $0xb8] sm:$0xff]  ;;  %v198_v26 = vld [vmem:[%s630_s20 + $0xc0] sm:$0xff] }
  0x19   : > { %449 = vst.msk [vmem:[%s658_s25 + $0x20] sm:$0xff] %vm444_vm0, %v384_v35  ;;  %450 = vst.msk [vmem:[%s658_s25 + $0x28] sm:$0xff] %vm444_vm0, %v385_v36  ;;  %v324_v48 = vmul.f32 %v635_v1, %v253_v40  ;;  %v325_v49 = vmul.f32 %v635_v1, %v254_v41  ;;  %v326_v50 = vmul.f32 %v635_v1, %v255_v42  ;;  %v199_v27 = vld [vmem:[%s630_s20 + $0xc8] sm:$0xff]  ;;  %v200_v28 = vld [vmem:[%s630_s20 + $0xd0] sm:$0xff] }
  0x1a   : > { %451 = vst.msk [vmem:[%s658_s25 + $0x30] sm:$0xff] %vm444_vm0, %v386_v39  ;;  %v259_v51 = vsub.f32 %v188_v38, %v625_v0  ;;  %452 = vst.msk [vmem:[%s658_s25 + $0x38] sm:$0xff] %vm444_vm0, %v387_v44  ;;  %v327_v52 = vmul.f32 %v635_v1, %v256_v45  ;;  %v328_v53 = vmul.f32 %v635_v1, %v257_v46  ;;  %v201_v33 = vld [vmem:[%s630_s20 + $0xd8] sm:$0xff]  ;;  %v202_v34 = vld [vmem:[%s630_s20 + $0xe0] sm:$0xff] }
  0x1b   : > { %v329_v54 = vmul.f32 %v635_v1, %v258_v47  ;;  %v260_v55 = vsub.f32 %v189_v43, %v625_v0  ;;  %v388_v59 = vmax.f32 %v324_v48, 0.0  ;;  %v389_v60 = vmax.f32 %v325_v49, 0.0  ;;  %v203_v35 = vld [vmem:[%s630_s20 + $0xe8] sm:$0xff]  ;;  %v204_v40 = vld [vmem:[%s630_s20 + $0xf0] sm:$0xff]  ;;  %v205_v45 = vld [vmem:[%s630_s20 + $0xf8] sm:$0xff] }
  0x1c   : > { %v390_v61 = vmax.f32 %v326_v50, 0.0  ;;  %v330_v62 = vmul.f32 %v635_v1, %v259_v51  ;;  %v391_v4 = vmax.f32 %v327_v52, 0.0  ;;  %v392_v5 = vmax.f32 %v328_v53, 0.0 }
  0x1d   : > { %v393_v6 = vmax.f32 %v329_v54, 0.0  ;;  %v331_v7 = vmul.f32 %v635_v1, %v260_v55  ;;  %453 = vst.msk [vmem:[%s658_s25 + $0x40] sm:$0xff] %vm444_vm0, %v388_v59  ;;  %454 = vst.msk [vmem:[%s658_s25 + $0x48] sm:$0xff] %vm444_vm0, %v389_v60  ;;  %v261_v10 = vsub.f32 %v190_v56, %v625_v0  ;;  %v262_v11 = vsub.f32 %v191_v57, %v625_v0  ;;  %v207_v59 = vld [vmem:[%s630_s20 + $0x108] sm:$0xff]  ;;  %v208_v60 = vld [vmem:[%s630_s20 + $0x110] sm:$0xff] }
  0x1e   : > { %455 = vst.msk [vmem:[%s658_s25 + $0x50] sm:$0xff] %vm444_vm0, %v390_v61  ;;  %v394_v9 = vmax.f32 %v330_v62, 0.0  ;;  %v263_v12 = vsub.f32 %v192_v58, %v625_v0  ;;  %456 = vst.msk [vmem:[%s658_s25 + $0x58] sm:$0xff] %vm444_vm0, %v391_v4  ;;  %v264_v15 = vsub.f32 %v193_v63, %v625_v0  ;;  %v265_v16 = vsub.f32 %v194_v2, %v625_v0  ;;  %v206_v58 = vld [vmem:[%s630_s20 + $0x100] sm:$0xff] }
  0x1f   : > { %457 = vst.msk [vmem:[%s658_s25 + $0x60] sm:$0xff] %vm444_vm0, %v392_v5  ;;  %458 = vst.msk [vmem:[%s658_s25 + $0x68] sm:$0xff] %vm444_vm0, %v393_v6  ;;  %v395_v14 = vmax.f32 %v331_v7, 0.0  ;;  %v266_v17 = vsub.f32 %v195_v3, %v625_v0  ;;  %v332_v18 = vmul.f32 %v635_v1, %v261_v10  ;;  %v333_v19 = vmul.f32 %v635_v1, %v262_v11  ;;  %v209_v3 = vld [vmem:[%s630_s20 + $0x118] sm:$0xff]  ;;  %v210_v4 = vld [vmem:[%s630_s20 + $0x120] sm:$0xff] }
  0x20   : > { %459 = vst.msk [vmem:[%s658_s25 + $0x70] sm:$0xff] %vm444_vm0, %v394_v9  ;;  %v334_v20 = vmul.f32 %v635_v1, %v263_v12  ;;  %v267_v21 = vsub.f32 %v196_v8, %v625_v0  ;;  %v335_v22 = vmul.f32 %v635_v1, %v264_v15  ;;  %v336_v23 = vmul.f32 %v635_v1, %v265_v16  ;;  %v211_v5 = vld [vmem:[%s630_s20 + $0x128] sm:$0xff]  ;;  %v212_v10 = vld [vmem:[%s630_s20 + $0x130] sm:$0xff]  ;;  %v213_v15 = vld [vmem:[%s630_s20 + $0x138] sm:$0xff] }
  0x21   : > { %460 = vst.msk [vmem:[%s658_s25 + $0x78] sm:$0xff] %vm444_vm0, %v395_v14  ;;  %v337_v24 = vmul.f32 %v635_v1, %v266_v17  ;;  %v268_v25 = vsub.f32 %v197_v13, %v625_v0  ;;  %v396_v29 = vmax.f32 %v332_v18, 0.0  ;;  %v397_v30 = vmax.f32 %v333_v19, 0.0 }
  0x22   : > { %v398_v31 = vmax.f32 %v334_v20, 0.0  ;;  %v338_v32 = vmul.f32 %v635_v1, %v267_v21  ;;  %v399_v36 = vmax.f32 %v335_v22, 0.0  ;;  %v400_v37 = vmax.f32 %v336_v23, 0.0 }
  0x23   : > { %v401_v38 = vmax.f32 %v337_v24, 0.0  ;;  %v339_v39 = vmul.f32 %v635_v1, %v268_v25  ;;  %461 = vst.msk [vmem:[%s658_s25 + $0x80] sm:$0xff] %vm444_vm0, %v396_v29  ;;  %462 = vst.msk [vmem:[%s658_s25 + $0x88] sm:$0xff] %vm444_vm0, %v397_v30  ;;  %v269_v42 = vsub.f32 %v198_v26, %v625_v0  ;;  %v270_v43 = vsub.f32 %v199_v27, %v625_v0  ;;  %v215_v29 = vld [vmem:[%s630_s20 + $0x148] sm:$0xff]  ;;  %v216_v30 = vld [vmem:[%s630_s20 + $0x150] sm:$0xff] }
  0x24   : > { %463 = vst.msk [vmem:[%s658_s25 + $0x90] sm:$0xff] %vm444_vm0, %v398_v31  ;;  %v402_v41 = vmax.f32 %v338_v32, 0.0  ;;  %v271_v44 = vsub.f32 %v200_v28, %v625_v0  ;;  %464 = vst.msk [vmem:[%s658_s25 + $0x98] sm:$0xff] %vm444_vm0, %v399_v36  ;;  %v272_v47 = vsub.f32 %v201_v33, %v625_v0  ;;  %v273_v48 = vsub.f32 %v202_v34, %v625_v0  ;;  %v214_v28 = vld [vmem:[%s630_s20 + $0x140] sm:$0xff] }
  0x25   : > { %465 = vst.msk [vmem:[%s658_s25 + $0xa0] sm:$0xff] %vm444_vm0, %v400_v37  ;;  %466 = vst.msk [vmem:[%s658_s25 + $0xa8] sm:$0xff] %vm444_vm0, %v401_v38  ;;  %v403_v46 = vmax.f32 %v339_v39, 0.0  ;;  %v274_v49 = vsub.f32 %v203_v35, %v625_v0  ;;  %v340_v50 = vmul.f32 %v635_v1, %v269_v42  ;;  %v341_v51 = vmul.f32 %v635_v1, %v270_v43  ;;  %v217_v35 = vld [vmem:[%s630_s20 + $0x158] sm:$0xff]  ;;  %v218_v36 = vld [vmem:[%s630_s20 + $0x160] sm:$0xff] }
  0x26   : > { %467 = vst.msk [vmem:[%s658_s25 + $0xb0] sm:$0xff] %vm444_vm0, %v402_v41  ;;  %v342_v52 = vmul.f32 %v635_v1, %v271_v44  ;;  %v275_v53 = vsub.f32 %v204_v40, %v625_v0  ;;  %v343_v54 = vmul.f32 %v635_v1, %v272_v47  ;;  %v344_v55 = vmul.f32 %v635_v1, %v273_v48  ;;  %v219_v37 = vld [vmem:[%s630_s20 + $0x168] sm:$0xff]  ;;  %v220_v42 = vld [vmem:[%s630_s20 + $0x170] sm:$0xff]  ;;  %v221_v47 = vld [vmem:[%s630_s20 + $0x178] sm:$0xff] }
  0x27   : > { %468 = vst.msk [vmem:[%s658_s25 + $0xb8] sm:$0xff] %vm444_vm0, %v403_v46  ;;  %v345_v56 = vmul.f32 %v635_v1, %v274_v49  ;;  %v276_v57 = vsub.f32 %v205_v45, %v625_v0  ;;  %v404_v61 = vmax.f32 %v340_v50, 0.0  ;;  %v405_v62 = vmax.f32 %v341_v51, 0.0 }
  0x28   : > { %v406_v63 = vmax.f32 %v342_v52, 0.0  ;;  %v346_v2 = vmul.f32 %v635_v1, %v275_v53  ;;  %v407_v6 = vmax.f32 %v343_v54, 0.0  ;;  %v408_v7 = vmax.f32 %v344_v55, 0.0 }
  0x29   : > { %v409_v8 = vmax.f32 %v345_v56, 0.0  ;;  %v347_v9 = vmul.f32 %v635_v1, %v276_v57  ;;  %469 = vst.msk [vmem:[%s658_s25 + $0xc0] sm:$0xff] %vm444_vm0, %v404_v61  ;;  %470 = vst.msk [vmem:[%s658_s25 + $0xc8] sm:$0xff] %vm444_vm0, %v405_v62  ;;  %v277_v12 = vsub.f32 %v206_v58, %v625_v0  ;;  %v278_v13 = vsub.f32 %v207_v59, %v625_v0  ;;  %v223_v61 = vld [vmem:[%s630_s20 + $0x188] sm:$0xff]  ;;  %v224_v62 = vld [vmem:[%s630_s20 + $0x190] sm:$0xff] }
  0x2a   : > { %471 = vst.msk [vmem:[%s658_s25 + $0xd0] sm:$0xff] %vm444_vm0, %v406_v63  ;;  %v410_v11 = vmax.f32 %v346_v2, 0.0  ;;  %v279_v14 = vsub.f32 %v208_v60, %v625_v0  ;;  %472 = vst.msk [vmem:[%s658_s25 + $0xd8] sm:$0xff] %vm444_vm0, %v407_v6  ;;  %v280_v17 = vsub.f32 %v209_v3, %v625_v0  ;;  %v281_v18 = vsub.f32 %v210_v4, %v625_v0  ;;  %v222_v60 = vld [vmem:[%s630_s20 + $0x180] sm:$0xff] }
  0x2b   : > { %473 = vst.msk [vmem:[%s658_s25 + $0xe0] sm:$0xff] %vm444_vm0, %v408_v7  ;;  %474 = vst.msk [vmem:[%s658_s25 + $0xe8] sm:$0xff] %vm444_vm0, %v409_v8  ;;  %v411_v16 = vmax.f32 %v347_v9, 0.0  ;;  %v282_v19 = vsub.f32 %v211_v5, %v625_v0  ;;  %v348_v20 = vmul.f32 %v635_v1, %v277_v12  ;;  %v349_v21 = vmul.f32 %v635_v1, %v278_v13  ;;  %v225_v5 = vld [vmem:[%s630_s20 + $0x198] sm:$0xff]  ;;  %v226_v6 = vld [vmem:[%s630_s20 + $0x1a0] sm:$0xff] }
  0x2c   : > { %475 = vst.msk [vmem:[%s658_s25 + $0xf0] sm:$0xff] %vm444_vm0, %v410_v11  ;;  %v350_v22 = vmul.f32 %v635_v1, %v279_v14  ;;  %v283_v23 = vsub.f32 %v212_v10, %v625_v0  ;;  %v351_v24 = vmul.f32 %v635_v1, %v280_v17  ;;  %v352_v25 = vmul.f32 %v635_v1, %v281_v18  ;;  %v227_v7 = vld [vmem:[%s630_s20 + $0x1a8] sm:$0xff]  ;;  %v228_v12 = vld [vmem:[%s630_s20 + $0x1b0] sm:$0xff]  ;;  %v229_v17 = vld [vmem:[%s630_s20 + $0x1b8] sm:$0xff] }
  0x2d   : > { %476 = vst.msk [vmem:[%s658_s25 + $0xf8] sm:$0xff] %vm444_vm0, %v411_v16  ;;  %v353_v26 = vmul.f32 %v635_v1, %v282_v19  ;;  %v284_v27 = vsub.f32 %v213_v15, %v625_v0  ;;  %v412_v31 = vmax.f32 %v348_v20, 0.0  ;;  %v413_v32 = vmax.f32 %v349_v21, 0.0 }
  0x2e   : > { %v414_v33 = vmax.f32 %v350_v22, 0.0  ;;  %v354_v34 = vmul.f32 %v635_v1, %v283_v23  ;;  %v415_v38 = vmax.f32 %v351_v24, 0.0  ;;  %v416_v39 = vmax.f32 %v352_v25, 0.0 }
  0x2f   : > { %v417_v40 = vmax.f32 %v353_v26, 0.0  ;;  %v355_v41 = vmul.f32 %v635_v1, %v284_v27  ;;  %477 = vst.msk [vmem:[%s658_s25 + $0x100] sm:$0xff] %vm444_vm0, %v412_v31  ;;  %478 = vst.msk [vmem:[%s658_s25 + $0x108] sm:$0xff] %vm444_vm0, %v413_v32  ;;  %v285_v44 = vsub.f32 %v214_v28, %v625_v0  ;;  %v286_v45 = vsub.f32 %v215_v29, %v625_v0  ;;  %v231_v31 = vld [vmem:[%s630_s20 + $0x1c8] sm:$0xff]  ;;  %v232_v32 = vld [vmem:[%s630_s20 + $0x1d0] sm:$0xff] }
  0x30   : > { %479 = vst.msk [vmem:[%s658_s25 + $0x110] sm:$0xff] %vm444_vm0, %v414_v33  ;;  %v418_v43 = vmax.f32 %v354_v34, 0.0  ;;  %v287_v46 = vsub.f32 %v216_v30, %v625_v0  ;;  %480 = vst.msk [vmem:[%s658_s25 + $0x118] sm:$0xff] %vm444_vm0, %v415_v38  ;;  %v288_v49 = vsub.f32 %v217_v35, %v625_v0  ;;  %v289_v50 = vsub.f32 %v218_v36, %v625_v0  ;;  %v230_v30 = vld [vmem:[%s630_s20 + $0x1c0] sm:$0xff] }
  0x31   : > { %481 = vst.msk [vmem:[%s658_s25 + $0x120] sm:$0xff] %vm444_vm0, %v416_v39  ;;  %482 = vst.msk [vmem:[%s658_s25 + $0x128] sm:$0xff] %vm444_vm0, %v417_v40  ;;  %v419_v48 = vmax.f32 %v355_v41, 0.0  ;;  %v290_v51 = vsub.f32 %v219_v37, %v625_v0  ;;  %v356_v52 = vmul.f32 %v635_v1, %v285_v44  ;;  %v357_v53 = vmul.f32 %v635_v1, %v286_v45  ;;  %v233_v37 = vld [vmem:[%s630_s20 + $0x1d8] sm:$0xff]  ;;  %v234_v38 = vld [vmem:[%s630_s20 + $0x1e0] sm:$0xff] }
  0x32   : > { %483 = vst.msk [vmem:[%s658_s25 + $0x130] sm:$0xff] %vm444_vm0, %v418_v43  ;;  %v358_v54 = vmul.f32 %v635_v1, %v287_v46  ;;  %v291_v55 = vsub.f32 %v220_v42, %v625_v0  ;;  %v359_v56 = vmul.f32 %v635_v1, %v288_v49  ;;  %v360_v57 = vmul.f32 %v635_v1, %v289_v50  ;;  %v235_v39 = vld [vmem:[%s630_s20 + $0x1e8] sm:$0xff]  ;;  %v236_v44 = vld [vmem:[%s630_s20 + $0x1f0] sm:$0xff]  ;;  %v237_v49 = vld [vmem:[%s630_s20 + $0x1f8] sm:$0xff] }
  0x33   : > { %484 = vst.msk [vmem:[%s658_s25 + $0x138] sm:$0xff] %vm444_vm0, %v419_v48  ;;  %v361_v58 = vmul.f32 %v635_v1, %v290_v51  ;;  %v292_v59 = vsub.f32 %v221_v47, %v625_v0  ;;  %v420_v63 = vmax.f32 %v356_v52, 0.0  ;;  %v421_v2 = vmax.f32 %v357_v53, 0.0 }
  0x34   : > { %v422_v3 = vmax.f32 %v358_v54, 0.0  ;;  %v362_v4 = vmul.f32 %v635_v1, %v291_v55  ;;  %v423_v8 = vmax.f32 %v359_v56, 0.0  ;;  %v424_v9 = vmax.f32 %v360_v57, 0.0 }
  0x35   : > { %v425_v10 = vmax.f32 %v361_v58, 0.0  ;;  %v363_v11 = vmul.f32 %v635_v1, %v292_v59  ;;  %485 = vst.msk [vmem:[%s658_s25 + $0x140] sm:$0xff] %vm444_vm0, %v420_v63  ;;  %486 = vst.msk [vmem:[%s658_s25 + $0x148] sm:$0xff] %vm444_vm0, %v421_v2  ;;  %v293_v14 = vsub.f32 %v222_v60, %v625_v0  ;;  %v294_v15 = vsub.f32 %v223_v61, %v625_v0 }
  0x36   : > { %487 = vst.msk [vmem:[%s658_s25 + $0x150] sm:$0xff] %vm444_vm0, %v422_v3  ;;  %v426_v13 = vmax.f32 %v362_v4, 0.0  ;;  %v295_v16 = vsub.f32 %v224_v62, %v625_v0  ;;  %488 = vst.msk [vmem:[%s658_s25 + $0x158] sm:$0xff] %vm444_vm0, %v423_v8  ;;  %v296_v19 = vsub.f32 %v225_v5, %v625_v0  ;;  %v297_v20 = vsub.f32 %v226_v6, %v625_v0 }
  0x37   : > { %489 = vst.msk [vmem:[%s658_s25 + $0x160] sm:$0xff] %vm444_vm0, %v424_v9  ;;  %490 = vst.msk [vmem:[%s658_s25 + $0x168] sm:$0xff] %vm444_vm0, %v425_v10  ;;  %v427_v18 = vmax.f32 %v363_v11, 0.0  ;;  %v298_v21 = vsub.f32 %v227_v7, %v625_v0  ;;  %v364_v22 = vmul.f32 %v635_v1, %v293_v14  ;;  %v365_v23 = vmul.f32 %v635_v1, %v294_v15 }
  0x38   : > { %491 = vst.msk [vmem:[%s658_s25 + $0x170] sm:$0xff] %vm444_vm0, %v426_v13  ;;  %v366_v24 = vmul.f32 %v635_v1, %v295_v16  ;;  %v299_v25 = vsub.f32 %v228_v12, %v625_v0  ;;  %v367_v26 = vmul.f32 %v635_v1, %v296_v19  ;;  %v368_v27 = vmul.f32 %v635_v1, %v297_v20 }
  0x39   : > { %492 = vst.msk [vmem:[%s658_s25 + $0x178] sm:$0xff] %vm444_vm0, %v427_v18  ;;  %v369_v28 = vmul.f32 %v635_v1, %v298_v21  ;;  %v300_v29 = vsub.f32 %v229_v17, %v625_v0  ;;  %v428_v33 = vmax.f32 %v364_v22, 0.0  ;;  %v429_v34 = vmax.f32 %v365_v23, 0.0 }
  0x3a   : > { %v430_v35 = vmax.f32 %v366_v24, 0.0  ;;  %v370_v36 = vmul.f32 %v635_v1, %v299_v25  ;;  %v431_v40 = vmax.f32 %v367_v26, 0.0  ;;  %v432_v41 = vmax.f32 %v368_v27, 0.0 }
  0x3b   : > { %v433_v42 = vmax.f32 %v369_v28, 0.0  ;;  %v371_v43 = vmul.f32 %v635_v1, %v300_v29  ;;  %493 = vst.msk [vmem:[%s658_s25 + $0x180] sm:$0xff] %vm444_vm0, %v428_v33  ;;  %494 = vst.msk [vmem:[%s658_s25 + $0x188] sm:$0xff] %vm444_vm0, %v429_v34  ;;  %v301_v46 = vsub.f32 %v230_v30, %v625_v0  ;;  %v302_v47 = vsub.f32 %v231_v31, %v625_v0 }
  0x3c   : > { %495 = vst.msk [vmem:[%s658_s25 + $0x190] sm:$0xff] %vm444_vm0, %v430_v35  ;;  %v434_v45 = vmax.f32 %v370_v36, 0.0  ;;  %v303_v48 = vsub.f32 %v232_v32, %v625_v0  ;;  %496 = vst.msk [vmem:[%s658_s25 + $0x198] sm:$0xff] %vm444_vm0, %v431_v40  ;;  %v304_v51 = vsub.f32 %v233_v37, %v625_v0  ;;  %v305_v52 = vsub.f32 %v234_v38, %v625_v0 }
  0x3d   : > { %497 = vst.msk [vmem:[%s658_s25 + $0x1a0] sm:$0xff] %vm444_vm0, %v432_v41  ;;  %498 = vst.msk [vmem:[%s658_s25 + $0x1a8] sm:$0xff] %vm444_vm0, %v433_v42  ;;  %v435_v50 = vmax.f32 %v371_v43, 0.0  ;;  %v306_v53 = vsub.f32 %v235_v39, %v625_v0  ;;  %v372_v54 = vmul.f32 %v635_v1, %v301_v46  ;;  %v373_v55 = vmul.f32 %v635_v1, %v302_v47 }
  0x3e   : > { %499 = vst.msk [vmem:[%s658_s25 + $0x1b0] sm:$0xff] %vm444_vm0, %v434_v45  ;;  %v374_v56 = vmul.f32 %v635_v1, %v303_v48  ;;  %v307_v57 = vsub.f32 %v236_v44, %v625_v0  ;;  %v375_v58 = vmul.f32 %v635_v1, %v304_v51  ;;  %v376_v59 = vmul.f32 %v635_v1, %v305_v52 }
  0x3f   : > { %500 = vst.msk [vmem:[%s658_s25 + $0x1b8] sm:$0xff] %vm444_vm0, %v435_v50  ;;  %v377_v60 = vmul.f32 %v635_v1, %v306_v53  ;;  %v308_v61 = vsub.f32 %v237_v49, %v625_v0  ;;  %v436_v62 = vmax.f32 %v372_v54, 0.0  ;;  %v437_v63 = vmax.f32 %v373_v55, 0.0 }
  0x40   : > { %v438_v2 = vmax.f32 %v374_v56, 0.0  ;;  %v378_v3 = vmul.f32 %v635_v1, %v307_v57  ;;  %v439_v4 = vmax.f32 %v375_v58, 0.0  ;;  %v440_v5 = vmax.f32 %v376_v59, 0.0 }
  0x41   : > { %v441_v6 = vmax.f32 %v377_v60, 0.0  ;;  %v379_v7 = vmul.f32 %v635_v1, %v308_v61  ;;  %501 = vst.msk [vmem:[%s658_s25 + $0x1c0] sm:$0xff] %vm444_vm0, %v436_v62  ;;  %502 = vst.msk [vmem:[%s658_s25 + $0x1c8] sm:$0xff] %vm444_vm0, %v437_v63 }
  0x42   : > { %503 = vst.msk [vmem:[%s658_s25 + $0x1d0] sm:$0xff] %vm444_vm0, %v438_v2  ;;  %v442_v8 = vmax.f32 %v378_v3, 0.0  ;;  %504 = vst.msk [vmem:[%s658_s25 + $0x1d8] sm:$0xff] %vm444_vm0, %v439_v4 }
  0x43   : > { %505 = vst.msk [vmem:[%s658_s25 + $0x1e0] sm:$0xff] %vm444_vm0, %v440_v5  ;;  %506 = vst.msk [vmem:[%s658_s25 + $0x1e8] sm:$0xff] %vm444_vm0, %v441_v6  ;;  %v443_v0 = vmax.f32 %v379_v7, 0.0 }
  0x44   : > { %507 = vst.msk [vmem:[%s658_s25 + $0x1f0] sm:$0xff] %vm444_vm0, %v442_v8 }
  0x45   : > { %508 = vst.msk [vmem:[%s658_s25 + $0x1f8] sm:$0xff] %vm444_vm0, %v443_v0 }
  0x46 PF: > { %s13_s12 = sadd.s32 1, %s592_s12  }
  0x47   : > { %p10_p4 = scmp.ge.s32.totalorder %s13_s12, 5  }
  0x49   :  { %12 = sbr.rel (!%p10_p4) target bundleno = 1 (0x1), region = 62 }

// kernel: _lambda_.52
= control target key start
LH: loop header
LB: loop body
LE: loop exit
PB: predicated region body
PF: predicated region fallthrough
CT: control target
= control target key end

     0   :  { %10 = vsyncpa [#allocation3], 0  ;;  %s1555_s0 = inlined_call_operand.vmem [shape: bf16[1536,36], index: 0, kind: input, shape index: {}]   ;;  %s1556_s1 = inlined_call_operand.vmem [shape: bf16[36,1], index: 1, kind: input, shape index: {}]   ;;  %s1557_s2 = inlined_call_operand.vmem [shape: f32[1536,1], index: 2, kind: output, shape index: {0}]   ;;  %s1558_s3 = inlined_call_operand.hbm [shape: f32[1,1], index: 3, kind: output, shape index: {1}]   ;;  %s1559_s4 = inlined_call_operand.hbm [shape: f32[1,1], index: 4, kind: output, shape index: {2}]  }
   0x1   :  { %11 = vsyncpa [#allocation5], 0  ;;  %s1118_s15 = smov 0  }
   0x2 LB: > { %s1124_s16 = sadd.s32 4294967295, %s1088_s15   ;;  %p868_p0 = scmp.ge.s32.totalorder %s1088_s15, 1  ;;  %s1088_s15 = sphi %s1118_s15, %s17_s15  }
   0x3   : > { %p160_p1 = scmp.lt.s32.totalorder %s1088_s15, 7 }
   0x5   : > { %p161_p2 = pnand %p868_p0, %p160_p1 }
   0x6   : > { %v1003_v0 = vld [vmem:[%s1556_s1] sm:$0xff] (!%p161_p2)   ;;  %v1004_v1 = vld [vmem:[%s1556_s1 + $0x8] sm:$0xff] (!%p161_p2)   ;;  %s869_s21 = sshll.u32 (!%p161_p2), %s1124_s16, 5  ;;  %v1005_v2 = vld [vmem:[%s1556_s1 + $0x10] ss:$0 sps:$4 sm:$0x33] (!%p161_p2)  }
   0x7   : > { %164 = sbr.rel (%p161_p2) target bundleno = 382 (0x17e), region = 28  ;;  %934 = vmatprep.subr.bf16.mxu0 (!%p161_p2), %v1003_v0  ;;  %972 = vmatprep.subr.bf16.mxu1 (!%p161_p2), %v1003_v0  ;;  %p187_p3 = scmp.lt.s32.totalorder (!%p161_p2), %s869_s21, 191  ;;  %vm380_vm0 = vcmask (!%p161_p2), 1041408   ;;  %vm331_vm1 = vcmask (!%p161_p2), 293888   ;;  %vm545_vm2 = vcmask (!%p161_p2), 7168  }
   0x8   : > { %935 = vmatpush3.bf16.msra.mxu0 (!%p161_p2), %v1003_v0  ;;  %975 = vmatpush3.bf16.msra.mxu1 (!%p161_p2), %v1003_v0  ;;  %v382_v3 = vsel (!%p161_p2), %vm380_vm0, %v1005_v2, 0  ;;  %p908_p4 = scmp.ne.s32.totalorder (!%p161_p2), %s1124_s16, 0 }
   0x9   : > { %936 = vmatprep.subr.bf16.mxu0 (!%p161_p2), %v1004_v1  ;;  %973 = vmatprep.subr.bf16.mxu1 (!%p161_p2), %v1004_v1 }
   0xc   : > { %937 = vmatpush3.bf16.msra.mxu0 (!%p161_p2), %v1004_v1  ;;  %976 = vmatpush3.bf16.msra.mxu1 (!%p161_p2), %v1004_v1 }
   0xd   : > { %978 = vmatprep.subr.msk.bf16.mxu0 (!%p161_p2), %vm380_vm0, %v1005_v2  ;;  %979 = vmatprep.subr.msk.bf16.mxu1 (!%p161_p2), %vm380_vm0, %v1005_v2 }
   0xe   : > { %s1561_s21 = smov (!%p187_p3, %s869_s21), 191  ;;  %vm582_vm3 = vcmask (!%p908_p4), 0   ;;  %v1090_v52 = vmov (!%p908_p4), 0.0  }
   0xf   : > { %s870_s24 = sshll.u32 %s1561_s21, 2  ;;  %s872_s28 = sshll.u32 %s1561_s21, 3  ;;  %583 = vst.msk [vmem:[#allocation2] sm:$0x1] (!%p908_p4), %vm582_vm3, %v1090_v52  ;;  %584 = vst.msk [vmem:[#allocation4] sm:$0x1] (!%p908_p4), %vm582_vm3, %v1090_v52 }
  0x10   : > { %s1144_s27 = scalar_lea.vmem %s1555_s0, %s870_s24  ;;  %939 = vmatpush3.bf16.msra.mxu0 %v382_v3  ;;  %977 = vmatpush3.bf16.msra.mxu1 %v382_v3  ;;  %s1182_s5 = scalar_lea.vmem %s1557_s2, %s872_s28 }
  0x11   : > { %v1006_v4 = vld [vmem:[%s1144_s27] sm:$0xff]   ;;  %v1008_v6 = vld [vmem:[%s1144_s27 + $0x8] sm:$0xff]   ;;  %v1010_v8 = vld [vmem:[%s1144_s27 + $0x10] sm:$0xff]  }
  0x12   : > { %v1007_v5 = vld [vmem:[%s1144_s27 + $0x40] sm:$0xff]   ;;  %940 = vmatprep.mubr.msk.bf16.mxu0 %vm331_vm1, %v1006_v4  ;;  %v1009_v7 = vld [vmem:[%s1144_s27 + $0x48] sm:$0xff]   ;;  %v1011_v9 = vld [vmem:[%s1144_s27 + $0x50] sm:$0xff]  }
  0x13   : > { %956 = vmatprep.mubr.msk.bf16.mxu1 %vm331_vm1, %v1007_v5  ;;  %941 = vmatmul.mubr.msk.bf16.vlgmr.msra.gmra.mrb[0].mxu0 %vm331_vm1, %v1008_v6  ;;  %v1012_v10 = vld [vmem:[%s1144_s27 + $0x18] sm:$0xff]   ;;  %v1014_v12 = vld [vmem:[%s1144_s27 + $0x20] sm:$0xff]   ;;  %v1016_v14 = vld [vmem:[%s1144_s27 + $0x28] sm:$0xff]  }
  0x14   : > { %957 = vmatmul.mubr.msk.bf16.vlgmr.msra.gmra.mrb[0].mxu1 %vm331_vm1, %v1009_v7  ;;  %944 = vmatprep.mubr.msk.bf16.mxu0 %vm331_vm1, %v1010_v8  ;;  %v1013_v11 = vld [vmem:[%s1144_s27 + $0x58] sm:$0xff]   ;;  %v1015_v13 = vld [vmem:[%s1144_s27 + $0x60] sm:$0xff]   ;;  %v1017_v15 = vld [vmem:[%s1144_s27 + $0x68] sm:$0xff]  }
  0x15   : > { %960 = vmatprep.mubr.msk.bf16.mxu1 %vm331_vm1, %v1011_v9  ;;  %v1018_v16 = vld [vmem:[%s1144_s27 + $0x30] sm:$0xff]   ;;  %v1020_v18 = vld [vmem:[%s1144_s27 + $0x38] sm:$0xff]  }
  0x16   : > { %v1019_v17 = vld [vmem:[%s1144_s27 + $0x70] sm:$0xff]   ;;  %v1021_v19 = vld [vmem:[%s1144_s27 + $0x78] sm:$0xff]  }
  0x1b   : > { %945 = vmatmul.mubr.msk.bf16.gmra.mrb[4].mxu0 %vm331_vm1, %v1012_v10 }
  0x1c   : > { %961 = vmatmul.mubr.msk.bf16.gmra.mrb[4].mxu1 %vm331_vm1, %v1013_v11  ;;  %948 = vmatprep.mubr.msk.bf16.mxu0 %vm331_vm1, %v1014_v12 }
  0x1d   : > { %964 = vmatprep.mubr.msk.bf16.mxu1 %vm331_vm1, %v1015_v13 }
  0x23   : > { %949 = vmatmul.mubr.msk.bf16.gmra.mrb[8].mxu0 %vm331_vm1, %v1016_v14 }
  0x24   : > { %965 = vmatmul.mubr.msk.bf16.gmra.mrb[8].mxu1 %vm331_vm1, %v1017_v15  ;;  %952 = vmatprep.mubr.msk.bf16.mxu0 %vm331_vm1, %v1018_v16 }
  0x25   : > { %968 = vmatprep.mubr.msk.bf16.mxu1 %vm331_vm1, %v1019_v17 }
  0x2b   : > { %953 = vmatmul.mubr.msk.bf16.gmra.mrb[12].mxu0 %vm331_vm1, %v1020_v18 }
  0x2c   : > { %969 = vmatmul.mubr.msk.bf16.gmra.mrb[12].mxu1 %vm331_vm1, %v1021_v19 }
  0xe6   : > { %v1184_v20 = vpop.f32.mrb[0].mxu0 }
  0xe7   : > { %v1186_v21 = vpop.f32.mrb[0].mxu1  ;;  %548 = vst.msk [vmem:[%s1182_s5 + $0x10] sm:$0xff] %vm545_vm2, %v1184_v20  ;;  %v1194_v22 = vpop.f32.mrb[1].mxu0 }
  0xe8   : > { %564 = vst.msk [vmem:[%s1182_s5 + $0x90] sm:$0xff] %vm545_vm2, %v1186_v21  ;;  %v1196_v23 = vpop.f32.mrb[1].mxu1  ;;  %546 = vst.msk [vmem:[%s1182_s5] sm:$0xff] %vm545_vm2, %v1194_v22  ;;  %v1204_v24 = vpop.f32.mrb[2].mxu0 }
  0xe9   : > { %562 = vst.msk [vmem:[%s1182_s5 + $0x80] sm:$0xff] %vm545_vm2, %v1196_v23  ;;  %v1206_v25 = vpop.f32.mrb[2].mxu1  ;;  %549 = vst.msk [vmem:[%s1182_s5 + $0x18] sm:$0xff] %vm545_vm2, %v1204_v24  ;;  %v1214_v26 = vpop.f32.mrb[3].mxu0 }
  0xea   : > { %565 = vst.msk [vmem:[%s1182_s5 + $0x98] sm:$0xff] %vm545_vm2, %v1206_v25  ;;  %v1216_v27 = vpop.f32.mrb[3].mxu1  ;;  %547 = vst.msk [vmem:[%s1182_s5 + $0x8] sm:$0xff] %vm545_vm2, %v1214_v26 }
  0xeb   : > { %563 = vst.msk [vmem:[%s1182_s5 + $0x88] sm:$0xff] %vm545_vm2, %v1216_v27 }
  0xee   : > { %v1224_v28 = vpop.f32.mrb[4].mxu0 }
  0xef   : > { %v1226_v29 = vpop.f32.mrb[4].mxu1  ;;  %552 = vst.msk [vmem:[%s1182_s5 + $0x30] sm:$0xff] %vm545_vm2, %v1224_v28  ;;  %v1234_v30 = vpop.f32.mrb[5].mxu0 }
  0xf0   : > { %568 = vst.msk [vmem:[%s1182_s5 + $0xb0] sm:$0xff] %vm545_vm2, %v1226_v29  ;;  %v1236_v31 = vpop.f32.mrb[5].mxu1  ;;  %550 = vst.msk [vmem:[%s1182_s5 + $0x20] sm:$0xff] %vm545_vm2, %v1234_v30  ;;  %v1244_v32 = vpop.f32.mrb[6].mxu0 }
  0xf1   : > { %566 = vst.msk [vmem:[%s1182_s5 + $0xa0] sm:$0xff] %vm545_vm2, %v1236_v31  ;;  %v1246_v33 = vpop.f32.mrb[6].mxu1  ;;  %553 = vst.msk [vmem:[%s1182_s5 + $0x38] sm:$0xff] %vm545_vm2, %v1244_v32  ;;  %v1254_v34 = vpop.f32.mrb[7].mxu0 }
  0xf2   : > { %569 = vst.msk [vmem:[%s1182_s5 + $0xb8] sm:$0xff] %vm545_vm2, %v1246_v33  ;;  %v1256_v35 = vpop.f32.mrb[7].mxu1  ;;  %551 = vst.msk [vmem:[%s1182_s5 + $0x28] sm:$0xff] %vm545_vm2, %v1254_v34 }
  0xf3   : > { %567 = vst.msk [vmem:[%s1182_s5 + $0xa8] sm:$0xff] %vm545_vm2, %v1256_v35 }
  0xf6   : > { %v1264_v36 = vpop.f32.mrb[8].mxu0 }
  0xf7   : > { %v1266_v37 = vpop.f32.mrb[8].mxu1  ;;  %556 = vst.msk [vmem:[%s1182_s5 + $0x50] sm:$0xff] %vm545_vm2, %v1264_v36  ;;  %v1274_v38 = vpop.f32.mrb[9].mxu0 }
  0xf8   : > { %572 = vst.msk [vmem:[%s1182_s5 + $0xd0] sm:$0xff] %vm545_vm2, %v1266_v37  ;;  %v1276_v39 = vpop.f32.mrb[9].mxu1  ;;  %554 = vst.msk [vmem:[%s1182_s5 + $0x40] sm:$0xff] %vm545_vm2, %v1274_v38  ;;  %v1284_v40 = vpop.f32.mrb[10].mxu0 }
  0xf9   : > { %570 = vst.msk [vmem:[%s1182_s5 + $0xc0] sm:$0xff] %vm545_vm2, %v1276_v39  ;;  %v1286_v41 = vpop.f32.mrb[10].mxu1  ;;  %557 = vst.msk [vmem:[%s1182_s5 + $0x58] sm:$0xff] %vm545_vm2, %v1284_v40  ;;  %v1294_v42 = vpop.f32.mrb[11].mxu0 }
  0xfa   : > { %573 = vst.msk [vmem:[%s1182_s5 + $0xd8] sm:$0xff] %vm545_vm2, %v1286_v41  ;;  %v1296_v43 = vpop.f32.mrb[11].mxu1  ;;  %555 = vst.msk [vmem:[%s1182_s5 + $0x48] sm:$0xff] %vm545_vm2, %v1294_v42 }
  0xfb   : > { %571 = vst.msk [vmem:[%s1182_s5 + $0xc8] sm:$0xff] %vm545_vm2, %v1296_v43 }
  0xfd   : > { %581 = sbr.rel (%p908_p4) target bundleno = 260 (0x104), region = 32 }
  0xfe   : > { %v1304_v44 = vpop.f32.mrb[12].mxu0 }
  0xff   : > { %v1306_v45 = vpop.f32.mrb[12].mxu1  ;;  %560 = vst.msk [vmem:[%s1182_s5 + $0x70] sm:$0xff] %vm545_vm2, %v1304_v44  ;;  %v1314_v46 = vpop.f32.mrb[13].mxu0 }
 0x100   : > { %576 = vst.msk [vmem:[%s1182_s5 + $0xf0] sm:$0xff] %vm545_vm2, %v1306_v45  ;;  %v1316_v47 = vpop.f32.mrb[13].mxu1  ;;  %558 = vst.msk [vmem:[%s1182_s5 + $0x60] sm:$0xff] %vm545_vm2, %v1314_v46  ;;  %v1324_v48 = vpop.f32.mrb[14].mxu0 }
 0x101   : > { %574 = vst.msk [vmem:[%s1182_s5 + $0xe0] sm:$0xff] %vm545_vm2, %v1316_v47  ;;  %v1326_v49 = vpop.f32.mrb[14].mxu1  ;;  %561 = vst.msk [vmem:[%s1182_s5 + $0x78] sm:$0xff] %vm545_vm2, %v1324_v48  ;;  %v1334_v50 = vpop.f32.mrb[15].mxu0 }
 0x102   : > { %577 = vst.msk [vmem:[%s1182_s5 + $0xf8] sm:$0xff] %vm545_vm2, %v1326_v49  ;;  %v1336_v51 = vpop.f32.mrb[15].mxu1  ;;  %559 = vst.msk [vmem:[%s1182_s5 + $0x68] sm:$0xff] %vm545_vm2, %v1334_v50 }
 0x103   : > { %575 = vst.msk [vmem:[%s1182_s5 + $0xe8] sm:$0xff] %vm545_vm2, %v1336_v51 }
 0x104 PF: > { %v586_v53 = vsel %vm545_vm2, %v1194_v22, 0.0  ;;  %v587_v54 = vsel %vm545_vm2, %v1214_v26, 0.0  ;;  %v589_v55 = vsel %vm545_vm2, %v1184_v20, 0.0  ;;  %v591_v57 = vsel %vm545_vm2, %v1204_v24, 0.0  ;;  %s1091_s6 = smov [#allocation2]   ;;  %p988_p5 = scmp.eq.s32.totalorder %s1124_s16, 5 }
 0x105   : > { %v588_v56 = vadd.f32 %v587_v54, %v586_v53  ;;  %v593_v59 = vsel %vm545_vm2, %v1234_v30, 0.0  ;;  %v595_v61 = vsel %vm545_vm2, %v1254_v34, 0.0  ;;  %v597_v63 = vsel %vm545_vm2, %v1224_v28, 0.0  ;;  %s778_s7 = sshll.u32 %s1091_s6, 4  ;;  %s779_s7 = int_to_ptr.vmem [resolvable:$true] %s778_s7 }
 0x106   : > { %v599_v1 = vsel %vm545_vm2, %v1244_v32, 0.0  ;;  %v601_v3 = vsel %vm545_vm2, %v1274_v38, 0.0  ;;  %v603_v5 = vsel %vm545_vm2, %v1294_v42, 0.0  ;;  %v659_v6 = vmul.f32 %v1194_v22, %v1194_v22  ;;  %s1022_s8 = scalar_lea.vmem %s779_s7, 16  ;;  %s1028_s9 = scalar_lea.vmem %s779_s7, 32 }
 0x107   : > { %v590_v58 = vadd.f32 %v589_v55, %v588_v56  ;;  %v660_v7 = vmul.f32 %v1214_v26, %v1214_v26  ;;  %v661_v9 = vmul.f32 %v1184_v20, %v1184_v20  ;;  %v605_v10 = vsel %vm545_vm2, %v1264_v36, 0.0  ;;  %p1023_p6 = scmp.ne.s32.totalorder %s779_s7, %s1022_s8  ;;  %p1029_p9 = scmp.lt.s32.totalorder %s779_s7, %s779_s7 }
 0x108   : > { %v662_v11 = vmul.f32 %v1204_v24, %v1204_v24  ;;  %v607_v13 = vsel %vm545_vm2, %v1284_v40, 0.0  ;;  %v663_v14 = vmul.f32 %v1234_v30, %v1234_v30  ;;  %v691_v15 = vsel %vm545_vm2, %v659_v6, 0.0  ;;  %p1030_p10 = scmp.lt.s32.totalorder %s1028_s9, %s1022_s8 }
 0x109   : > { %v592_v60 = vadd.f32 %v591_v57, %v590_v58  ;;  %v692_v16 = vsel %vm545_vm2, %v660_v7, 0.0  ;;  %v694_v19 = vsel %vm545_vm2, %v661_v9, 0.0  ;;  %v609_v20 = vsel %vm545_vm2, %v1314_v46, 0.0  ;;  %p1024_p7 = pnand %p1023_p6, %p988_p5 }
 0x10a   : > { %v693_v18 = vadd.f32 %v692_v16, %v691_v15  ;;  %v664_v22 = vmul.f32 %v1254_v34, %v1254_v34  ;;  %v696_v24 = vsel %vm545_vm2, %v662_v11, 0.0  ;;  %v611_v30 = vsel %vm545_vm2, %v1334_v50, 0.0  ;;  %p1031_p11 = por %p1030_p10, %p1029_p9 }
 0x10b   : > { %v594_v62 = vadd.f32 %v593_v59, %v592_v60  ;;  %v665_v53 = vmul.f32 %v1224_v28, %v1224_v28  ;;  %v698_v54 = vsel %vm545_vm2, %v663_v14, 0.0  ;;  %v613_v57 = vsel %vm545_vm2, %v1304_v44, 0.0  ;;  %p1025_p8 = pneg %p1024_p7 }
 0x10c   : > { %v695_v52 = vadd.f32 %v694_v19, %v693_v18  ;;  %v666_v34 = vmul.f32 %v1244_v32, %v1244_v32  ;;  %v700_v58 = vsel %vm545_vm2, %v664_v22, 0.0  ;;  %v667_v28 = vmul.f32 %v1274_v38, %v1274_v38 }
 0x10d   : > { %v596_v0 = vadd.f32 %v595_v61, %v594_v62  ;;  %v615_v61 = vsel %vm545_vm2, %v1324_v48, 0.0  ;;  %v702_v62 = vsel %vm545_vm2, %v665_v53, 0.0  ;;  %v668_v32 = vmul.f32 %v1294_v42, %v1294_v42  ;;  %p1032_p12 = pnand %p1031_p11, %p1025_p8 }
 0x10e   : > { %v697_v56 = vadd.f32 %v696_v24, %v695_v52  ;;  %v669_v38 = vmul.f32 %v1264_v36, %v1264_v36  ;;  %v706_v6 = vsel %vm545_vm2, %v667_v28, 0.0  ;;  %v621_v9 = vsel %vm545_vm2, %v1186_v21, 0.0 }
 0x10f   : > { %v598_v2 = vadd.f32 %v597_v63, %v596_v0  ;;  %v670_v42 = vmul.f32 %v1284_v40, %v1284_v40  ;;  %v671_v36 = vmul.f32 %v1314_v46, %v1314_v46  ;;  %v672_v40 = vmul.f32 %v1334_v50, %v1334_v50 }
 0x110   : > { %v699_v60 = vadd.f32 %v698_v54, %v697_v56  ;;  %v710_v14 = vsel %vm545_vm2, %v669_v38, 0.0  ;;  %v627_v22 = vsel %vm545_vm2, %v1256_v35, 0.0  ;;  %v673_v46 = vmul.f32 %v1304_v44, %v1304_v44 }
 0x111   : > { %v600_v4 = vadd.f32 %v599_v1, %v598_v2  ;;  %v617_v1 = vsel %vm545_vm2, %v1196_v23, 0.0  ;;  %v704_v2 = vsel %vm545_vm2, %v666_v34, 0.0  ;;  %v712_v18 = vsel %vm545_vm2, %v670_v42, 0.0 }
 0x112   : > { %v701_v0 = vadd.f32 %v700_v58, %v699_v60  ;;  %v714_v24 = vsel %vm545_vm2, %v671_v36, 0.0  ;;  %v674_v50 = vmul.f32 %v1324_v48, %v1324_v48  ;;  %v716_v53 = vsel %vm545_vm2, %v672_v40, 0.0 }
 0x113   : > { %v602_v8 = vadd.f32 %v601_v3, %v600_v4  ;;  %v631_v56 = vsel %vm545_vm2, %v1246_v33, 0.0  ;;  %v675_v44 = vmul.f32 %v1196_v23, %v1196_v23  ;;  %v676_v48 = vmul.f32 %v1216_v27, %v1216_v27 }
 0x114   : > { %v703_v4 = vadd.f32 %v702_v62, %v701_v0  ;;  %v720_v60 = vsel %vm545_vm2, %v674_v50, 0.0  ;;  %v635_v62 = vsel %vm545_vm2, %v1296_v43, 0.0  ;;  %v677_v23 = vmul.f32 %v1186_v21, %v1186_v21 }
 0x115   : > { %v604_v12 = vadd.f32 %v603_v5, %v602_v8  ;;  %v619_v5 = vsel %vm545_vm2, %v1216_v27, 0.0  ;;  %v678_v27 = vmul.f32 %v1206_v25, %v1206_v25  ;;  %v679_v21 = vmul.f32 %v1236_v31, %v1236_v31 }
 0x116   : > { %v705_v8 = vadd.f32 %v704_v2, %v703_v4  ;;  %v724_v2 = vsel %vm545_vm2, %v676_v48, 0.0  ;;  %v726_v38 = vsel %vm545_vm2, %v677_v23, 0.0  ;;  %v647_v40 = vsel %vm545_vm2, %v1326_v49, 0.0 }
 0x117   : > { %v606_v17 = vadd.f32 %v605_v10, %v604_v12  ;;  %v708_v10 = vsel %vm545_vm2, %v668_v32, 0.0  ;;  %v637_v32 = vsel %vm545_vm2, %v1266_v37, 0.0  ;;  %vm656_vm4 = vcmask 0  }
 0x118   : > { %v707_v12 = vadd.f32 %v706_v6, %v705_v8  ;;  %v641_v8 = vsel %vm545_vm2, %v1316_v47, 0.0 }
 0x119   : > { %v608_v26 = vadd.f32 %v607_v13, %v606_v17  ;;  %v623_v13 = vsel %vm545_vm2, %v1206_v25, 0.0  ;;  %v625_v17 = vsel %vm545_vm2, %v1236_v31, 0.0  ;;  %v680_v25 = vmul.f32 %v1256_v35, %v1256_v35 }
 0x11a   : > { %v709_v16 = vadd.f32 %v708_v10, %v707_v12  ;;  %v681_v31 = vmul.f32 %v1226_v29, %v1226_v29  ;;  %v730_v12 = vsel %vm545_vm2, %v679_v21, 0.0  ;;  %v682_v35 = vmul.f32 %v1246_v33, %v1246_v33 }
 0x11b   : > { %v610_v55 = vadd.f32 %v609_v20, %v608_v26 }
 0x11c   : > { %v711_v20 = vadd.f32 %v710_v14, %v709_v16  ;;  %v645_v14 = vsel %vm545_vm2, %v1306_v45, 0.0 }
 0x11d   : > { %v612_v59 = vadd.f32 %v611_v30, %v610_v55  ;;  %v629_v30 = vsel %vm545_vm2, %v1226_v29, 0.0  ;;  %v683_v29 = vmul.f32 %v1276_v39, %v1276_v39 }
 0x11e   : > { %v713_v52 = vadd.f32 %v712_v18, %v711_v20  ;;  %v734_v18 = vsel %vm545_vm2, %v681_v31, 0.0 }
 0x11f   : > { %v614_v63 = vadd.f32 %v613_v57, %v612_v59  ;;  %v718_v57 = vsel %vm545_vm2, %v673_v46, 0.0  ;;  %v633_v59 = vsel %vm545_vm2, %v1276_v39, 0.0  ;;  %v736_v46 = vsel %vm545_vm2, %v682_v35, 0.0 }
 0x120   : > { %v715_v55 = vadd.f32 %v714_v24, %v713_v52  ;;  %v738_v52 = vsel %vm545_vm2, %v683_v29, 0.0  ;;  %v686_v39 = vmul.f32 %v1286_v41, %v1286_v41 }
 0x121   : > { %v616_v3 = vadd.f32 %v615_v61, %v614_v63  ;;  %v722_v63 = vsel %vm545_vm2, %v675_v44, 0.0 }
 0x122   : > { %v717_v58 = vadd.f32 %v716_v53, %v715_v55 }
 0x123   : > { %v618_v7 = vadd.f32 %v617_v1, %v616_v3 }
 0x124   : > { %v719_v28 = vadd.f32 %v718_v57, %v717_v58 }
 0x125   : > { %v620_v11 = vadd.f32 %v619_v5, %v618_v7  ;;  %v639_v5 = vsel %vm545_vm2, %v1286_v41, 0.0  ;;  %v689_v41 = vmul.f32 %v1306_v45, %v1306_v45 }
 0x126   : > { %v721_v1 = vadd.f32 %v720_v60, %v719_v28  ;;  %v690_v28 = vmul.f32 %v1326_v49, %v1326_v49 }
 0x127   : > { %v622_v15 = vadd.f32 %v621_v9, %v620_v11  ;;  %v728_v9 = vsel %vm545_vm2, %v678_v27, 0.0  ;;  %v643_v11 = vsel %vm545_vm2, %v1336_v51, 0.0 }
 0x128   : > { %v723_v4 = vadd.f32 %v722_v63, %v721_v1  ;;  %v750_v63 = vsel %vm545_vm2, %v689_v41, 0.0  ;;  %v752_v1 = vsel %vm545_vm2, %v690_v28, 0.0 }
 0x129   : > { %v624_v19 = vadd.f32 %v623_v13, %v622_v15  ;;  %v732_v15 = vsel %vm545_vm2, %v680_v25, 0.0 }
 0x12a   : > { %v725_v7 = vadd.f32 %v724_v2, %v723_v4 }
 0x12b   : > { %v626_v26 = vadd.f32 %v625_v17, %v624_v19 }
 0x12c   : > { %v727_v10 = vadd.f32 %v726_v38, %v725_v7 }
 0x12d   : > { %v628_v54 = vadd.f32 %v627_v22, %v626_v26  ;;  %v684_v22 = vmul.f32 %v1296_v43, %v1296_v43  ;;  %v685_v26 = vmul.f32 %v1266_v37, %v1266_v37  ;;  %v687_v43 = vmul.f32 %v1316_v47, %v1316_v47  ;;  %v585_v47 = vld [vmem:[#allocation2] sm:$0x1] }
 0x12e   : > { %v729_v36 = vadd.f32 %v728_v9, %v727_v10  ;;  %v688_v37 = vmul.f32 %v1336_v51, %v1336_v51 }
 0x12f   : > { %v630_v34 = vadd.f32 %v629_v30, %v628_v54  ;;  %v740_v53 = vsel %vm545_vm2, %v684_v22, 0.0  ;;  %v746_v48 = vsel %vm545_vm2, %v687_v43, 0.0 }
 0x130   : > { %v731_v17 = vadd.f32 %v730_v12, %v729_v36 }
 0x131   : > { %v632_v61 = vadd.f32 %v631_v56, %v630_v34  ;;  %v742_v56 = vsel %vm545_vm2, %v685_v26, 0.0  ;;  %v744_v34 = vsel %vm545_vm2, %v686_v39, 0.0 }
 0x132   : > { %v733_v20 = vadd.f32 %v732_v15, %v731_v17 }
 0x133   : > { %v634_v0 = vadd.f32 %v633_v59, %v632_v61 }
 0x134   : > { %v735_v24 = vadd.f32 %v734_v18, %v733_v20 }
 0x135   : > { %v636_v3 = vadd.f32 %v635_v62, %v634_v0  ;;  %v748_v62 = vsel %vm545_vm2, %v688_v37, 0.0 }
 0x136   : > { %v737_v50 = vadd.f32 %v736_v46, %v735_v24 }
 0x137   : > { %v638_v6 = vadd.f32 %v637_v32, %v636_v3 }
 0x138   : > { %v739_v55 = vadd.f32 %v738_v52, %v737_v50 }
 0x139   : > { %v640_v42 = vadd.f32 %v639_v5, %v638_v6 }
 0x13a   : > { %v741_v57 = vadd.f32 %v740_v53, %v739_v55 }
 0x13b   : > { %v642_v13 = vadd.f32 %v641_v8, %v640_v42 }
 0x13c   : > { %v743_v59 = vadd.f32 %v742_v56, %v741_v57 }
 0x13d   : > { %v644_v16 = vadd.f32 %v643_v11, %v642_v13 }
 0x13e   : > { %v745_v61 = vadd.f32 %v744_v34, %v743_v59 }
 0x13f   : > { %v646_v19 = vadd.f32 %v645_v14, %v644_v16 }
 0x140   : > { %v747_v23 = vadd.f32 %v746_v48, %v745_v61 }
 0x141   : > { %v648_v33 = vadd.f32 %v647_v40, %v646_v19 }
 0x142   : > { %v749_v0 = vadd.f32 %v748_v62, %v747_v23 }
 0x143   : > { %v649_v30 = vrot.slane %v648_v33, 4 }
 0x144   : > { %v751_v32 = vadd.f32 %v750_v63, %v749_v0 }
 0x145   : > { %v650_v54 = vadd.f32 %v649_v30, %v648_v33 }
 0x147   : > { %v651_v44 = vrot.slane %v650_v54, 2 }
 0x149   : > { %v652_v58 = vadd.f32 %v651_v44, %v650_v54 }
 0x14b   : > { %v653_v60 = vrot.slane %v652_v58, 1 }
 0x14d   : > { %v654_v51 = vadd.f32 %v653_v60, %v652_v58 }
 0x14f   : > { %v655_v45 = vadd.f32 %v654_v51, %v585_v47 }
 0x151   : > { %657 = vst.msk [vmem:[#allocation2] sm:$0x1] %vm656_vm4, %v655_v45 }
 0x152   : > { %1035 = shalt.err (!%p1032_p12)
}
 0x153   : > { %s1036_s12 = scalar_lea.hbm %s1558_s3, 16 }
 0x154   : > { %p1037_p13 = scmp.ne.s32.totalorder %s1558_s3, %s1036_s12  ;;  %p1042_p2 = scmp.lt.u32.totalorder %s1036_s12, %s1558_s3 }
 0x156   : > { %p1038_p0 = pnand %p1037_p13, %p988_p5 }
 0x158   : > { %p1039_p1 = pneg %p1038_p0 }
 0x15a   : > { %p1044_p3 = pnand %p1042_p2, %p1039_p1 }
 0x15c   : > { %1047 = shalt.err (!%p1044_p3)
}
 0x15d   : > { %981 = dma.vmem_to_hbm [thread:$0]  (%p988_p5), %s779_s7, 16, %s1558_s3, [#allocation3]   ;;  %v753_v49 = vadd.f32 %v752_v1, %v751_v32  ;;  %v658_v21 = vld [vmem:[#allocation4] sm:$0x1] }
 0x15e   : > { %s1092_s21 = smov [#allocation4]  }
 0x15f   : > { %v754_v27 = vrot.slane %v753_v49, 4  ;;  %s789_s22 = sshll.u32 %s1092_s21, 4  ;;  %s790_s22 = int_to_ptr.vmem [resolvable:$true] %s789_s22 }
 0x160   : > { %s1048_s23 = scalar_lea.vmem %s790_s22, 16  ;;  %s1054_s24 = scalar_lea.vmem %s790_s22, 32 }
 0x161   : > { %v755_v2 = vadd.f32 %v754_v27, %v753_v49  ;;  %p1049_p4 = scmp.ne.s32.totalorder %s790_s22, %s1048_s23  ;;  %p1055_p8 = scmp.lt.s32.totalorder %s790_s22, %s790_s22 }
 0x162   : > { %p1056_p9 = scmp.lt.s32.totalorder %s1054_s24, %s1048_s23 }
 0x163   : > { %v756_v3 = vrot.slane %v755_v2, 2  ;;  %p1050_p6 = pnand %p1049_p4, %p988_p5 }
 0x164   : > { %p1057_p10 = por %p1056_p9, %p1055_p8 }
 0x165   : > { %v757_v4 = vadd.f32 %v756_v3, %v755_v2  ;;  %p1051_p7 = pneg %p1050_p6 }
 0x167   : > { %v758_v5 = vrot.slane %v757_v4, 1  ;;  %p1058_p11 = pnand %p1057_p10, %p1051_p7 }
 0x169   : > { %v759_v38 = vadd.f32 %v758_v5, %v757_v4 }
 0x16b   : > { %v760_v6 = vadd.f32 %v759_v38, %v658_v21 }
 0x16d   : > { %761 = vst.msk [vmem:[#allocation4] sm:$0x1] %vm656_vm4, %v760_v6 }
 0x16e   : > { %1061 = shalt.err (!%p1058_p11)
}
 0x16f   : > { %s1062_s27 = scalar_lea.hbm %s1559_s4, 16 }
 0x170   : > { %p1063_p12 = scmp.ne.s32.totalorder %s1559_s4, %s1062_s27  ;;  %p1068_p1 = scmp.lt.u32.totalorder %s1062_s27, %s1559_s4 }
 0x172   : > { %p1064_p13 = pnand %p1063_p12, %p988_p5 }
 0x174   : > { %p1065_p0 = pneg %p1064_p13 }
 0x176   : > { %p1070_p2 = pnand %p1068_p1, %p1065_p0 }
 0x178   : > { %1073 = shalt.err (!%p1070_p2)
}
 0x179   : > { %983 = dma.vmem_to_hbm [thread:$0]  (%p988_p5), %s790_s22, 16, %s1559_s4, [#allocation5]  }
 0x17a   : > { %1079 = dma.done.wait (%p988_p5), [#allocation3], 16  }
 0x17b   : > { %1081 = vsyncadd (%p988_p5), [#allocation3], 4294967280 }
 0x17c   : > { %1083 = dma.done.wait (%p988_p5), [#allocation5], 16  }
 0x17d   : > { %1085 = vsyncadd (%p988_p5), [#allocation5], 4294967280 }
 0x17e PF: > { %s17_s15 = sadd.s32 1, %s1088_s15  }
 0x17f   : > { %p14_p3 = scmp.ge.s32.totalorder %s17_s15, 8  }
 0x181   :  { %16 = sbr.rel (!%p14_p3) target bundleno = 2 (0x2), region = 79 }
 0x188   :  { %814 = vsyncpa [#allocation3], 1 }
 0x189   :  { %816 = vsyncpa [#allocation3 + $0x1], 1 }
 0x18a   :  { %817 = vsyncpa [#allocation5], 1 }

// kernel: _lambda_.53
= control target key start
LH: loop header
LB: loop body
LE: loop exit
PB: predicated region body
PF: predicated region fallthrough
CT: control target
= control target key end

     0   :  { %s624_s16 = smov 0   ;;  %s969_s0 = inlined_call_operand.vmem [shape: f32[1536,1], index: 0, kind: input, shape index: {}]   ;;  %s970_s1 = inlined_call_operand.<no memory space> [shape: f32[1,1], index: 1, kind: input, shape index: {}]   ;;  %s971_s3 = inlined_call_operand.vmem [shape: f32[1536,1], index: 3, kind: output, shape index: {}]   ;;  %s972_s2 = inlined_call_operand.<no memory space> [shape: f32[1,1], index: 2, kind: input, shape index: {}]  }
   0x1   :  { %v8_v0 = vstv %s970_s1  ;;  %v10_v1 = vstv %s972_s2 }
   0x2   :  { %9 = vst [vmem:[#allocation2] sm:$0x1] %v8_v0  ;;  %11 = vst [vmem:[#allocation3] sm:$0x1] %v10_v1 }
   0x3 LB: > { %s569_s17 = sadd.s32 4294967295, %s596_s16   ;;  %p573_p0 = scmp.ge.s32.totalorder %s596_s16, 1  ;;  %s596_s16 = sphi %s624_s16, %s17_s16  }
   0x4   : > { %p142_p1 = scmp.lt.s32.totalorder %s596_s16, 4 }
   0x6   : > { %p143_p2 = pnand %p573_p0, %p142_p1 }
   0x7   : > { %s574_s1 = sshll.u32 (!%p143_p2), %s569_s17, 6  ;;  %vm448_vm0 = vcmask (!%p143_p2), 7168  }
   0x8   : > { %146 = sbr.rel (%p143_p2) target bundleno = 72 (0x48), region = 32  ;;  %p167_p3 = scmp.lt.s32.totalorder (!%p143_p2), %s574_s1, 191 }
   0x9   : > { %v632_v2 = vld [vmem:[#allocation2] ss:$0 sm:$0xff] (!%p143_p2)  ;;  %v639_v3 = vld [vmem:[#allocation3] ss:$0 sm:$0xff] (!%p143_p2) }
   0xf   : > { %s974_s1 = smov (!%p167_p3, %s574_s1), 191 }
  0x10   : > { %s575_s2 = sshll.u32 %s974_s1, 3 }
  0x11   : > { %s637_s20 = scalar_lea.vmem %s969_s0, %s575_s2  ;;  %s662_s23 = scalar_lea.vmem %s971_s3, %s575_s2 }
  0x12   : > { %v178_v4 = vld [vmem:[%s637_s20] sm:$0xff]  ;;  %v179_v5 = vld [vmem:[%s637_s20 + $0x8] sm:$0xff]  ;;  %v180_v6 = vld [vmem:[%s637_s20 + $0x10] sm:$0xff] }
  0x13   : > { %v249_v7 = vsub.f32 %v178_v4, %v632_v2  ;;  %v250_v8 = vsub.f32 %v179_v5, %v632_v2  ;;  %v251_v9 = vsub.f32 %v180_v6, %v632_v2  ;;  %v181_v10 = vld [vmem:[%s637_s20 + $0x18] sm:$0xff]  ;;  %v182_v11 = vld [vmem:[%s637_s20 + $0x20] sm:$0xff]  ;;  %v183_v12 = vld [vmem:[%s637_s20 + $0x28] sm:$0xff] }
  0x14   : > { %v252_v13 = vsub.f32 %v181_v10, %v632_v2  ;;  %v253_v14 = vsub.f32 %v182_v11, %v632_v2  ;;  %v254_v15 = vsub.f32 %v183_v12, %v632_v2  ;;  %v184_v16 = vld [vmem:[%s637_s20 + $0x30] sm:$0xff]  ;;  %v185_v17 = vld [vmem:[%s637_s20 + $0x38] sm:$0xff]  ;;  %v186_v26 = vld [vmem:[%s637_s20 + $0x40] sm:$0xff] }
  0x15   : > { %v320_v18 = vmul.f32 %v639_v3, %v249_v7  ;;  %v321_v19 = vmul.f32 %v639_v3, %v250_v8  ;;  %v322_v20 = vmul.f32 %v639_v3, %v251_v9  ;;  %v255_v21 = vsub.f32 %v184_v16, %v632_v2  ;;  %v187_v27 = vld [vmem:[%s637_s20 + $0x48] sm:$0xff]  ;;  %v188_v28 = vld [vmem:[%s637_s20 + $0x50] sm:$0xff]  ;;  %v189_v33 = vld [vmem:[%s637_s20 + $0x58] sm:$0xff] }
  0x16   : > { %v323_v22 = vmul.f32 %v639_v3, %v252_v13  ;;  %v324_v23 = vmul.f32 %v639_v3, %v253_v14  ;;  %v325_v24 = vmul.f32 %v639_v3, %v254_v15  ;;  %v256_v25 = vsub.f32 %v185_v17, %v632_v2  ;;  %v190_v34 = vld [vmem:[%s637_s20 + $0x60] sm:$0xff]  ;;  %v191_v35 = vld [vmem:[%s637_s20 + $0x68] sm:$0xff]  ;;  %v192_v40 = vld [vmem:[%s637_s20 + $0x70] sm:$0xff] }
  0x17   : > { %v384_v29 = vmax.f32 %v320_v18, 0.0  ;;  %v385_v30 = vmax.f32 %v321_v19, 0.0  ;;  %v386_v31 = vmax.f32 %v322_v20, 0.0  ;;  %v326_v32 = vmul.f32 %v639_v3, %v255_v21  ;;  %v193_v45 = vld [vmem:[%s637_s20 + $0x78] sm:$0xff]  ;;  %v194_v58 = vld [vmem:[%s637_s20 + $0x80] sm:$0xff]  ;;  %v195_v59 = vld [vmem:[%s637_s20 + $0x88] sm:$0xff] }
  0x18   : > { %v387_v36 = vmax.f32 %v323_v22, 0.0  ;;  %v388_v37 = vmax.f32 %v324_v23, 0.0  ;;  %v389_v38 = vmax.f32 %v325_v24, 0.0  ;;  %v327_v39 = vmul.f32 %v639_v3, %v256_v25  ;;  %v196_v60 = vld [vmem:[%s637_s20 + $0x90] sm:$0xff]  ;;  %v197_v1 = vld [vmem:[%s637_s20 + $0x98] sm:$0xff]  ;;  %v198_v4 = vld [vmem:[%s637_s20 + $0xa0] sm:$0xff] }
  0x19   : > { %449 = vst.msk [vmem:[%s662_s23] sm:$0xff] %vm448_vm0, %v384_v29  ;;  %450 = vst.msk [vmem:[%s662_s23 + $0x8] sm:$0xff] %vm448_vm0, %v385_v30  ;;  %v390_v41 = vmax.f32 %v326_v32, 0.0  ;;  %v257_v42 = vsub.f32 %v186_v26, %v632_v2  ;;  %v258_v43 = vsub.f32 %v187_v27, %v632_v2  ;;  %v259_v44 = vsub.f32 %v188_v28, %v632_v2  ;;  %v199_v5 = vld [vmem:[%s637_s20 + $0xa8] sm:$0xff]  ;;  %v200_v10 = vld [vmem:[%s637_s20 + $0xb0] sm:$0xff] }
  0x1a   : > { %451 = vst.msk [vmem:[%s662_s23 + $0x10] sm:$0xff] %vm448_vm0, %v386_v31  ;;  %452 = vst.msk [vmem:[%s662_s23 + $0x18] sm:$0xff] %vm448_vm0, %v387_v36  ;;  %v391_v46 = vmax.f32 %v327_v39, 0.0  ;;  %v260_v47 = vsub.f32 %v189_v33, %v632_v2  ;;  %v261_v48 = vsub.f32 %v190_v34, %v632_v2  ;;  %v262_v49 = vsub.f32 %v191_v35, %v632_v2  ;;  %v201_v15 = vld [vmem:[%s637_s20 + $0xb8] sm:$0xff]  ;;  %v202_v28 = vld [vmem:[%s637_s20 + $0xc0] sm:$0xff] }
  0x1b   : > { %453 = vst.msk [vmem:[%s662_s23 + $0x20] sm:$0xff] %vm448_vm0, %v388_v37  ;;  %454 = vst.msk [vmem:[%s662_s23 + $0x28] sm:$0xff] %vm448_vm0, %v389_v38  ;;  %v328_v50 = vmul.f32 %v639_v3, %v257_v42  ;;  %v329_v51 = vmul.f32 %v639_v3, %v258_v43  ;;  %v330_v52 = vmul.f32 %v639_v3, %v259_v44  ;;  %v203_v29 = vld [vmem:[%s637_s20 + $0xc8] sm:$0xff]  ;;  %v204_v30 = vld [vmem:[%s637_s20 + $0xd0] sm:$0xff] }
  0x1c   : > { %455 = vst.msk [vmem:[%s662_s23 + $0x30] sm:$0xff] %vm448_vm0, %v390_v41  ;;  %v263_v53 = vsub.f32 %v192_v40, %v632_v2  ;;  %456 = vst.msk [vmem:[%s662_s23 + $0x38] sm:$0xff] %vm448_vm0, %v391_v46  ;;  %v331_v54 = vmul.f32 %v639_v3, %v260_v47  ;;  %v332_v55 = vmul.f32 %v639_v3, %v261_v48  ;;  %v205_v35 = vld [vmem:[%s637_s20 + $0xd8] sm:$0xff]  ;;  %v206_v36 = vld [vmem:[%s637_s20 + $0xe0] sm:$0xff] }
  0x1d   : > { %v333_v56 = vmul.f32 %v639_v3, %v262_v49  ;;  %v264_v57 = vsub.f32 %v193_v45, %v632_v2  ;;  %v392_v61 = vmax.f32 %v328_v50, 0.0  ;;  %v393_v62 = vmax.f32 %v329_v51, 0.0  ;;  %v207_v37 = vld [vmem:[%s637_s20 + $0xe8] sm:$0xff]  ;;  %v208_v42 = vld [vmem:[%s637_s20 + $0xf0] sm:$0xff]  ;;  %v209_v47 = vld [vmem:[%s637_s20 + $0xf8] sm:$0xff] }
  0x1e   : > { %v394_v63 = vmax.f32 %v330_v52, 0.0  ;;  %v334_v0 = vmul.f32 %v639_v3, %v263_v53  ;;  %v395_v6 = vmax.f32 %v331_v54, 0.0  ;;  %v396_v7 = vmax.f32 %v332_v55, 0.0 }
  0x1f   : > { %v397_v8 = vmax.f32 %v333_v56, 0.0  ;;  %v335_v9 = vmul.f32 %v639_v3, %v264_v57  ;;  %457 = vst.msk [vmem:[%s662_s23 + $0x40] sm:$0xff] %vm448_vm0, %v392_v61  ;;  %458 = vst.msk [vmem:[%s662_s23 + $0x48] sm:$0xff] %vm448_vm0, %v393_v62  ;;  %v265_v12 = vsub.f32 %v194_v58, %v632_v2  ;;  %v266_v13 = vsub.f32 %v195_v59, %v632_v2  ;;  %v211_v61 = vld [vmem:[%s637_s20 + $0x108] sm:$0xff]  ;;  %v212_v62 = vld [vmem:[%s637_s20 + $0x110] sm:$0xff] }
  0x20   : > { %459 = vst.msk [vmem:[%s662_s23 + $0x50] sm:$0xff] %vm448_vm0, %v394_v63  ;;  %v398_v11 = vmax.f32 %v334_v0, 0.0  ;;  %v267_v14 = vsub.f32 %v196_v60, %v632_v2  ;;  %460 = vst.msk [vmem:[%s662_s23 + $0x58] sm:$0xff] %vm448_vm0, %v395_v6  ;;  %v268_v17 = vsub.f32 %v197_v1, %v632_v2  ;;  %v269_v18 = vsub.f32 %v198_v4, %v632_v2  ;;  %v210_v60 = vld [vmem:[%s637_s20 + $0x100] sm:$0xff] }
  0x21   : > { %461 = vst.msk [vmem:[%s662_s23 + $0x60] sm:$0xff] %vm448_vm0, %v396_v7  ;;  %462 = vst.msk [vmem:[%s662_s23 + $0x68] sm:$0xff] %vm448_vm0, %v397_v8  ;;  %v399_v16 = vmax.f32 %v335_v9, 0.0  ;;  %v270_v19 = vsub.f32 %v199_v5, %v632_v2  ;;  %v336_v20 = vmul.f32 %v639_v3, %v265_v12  ;;  %v337_v21 = vmul.f32 %v639_v3, %v266_v13  ;;  %v213_v5 = vld [vmem:[%s637_s20 + $0x118] sm:$0xff]  ;;  %v214_v6 = vld [vmem:[%s637_s20 + $0x120] sm:$0xff] }
  0x22   : > { %463 = vst.msk [vmem:[%s662_s23 + $0x70] sm:$0xff] %vm448_vm0, %v398_v11  ;;  %v338_v22 = vmul.f32 %v639_v3, %v267_v14  ;;  %v271_v23 = vsub.f32 %v200_v10, %v632_v2  ;;  %v339_v24 = vmul.f32 %v639_v3, %v268_v17  ;;  %v340_v25 = vmul.f32 %v639_v3, %v269_v18  ;;  %v215_v7 = vld [vmem:[%s637_s20 + $0x128] sm:$0xff]  ;;  %v216_v12 = vld [vmem:[%s637_s20 + $0x130] sm:$0xff]  ;;  %v217_v17 = vld [vmem:[%s637_s20 + $0x138] sm:$0xff] }
  0x23   : > { %464 = vst.msk [vmem:[%s662_s23 + $0x78] sm:$0xff] %vm448_vm0, %v399_v16  ;;  %v341_v26 = vmul.f32 %v639_v3, %v270_v19  ;;  %v272_v27 = vsub.f32 %v201_v15, %v632_v2  ;;  %v400_v31 = vmax.f32 %v336_v20, 0.0  ;;  %v401_v32 = vmax.f32 %v337_v21, 0.0 }
  0x24   : > { %v402_v33 = vmax.f32 %v338_v22, 0.0  ;;  %v342_v34 = vmul.f32 %v639_v3, %v271_v23  ;;  %v403_v38 = vmax.f32 %v339_v24, 0.0  ;;  %v404_v39 = vmax.f32 %v340_v25, 0.0 }
  0x25   : > { %v405_v40 = vmax.f32 %v341_v26, 0.0  ;;  %v343_v41 = vmul.f32 %v639_v3, %v272_v27  ;;  %465 = vst.msk [vmem:[%s662_s23 + $0x80] sm:$0xff] %vm448_vm0, %v400_v31  ;;  %466 = vst.msk [vmem:[%s662_s23 + $0x88] sm:$0xff] %vm448_vm0, %v401_v32  ;;  %v273_v44 = vsub.f32 %v202_v28, %v632_v2  ;;  %v274_v45 = vsub.f32 %v203_v29, %v632_v2  ;;  %v219_v31 = vld [vmem:[%s637_s20 + $0x148] sm:$0xff]  ;;  %v220_v32 = vld [vmem:[%s637_s20 + $0x150] sm:$0xff] }
  0x26   : > { %467 = vst.msk [vmem:[%s662_s23 + $0x90] sm:$0xff] %vm448_vm0, %v402_v33  ;;  %v406_v43 = vmax.f32 %v342_v34, 0.0  ;;  %v275_v46 = vsub.f32 %v204_v30, %v632_v2  ;;  %468 = vst.msk [vmem:[%s662_s23 + $0x98] sm:$0xff] %vm448_vm0, %v403_v38  ;;  %v276_v49 = vsub.f32 %v205_v35, %v632_v2  ;;  %v277_v50 = vsub.f32 %v206_v36, %v632_v2  ;;  %v218_v30 = vld [vmem:[%s637_s20 + $0x140] sm:$0xff] }
  0x27   : > { %469 = vst.msk [vmem:[%s662_s23 + $0xa0] sm:$0xff] %vm448_vm0, %v404_v39  ;;  %470 = vst.msk [vmem:[%s662_s23 + $0xa8] sm:$0xff] %vm448_vm0, %v405_v40  ;;  %v407_v48 = vmax.f32 %v343_v41, 0.0  ;;  %v278_v51 = vsub.f32 %v207_v37, %v632_v2  ;;  %v344_v52 = vmul.f32 %v639_v3, %v273_v44  ;;  %v345_v53 = vmul.f32 %v639_v3, %v274_v45  ;;  %v221_v37 = vld [vmem:[%s637_s20 + $0x158] sm:$0xff]  ;;  %v222_v38 = vld [vmem:[%s637_s20 + $0x160] sm:$0xff] }
  0x28   : > { %471 = vst.msk [vmem:[%s662_s23 + $0xb0] sm:$0xff] %vm448_vm0, %v406_v43  ;;  %v346_v54 = vmul.f32 %v639_v3, %v275_v46  ;;  %v279_v55 = vsub.f32 %v208_v42, %v632_v2  ;;  %v347_v56 = vmul.f32 %v639_v3, %v276_v49  ;;  %v348_v57 = vmul.f32 %v639_v3, %v277_v50  ;;  %v223_v39 = vld [vmem:[%s637_s20 + $0x168] sm:$0xff]  ;;  %v224_v44 = vld [vmem:[%s637_s20 + $0x170] sm:$0xff]  ;;  %v225_v49 = vld [vmem:[%s637_s20 + $0x178] sm:$0xff] }
  0x29   : > { %472 = vst.msk [vmem:[%s662_s23 + $0xb8] sm:$0xff] %vm448_vm0, %v407_v48  ;;  %v349_v58 = vmul.f32 %v639_v3, %v278_v51  ;;  %v280_v59 = vsub.f32 %v209_v47, %v632_v2  ;;  %v408_v63 = vmax.f32 %v344_v52, 0.0  ;;  %v409_v0 = vmax.f32 %v345_v53, 0.0 }
  0x2a   : > { %v410_v1 = vmax.f32 %v346_v54, 0.0  ;;  %v350_v4 = vmul.f32 %v639_v3, %v279_v55  ;;  %v411_v8 = vmax.f32 %v347_v56, 0.0  ;;  %v412_v9 = vmax.f32 %v348_v57, 0.0 }
  0x2b   : > { %v413_v10 = vmax.f32 %v349_v58, 0.0  ;;  %v351_v11 = vmul.f32 %v639_v3, %v280_v59  ;;  %473 = vst.msk [vmem:[%s662_s23 + $0xc0] sm:$0xff] %vm448_vm0, %v408_v63  ;;  %474 = vst.msk [vmem:[%s662_s23 + $0xc8] sm:$0xff] %vm448_vm0, %v409_v0  ;;  %v281_v14 = vsub.f32 %v210_v60, %v632_v2  ;;  %v282_v15 = vsub.f32 %v211_v61, %v632_v2  ;;  %v227_v63 = vld [vmem:[%s637_s20 + $0x188] sm:$0xff]  ;;  %v228_v0 = vld [vmem:[%s637_s20 + $0x190] sm:$0xff] }
  0x2c   : > { %475 = vst.msk [vmem:[%s662_s23 + $0xd0] sm:$0xff] %vm448_vm0, %v410_v1  ;;  %v414_v13 = vmax.f32 %v350_v4, 0.0  ;;  %v283_v16 = vsub.f32 %v212_v62, %v632_v2  ;;  %476 = vst.msk [vmem:[%s662_s23 + $0xd8] sm:$0xff] %vm448_vm0, %v411_v8  ;;  %v284_v19 = vsub.f32 %v213_v5, %v632_v2  ;;  %v285_v20 = vsub.f32 %v214_v6, %v632_v2  ;;  %v226_v62 = vld [vmem:[%s637_s20 + $0x180] sm:$0xff] }
  0x2d   : > { %477 = vst.msk [vmem:[%s662_s23 + $0xe0] sm:$0xff] %vm448_vm0, %v412_v9  ;;  %478 = vst.msk [vmem:[%s662_s23 + $0xe8] sm:$0xff] %vm448_vm0, %v413_v10  ;;  %v415_v18 = vmax.f32 %v351_v11, 0.0  ;;  %v286_v21 = vsub.f32 %v215_v7, %v632_v2  ;;  %v352_v22 = vmul.f32 %v639_v3, %v281_v14  ;;  %v353_v23 = vmul.f32 %v639_v3, %v282_v15  ;;  %v229_v7 = vld [vmem:[%s637_s20 + $0x198] sm:$0xff]  ;;  %v230_v8 = vld [vmem:[%s637_s20 + $0x1a0] sm:$0xff] }
  0x2e   : > { %479 = vst.msk [vmem:[%s662_s23 + $0xf0] sm:$0xff] %vm448_vm0, %v414_v13  ;;  %v354_v24 = vmul.f32 %v639_v3, %v283_v16  ;;  %v287_v25 = vsub.f32 %v216_v12, %v632_v2  ;;  %v355_v26 = vmul.f32 %v639_v3, %v284_v19  ;;  %v356_v27 = vmul.f32 %v639_v3, %v285_v20  ;;  %v231_v9 = vld [vmem:[%s637_s20 + $0x1a8] sm:$0xff]  ;;  %v232_v14 = vld [vmem:[%s637_s20 + $0x1b0] sm:$0xff]  ;;  %v233_v19 = vld [vmem:[%s637_s20 + $0x1b8] sm:$0xff] }
  0x2f   : > { %480 = vst.msk [vmem:[%s662_s23 + $0xf8] sm:$0xff] %vm448_vm0, %v415_v18  ;;  %v357_v28 = vmul.f32 %v639_v3, %v286_v21  ;;  %v288_v29 = vsub.f32 %v217_v17, %v632_v2  ;;  %v416_v33 = vmax.f32 %v352_v22, 0.0  ;;  %v417_v34 = vmax.f32 %v353_v23, 0.0 }
  0x30   : > { %v418_v35 = vmax.f32 %v354_v24, 0.0  ;;  %v358_v36 = vmul.f32 %v639_v3, %v287_v25  ;;  %v419_v40 = vmax.f32 %v355_v26, 0.0  ;;  %v420_v41 = vmax.f32 %v356_v27, 0.0 }
  0x31   : > { %v421_v42 = vmax.f32 %v357_v28, 0.0  ;;  %v359_v43 = vmul.f32 %v639_v3, %v288_v29  ;;  %481 = vst.msk [vmem:[%s662_s23 + $0x100] sm:$0xff] %vm448_vm0, %v416_v33  ;;  %482 = vst.msk [vmem:[%s662_s23 + $0x108] sm:$0xff] %vm448_vm0, %v417_v34  ;;  %v289_v46 = vsub.f32 %v218_v30, %v632_v2  ;;  %v290_v47 = vsub.f32 %v219_v31, %v632_v2  ;;  %v235_v33 = vld [vmem:[%s637_s20 + $0x1c8] sm:$0xff]  ;;  %v236_v34 = vld [vmem:[%s637_s20 + $0x1d0] sm:$0xff] }
  0x32   : > { %483 = vst.msk [vmem:[%s662_s23 + $0x110] sm:$0xff] %vm448_vm0, %v418_v35  ;;  %v422_v45 = vmax.f32 %v358_v36, 0.0  ;;  %v291_v48 = vsub.f32 %v220_v32, %v632_v2  ;;  %484 = vst.msk [vmem:[%s662_s23 + $0x118] sm:$0xff] %vm448_vm0, %v419_v40  ;;  %v292_v51 = vsub.f32 %v221_v37, %v632_v2  ;;  %v293_v52 = vsub.f32 %v222_v38, %v632_v2  ;;  %v234_v32 = vld [vmem:[%s637_s20 + $0x1c0] sm:$0xff] }
  0x33   : > { %485 = vst.msk [vmem:[%s662_s23 + $0x120] sm:$0xff] %vm448_vm0, %v420_v41  ;;  %486 = vst.msk [vmem:[%s662_s23 + $0x128] sm:$0xff] %vm448_vm0, %v421_v42  ;;  %v423_v50 = vmax.f32 %v359_v43, 0.0  ;;  %v294_v53 = vsub.f32 %v223_v39, %v632_v2  ;;  %v360_v54 = vmul.f32 %v639_v3, %v289_v46  ;;  %v361_v55 = vmul.f32 %v639_v3, %v290_v47  ;;  %v237_v39 = vld [vmem:[%s637_s20 + $0x1d8] sm:$0xff]  ;;  %v238_v40 = vld [vmem:[%s637_s20 + $0x1e0] sm:$0xff] }
  0x34   : > { %487 = vst.msk [vmem:[%s662_s23 + $0x130] sm:$0xff] %vm448_vm0, %v422_v45  ;;  %v362_v56 = vmul.f32 %v639_v3, %v291_v48  ;;  %v295_v57 = vsub.f32 %v224_v44, %v632_v2  ;;  %v363_v58 = vmul.f32 %v639_v3, %v292_v51  ;;  %v364_v59 = vmul.f32 %v639_v3, %v293_v52  ;;  %v239_v41 = vld [vmem:[%s637_s20 + $0x1e8] sm:$0xff]  ;;  %v240_v46 = vld [vmem:[%s637_s20 + $0x1f0] sm:$0xff]  ;;  %v241_v51 = vld [vmem:[%s637_s20 + $0x1f8] sm:$0xff] }
  0x35   : > { %488 = vst.msk [vmem:[%s662_s23 + $0x138] sm:$0xff] %vm448_vm0, %v423_v50  ;;  %v365_v60 = vmul.f32 %v639_v3, %v294_v53  ;;  %v296_v61 = vsub.f32 %v225_v49, %v632_v2  ;;  %v424_v1 = vmax.f32 %v360_v54, 0.0  ;;  %v425_v4 = vmax.f32 %v361_v55, 0.0 }
  0x36   : > { %v426_v5 = vmax.f32 %v362_v56, 0.0  ;;  %v366_v6 = vmul.f32 %v639_v3, %v295_v57  ;;  %v427_v10 = vmax.f32 %v363_v58, 0.0  ;;  %v428_v11 = vmax.f32 %v364_v59, 0.0 }
  0x37   : > { %v429_v12 = vmax.f32 %v365_v60, 0.0  ;;  %v367_v13 = vmul.f32 %v639_v3, %v296_v61  ;;  %489 = vst.msk [vmem:[%s662_s23 + $0x140] sm:$0xff] %vm448_vm0, %v424_v1  ;;  %490 = vst.msk [vmem:[%s662_s23 + $0x148] sm:$0xff] %vm448_vm0, %v425_v4  ;;  %v297_v16 = vsub.f32 %v226_v62, %v632_v2  ;;  %v298_v17 = vsub.f32 %v227_v63, %v632_v2 }
  0x38   : > { %491 = vst.msk [vmem:[%s662_s23 + $0x150] sm:$0xff] %vm448_vm0, %v426_v5  ;;  %v430_v15 = vmax.f32 %v366_v6, 0.0  ;;  %v299_v18 = vsub.f32 %v228_v0, %v632_v2  ;;  %492 = vst.msk [vmem:[%s662_s23 + $0x158] sm:$0xff] %vm448_vm0, %v427_v10  ;;  %v300_v21 = vsub.f32 %v229_v7, %v632_v2  ;;  %v301_v22 = vsub.f32 %v230_v8, %v632_v2 }
  0x39   : > { %493 = vst.msk [vmem:[%s662_s23 + $0x160] sm:$0xff] %vm448_vm0, %v428_v11  ;;  %494 = vst.msk [vmem:[%s662_s23 + $0x168] sm:$0xff] %vm448_vm0, %v429_v12  ;;  %v431_v20 = vmax.f32 %v367_v13, 0.0  ;;  %v302_v23 = vsub.f32 %v231_v9, %v632_v2  ;;  %v368_v24 = vmul.f32 %v639_v3, %v297_v16  ;;  %v369_v25 = vmul.f32 %v639_v3, %v298_v17 }
  0x3a   : > { %495 = vst.msk [vmem:[%s662_s23 + $0x170] sm:$0xff] %vm448_vm0, %v430_v15  ;;  %v370_v26 = vmul.f32 %v639_v3, %v299_v18  ;;  %v303_v27 = vsub.f32 %v232_v14, %v632_v2  ;;  %v371_v28 = vmul.f32 %v639_v3, %v300_v21  ;;  %v372_v29 = vmul.f32 %v639_v3, %v301_v22 }
  0x3b   : > { %496 = vst.msk [vmem:[%s662_s23 + $0x178] sm:$0xff] %vm448_vm0, %v431_v20  ;;  %v373_v30 = vmul.f32 %v639_v3, %v302_v23  ;;  %v304_v31 = vsub.f32 %v233_v19, %v632_v2  ;;  %v432_v35 = vmax.f32 %v368_v24, 0.0  ;;  %v433_v36 = vmax.f32 %v369_v25, 0.0 }
  0x3c   : > { %v434_v37 = vmax.f32 %v370_v26, 0.0  ;;  %v374_v38 = vmul.f32 %v639_v3, %v303_v27  ;;  %v435_v42 = vmax.f32 %v371_v28, 0.0  ;;  %v436_v43 = vmax.f32 %v372_v29, 0.0 }
  0x3d   : > { %v437_v44 = vmax.f32 %v373_v30, 0.0  ;;  %v375_v45 = vmul.f32 %v639_v3, %v304_v31  ;;  %497 = vst.msk [vmem:[%s662_s23 + $0x180] sm:$0xff] %vm448_vm0, %v432_v35  ;;  %498 = vst.msk [vmem:[%s662_s23 + $0x188] sm:$0xff] %vm448_vm0, %v433_v36  ;;  %v305_v48 = vsub.f32 %v234_v32, %v632_v2  ;;  %v306_v49 = vsub.f32 %v235_v33, %v632_v2 }
  0x3e   : > { %499 = vst.msk [vmem:[%s662_s23 + $0x190] sm:$0xff] %vm448_vm0, %v434_v37  ;;  %v438_v47 = vmax.f32 %v374_v38, 0.0  ;;  %v307_v50 = vsub.f32 %v236_v34, %v632_v2  ;;  %500 = vst.msk [vmem:[%s662_s23 + $0x198] sm:$0xff] %vm448_vm0, %v435_v42  ;;  %v308_v53 = vsub.f32 %v237_v39, %v632_v2  ;;  %v309_v54 = vsub.f32 %v238_v40, %v632_v2 }
  0x3f   : > { %501 = vst.msk [vmem:[%s662_s23 + $0x1a0] sm:$0xff] %vm448_vm0, %v436_v43  ;;  %502 = vst.msk [vmem:[%s662_s23 + $0x1a8] sm:$0xff] %vm448_vm0, %v437_v44  ;;  %v439_v52 = vmax.f32 %v375_v45, 0.0  ;;  %v310_v55 = vsub.f32 %v239_v41, %v632_v2  ;;  %v376_v56 = vmul.f32 %v639_v3, %v305_v48  ;;  %v377_v57 = vmul.f32 %v639_v3, %v306_v49 }
  0x40   : > { %503 = vst.msk [vmem:[%s662_s23 + $0x1b0] sm:$0xff] %vm448_vm0, %v438_v47  ;;  %v378_v58 = vmul.f32 %v639_v3, %v307_v50  ;;  %v311_v59 = vsub.f32 %v240_v46, %v632_v2  ;;  %v379_v60 = vmul.f32 %v639_v3, %v308_v53  ;;  %v380_v61 = vmul.f32 %v639_v3, %v309_v54 }
  0x41   : > { %504 = vst.msk [vmem:[%s662_s23 + $0x1b8] sm:$0xff] %vm448_vm0, %v439_v52  ;;  %v381_v62 = vmul.f32 %v639_v3, %v310_v55  ;;  %v312_v63 = vsub.f32 %v241_v51, %v632_v2  ;;  %v440_v0 = vmax.f32 %v376_v56, 0.0  ;;  %v441_v1 = vmax.f32 %v377_v57, 0.0 }
  0x42   : > { %v442_v4 = vmax.f32 %v378_v58, 0.0  ;;  %v382_v5 = vmul.f32 %v639_v3, %v311_v59  ;;  %v443_v6 = vmax.f32 %v379_v60, 0.0  ;;  %v444_v7 = vmax.f32 %v380_v61, 0.0 }
  0x43   : > { %v445_v8 = vmax.f32 %v381_v62, 0.0  ;;  %v383_v9 = vmul.f32 %v639_v3, %v312_v63  ;;  %505 = vst.msk [vmem:[%s662_s23 + $0x1c0] sm:$0xff] %vm448_vm0, %v440_v0  ;;  %506 = vst.msk [vmem:[%s662_s23 + $0x1c8] sm:$0xff] %vm448_vm0, %v441_v1 }
  0x44   : > { %507 = vst.msk [vmem:[%s662_s23 + $0x1d0] sm:$0xff] %vm448_vm0, %v442_v4  ;;  %v446_v10 = vmax.f32 %v382_v5, 0.0  ;;  %508 = vst.msk [vmem:[%s662_s23 + $0x1d8] sm:$0xff] %vm448_vm0, %v443_v6 }
  0x45   : > { %509 = vst.msk [vmem:[%s662_s23 + $0x1e0] sm:$0xff] %vm448_vm0, %v444_v7  ;;  %510 = vst.msk [vmem:[%s662_s23 + $0x1e8] sm:$0xff] %vm448_vm0, %v445_v8  ;;  %v447_v2 = vmax.f32 %v383_v9, 0.0 }
  0x46   : > { %511 = vst.msk [vmem:[%s662_s23 + $0x1f0] sm:$0xff] %vm448_vm0, %v446_v10 }
  0x47   : > { %512 = vst.msk [vmem:[%s662_s23 + $0x1f8] sm:$0xff] %vm448_vm0, %v447_v2 }
  0x48 PF: > { %s17_s16 = sadd.s32 1, %s596_s16  }
  0x49   : > { %p14_p4 = scmp.ge.s32.totalorder %s17_s16, 5  }
  0x4b   :  { %16 = sbr.rel (!%p14_p4) target bundleno = 3 (0x3), region = 62 }

// kernel: _lambda_.54
= control target key start
LH: loop header
LB: loop body
LE: loop exit
PB: predicated region body
PF: predicated region fallthrough
CT: control target
= control target key end

     0   :  { %vm735_vm0 = vcmask 572416   ;;  %s1329_s1 = inlined_call_operand.vmem [shape: bf16[768,198], index: 1, kind: input, shape index: {}]   ;;  %s1330_s0 = inlined_call_operand.vmem [shape: bf16[8,768], index: 0, kind: input, shape index: {}]   ;;  %s1331_s2 = inlined_call_operand.vmem [shape: f32[8,198], index: 2, kind: output, shape index: {}]  }
   0x1   :  { %v849_v0 = vld [vmem:[%s1329_s1 + $0x104] ss:$8 sps:$4 sm:$0xff]   ;;  %v851_v1 = vld [vmem:[%s1329_s1 + $0x100] ss:$8 sps:$4 sm:$0xff]   ;;  %v852_v2 = vld [vmem:[%s1329_s1 + $0x114] ss:$8 sps:$4 sm:$0xff]  }
   0x2   :  { %652 = vmatprep.subr.bf16.mxu0 %v849_v0  ;;  %v854_v3 = vld [vmem:[%s1329_s1 + $0x110] ss:$8 sps:$4 sm:$0xff]   ;;  %v855_v4 = vld [vmem:[%s1329_s1 + $0x124] ss:$8 sps:$4 sm:$0xff]   ;;  %v857_v5 = vld [vmem:[%s1329_s1 + $0x120] ss:$8 sps:$4 sm:$0xff]  }
   0x3   :  { %653 = vmatpush1.bf16.msra.mxu0 %v851_v1  ;;  %v858_v6 = vld [vmem:[%s1329_s1 + $0x134] ss:$8 sps:$4 sm:$0xff]   ;;  %v860_v7 = vld [vmem:[%s1329_s1 + $0x130] ss:$8 sps:$4 sm:$0xff]   ;;  %v861_v8 = vld [vmem:[%s1329_s1 + $0x144] ss:$8 sps:$4 sm:$0xff]  }
   0x4   :  { %654 = vmatprep.subr.bf16.mxu0 %v852_v2  ;;  %v863_v9 = vld [vmem:[%s1329_s1 + $0x140] ss:$8 sps:$4 sm:$0xff]   ;;  %v864_v10 = vld [vmem:[%s1329_s1 + $0x154] ss:$8 sps:$4 sm:$0xff]   ;;  %v866_v11 = vld [vmem:[%s1329_s1 + $0x150] ss:$8 sps:$4 sm:$0xff]  }
   0x5   :  { %v867_v12 = vld [vmem:[%s1329_s1 + $0x164] ss:$8 sps:$4 sm:$0xff]   ;;  %v899_v14 = vld [vmem:[%s1329_s1] ss:$8 sps:$4 sm:$0xff]   ;;  %v870_v18 = vld [vmem:[%s1329_s1 + $0x174] ss:$8 sps:$4 sm:$0xff]  }
   0x6   :  { %v896_v13 = vld [vmem:[%s1329_s1 + $0x4] ss:$8 sps:$4 sm:$0xff]   ;;  %v869_v16 = vld [vmem:[%s1329_s1 + $0x160] ss:$8 sps:$4 sm:$0xff]   ;;  %v905_v19 = vld [vmem:[%s1329_s1 + $0x14] ss:$8 sps:$4 sm:$0xff]  }
   0x7   :  { %655 = vmatpush1.bf16.msra.mxu0 %v854_v3  ;;  %v1062_v15 = vld [vmem:[%s1330_s0 + $0x8] sm:$0xff]  ;;  %611 = vmatprep.subr.bf16.mxu1 %v896_v13  ;;  %v907_v20 = vld [vmem:[%s1329_s1 + $0x10] ss:$8 sps:$4 sm:$0xff]   ;;  %v917_v26 = vld [vmem:[%s1329_s1 + $0x34] ss:$8 sps:$4 sm:$0xff]  }
   0x8   :  { %656 = vmatprep.subr.bf16.mxu0 %v855_v4  ;;  %v744_v17 = vcombine.high %v1062_v15, %v1062_v15  ;;  %612 = vmatpush1.bf16.msra.mxu1 %v899_v14  ;;  %v872_v21 = vld [vmem:[%s1329_s1 + $0x170] ss:$8 sps:$4 sm:$0xff]   ;;  %v873_v22 = vld [vmem:[%s1329_s1 + $0x184] ss:$8 sps:$4 sm:$0xff]   ;;  %v913_v24 = vld [vmem:[%s1329_s1 + $0x20] ss:$8 sps:$4 sm:$0xff]   ;;  %v743_v58 = vcombine.low %v1062_v15, %v1062_v15 }
   0x9   :  { %613 = vmatprep.subr.bf16.mxu1 %v905_v19  ;;  %v911_v23 = vld [vmem:[%s1329_s1 + $0x24] ss:$8 sps:$4 sm:$0xff]   ;;  %v875_v25 = vld [vmem:[%s1329_s1 + $0x180] ss:$8 sps:$4 sm:$0xff]   ;;  %v876_v27 = vld [vmem:[%s1329_s1 + $0x194] ss:$8 sps:$4 sm:$0xff]  }
   0xa   :  { %684 = vmatprep.mubr.bf16.mxu0 %v744_v17  ;;  %v919_v28 = vld [vmem:[%s1329_s1 + $0x30] ss:$8 sps:$4 sm:$0xff]   ;;  %v923_v29 = vld [vmem:[%s1329_s1 + $0x44] ss:$8 sps:$4 sm:$0xff]   ;;  %v925_v32 = vld [vmem:[%s1329_s1 + $0x40] ss:$8 sps:$4 sm:$0xff]  }
   0xb   :  { %657 = vmatpush1.bf16.msra.mxu0 %v857_v5  ;;  %v878_v30 = vld [vmem:[%s1329_s1 + $0x190] ss:$8 sps:$4 sm:$0xff]   ;;  %v879_v31 = vld [vmem:[%s1329_s1 + $0x1a4] ss:$8 sps:$4 sm:$0xff]   ;;  %v929_v33 = vld [vmem:[%s1329_s1 + $0x54] ss:$8 sps:$4 sm:$0xff]  }
   0xc   :  { %658 = vmatprep.subr.bf16.mxu0 %v858_v6  ;;  %614 = vmatpush1.bf16.msra.mxu1 %v907_v20  ;;  %v881_v34 = vld [vmem:[%s1329_s1 + $0x1a0] ss:$8 sps:$4 sm:$0xff]   ;;  %v882_v35 = vld [vmem:[%s1329_s1 + $0x1b4] ss:$8 sps:$4 sm:$0xff]   ;;  %v931_v36 = vld [vmem:[%s1329_s1 + $0x50] ss:$8 sps:$4 sm:$0xff]  }
   0xd   :  { %615 = vmatprep.subr.bf16.mxu1 %v911_v23  ;;  %v935_v37 = vld [vmem:[%s1329_s1 + $0x64] ss:$8 sps:$4 sm:$0xff]   ;;  %v884_v38 = vld [vmem:[%s1329_s1 + $0x1b0] ss:$8 sps:$4 sm:$0xff]   ;;  %v937_v40 = vld [vmem:[%s1329_s1 + $0x60] ss:$8 sps:$4 sm:$0xff]  }
   0xe   :  { %v885_v39 = vld [vmem:[%s1329_s1 + $0x1c4] ss:$8 sps:$4 sm:$0xff]   ;;  %v941_v41 = vld [vmem:[%s1329_s1 + $0x74] ss:$8 sps:$4 sm:$0xff]   ;;  %v887_v42 = vld [vmem:[%s1329_s1 + $0x1c0] ss:$8 sps:$4 sm:$0xff]  }
   0xf   :  { %659 = vmatpush1.bf16.msra.mxu0 %v860_v7  ;;  %v888_v43 = vld [vmem:[%s1329_s1 + $0x1d4] ss:$8 sps:$4 sm:$0xff]   ;;  %v943_v44 = vld [vmem:[%s1329_s1 + $0x70] ss:$8 sps:$4 sm:$0xff]   ;;  %v947_v45 = vld [vmem:[%s1329_s1 + $0x84] ss:$8 sps:$4 sm:$0xff]  }
  0x10   :  { %660 = vmatprep.subr.bf16.mxu0 %v861_v8  ;;  %616 = vmatpush1.bf16.msra.mxu1 %v913_v24  ;;  %v890_v46 = vld [vmem:[%s1329_s1 + $0x1d0] ss:$8 sps:$4 sm:$0xff]   ;;  %v891_v47 = vld [vmem:[%s1329_s1 + $0x1e4] ss:$8 sps:$4 sm:$0xff]   ;;  %v949_v48 = vld [vmem:[%s1329_s1 + $0x80] ss:$8 sps:$4 sm:$0xff]  }
  0x11   :  { %617 = vmatprep.subr.bf16.mxu1 %v917_v26  ;;  %v953_v49 = vld [vmem:[%s1329_s1 + $0x94] ss:$8 sps:$4 sm:$0xff]   ;;  %v893_v50 = vld [vmem:[%s1329_s1 + $0x1e0] ss:$8 sps:$4 sm:$0xff]   ;;  %v955_v52 = vld [vmem:[%s1329_s1 + $0x90] ss:$8 sps:$4 sm:$0xff]  }
  0x12   :  { %v894_v51 = vld [vmem:[%s1329_s1 + $0x1f4] ss:$8 sps:$4 sm:$0xff]   ;;  %v959_v53 = vld [vmem:[%s1329_s1 + $0xa4] ss:$8 sps:$4 sm:$0xff]   ;;  %v898_v54 = vld [vmem:[%s1329_s1 + $0x1f0] ss:$8 sps:$4 sm:$0xff]  }
  0x13   :  { %661 = vmatpush1.bf16.msra.mxu0 %v863_v9  ;;  %v904_v55 = vld [vmem:[%s1329_s1 + $0x204] ss:$8 sps:$4 sm:$0xff]   ;;  %v961_v56 = vld [vmem:[%s1329_s1 + $0xa0] ss:$8 sps:$4 sm:$0xff]   ;;  %v965_v57 = vld [vmem:[%s1329_s1 + $0xb4] ss:$8 sps:$4 sm:$0xff]  }
  0x14   :  { %662 = vmatprep.subr.bf16.mxu0 %v864_v10  ;;  %618 = vmatpush1.bf16.msra.mxu1 %v919_v28  ;;  %v902_v59 = vld [vmem:[%s1329_s1 + $0x200] ss:$8 sps:$4 sm:$0xff]   ;;  %v910_v61 = vld [vmem:[%s1329_s1 + $0x214] ss:$8 sps:$4 sm:$0xff]   ;;  %v967_v62 = vld [vmem:[%s1329_s1 + $0xb0] ss:$8 sps:$4 sm:$0xff]  }
  0x15   :  { %619 = vmatprep.subr.bf16.mxu1 %v923_v29  ;;  %v11_v60 = vld [vmem:[%s1330_s0] sm:$0xff]  ;;  %v1206_v0 = vld [vmem:[%s1330_s0 + $0x10] sm:$0xff] }
  0x16   :  { %v742_v63 = vcombine.high %v11_v60, %v11_v60  ;;  %v971_v1 = vld [vmem:[%s1329_s1 + $0xc4] ss:$8 sps:$4 sm:$0xff]   ;;  %v746_v2 = vcombine.high %v1206_v0, %v1206_v0  ;;  %v908_v3 = vld [vmem:[%s1329_s1 + $0x210] ss:$8 sps:$4 sm:$0xff]   ;;  %v973_v5 = vld [vmem:[%s1329_s1 + $0xc0] ss:$8 sps:$4 sm:$0xff]   ;;  %v741_v19 = vcombine.low %v11_v60, %v11_v60 }
  0x17   :  { %663 = vmatpush1.bf16.msra.mxu0 %v866_v11  ;;  %v916_v4 = vld [vmem:[%s1329_s1 + $0x224] ss:$8 sps:$4 sm:$0xff]   ;;  %v977_v6 = vld [vmem:[%s1329_s1 + $0xd4] ss:$8 sps:$4 sm:$0xff]   ;;  %v914_v7 = vld [vmem:[%s1329_s1 + $0x220] ss:$8 sps:$4 sm:$0xff]  }
  0x18   :  { %664 = vmatprep.subr.bf16.mxu0 %v867_v12  ;;  %620 = vmatpush1.bf16.msra.mxu1 %v925_v32  ;;  %v922_v8 = vld [vmem:[%s1329_s1 + $0x234] ss:$8 sps:$4 sm:$0xff]   ;;  %v979_v9 = vld [vmem:[%s1329_s1 + $0xd0] ss:$8 sps:$4 sm:$0xff]   ;;  %v983_v10 = vld [vmem:[%s1329_s1 + $0xe4] ss:$8 sps:$4 sm:$0xff]  }
  0x19   :  { %621 = vmatprep.subr.bf16.mxu1 %v929_v33  ;;  %643 = vmatprep.mubr.bf16.mxu1 %v742_v63  ;;  %v920_v11 = vld [vmem:[%s1329_s1 + $0x230] ss:$8 sps:$4 sm:$0xff]   ;;  %v928_v12 = vld [vmem:[%s1329_s1 + $0x244] ss:$8 sps:$4 sm:$0xff]   ;;  %v985_v13 = vld [vmem:[%s1329_s1 + $0xe0] ss:$8 sps:$4 sm:$0xff]  }
  0x1a   :  { %v989_v14 = vld [vmem:[%s1329_s1 + $0xf4] ss:$8 sps:$4 sm:$0xff]   ;;  %v926_v15 = vld [vmem:[%s1329_s1 + $0x240] ss:$8 sps:$4 sm:$0xff]   ;;  %v991_v17 = vld [vmem:[%s1329_s1 + $0xf0] ss:$8 sps:$4 sm:$0xff]  }
  0x1b   :  { %665 = vmatpush1.bf16.msra.mxu0 %v869_v16  ;;  %v934_v16 = vld [vmem:[%s1329_s1 + $0x254] ss:$8 sps:$4 sm:$0xff]   ;;  %v940_v20 = vld [vmem:[%s1329_s1 + $0x264] ss:$8 sps:$4 sm:$0xff]   ;;  %v944_v23 = vld [vmem:[%s1329_s1 + $0x270] ss:$8 sps:$4 sm:$0xff]  }
  0x1c   :  { %666 = vmatprep.subr.bf16.mxu0 %v870_v18  ;;  %622 = vmatpush1.bf16.msra.mxu1 %v931_v36  ;;  %v932_v18 = vld [vmem:[%s1329_s1 + $0x250] ss:$8 sps:$4 sm:$0xff]   ;;  %v952_v24 = vld [vmem:[%s1329_s1 + $0x284] ss:$8 sps:$4 sm:$0xff]   ;;  %v958_v26 = vld [vmem:[%s1329_s1 + $0x294] ss:$8 sps:$4 sm:$0xff]  }
  0x1d   :  { %623 = vmatprep.subr.bf16.mxu1 %v935_v37  ;;  %v964_v28 = vld [vmem:[%s1329_s1 + $0x2a4] ss:$8 sps:$4 sm:$0xff]   ;;  %v962_v29 = vld [vmem:[%s1329_s1 + $0x2a0] ss:$8 sps:$4 sm:$0xff]  }
  0x1e   :  { %v976_v32 = vld [vmem:[%s1329_s1 + $0x2c4] ss:$8 sps:$4 sm:$0xff]   ;;  %v974_v33 = vld [vmem:[%s1329_s1 + $0x2c0] ss:$8 sps:$4 sm:$0xff]  }
  0x1f   :  { %667 = vmatpush1.bf16.msra.mxu0 %v872_v21  ;;  %v938_v21 = vld [vmem:[%s1329_s1 + $0x260] ss:$8 sps:$4 sm:$0xff]   ;;  %v988_v36 = vld [vmem:[%s1329_s1 + $0x2e4] ss:$8 sps:$4 sm:$0xff]  }
  0x20   :  { %668 = vmatprep.subr.bf16.mxu0 %v873_v22  ;;  %624 = vmatpush1.bf16.msra.mxu1 %v937_v40  ;;  %v946_v22 = vld [vmem:[%s1329_s1 + $0x274] ss:$8 sps:$4 sm:$0xff]   ;;  %v986_v37 = vld [vmem:[%s1329_s1 + $0x2e0] ss:$8 sps:$4 sm:$0xff]   ;;  %v745_v40 = vcombine.low %v1206_v0, %v1206_v0 }
  0x21   :  { %625 = vmatprep.subr.bf16.mxu1 %v941_v41 }
  0x23   :  { %669 = vmatpush1.bf16.msra.mxu0 %v875_v25  ;;  %v950_v25 = vld [vmem:[%s1329_s1 + $0x280] ss:$8 sps:$4 sm:$0xff]  }
  0x24   :  { %670 = vmatprep.subr.bf16.mxu0 %v876_v27  ;;  %626 = vmatpush1.bf16.msra.mxu1 %v943_v44  ;;  %v956_v27 = vld [vmem:[%s1329_s1 + $0x290] ss:$8 sps:$4 sm:$0xff]  }
  0x25   :  { %627 = vmatprep.subr.bf16.mxu1 %v947_v45 }
  0x27   :  { %671 = vmatpush1.bf16.msra.mxu0 %v878_v30  ;;  %v970_v30 = vld [vmem:[%s1329_s1 + $0x2b4] ss:$8 sps:$4 sm:$0xff]  }
  0x28   :  { %672 = vmatprep.subr.bf16.mxu0 %v879_v31  ;;  %628 = vmatpush1.bf16.msra.mxu1 %v949_v48  ;;  %v968_v31 = vld [vmem:[%s1329_s1 + $0x2b0] ss:$8 sps:$4 sm:$0xff]  }
  0x29   :  { %629 = vmatprep.subr.bf16.mxu1 %v953_v49 }
  0x2b   :  { %673 = vmatpush1.bf16.msra.mxu0 %v881_v34  ;;  %v982_v34 = vld [vmem:[%s1329_s1 + $0x2d4] ss:$8 sps:$4 sm:$0xff]  }
  0x2c   :  { %674 = vmatprep.subr.bf16.mxu0 %v882_v35  ;;  %630 = vmatpush1.bf16.msra.mxu1 %v955_v52  ;;  %v980_v35 = vld [vmem:[%s1329_s1 + $0x2d0] ss:$8 sps:$4 sm:$0xff]  }
  0x2d   :  { %631 = vmatprep.subr.bf16.mxu1 %v959_v53 }
  0x2f   :  { %675 = vmatpush1.bf16.msra.mxu0 %v884_v38  ;;  %v996_v38 = vld [vmem:[%s1329_s1 + $0x2f4] ss:$8 sps:$4 sm:$0xff]  }
  0x30   :  { %676 = vmatprep.subr.bf16.mxu0 %v885_v39  ;;  %632 = vmatpush1.bf16.msra.mxu1 %v961_v56  ;;  %v994_v39 = vld [vmem:[%s1329_s1 + $0x2f0] ss:$8 sps:$4 sm:$0xff]  }
  0x31   :  { %633 = vmatprep.subr.bf16.mxu1 %v965_v57 }
  0x33   :  { %677 = vmatpush1.bf16.msra.mxu0 %v887_v42 }
  0x34   :  { %678 = vmatprep.subr.bf16.mxu0 %v888_v43  ;;  %634 = vmatpush1.bf16.msra.mxu1 %v967_v62 }
  0x35   :  { %635 = vmatprep.subr.bf16.mxu1 %v971_v1 }
  0x37   :  { %679 = vmatpush1.bf16.msra.mxu0 %v890_v46 }
  0x38   :  { %680 = vmatprep.subr.bf16.mxu0 %v891_v47  ;;  %636 = vmatpush1.bf16.msra.mxu1 %v973_v5 }
  0x39   :  { %637 = vmatprep.subr.bf16.mxu1 %v977_v6 }
  0x3b   :  { %681 = vmatpush1.bf16.msra.mxu0 %v893_v50 }
  0x3c   :  { %682 = vmatprep.subr.bf16.mxu0 %v894_v51  ;;  %638 = vmatpush1.bf16.msra.mxu1 %v979_v9 }
  0x3d   :  { %639 = vmatprep.subr.bf16.mxu1 %v983_v10 }
  0x3f   :  { %683 = vmatpush1.bf16.msra.mxu0 %v898_v54 }
  0x40   :  { %693 = vmatprep.subr.bf16.mxu0 %v904_v55  ;;  %640 = vmatpush1.bf16.msra.mxu1 %v985_v13 }
  0x41   :  { %641 = vmatprep.subr.bf16.mxu1 %v989_v14 }
  0x42   :  { %685 = vmatmul.mubr.bf16.vlgmr.msra.gmra.mrb[0].mxu0 %v743_v58 }
  0x43   :  { %694 = vmatpush1.bf16.msra.mxu0 %v902_v59  ;;  %725 = vmatprep.mubr.bf16.mxu0 %v746_v2 }
  0x44   :  { %695 = vmatprep.subr.bf16.mxu0 %v910_v61  ;;  %642 = vmatpush1.bf16.msra.mxu1 %v991_v17 }
  0x47   :  { %696 = vmatpush1.bf16.msra.mxu0 %v908_v3  ;;  %644 = vmatmul.mubr.bf16.vlgmr.msra.gmra.mrb[0].mxu1 %v741_v19 }
  0x48   :  { %697 = vmatprep.subr.bf16.mxu0 %v916_v4 }
  0x4b   :  { %698 = vmatpush1.bf16.msra.mxu0 %v914_v7 }
  0x4c   :  { %699 = vmatprep.subr.bf16.mxu0 %v922_v8 }
  0x4f   :  { %700 = vmatpush1.bf16.msra.mxu0 %v920_v11 }
  0x50   :  { %701 = vmatprep.subr.bf16.mxu0 %v928_v12 }
  0x53   :  { %702 = vmatpush1.bf16.msra.mxu0 %v926_v15 }
  0x54   :  { %703 = vmatprep.subr.bf16.mxu0 %v934_v16 }
  0x57   :  { %704 = vmatpush1.bf16.msra.mxu0 %v932_v18 }
  0x58   :  { %705 = vmatprep.subr.bf16.mxu0 %v940_v20 }
  0x5b   :  { %706 = vmatpush1.bf16.msra.mxu0 %v938_v21 }
  0x5c   :  { %707 = vmatprep.subr.bf16.mxu0 %v946_v22 }
  0x5f   :  { %708 = vmatpush1.bf16.msra.mxu0 %v944_v23 }
  0x60   :  { %709 = vmatprep.subr.bf16.mxu0 %v952_v24 }
  0x63   :  { %710 = vmatpush1.bf16.msra.mxu0 %v950_v25 }
  0x64   :  { %711 = vmatprep.subr.bf16.mxu0 %v958_v26 }
  0x67   :  { %712 = vmatpush1.bf16.msra.mxu0 %v956_v27 }
  0x68   :  { %713 = vmatprep.subr.bf16.mxu0 %v964_v28 }
  0x6b   :  { %714 = vmatpush1.bf16.msra.mxu0 %v962_v29 }
  0x6c   :  { %715 = vmatprep.subr.bf16.mxu0 %v970_v30 }
  0x6f   :  { %716 = vmatpush1.bf16.msra.mxu0 %v968_v31 }
  0x70   :  { %717 = vmatprep.subr.bf16.mxu0 %v976_v32 }
  0x73   :  { %718 = vmatpush1.bf16.msra.mxu0 %v974_v33 }
  0x74   :  { %719 = vmatprep.subr.bf16.mxu0 %v982_v34 }
  0x77   :  { %720 = vmatpush1.bf16.msra.mxu0 %v980_v35 }
  0x78   :  { %721 = vmatprep.subr.bf16.mxu0 %v988_v36 }
  0x7b   :  { %722 = vmatpush1.bf16.msra.mxu0 %v986_v37 }
  0x7c   :  { %723 = vmatprep.subr.bf16.mxu0 %v996_v38 }
  0x7f   :  { %724 = vmatpush1.bf16.msra.mxu0 %v994_v39 }
  0x82   :  { %726 = vmatmul.mubr.bf16.vlgmr.msra.gmra.mrb[0].mxu0 %v745_v40 }
 0x11a   :  { %v645_v41 = vpop.f32.mrb[0].mxu1 }
 0x11b   :  { %v647_v42 = vpop.f32.mrb[1].mxu1 }
 0x11c   :  { %v649_v43 = vpop.f32.mrb[2].mxu1 }
 0x11d   :  { %v650_v44 = vpop.f32.mrb[3].mxu1 }
 0x155   :  { %v727_v45 = vpop.f32.mrb[0].mxu0 }
 0x156   :  { %v843_v46 = vadd.f32 %v727_v45, %v645_v41  ;;  %v729_v47 = vpop.f32.mrb[1].mxu0 }
 0x157   :  { %v844_v48 = vadd.f32 %v729_v47, %v647_v42  ;;  %v731_v49 = vpop.f32.mrb[2].mxu0 }
 0x158   :  { %734 = vst [vmem:[%s1331_s2] sm:$0xff] %v843_v46  ;;  %v732_v50 = vpop.f32.mrb[3].mxu0 }
 0x159   :  { %736 = vst.msk [vmem:[%s1331_s2 + $0x8] sm:$0xff] %vm735_vm0, %v844_v48 }

// kernel: _lambda_.55
= control target key start
LH: loop header
LB: loop body
LE: loop exit
PB: predicated region body
PF: predicated region fallthrough
CT: control target
= control target key end

     0   :  { %vm30_vm0 = vcmask 572416   ;;  %s77_s0 = inlined_call_operand.vmem [shape: f32[8,198], index: 0, kind: input, shape index: {}]   ;;  %s78_s1 = inlined_call_operand.vmem [shape: f32[8,198], index: 1, kind: input, shape index: {}]   ;;  %s79_s2 = inlined_call_operand.vmem [shape: f32[8,198], index: 2, kind: output, shape index: {}]  }
   0x1   :  { %v13_v0 = vld [vmem:[%s77_s0] sm:$0xff]  ;;  %v14_v1 = vld [vmem:[%s77_s0 + $0x8] sm:$0xff] }
   0x2   :  { %v15_v2 = vsub.f32 0.0, %v13_v0  ;;  %v16_v3 = vsub.f32 0.0, %v14_v1  ;;  %v11_v10 = vld [vmem:[%s78_s1] sm:$0xff]  ;;  %v12_v11 = vld [vmem:[%s78_s1 + $0x8] sm:$0xff] }
   0x4   :  { %v17_v4 = vmul.f32 1.442695, %v15_v2  ;;  %v19_v5 = vmul.f32 1.442695, %v16_v3 }
   0x6   :  { %36 = vpow2.f32 %v17_v4 }
   0x7   :  { %38 = vpow2.f32 %v19_v5 }
  0x10   :  { %v37_v6 = vpop.eup %36 }
  0x11   :  { %v39_v7 = vpop.eup %38  ;;  %v21_v8 = vadd.f32 1.0, %v37_v6 }
  0x12   :  { %v22_v9 = vadd.f32 1.0, %v39_v7 }
  0x13   :  { %40 = vrcp.f32 %v21_v8 }
  0x14   :  { %42 = vrcp.f32 %v22_v9 }
  0x1d   :  { %v41_v12 = vpop.eup %40 }
  0x1e   :  { %v43_v13 = vpop.eup %42  ;;  %v27_v14 = vmul.f32 %v41_v12, %v11_v10 }
  0x1f   :  { %v28_v15 = vmul.f32 %v43_v13, %v12_v11 }
  0x20   :  { %29 = vst [vmem:[%s79_s2] sm:$0xff] %v27_v14 }
  0x21   :  { %31 = vst.msk [vmem:[%s79_s2 + $0x8] sm:$0xff] %vm30_vm0, %v28_v15 }

</bundles_post_ra>
